<compile_context>
chip_gen: v5e
topology: v5e:2x2
jax: 0.10.0
libtpu: 0.0.40
codegen_flags: <defaults>
</compile_context>

<pallas_src>
import numpy as np
import jax
import jax.numpy as jnp
from jax import lax
from jax.experimental import pallas as pl
from jax.experimental.pallas import tpu as pltpu

NEG_INF = -1e30


def _round_up(x, m):
    return ((x + m - 1) // m) * m


_VMEM_LIMIT_CACHE = None


def _vmem_limit_bytes():
    """Per-generation scoped-VMEM budget: ~3/4 of physical VMEM capacity."""
    global _VMEM_LIMIT_CACHE
    if _VMEM_LIMIT_CACHE is None:
        limit = 48 * 1024 * 1024                       # safe default (v7x has 64 MiB)
        try:
            cap = getattr(pltpu.get_tpu_info(), "vmem_capacity_bytes", None)
            if cap:
                limit = int(cap) * 3 // 4              # ~96 MiB on v5e/v6e, ~48 MiB on v7x
        except Exception:
            pass
        _VMEM_LIMIT_CACHE = limit
    return _VMEM_LIMIT_CACHE


def _pick_row_tile(n, *, bytes_per_row, fixed_bytes, budget, max_tile=512):
    """Largest power-of-two row tile dividing n whose double-buffered per-row blocks
    plus resident (fixed) blocks fit the VMEM budget."""
    for t in (512, 256, 128, 64, 32, 16, 8):
        if t > max_tile or t > n or n % t:
            continue
        if fixed_bytes + 2 * t * bytes_per_row <= budget:
            return t
    return 8 if n % 8 == 0 else n


# ----------------------------------------------------------------------------
# Kernel 1: LSTM recurrence.  Grid = (batch_shards, time_blocks); h/c live in VMEM
# scratch across the (arbitrary) time axis; each batch shard can run on its own
# TensorCore (v7x).  Only h @ W_hh (bf16 MXU, f32 accumulate) stays on the serial path.
# ----------------------------------------------------------------------------
def lstm_forward(pre_gates, w_hh, h0, c0, *, time_block, t_valid, batch_shards=1):
    Tp, Bp, G = pre_gates.shape
    H = h0.shape[-1]
    assert G == 4 * H and Tp % time_block == 0
    assert Bp % (8 * batch_shards) == 0
    Tb = time_block
    n_blocks = Tp // Tb
    Bs = Bp // batch_shards
    needs_mask = t_valid < Tp                 # freeze h/c on padded timesteps
    # Full unroll only while the per-step live set (one (Bs, 4H) f32 gate tile) stays
    # well inside the 64 x 4 KiB vreg file; otherwise fall back to unroll=2.
    unroll = Tb if (Bs * 4 * H * 4) <= 16 * 4096 else 2
    vmem_limit = _vmem_limit_bytes()

    def kernel(pg_ref, whh_ref, h0_ref, c0_ref, out_ref, hN_ref, cN_ref, h_s, c_s):
        tb = pl.program_id(1)

        @pl.when(tb == 0)
        def _():
            h_s[...] = h0_ref[...]
            c_s[...] = c0_ref[...]

        def step(j, carry):
            h, c = carry
            # bf16 x bf16 MXU matmul, f32 accumulation; gate math stays f32.
            gates = pg_ref[j] + jnp.dot(h.astype(jnp.bfloat16), whh_ref[...],
                                        preferred_element_type=jnp.float32)
            # gate columns pre-permuted to [i, f, o, g] -> one contiguous sigmoid push
            sig = jax.nn.sigmoid(gates[:, :3 * H])
            g_g = jnp.tanh(gates[:, 3 * H:])
            i_g = sig[:, 0 * H:1 * H]
            f_g = sig[:, 1 * H:2 * H]
            o_g = sig[:, 2 * H:3 * H]
            c_new = f_g * c + i_g * g_g
            h_new = o_g * jnp.tanh(c_new)
            if needs_mask:
                valid = (tb * Tb + j) < t_valid
                h_new = jnp.where(valid, h_new, h)
                c_new = jnp.where(valid, c_new, c)
            out_ref[j] = h_new
            return (h_new, c_new)

        h_fin, c_fin = lax.fori_loop(0, Tb, step, (h_s[...], c_s[...]), unroll=unroll)
        h_s[...] = h_fin
        c_s[...] = c_fin

        @pl.when(tb == pl.num_programs(1) - 1)
        def _():
            hN_ref[...] = h_s[...]
            cN_ref[...] = c_s[...]

    cost = pl.CostEstimate(
        flops=2 * Tp * Bp * H * 4 * H + 10 * Tp * Bp * H,
        transcendentals=5 * Tp * Bp * H,
        bytes_accessed=(4 * Tp * Bp * 4 * H      # pre-gates (f32)
                        + 2 * H * 4 * H          # W_hh (bf16, resident)
                        + 4 * 4 * Bp * H         # h0/c0/hN/cN
                        + 4 * Tp * Bp * H))      # hidden outputs

    out, hN, cN = pl.pallas_call(
        kernel,
        out_shape=(jax.ShapeDtypeStruct((Tp, Bp, H), jnp.float32),
                   jax.ShapeDtypeStruct((Bp, H), jnp.float32),
                   jax.ShapeDtypeStruct((Bp, H), jnp.float32)),
        grid_spec=pltpu.PrefetchScalarGridSpec(
            num_scalar_prefetch=0,
            grid=(batch_shards, n_blocks),
            in_specs=[
                pl.BlockSpec((Tb, Bs, 4 * H), lambda i, t: (t, i, 0)),  # pre-gates block
                # TODO(synk): on v7x with large H, mark this constant-index resident
                # W_hh block pipeline_mode=pl.Buffered(1) to avoid double-buffering it.
                pl.BlockSpec((H, 4 * H), lambda i, t: (0, 0)),          # W_hh (bf16, resident)
                pl.BlockSpec((Bs, H), lambda i, t: (i, 0)),             # h0 shard
                pl.BlockSpec((Bs, H), lambda i, t: (i, 0)),             # c0 shard
            ],
            out_specs=[
                pl.BlockSpec((Tb, Bs, H), lambda i, t: (t, i, 0)),      # hidden states
                pl.BlockSpec((Bs, H), lambda i, t: (i, 0)),             # final h shard
                pl.BlockSpec((Bs, H), lambda i, t: (i, 0)),             # final c shard
            ],
            scratch_shapes=[pltpu.VMEM((Bs, H), jnp.float32),
                            pltpu.VMEM((Bs, H), jnp.float32)],
        ),
        compiler_params=pltpu.CompilerParams(
            dimension_semantics=("parallel", "arbitrary"),   # shards parallel, time serial
            vmem_limit_bytes=vmem_limit),
        cost_estimate=cost,
    )(pre_gates, w_hh, h0, c0)
    return out, hN, cN


# ----------------------------------------------------------------------------
# Kernel 2: output projection + log_softmax.  Parallel, VMEM-aware row tiles,
# bf16 resident weight, lane-dense padded vocab, batch-first output rows.
# ----------------------------------------------------------------------------
def _head_kernel(h_ref, w_ref, b_ref, o_ref):
    # bf16 x bf16 -> f32 MXU matmul; softmax math in f32 (EUP exp/log).
    logits = jnp.dot(h_ref[...], w_ref[...],
                     preferred_element_type=jnp.float32) + b_ref[...]
    m = jnp.max(logits, axis=-1, keepdims=True)
    lse = m + jnp.log(jnp.sum(jnp.exp(logits - m), axis=-1, keepdims=True))
    o_ref[...] = logits - lse


def head_forward(h_flat, w_out, b_out):
    N, H = h_flat.shape
    Vp = w_out.shape[-1]
    vmem_limit = _vmem_limit_bytes()
    # VMEM-aware row tile: double-buffered bf16 weight + bias (fixed) plus
    # double-buffered (tile_n, H) bf16 input and (tile_n, Vp) f32 output blocks.
    fixed_bytes = 2 * H * Vp * 2 + 2 * Vp * 4
    bytes_per_row = H * 2 + Vp * 4
    tile_n = _pick_row_tile(N, bytes_per_row=bytes_per_row, fixed_bytes=fixed_bytes,
                            budget=int(vmem_limit * 0.8))
    # TODO(synk): for very large vocab (H*Vp weight near the VMEM budget) add a Vp
    # grid axis with a two-pass / running-max log_softmax instead of one full row.
    cost = pl.CostEstimate(flops=2 * N * H * Vp + 5 * N * Vp,
                           transcendentals=N * Vp + N,
                           bytes_accessed=2 * N * H + 2 * H * Vp + 4 * Vp + 4 * N * Vp)
    return pl.pallas_call(
        _head_kernel,
        out_shape=jax.ShapeDtypeStruct((N, Vp), jnp.float32),
        grid_spec=pltpu.PrefetchScalarGridSpec(
            num_scalar_prefetch=0,
            grid=(N // tile_n,),
            in_specs=[pl.BlockSpec((tile_n, H), lambda i: (i, 0)),
                      pl.BlockSpec((H, Vp), lambda i: (0, 0)),
                      pl.BlockSpec((1, Vp), lambda i: (0, 0))],
            out_specs=pl.BlockSpec((tile_n, Vp), lambda i: (i, 0)),
        ),
        compiler_params=pltpu.CompilerParams(
            dimension_semantics=("parallel",),
            vmem_limit_bytes=vmem_limit),
        cost_estimate=cost,
    )(h_flat, w_out, b_out)


# ----------------------------------------------------------------------------
# One-time weight preparation (hoisted out of the per-call jit path).
# ----------------------------------------------------------------------------
def _permute_gate_cols(w):
    # PyTorch gate order along 4H is [i, f, g, o]; reorder to [i, f, o, g] so the
    # three sigmoid gates form one contiguous slab inside the kernel.
    i, f, g, o = jnp.split(w, 4, axis=-1)
    return jnp.concatenate([i, f, o, g], axis=-1)


def preprocess_params(params):
    """Gate permutation, embedding/input-projection fold, vocab padding, bf16 casts."""
    V = params["w_out"].shape[-1]
    Vp = _round_up(V, 128)                                    # lane-dense vocab
    w_ih = _permute_gate_cols(params["w_ih"])
    b_lstm = _permute_gate_cols(params["b_lstm"])
    # Fold the K=E input projection into the embedding table: per-token pre-gates.
    pregate_table = jnp.dot(params["emb"], w_ih,
                            preferred_element_type=jnp.float32) + b_lstm   # (V, 4H) f32
    # Padded vocab columns get a -1e30 bias so they never affect the log_softmax
    # normalizer; they are sliced off after the head.
    w_out = jnp.pad(params["w_out"], ((0, 0), (0, Vp - V))).astype(jnp.bfloat16)
    b_out = jnp.pad(params["b_out"], ((0, 0), (0, Vp - V)),
                    constant_values=NEG_INF).astype(jnp.float32)
    return {
        "pregate_table": pregate_table,                       # (V, 4H)  f32
        "w_hh": _permute_gate_cols(params["w_hh"]).astype(jnp.bfloat16),  # (H, 4H) bf16
        "w_out": w_out,                                       # (H, Vp)  bf16
        "b_out": b_out,                                       # (1, Vp)  f32
    }


# ----------------------------------------------------------------------------
# Full model forward (per-call path).
# ----------------------------------------------------------------------------
def lstm_lm_forward(kparams, x, hidden, *, time_block=None, batch_shards=None):
    h0, c0 = hidden                                   # (1, B, H) each
    B, T = x.shape
    H = h0.shape[-1]
    V = kparams["pregate_table"].shape[0]
    Vp = kparams["w_out"].shape[-1]

    Bp = _round_up(B, 8)                              # full f32 sublane count
    if time_block is None:                            # amortize per-grid-step overhead
        time_block = 8 if T <= 16 else (16 if T <= 64 else 32)
    Tb = time_block
    Tp = _round_up(T, Tb)
    if batch_shards is None:                          # v7x: split batch across the 2 TCs
        batch_shards = 2 if Bp % 16 == 0 else 1

    # Pre-gates via embedding-table gather (input projection already folded in).
    # TODO(synk): the embedding gather itself stays as XLA glue (jnp.take).
    x_tb = jnp.transpose(x)                           # (T, B) tiny int32 transpose
    pre_gates = jnp.take(kparams["pregate_table"], x_tb, axis=0)        # (T, B, 4H)
    pre_gates = jnp.pad(pre_gates, ((0, Tp - T), (0, Bp - B), (0, 0)))

    h0p = jnp.pad(h0[0], ((0, Bp - B), (0, 0)))
    c0p = jnp.pad(c0[0], ((0, Bp - B), (0, 0)))

    out_tbh, hN, cN = lstm_forward(pre_gates, kparams["w_hh"], h0p, c0p,
                                   time_block=Tb, t_valid=T,
                                   batch_shards=batch_shards)

    # Head input: slice off time padding and transpose the small H-wide hidden tensor
    # (never the big V-wide log-prob tensor), so the head emits batch-first output
    # directly. bf16 cast halves the head-input DMA bytes.
    h_bth = jnp.transpose(out_tbh[:T], (1, 0, 2)).astype(jnp.bfloat16)  # (Bp, T, H)
    logp_flat = head_forward(h_bth.reshape(Bp * T, H),
                             kparams["w_out"], kparams["b_out"])
    logp = logp_flat.reshape(Bp, T, Vp)[:B, :, :V]    # (B, T, V) batch_first
    return logp, (hN[:B][None], cN[:B][None])


# Pure-JAX reference (PyTorch gate order, raw f32 weights) for verification.
def reference_forward(params, x, hidden):
    h0, c0 = hidden
    x_emb = jnp.take(params["emb"], x, axis=0)
    H = h0.shape[-1]

    def step(carry, x_t):
        h, c = carry
        gates = x_t @ params["w_ih"] + h @ params["w_hh"] + params["b_lstm"]
        i = jax.nn.sigmoid(gates[:, 0 * H:1 * H])
        f = jax.nn.sigmoid(gates[:, 1 * H:2 * H])
        g = jnp.tanh(gates[:, 2 * H:3 * H])
        o = jax.nn.sigmoid(gates[:, 3 * H:4 * H])
        c = f * c + i * g
        h = o * jnp.tanh(c)
        return (h, c), h

    (hN, cN), out = jax.lax.scan(step, (h0[0], c0[0]),
                                 jnp.transpose(x_emb, (1, 0, 2)))
    out = jnp.transpose(out, (1, 0, 2))
    logits = out @ params["w_out"] + params["b_out"]
    return jax.nn.log_softmax(logits, axis=-1), (hN[None], cN[None])


if __name__ == "__main__":
    # Small shapes consistent with the module defaults.
    NUM_TOKENS, EMB, HID = 64, 32, 256
    B, T, N_LAYERS = 2, 8, 1

    key = jax.random.PRNGKey(0)
    ks = jax.random.split(key, 8)
    kinit = 1.0 / np.sqrt(HID)

    params = {
        # nn.Embedding(num_tokens, emb_size)
        "emb": jax.random.normal(ks[0], (NUM_TOKENS, EMB), jnp.float32),
        # nn.LSTM weights, stored pre-transposed: (in, 4H), gate order i,f,g,o.
        "w_ih": jax.random.uniform(ks[1], (EMB, 4 * HID), jnp.float32, -kinit, kinit),
        "w_hh": jax.random.uniform(ks[2], (HID, 4 * HID), jnp.float32, -kinit, kinit),
        # b_ih + b_hh folded into one bias, kept 2D (1, 4H) for TPU layout.
        "b_lstm": (jax.random.uniform(ks[3], (1, 4 * HID), jnp.float32, -kinit, kinit)
                   + jax.random.uniform(ks[4], (1, 4 * HID), jnp.float32, -kinit, kinit)),
        # nn.Linear(rnn_num_units, num_tokens), pre-transposed to (H, V).
        "w_out": jax.random.uniform(ks[5], (HID, NUM_TOKENS), jnp.float32, -kinit, kinit),
        "b_out": jax.random.uniform(ks[6], (1, NUM_TOKENS), jnp.float32, -kinit, kinit),
    }

    x = jax.random.randint(ks[7], (B, T), 0, NUM_TOKENS, dtype=jnp.int32)
    hidden = (jnp.zeros((N_LAYERS, B, HID), jnp.float32),
              jnp.zeros((N_LAYERS, B, HID), jnp.float32))

    # One-time weight preparation, hoisted out of the per-call path.
    kparams = jax.tree_util.tree_map(jax.block_until_ready, preprocess_params(params))

    fwd = jax.jit(lstm_lm_forward)
    logp, (hN, cN) = jax.block_until_ready(fwd(kparams, x, hidden))

    # Correctness check against a pure-JAX f32 reference (bf16 MXU => looser tolerance).
    logp_ref, (hN_ref, cN_ref) = reference_forward(params, x, hidden)
    np.testing.assert_allclose(np.asarray(logp), np.asarray(logp_ref), atol=3e-2, rtol=3e-2)
    np.testing.assert_allclose(np.asarray(hN), np.asarray(hN_ref), atol=3e-2, rtol=3e-2)
    np.testing.assert_allclose(np.asarray(cN), np.asarray(cN_ref), atol=3e-2, rtol=3e-2)

    assert logp.shape == (B, T, NUM_TOKENS)
    assert hN.shape == (N_LAYERS, B, HID) and cN.shape == (N_LAYERS, B, HID)
    print("KERNEL_OK")
</pallas_src>

<mosaic_0001>
module attributes {stable_mosaic.version = 11 : i64} {
  func.func @_head_kernel(%arg0: i32, %arg1: memref<64x256xbf16, #tpu.memory_space<vmem>>, %arg2: memref<256x128xbf16, #tpu.memory_space<vmem>>, %arg3: memref<1x128xf32, #tpu.memory_space<vmem>>, %arg4: memref<64x128xf32, #tpu.memory_space<vmem>>) attributes {dimension_semantics = [#tpu.dimension_semantics<parallel>], iteration_bounds = array<i64: 1>, scalar_prefetch = 0 : i64, scratch_operands = 0 : i64, tpu.core_type = #tpu.core_type<tc>, window_params = [{transform_indices = @transform_0, window_bounds = array<i64: 64, 256>}, {pipeline_mode = #tpu.pipeline_mode<synchronous>, transform_indices = @transform_1, window_bounds = array<i64: 256, 128>}, {pipeline_mode = #tpu.pipeline_mode<synchronous>, transform_indices = @transform_2, window_bounds = array<i64: 1, 128>}, {transform_indices = @transform_3, window_bounds = array<i64: 64, 128>}]} {
    %c0 = arith.constant 0 : index
    %c0_0 = arith.constant 0 : index
    %0 = vector.load %arg1[%c0, %c0_0] : memref<64x256xbf16, #tpu.memory_space<vmem>>, vector<64x256xbf16>
    %c0_1 = arith.constant 0 : index
    %c0_2 = arith.constant 0 : index
    %1 = vector.load %arg2[%c0_1, %c0_2] : memref<256x128xbf16, #tpu.memory_space<vmem>>, vector<256x128xbf16>
    %cst = arith.constant dense<0.000000e+00> : vector<64x128xf32>
    %2 = tpu.matmul %0, %1, %cst {dimension_numbers = #tpu.dot_dimension_numbers<[1], [0], [0], [1], [0, 0, 1, 1], [], []>} : vector<64x256xbf16>, vector<256x128xbf16>, vector<64x128xf32> -> vector<64x128xf32>
    %c0_3 = arith.constant 0 : index
    %c0_4 = arith.constant 0 : index
    %3 = vector.load %arg3[%c0_3, %c0_4] : memref<1x128xf32, #tpu.memory_space<vmem>>, vector<1x128xf32>
    %4 = vector.broadcast %3 : vector<1x128xf32> to vector<64x128xf32>
    %5 = arith.addf %2, %4 : vector<64x128xf32>
    %cst_5 = arith.constant dense<0xFF800000> : vector<64xf32>
    %6 = vector.multi_reduction <maximumf>, %5, %cst_5 [1] : vector<64x128xf32> to vector<64xf32>
    %7 = vector.shape_cast %6 : vector<64xf32> to vector<64x1xf32>
    %8 = vector.broadcast %7 : vector<64x1xf32> to vector<64x128xf32>
    %9 = arith.subf %5, %8 : vector<64x128xf32>
    %10 = math.exp %9 : vector<64x128xf32>
    %cst_6 = arith.constant dense<0.000000e+00> : vector<64xf32>
    %11 = vector.multi_reduction <add>, %10, %cst_6 [1] : vector<64x128xf32> to vector<64xf32>
    %12 = vector.shape_cast %11 : vector<64xf32> to vector<64x1xf32>
    %13 = math.log %12 : vector<64x1xf32>
    %14 = arith.addf %7, %13 : vector<64x1xf32>
    %15 = vector.broadcast %14 : vector<64x1xf32> to vector<64x128xf32>
    %16 = arith.subf %5, %15 : vector<64x128xf32>
    %c0_7 = arith.constant 0 : index
    %c0_8 = arith.constant 0 : index
    %17 = vector.load %arg4[%c0_7, %c0_8] : memref<64x128xf32, #tpu.memory_space<vmem>>, vector<64x128xf32>
    tpu.vector_store %arg4[%c0_7, %c0_8], %16 {strides = array<i32>} : memref<64x128xf32, #tpu.memory_space<vmem>>, vector<64x128xf32>,
    return
  }
  func.func @transform_0(%arg0: i32) -> (i32, i32) {
    %c0_i32 = arith.constant 0 : i32
    %c0_i32_0 = arith.constant 0 : i32
    return %arg0, %c0_i32 : i32, i32
  }
  func.func @transform_1(%arg0: i32) -> (i32, i32) {
    %c0_i32 = arith.constant 0 : i32
    %c0_i32_0 = arith.constant 0 : i32
    %c0_i32_1 = arith.constant 0 : i32
    return %c0_i32, %c0_i32_0 : i32, i32
  }
  func.func @transform_2(%arg0: i32) -> (i32, i32) {
    %c0_i32 = arith.constant 0 : i32
    %c0_i32_0 = arith.constant 0 : i32
    %c0_i32_1 = arith.constant 0 : i32
    return %c0_i32, %c0_i32_0 : i32, i32
  }
  func.func @transform_3(%arg0: i32) -> (i32, i32) {
    %c0_i32 = arith.constant 0 : i32
    %c0_i32_0 = arith.constant 0 : i32
    return %arg0, %c0_i32 : i32, i32
  }
}

module attributes {stable_mosaic.version = 11 : i64} {
  func.func @kernel(%arg0: i32, %arg1: i32, %arg2: memref<8x8x1024xf32, #tpu.memory_space<vmem>>, %arg3: memref<256x1024xbf16, #tpu.memory_space<vmem>>, %arg4: memref<8x256xf32, #tpu.memory_space<vmem>>, %arg5: memref<8x256xf32, #tpu.memory_space<vmem>>, %arg6: memref<8x8x256xf32, #tpu.memory_space<vmem>>, %arg7: memref<8x256xf32, #tpu.memory_space<vmem>>, %arg8: memref<8x256xf32, #tpu.memory_space<vmem>>, %arg9: memref<8x256xf32, #tpu.memory_space<vmem>>, %arg10: memref<8x256xf32, #tpu.memory_space<vmem>>) attributes {dimension_semantics = [#tpu.dimension_semantics<parallel>, #tpu.dimension_semantics<arbitrary>], iteration_bounds = array<i64: 1, 1>, scalar_prefetch = 0 : i64, scratch_operands = 2 : i64, tpu.core_type = #tpu.core_type<tc>, window_params = [{transform_indices = @transform_0, window_bounds = array<i64: 8, 8, 1024>}, {pipeline_mode = #tpu.pipeline_mode<synchronous>, transform_indices = @transform_1, window_bounds = array<i64: 256, 1024>}, {transform_indices = @transform_2, window_bounds = array<i64: 8, 256>}, {transform_indices = @transform_3, window_bounds = array<i64: 8, 256>}, {transform_indices = @transform_4, window_bounds = array<i64: 8, 8, 256>}, {transform_indices = @transform_5, window_bounds = array<i64: 8, 256>}, {transform_indices = @transform_6, window_bounds = array<i64: 8, 256>}]} {
    %c0_i32 = arith.constant 0 : i32
    %0 = arith.cmpi eq, %arg1, %c0_i32 : i32
    %1 = arith.extui %0 : i1 to i32
    %c0_i32_0 = arith.constant 0 : i32
    %2 = arith.cmpi ne, %1, %c0_i32_0 : i32
    scf.if %2 {
      %c0_74 = arith.constant 0 : index
      %c0_75 = arith.constant 0 : index
      %226 = vector.load %arg4[%c0_74, %c0_75] : memref<8x256xf32, #tpu.memory_space<vmem>>, vector<8x256xf32>
      %c0_76 = arith.constant 0 : index
      %c0_77 = arith.constant 0 : index
      %227 = vector.load %arg9[%c0_76, %c0_77] : memref<8x256xf32, #tpu.memory_space<vmem>>, vector<8x256xf32>
      tpu.vector_store %arg9[%c0_76, %c0_77], %226 {strides = array<i32>} : memref<8x256xf32, #tpu.memory_space<vmem>>, vector<8x256xf32>,
      %c0_78 = arith.constant 0 : index
      %c0_79 = arith.constant 0 : index
      %228 = vector.load %arg5[%c0_78, %c0_79] : memref<8x256xf32, #tpu.memory_space<vmem>>, vector<8x256xf32>
      %c0_80 = arith.constant 0 : index
      %c0_81 = arith.constant 0 : index
      %229 = vector.load %arg10[%c0_80, %c0_81] : memref<8x256xf32, #tpu.memory_space<vmem>>, vector<8x256xf32>
      tpu.vector_store %arg10[%c0_80, %c0_81], %228 {strides = array<i32>} : memref<8x256xf32, #tpu.memory_space<vmem>>, vector<8x256xf32>,
    } else {
    }
    %c0 = arith.constant 0 : index
    %c0_1 = arith.constant 0 : index
    %3 = vector.load %arg9[%c0, %c0_1] : memref<8x256xf32, #tpu.memory_space<vmem>>, vector<8x256xf32>
    %c0_2 = arith.constant 0 : index
    %c0_3 = arith.constant 0 : index
    %4 = vector.load %arg10[%c0_2, %c0_3] : memref<8x256xf32, #tpu.memory_space<vmem>>, vector<8x256xf32>
    %c0_i32_4 = arith.constant 0 : i32
    %5 = arith.index_cast %c0_i32_4 : i32 to index
    %c0_5 = arith.constant 0 : index
    %c0_6 = arith.constant 0 : index
    %6 = vector.load %arg2[%5, %c0_5, %c0_6] : memref<8x8x1024xf32, #tpu.memory_space<vmem>>, vector<1x8x1024xf32>
    %7 = vector.shape_cast %6 : vector<1x8x1024xf32> to vector<8x1024xf32>
    %8 = arith.truncf %3 : vector<8x256xf32> to vector<8x256xbf16>
    %c0_7 = arith.constant 0 : index
    %c0_8 = arith.constant 0 : index
    %9 = vector.load %arg3[%c0_7, %c0_8] : memref<256x1024xbf16, #tpu.memory_space<vmem>>, vector<256x1024xbf16>
    %cst = arith.constant dense<0.000000e+00> : vector<8x1024xf32>
    %10 = tpu.matmul %8, %9, %cst {dimension_numbers = #tpu.dot_dimension_numbers<[1], [0], [0], [1], [0, 0, 1, 1], [], []>} : vector<8x256xbf16>, vector<256x1024xbf16>, vector<8x1024xf32> -> vector<8x1024xf32>
    %11 = arith.addf %7, %10 : vector<8x1024xf32>
    %12 = vector.extract_strided_slice %11 {offsets = [0, 0], sizes = [8, 768], strides = [1, 1]} : vector<8x1024xf32> to vector<8x768xf32>
    %13 = arith.negf %12 : vector<8x768xf32>
    %14 = math.exp %13 : vector<8x768xf32>
    %cst_9 = arith.constant 1.000000e+00 : f32
    %15 = vector.broadcast %cst_9 : f32 to vector<8x768xf32>
    %16 = arith.addf %15, %14 : vector<8x768xf32>
    %17 = arith.divf %15, %16 : vector<8x768xf32>
    %18 = vector.extract_strided_slice %11 {offsets = [0, 768], sizes = [8, 256], strides = [1, 1]} : vector<8x1024xf32> to vector<8x256xf32>
    %19 = math.tanh %18 : vector<8x256xf32>
    %20 = vector.extract_strided_slice %17 {offsets = [0, 0], sizes = [8, 256], strides = [1, 1]} : vector<8x768xf32> to vector<8x256xf32>
    %21 = vector.extract_strided_slice %17 {offsets = [0, 256], sizes = [8, 256], strides = [1, 1]} : vector<8x768xf32> to vector<8x256xf32>
    %22 = vector.extract_strided_slice %17 {offsets = [0, 512], sizes = [8, 256], strides = [1, 1]} : vector<8x768xf32> to vector<8x256xf32>
    %23 = arith.mulf %21, %4 : vector<8x256xf32>
    %24 = arith.mulf %20, %19 : vector<8x256xf32>
    %25 = arith.addf %23, %24 : vector<8x256xf32>
    %26 = math.tanh %25 : vector<8x256xf32>
    %27 = arith.mulf %22, %26 : vector<8x256xf32>
    %28 = arith.index_cast %c0_i32_4 : i32 to index
    %c0_10 = arith.constant 0 : index
    %c0_11 = arith.constant 0 : index
    %29 = vector.load %arg6[%28, %c0_10, %c0_11] : memref<8x8x256xf32, #tpu.memory_space<vmem>>, vector<1x8x256xf32>
    %30 = vector.shape_cast %29 : vector<1x8x256xf32> to vector<8x256xf32>
    %31 = vector.shape_cast %27 : vector<8x256xf32> to vector<1x8x256xf32>
    tpu.vector_store %arg6[%28, %c0_10, %c0_11], %31 {strides = array<i32>} : memref<8x8x256xf32, #tpu.memory_space<vmem>>, vector<1x8x256xf32>,
    %c1_i32 = arith.constant 1 : i32
    %32 = arith.index_cast %c1_i32 : i32 to index
    %c0_12 = arith.constant 0 : index
    %c0_13 = arith.constant 0 : index
    %33 = vector.load %arg2[%32, %c0_12, %c0_13] : memref<8x8x1024xf32, #tpu.memory_space<vmem>>, vector<1x8x1024xf32>
    %34 = vector.shape_cast %33 : vector<1x8x1024xf32> to vector<8x1024xf32>
    %35 = arith.truncf %27 : vector<8x256xf32> to vector<8x256xbf16>
    %c0_14 = arith.constant 0 : index
    %c0_15 = arith.constant 0 : index
    %36 = vector.load %arg3[%c0_14, %c0_15] : memref<256x1024xbf16, #tpu.memory_space<vmem>>, vector<256x1024xbf16>
    %cst_16 = arith.constant dense<0.000000e+00> : vector<8x1024xf32>
    %37 = tpu.matmul %35, %36, %cst_16 {dimension_numbers = #tpu.dot_dimension_numbers<[1], [0], [0], [1], [0, 0, 1, 1], [], []>} : vector<8x256xbf16>, vector<256x1024xbf16>, vector<8x1024xf32> -> vector<8x1024xf32>
    %38 = arith.addf %34, %37 : vector<8x1024xf32>
    %39 = vector.extract_strided_slice %38 {offsets = [0, 0], sizes = [8, 768], strides = [1, 1]} : vector<8x1024xf32> to vector<8x768xf32>
    %40 = arith.negf %39 : vector<8x768xf32>
    %41 = math.exp %40 : vector<8x768xf32>
    %cst_17 = arith.constant 1.000000e+00 : f32
    %42 = vector.broadcast %cst_17 : f32 to vector<8x768xf32>
    %43 = arith.addf %42, %41 : vector<8x768xf32>
    %44 = arith.divf %42, %43 : vector<8x768xf32>
    %45 = vector.extract_strided_slice %38 {offsets = [0, 768], sizes = [8, 256], strides = [1, 1]} : vector<8x1024xf32> to vector<8x256xf32>
    %46 = math.tanh %45 : vector<8x256xf32>
    %47 = vector.extract_strided_slice %44 {offsets = [0, 0], sizes = [8, 256], strides = [1, 1]} : vector<8x768xf32> to vector<8x256xf32>
    %48 = vector.extract_strided_slice %44 {offsets = [0, 256], sizes = [8, 256], strides = [1, 1]} : vector<8x768xf32> to vector<8x256xf32>
    %49 = vector.extract_strided_slice %44 {offsets = [0, 512], sizes = [8, 256], strides = [1, 1]} : vector<8x768xf32> to vector<8x256xf32>
    %50 = arith.mulf %48, %25 : vector<8x256xf32>
    %51 = arith.mulf %47, %46 : vector<8x256xf32>
    %52 = arith.addf %50, %51 : vector<8x256xf32>
    %53 = math.tanh %52 : vector<8x256xf32>
    %54 = arith.mulf %49, %53 : vector<8x256xf32>
    %55 = arith.index_cast %c1_i32 : i32 to index
    %c0_18 = arith.constant 0 : index
    %c0_19 = arith.constant 0 : index
    %56 = vector.load %arg6[%55, %c0_18, %c0_19] : memref<8x8x256xf32, #tpu.memory_space<vmem>>, vector<1x8x256xf32>
    %57 = vector.shape_cast %56 : vector<1x8x256xf32> to vector<8x256xf32>
    %58 = vector.shape_cast %54 : vector<8x256xf32> to vector<1x8x256xf32>
    tpu.vector_store %arg6[%55, %c0_18, %c0_19], %58 {strides = array<i32>} : memref<8x8x256xf32, #tpu.memory_space<vmem>>, vector<1x8x256xf32>,
    %c2_i32 = arith.constant 2 : i32
    %59 = arith.index_cast %c2_i32 : i32 to index
    %c0_20 = arith.constant 0 : index
    %c0_21 = arith.constant 0 : index
    %60 = vector.load %arg2[%59, %c0_20, %c0_21] : memref<8x8x1024xf32, #tpu.memory_space<vmem>>, vector<1x8x1024xf32>
    %61 = vector.shape_cast %60 : vector<1x8x1024xf32> to vector<8x1024xf32>
    %62 = arith.truncf %54 : vector<8x256xf32> to vector<8x256xbf16>
    %c0_22 = arith.constant 0 : index
    %c0_23 = arith.constant 0 : index
    %63 = vector.load %arg3[%c0_22, %c0_23] : memref<256x1024xbf16, #tpu.memory_space<vmem>>, vector<256x1024xbf16>
    %cst_24 = arith.constant dense<0.000000e+00> : vector<8x1024xf32>
    %64 = tpu.matmul %62, %63, %cst_24 {dimension_numbers = #tpu.dot_dimension_numbers<[1], [0], [0], [1], [0, 0, 1, 1], [], []>} : vector<8x256xbf16>, vector<256x1024xbf16>, vector<8x1024xf32> -> vector<8x1024xf32>
    %65 = arith.addf %61, %64 : vector<8x1024xf32>
    %66 = vector.extract_strided_slice %65 {offsets = [0, 0], sizes = [8, 768], strides = [1, 1]} : vector<8x1024xf32> to vector<8x768xf32>
    %67 = arith.negf %66 : vector<8x768xf32>
    %68 = math.exp %67 : vector<8x768xf32>
    %cst_25 = arith.constant 1.000000e+00 : f32
    %69 = vector.broadcast %cst_25 : f32 to vector<8x768xf32>
    %70 = arith.addf %69, %68 : vector<8x768xf32>
    %71 = arith.divf %69, %70 : vector<8x768xf32>
    %72 = vector.extract_strided_slice %65 {offsets = [0, 768], sizes = [8, 256], strides = [1, 1]} : vector<8x1024xf32> to vector<8x256xf32>
    %73 = math.tanh %72 : vector<8x256xf32>
    %74 = vector.extract_strided_slice %71 {offsets = [0, 0], sizes = [8, 256], strides = [1, 1]} : vector<8x768xf32> to vector<8x256xf32>
    %75 = vector.extract_strided_slice %71 {offsets = [0, 256], sizes = [8, 256], strides = [1, 1]} : vector<8x768xf32> to vector<8x256xf32>
    %76 = vector.extract_strided_slice %71 {offsets = [0, 512], sizes = [8, 256], strides = [1, 1]} : vector<8x768xf32> to vector<8x256xf32>
    %77 = arith.mulf %75, %52 : vector<8x256xf32>
    %78 = arith.mulf %74, %73 : vector<8x256xf32>
    %79 = arith.addf %77, %78 : vector<8x256xf32>
    %80 = math.tanh %79 : vector<8x256xf32>
    %81 = arith.mulf %76, %80 : vector<8x256xf32>
    %82 = arith.index_cast %c2_i32 : i32 to index
    %c0_26 = arith.constant 0 : index
    %c0_27 = arith.constant 0 : index
    %83 = vector.load %arg6[%82, %c0_26, %c0_27] : memref<8x8x256xf32, #tpu.memory_space<vmem>>, vector<1x8x256xf32>
    %84 = vector.shape_cast %83 : vector<1x8x256xf32> to vector<8x256xf32>
    %85 = vector.shape_cast %81 : vector<8x256xf32> to vector<1x8x256xf32>
    tpu.vector_store %arg6[%82, %c0_26, %c0_27], %85 {strides = array<i32>} : memref<8x8x256xf32, #tpu.memory_space<vmem>>, vector<1x8x256xf32>,
    %c3_i32 = arith.constant 3 : i32
    %86 = arith.index_cast %c3_i32 : i32 to index
    %c0_28 = arith.constant 0 : index
    %c0_29 = arith.constant 0 : index
    %87 = vector.load %arg2[%86, %c0_28, %c0_29] : memref<8x8x1024xf32, #tpu.memory_space<vmem>>, vector<1x8x1024xf32>
    %88 = vector.shape_cast %87 : vector<1x8x1024xf32> to vector<8x1024xf32>
    %89 = arith.truncf %81 : vector<8x256xf32> to vector<8x256xbf16>
    %c0_30 = arith.constant 0 : index
    %c0_31 = arith.constant 0 : index
    %90 = vector.load %arg3[%c0_30, %c0_31] : memref<256x1024xbf16, #tpu.memory_space<vmem>>, vector<256x1024xbf16>
    %cst_32 = arith.constant dense<0.000000e+00> : vector<8x1024xf32>
    %91 = tpu.matmul %89, %90, %cst_32 {dimension_numbers = #tpu.dot_dimension_numbers<[1], [0], [0], [1], [0, 0, 1, 1], [], []>} : vector<8x256xbf16>, vector<256x1024xbf16>, vector<8x1024xf32> -> vector<8x1024xf32>
    %92 = arith.addf %88, %91 : vector<8x1024xf32>
    %93 = vector.extract_strided_slice %92 {offsets = [0, 0], sizes = [8, 768], strides = [1, 1]} : vector<8x1024xf32> to vector<8x768xf32>
    %94 = arith.negf %93 : vector<8x768xf32>
    %95 = math.exp %94 : vector<8x768xf32>
    %cst_33 = arith.constant 1.000000e+00 : f32
    %96 = vector.broadcast %cst_33 : f32 to vector<8x768xf32>
    %97 = arith.addf %96, %95 : vector<8x768xf32>
    %98 = arith.divf %96, %97 : vector<8x768xf32>
    %99 = vector.extract_strided_slice %92 {offsets = [0, 768], sizes = [8, 256], strides = [1, 1]} : vector<8x1024xf32> to vector<8x256xf32>
    %100 = math.tanh %99 : vector<8x256xf32>
    %101 = vector.extract_strided_slice %98 {offsets = [0, 0], sizes = [8, 256], strides = [1, 1]} : vector<8x768xf32> to vector<8x256xf32>
    %102 = vector.extract_strided_slice %98 {offsets = [0, 256], sizes = [8, 256], strides = [1, 1]} : vector<8x768xf32> to vector<8x256xf32>
    %103 = vector.extract_strided_slice %98 {offsets = [0, 512], sizes = [8, 256], strides = [1, 1]} : vector<8x768xf32> to vector<8x256xf32>
    %104 = arith.mulf %102, %79 : vector<8x256xf32>
    %105 = arith.mulf %101, %100 : vector<8x256xf32>
    %106 = arith.addf %104, %105 : vector<8x256xf32>
    %107 = math.tanh %106 : vector<8x256xf32>
    %108 = arith.mulf %103, %107 : vector<8x256xf32>
    %109 = arith.index_cast %c3_i32 : i32 to index
    %c0_34 = arith.constant 0 : index
    %c0_35 = arith.constant 0 : index
    %110 = vector.load %arg6[%109, %c0_34, %c0_35] : memref<8x8x256xf32, #tpu.memory_space<vmem>>, vector<1x8x256xf32>
    %111 = vector.shape_cast %110 : vector<1x8x256xf32> to vector<8x256xf32>
    %112 = vector.shape_cast %108 : vector<8x256xf32> to vector<1x8x256xf32>
    tpu.vector_store %arg6[%109, %c0_34, %c0_35], %112 {strides = array<i32>} : memref<8x8x256xf32, #tpu.memory_space<vmem>>, vector<1x8x256xf32>,
    %c4_i32 = arith.constant 4 : i32
    %113 = arith.index_cast %c4_i32 : i32 to index
    %c0_36 = arith.constant 0 : index
    %c0_37 = arith.constant 0 : index
    %114 = vector.load %arg2[%113, %c0_36, %c0_37] : memref<8x8x1024xf32, #tpu.memory_space<vmem>>, vector<1x8x1024xf32>
    %115 = vector.shape_cast %114 : vector<1x8x1024xf32> to vector<8x1024xf32>
    %116 = arith.truncf %108 : vector<8x256xf32> to vector<8x256xbf16>
    %c0_38 = arith.constant 0 : index
    %c0_39 = arith.constant 0 : index
    %117 = vector.load %arg3[%c0_38, %c0_39] : memref<256x1024xbf16, #tpu.memory_space<vmem>>, vector<256x1024xbf16>
    %cst_40 = arith.constant dense<0.000000e+00> : vector<8x1024xf32>
    %118 = tpu.matmul %116, %117, %cst_40 {dimension_numbers = #tpu.dot_dimension_numbers<[1], [0], [0], [1], [0, 0, 1, 1], [], []>} : vector<8x256xbf16>, vector<256x1024xbf16>, vector<8x1024xf32> -> vector<8x1024xf32>
    %119 = arith.addf %115, %118 : vector<8x1024xf32>
    %120 = vector.extract_strided_slice %119 {offsets = [0, 0], sizes = [8, 768], strides = [1, 1]} : vector<8x1024xf32> to vector<8x768xf32>
    %121 = arith.negf %120 : vector<8x768xf32>
    %122 = math.exp %121 : vector<8x768xf32>
    %cst_41 = arith.constant 1.000000e+00 : f32
    %123 = vector.broadcast %cst_41 : f32 to vector<8x768xf32>
    %124 = arith.addf %123, %122 : vector<8x768xf32>
    %125 = arith.divf %123, %124 : vector<8x768xf32>
    %126 = vector.extract_strided_slice %119 {offsets = [0, 768], sizes = [8, 256], strides = [1, 1]} : vector<8x1024xf32> to vector<8x256xf32>
    %127 = math.tanh %126 : vector<8x256xf32>
    %128 = vector.extract_strided_slice %125 {offsets = [0, 0], sizes = [8, 256], strides = [1, 1]} : vector<8x768xf32> to vector<8x256xf32>
    %129 = vector.extract_strided_slice %125 {offsets = [0, 256], sizes = [8, 256], strides = [1, 1]} : vector<8x768xf32> to vector<8x256xf32>
    %130 = vector.extract_strided_slice %125 {offsets = [0, 512], sizes = [8, 256], strides = [1, 1]} : vector<8x768xf32> to vector<8x256xf32>
    %131 = arith.mulf %129, %106 : vector<8x256xf32>
    %132 = arith.mulf %128, %127 : vector<8x256xf32>
    %133 = arith.addf %131, %132 : vector<8x256xf32>
    %134 = math.tanh %133 : vector<8x256xf32>
    %135 = arith.mulf %130, %134 : vector<8x256xf32>
    %136 = arith.index_cast %c4_i32 : i32 to index
    %c0_42 = arith.constant 0 : index
    %c0_43 = arith.constant 0 : index
    %137 = vector.load %arg6[%136, %c0_42, %c0_43] : memref<8x8x256xf32, #tpu.memory_space<vmem>>, vector<1x8x256xf32>
    %138 = vector.shape_cast %137 : vector<1x8x256xf32> to vector<8x256xf32>
    %139 = vector.shape_cast %135 : vector<8x256xf32> to vector<1x8x256xf32>
    tpu.vector_store %arg6[%136, %c0_42, %c0_43], %139 {strides = array<i32>} : memref<8x8x256xf32, #tpu.memory_space<vmem>>, vector<1x8x256xf32>,
    %c5_i32 = arith.constant 5 : i32
    %140 = arith.index_cast %c5_i32 : i32 to index
    %c0_44 = arith.constant 0 : index
    %c0_45 = arith.constant 0 : index
    %141 = vector.load %arg2[%140, %c0_44, %c0_45] : memref<8x8x1024xf32, #tpu.memory_space<vmem>>, vector<1x8x1024xf32>
    %142 = vector.shape_cast %141 : vector<1x8x1024xf32> to vector<8x1024xf32>
    %143 = arith.truncf %135 : vector<8x256xf32> to vector<8x256xbf16>
    %c0_46 = arith.constant 0 : index
    %c0_47 = arith.constant 0 : index
    %144 = vector.load %arg3[%c0_46, %c0_47] : memref<256x1024xbf16, #tpu.memory_space<vmem>>, vector<256x1024xbf16>
    %cst_48 = arith.constant dense<0.000000e+00> : vector<8x1024xf32>
    %145 = tpu.matmul %143, %144, %cst_48 {dimension_numbers = #tpu.dot_dimension_numbers<[1], [0], [0], [1], [0, 0, 1, 1], [], []>} : vector<8x256xbf16>, vector<256x1024xbf16>, vector<8x1024xf32> -> vector<8x1024xf32>
    %146 = arith.addf %142, %145 : vector<8x1024xf32>
    %147 = vector.extract_strided_slice %146 {offsets = [0, 0], sizes = [8, 768], strides = [1, 1]} : vector<8x1024xf32> to vector<8x768xf32>
    %148 = arith.negf %147 : vector<8x768xf32>
    %149 = math.exp %148 : vector<8x768xf32>
    %cst_49 = arith.constant 1.000000e+00 : f32
    %150 = vector.broadcast %cst_49 : f32 to vector<8x768xf32>
    %151 = arith.addf %150, %149 : vector<8x768xf32>
    %152 = arith.divf %150, %151 : vector<8x768xf32>
    %153 = vector.extract_strided_slice %146 {offsets = [0, 768], sizes = [8, 256], strides = [1, 1]} : vector<8x1024xf32> to vector<8x256xf32>
    %154 = math.tanh %153 : vector<8x256xf32>
    %155 = vector.extract_strided_slice %152 {offsets = [0, 0], sizes = [8, 256], strides = [1, 1]} : vector<8x768xf32> to vector<8x256xf32>
    %156 = vector.extract_strided_slice %152 {offsets = [0, 256], sizes = [8, 256], strides = [1, 1]} : vector<8x768xf32> to vector<8x256xf32>
    %157 = vector.extract_strided_slice %152 {offsets = [0, 512], sizes = [8, 256], strides = [1, 1]} : vector<8x768xf32> to vector<8x256xf32>
    %158 = arith.mulf %156, %133 : vector<8x256xf32>
    %159 = arith.mulf %155, %154 : vector<8x256xf32>
    %160 = arith.addf %158, %159 : vector<8x256xf32>
    %161 = math.tanh %160 : vector<8x256xf32>
    %162 = arith.mulf %157, %161 : vector<8x256xf32>
    %163 = arith.index_cast %c5_i32 : i32 to index
    %c0_50 = arith.constant 0 : index
    %c0_51 = arith.constant 0 : index
    %164 = vector.load %arg6[%163, %c0_50, %c0_51] : memref<8x8x256xf32, #tpu.memory_space<vmem>>, vector<1x8x256xf32>
    %165 = vector.shape_cast %164 : vector<1x8x256xf32> to vector<8x256xf32>
    %166 = vector.shape_cast %162 : vector<8x256xf32> to vector<1x8x256xf32>
    tpu.vector_store %arg6[%163, %c0_50, %c0_51], %166 {strides = array<i32>} : memref<8x8x256xf32, #tpu.memory_space<vmem>>, vector<1x8x256xf32>,
    %c6_i32 = arith.constant 6 : i32
    %167 = arith.index_cast %c6_i32 : i32 to index
    %c0_52 = arith.constant 0 : index
    %c0_53 = arith.constant 0 : index
    %168 = vector.load %arg2[%167, %c0_52, %c0_53] : memref<8x8x1024xf32, #tpu.memory_space<vmem>>, vector<1x8x1024xf32>
    %169 = vector.shape_cast %168 : vector<1x8x1024xf32> to vector<8x1024xf32>
    %170 = arith.truncf %162 : vector<8x256xf32> to vector<8x256xbf16>
    %c0_54 = arith.constant 0 : index
    %c0_55 = arith.constant 0 : index
    %171 = vector.load %arg3[%c0_54, %c0_55] : memref<256x1024xbf16, #tpu.memory_space<vmem>>, vector<256x1024xbf16>
    %cst_56 = arith.constant dense<0.000000e+00> : vector<8x1024xf32>
    %172 = tpu.matmul %170, %171, %cst_56 {dimension_numbers = #tpu.dot_dimension_numbers<[1], [0], [0], [1], [0, 0, 1, 1], [], []>} : vector<8x256xbf16>, vector<256x1024xbf16>, vector<8x1024xf32> -> vector<8x1024xf32>
    %173 = arith.addf %169, %172 : vector<8x1024xf32>
    %174 = vector.extract_strided_slice %173 {offsets = [0, 0], sizes = [8, 768], strides = [1, 1]} : vector<8x1024xf32> to vector<8x768xf32>
    %175 = arith.negf %174 : vector<8x768xf32>
    %176 = math.exp %175 : vector<8x768xf32>
    %cst_57 = arith.constant 1.000000e+00 : f32
    %177 = vector.broadcast %cst_57 : f32 to vector<8x768xf32>
    %178 = arith.addf %177, %176 : vector<8x768xf32>
    %179 = arith.divf %177, %178 : vector<8x768xf32>
    %180 = vector.extract_strided_slice %173 {offsets = [0, 768], sizes = [8, 256], strides = [1, 1]} : vector<8x1024xf32> to vector<8x256xf32>
    %181 = math.tanh %180 : vector<8x256xf32>
    %182 = vector.extract_strided_slice %179 {offsets = [0, 0], sizes = [8, 256], strides = [1, 1]} : vector<8x768xf32> to vector<8x256xf32>
    %183 = vector.extract_strided_slice %179 {offsets = [0, 256], sizes = [8, 256], strides = [1, 1]} : vector<8x768xf32> to vector<8x256xf32>
    %184 = vector.extract_strided_slice %179 {offsets = [0, 512], sizes = [8, 256], strides = [1, 1]} : vector<8x768xf32> to vector<8x256xf32>
    %185 = arith.mulf %183, %160 : vector<8x256xf32>
    %186 = arith.mulf %182, %181 : vector<8x256xf32>
    %187 = arith.addf %185, %186 : vector<8x256xf32>
    %188 = math.tanh %187 : vector<8x256xf32>
    %189 = arith.mulf %184, %188 : vector<8x256xf32>
    %190 = arith.index_cast %c6_i32 : i32 to index
    %c0_58 = arith.constant 0 : index
    %c0_59 = arith.constant 0 : index
    %191 = vector.load %arg6[%190, %c0_58, %c0_59] : memref<8x8x256xf32, #tpu.memory_space<vmem>>, vector<1x8x256xf32>
    %192 = vector.shape_cast %191 : vector<1x8x256xf32> to vector<8x256xf32>
    %193 = vector.shape_cast %189 : vector<8x256xf32> to vector<1x8x256xf32>
    tpu.vector_store %arg6[%190, %c0_58, %c0_59], %193 {strides = array<i32>} : memref<8x8x256xf32, #tpu.memory_space<vmem>>, vector<1x8x256xf32>,
    %c7_i32 = arith.constant 7 : i32
    %194 = arith.index_cast %c7_i32 : i32 to index
    %c0_60 = arith.constant 0 : index
    %c0_61 = arith.constant 0 : index
    %195 = vector.load %arg2[%194, %c0_60, %c0_61] : memref<8x8x1024xf32, #tpu.memory_space<vmem>>, vector<1x8x1024xf32>
    %196 = vector.shape_cast %195 : vector<1x8x1024xf32> to vector<8x1024xf32>
    %197 = arith.truncf %189 : vector<8x256xf32> to vector<8x256xbf16>
    %c0_62 = arith.constant 0 : index
    %c0_63 = arith.constant 0 : index
    %198 = vector.load %arg3[%c0_62, %c0_63] : memref<256x1024xbf16, #tpu.memory_space<vmem>>, vector<256x1024xbf16>
    %cst_64 = arith.constant dense<0.000000e+00> : vector<8x1024xf32>
    %199 = tpu.matmul %197, %198, %cst_64 {dimension_numbers = #tpu.dot_dimension_numbers<[1], [0], [0], [1], [0, 0, 1, 1], [], []>} : vector<8x256xbf16>, vector<256x1024xbf16>, vector<8x1024xf32> -> vector<8x1024xf32>
    %200 = arith.addf %196, %199 : vector<8x1024xf32>
    %201 = vector.extract_strided_slice %200 {offsets = [0, 0], sizes = [8, 768], strides = [1, 1]} : vector<8x1024xf32> to vector<8x768xf32>
    %202 = arith.negf %201 : vector<8x768xf32>
    %203 = math.exp %202 : vector<8x768xf32>
    %cst_65 = arith.constant 1.000000e+00 : f32
    %204 = vector.broadcast %cst_65 : f32 to vector<8x768xf32>
    %205 = arith.addf %204, %203 : vector<8x768xf32>
    %206 = arith.divf %204, %205 : vector<8x768xf32>
    %207 = vector.extract_strided_slice %200 {offsets = [0, 768], sizes = [8, 256], strides = [1, 1]} : vector<8x1024xf32> to vector<8x256xf32>
    %208 = math.tanh %207 : vector<8x256xf32>
    %209 = vector.extract_strided_slice %206 {offsets = [0, 0], sizes = [8, 256], strides = [1, 1]} : vector<8x768xf32> to vector<8x256xf32>
    %210 = vector.extract_strided_slice %206 {offsets = [0, 256], sizes = [8, 256], strides = [1, 1]} : vector<8x768xf32> to vector<8x256xf32>
    %211 = vector.extract_strided_slice %206 {offsets = [0, 512], sizes = [8, 256], strides = [1, 1]} : vector<8x768xf32> to vector<8x256xf32>
    %212 = arith.mulf %210, %187 : vector<8x256xf32>
    %213 = arith.mulf %209, %208 : vector<8x256xf32>
    %214 = arith.addf %212, %213 : vector<8x256xf32>
    %215 = math.tanh %214 : vector<8x256xf32>
    %216 = arith.mulf %211, %215 : vector<8x256xf32>
    %217 = arith.index_cast %c7_i32 : i32 to index
    %c0_66 = arith.constant 0 : index
    %c0_67 = arith.constant 0 : index
    %218 = vector.load %arg6[%217, %c0_66, %c0_67] : memref<8x8x256xf32, #tpu.memory_space<vmem>>, vector<1x8x256xf32>
    %219 = vector.shape_cast %218 : vector<1x8x256xf32> to vector<8x256xf32>
    %220 = vector.shape_cast %216 : vector<8x256xf32> to vector<1x8x256xf32>
    tpu.vector_store %arg6[%217, %c0_66, %c0_67], %220 {strides = array<i32>} : memref<8x8x256xf32, #tpu.memory_space<vmem>>, vector<1x8x256xf32>,
    %c8_i32 = arith.constant 8 : i32
    %c0_68 = arith.constant 0 : index
    %c0_69 = arith.constant 0 : index
    %221 = vector.load %arg9[%c0_68, %c0_69] : memref<8x256xf32, #tpu.memory_space<vmem>>, vector<8x256xf32>
    tpu.vector_store %arg9[%c0_68, %c0_69], %216 {strides = array<i32>} : memref<8x256xf32, #tpu.memory_space<vmem>>, vector<8x256xf32>,
    %c0_70 = arith.constant 0 : index
    %c0_71 = arith.constant 0 : index
    %222 = vector.load %arg10[%c0_70, %c0_71] : memref<8x256xf32, #tpu.memory_space<vmem>>, vector<8x256xf32>
    tpu.vector_store %arg10[%c0_70, %c0_71], %214 {strides = array<i32>} : memref<8x256xf32, #tpu.memory_space<vmem>>, vector<8x256xf32>,
    %c0_i32_72 = arith.constant 0 : i32
    %223 = arith.cmpi eq, %arg1, %c0_i32_72 : i32
    %224 = arith.extui %223 : i1 to i32
    %c0_i32_73 = arith.constant 0 : i32
    %225 = arith.cmpi ne, %224, %c0_i32_73 : i32
    scf.if %225 {
      %c0_74 = arith.constant 0 : index
      %c0_75 = arith.constant 0 : index
      %226 = vector.load %arg9[%c0_74, %c0_75] : memref<8x256xf32, #tpu.memory_space<vmem>>, vector<8x256xf32>
      %c0_76 = arith.constant 0 : index
      %c0_77 = arith.constant 0 : index
      %227 = vector.load %arg7[%c0_76, %c0_77] : memref<8x256xf32, #tpu.memory_space<vmem>>, vector<8x256xf32>
      tpu.vector_store %arg7[%c0_76, %c0_77], %226 {strides = array<i32>} : memref<8x256xf32, #tpu.memory_space<vmem>>, vector<8x256xf32>,
      %c0_78 = arith.constant 0 : index
      %c0_79 = arith.constant 0 : index
      %228 = vector.load %arg10[%c0_78, %c0_79] : memref<8x256xf32, #tpu.memory_space<vmem>>, vector<8x256xf32>
      %c0_80 = arith.constant 0 : index
      %c0_81 = arith.constant 0 : index
      %229 = vector.load %arg8[%c0_80, %c0_81] : memref<8x256xf32, #tpu.memory_space<vmem>>, vector<8x256xf32>
      tpu.vector_store %arg8[%c0_80, %c0_81], %228 {strides = array<i32>} : memref<8x256xf32, #tpu.memory_space<vmem>>, vector<8x256xf32>,
    } else {
    }
    return
  }
  func.func @transform_0(%arg0: i32, %arg1: i32) -> (i32, i32, i32) {
    %c0_i32 = arith.constant 0 : i32
    %c0_i32_0 = arith.constant 0 : i32
    return %arg1, %arg0, %c0_i32 : i32, i32, i32
  }
  func.func @transform_1(%arg0: i32, %arg1: i32) -> (i32, i32) {
    %c0_i32 = arith.constant 0 : i32
    %c0_i32_0 = arith.constant 0 : i32
    %c0_i32_1 = arith.constant 0 : i32
    return %c0_i32, %c0_i32_0 : i32, i32
  }
  func.func @transform_2(%arg0: i32, %arg1: i32) -> (i32, i32) {
    %c0_i32 = arith.constant 0 : i32
    %c0_i32_0 = arith.constant 0 : i32
    return %arg0, %c0_i32 : i32, i32
  }
  func.func @transform_3(%arg0: i32, %arg1: i32) -> (i32, i32) {
    %c0_i32 = arith.constant 0 : i32
    %c0_i32_0 = arith.constant 0 : i32
    return %arg0, %c0_i32 : i32, i32
  }
  func.func @transform_4(%arg0: i32, %arg1: i32) -> (i32, i32, i32) {
    %c0_i32 = arith.constant 0 : i32
    %c0_i32_0 = arith.constant 0 : i32
    return %arg1, %arg0, %c0_i32 : i32, i32, i32
  }
  func.func @transform_5(%arg0: i32, %arg1: i32) -> (i32, i32) {
    %c0_i32 = arith.constant 0 : i32
    %c0_i32_0 = arith.constant 0 : i32
    return %arg0, %c0_i32 : i32, i32
  }
  func.func @transform_6(%arg0: i32, %arg1: i32) -> (i32, i32) {
    %c0_i32 = arith.constant 0 : i32
    %c0_i32_0 = arith.constant 0 : i32
    return %arg0, %c0_i32 : i32, i32
  }
}

</mosaic_0001>

<bundles_post_ra>
// kernel: lstm_lm_forward.3
= control target key start
LH: loop header
LB: loop body
LE: loop exit
PB: predicated region body
PF: predicated region fallthrough
CT: control target
= control target key end

     0   :  { %s728_s1 = inlined_call_operand.vmem [shape: bf16[256,128], index: 1, kind: input, shape index: {}]   ;;  %s729_s2 = inlined_call_operand.vmem [shape: f32[1,128], index: 2, kind: input, shape index: {}]   ;;  %s730_s0 = inlined_call_operand.vmem [shape: bf16[64,256], index: 0, kind: input, shape index: {}]   ;;  %s731_s3 = inlined_call_operand.vmem [shape: f32[64,128], index: 3, kind: output, shape index: {}]  }
   0x1   :  { %v463_v0 = vld [vmem:[%s728_s1 + $0x38] sm:$0xff]  ;;  %v462_v2 = vld [vmem:[%s728_s1 + $0x30] sm:$0xff]  ;;  %v461_v4 = vld [vmem:[%s728_s1 + $0x28] sm:$0xff] }
   0x2   :  { %v471_v1 = vld [vmem:[%s728_s1 + $0x78] sm:$0xff]  ;;  %194 = vmatpush.bf16.msra.mxu0 %v463_v0  ;;  %472 = vmatpush.bf16.msra.mxu2 %v463_v0  ;;  %v470_v3 = vld [vmem:[%s728_s1 + $0x70] sm:$0xff]  ;;  %v469_v5 = vld [vmem:[%s728_s1 + $0x68] sm:$0xff] }
   0x3   :  { %223 = vmatpush.bf16.msra.mxu1 %v471_v1  ;;  %480 = vmatpush.bf16.msra.mxu3 %v471_v1  ;;  %v460_v6 = vld [vmem:[%s728_s1 + $0x20] sm:$0xff]  ;;  %v459_v8 = vld [vmem:[%s728_s1 + $0x18] sm:$0xff]  ;;  %v458_v10 = vld [vmem:[%s728_s1 + $0x10] sm:$0xff] }
   0x4   :  { %v468_v7 = vld [vmem:[%s728_s1 + $0x60] sm:$0xff]  ;;  %v467_v9 = vld [vmem:[%s728_s1 + $0x58] sm:$0xff]  ;;  %v466_v11 = vld [vmem:[%s728_s1 + $0x50] sm:$0xff] }
   0x5   :  { %v457_v12 = vld [vmem:[%s728_s1 + $0x8] sm:$0xff]  ;;  %v456_v14 = vld [vmem:[%s728_s1] sm:$0xff]  ;;  %v362_v28 = vld [vmem:[%s730_s0 + $0x10] sm:$0xf] }
   0x6   :  { %195 = vmatpush.bf16.msra.mxu0 %v462_v2  ;;  %473 = vmatpush.bf16.msra.mxu2 %v462_v2  ;;  %v465_v13 = vld [vmem:[%s728_s1 + $0x48] sm:$0xff]  ;;  %v464_v15 = vld [vmem:[%s728_s1 + $0x40] sm:$0xff]  ;;  %v451_v29 = vld [vmem:[%s730_s0 + $0x14] sm:$0xf0] }
   0x7   :  { %224 = vmatpush.bf16.msra.mxu1 %v470_v3  ;;  %481 = vmatpush.bf16.msra.mxu3 %v470_v3  ;;  %v354_v16 = vld [vmem:[%s730_s0] sm:$0xf]  ;;  %v449_v17 = vld [vmem:[%s730_s0 + $0x4] sm:$0xf0]  ;;  %v448_v20 = vld [vmem:[%s730_s0 + $0x4] sm:$0xf]  ;;  %v363_v36 = vor.u32 %v451_v29, %v362_v28 }
   0x8   :  { %v370_v18 = vld [vmem:[%s730_s0 + $0x20] sm:$0xf]  ;;  %v453_v19 = vld [vmem:[%s730_s0 + $0x24] sm:$0xf0]  ;;  %v356_v21 = vld [vmem:[%s730_s0 + $0x8] sm:$0xf0]  ;;  %v355_v24 = vor.u32 %v449_v17, %v354_v16 }
   0x9   :  { %v452_v22 = vld [vmem:[%s730_s0 + $0x24] sm:$0xf]  ;;  %v372_v23 = vld [vmem:[%s730_s0 + $0x28] sm:$0xf0]  ;;  %v371_v25 = vor.u32 %v453_v19, %v370_v18  ;;  %v359_v26 = vor.u32 %v448_v20, %v356_v21  ;;  %v378_v30 = vld [vmem:[%s730_s0 + $0x30] sm:$0xf] }
   0xa   :  { %196 = vmatpush.bf16.msra.mxu0 %v461_v4  ;;  %474 = vmatpush.bf16.msra.mxu2 %v461_v4  ;;  %v375_v27 = vor.u32 %v452_v22, %v372_v23  ;;  %v455_v31 = vld [vmem:[%s730_s0 + $0x34] sm:$0xf0]  ;;  %v450_v32 = vld [vmem:[%s730_s0 + $0x14] sm:$0xf]  ;;  %v364_v33 = vld [vmem:[%s730_s0 + $0x18] sm:$0xf0] }
   0xb   :  { %225 = vmatpush.bf16.msra.mxu1 %v469_v5  ;;  %482 = vmatpush.bf16.msra.mxu3 %v469_v5  ;;  %v454_v34 = vld [vmem:[%s730_s0 + $0x34] sm:$0xf]  ;;  %v380_v35 = vld [vmem:[%s730_s0 + $0x38] sm:$0xf0]  ;;  %v379_v37 = vor.u32 %v455_v31, %v378_v30  ;;  %v367_v38 = vor.u32 %v450_v32, %v364_v33  ;;  %v488_v40 = vld [vmem:[%s729_s2] ss:$0 sm:$0xff] }
   0xc   :  { %v383_v39 = vor.u32 %v454_v34, %v380_v35 }
   0xe   :  { %197 = vmatpush.bf16.msra.mxu0 %v460_v6  ;;  %475 = vmatpush.bf16.msra.mxu2 %v460_v6 }
   0xf   :  { %226 = vmatpush.bf16.msra.mxu1 %v468_v7  ;;  %483 = vmatpush.bf16.msra.mxu3 %v468_v7 }
  0x12   :  { %198 = vmatpush.bf16.msra.mxu0 %v459_v8  ;;  %476 = vmatpush.bf16.msra.mxu2 %v459_v8 }
  0x13   :  { %227 = vmatpush.bf16.msra.mxu1 %v467_v9  ;;  %484 = vmatpush.bf16.msra.mxu3 %v467_v9 }
  0x16   :  { %199 = vmatpush.bf16.msra.mxu0 %v458_v10  ;;  %477 = vmatpush.bf16.msra.mxu2 %v458_v10 }
  0x17   :  { %228 = vmatpush.bf16.msra.mxu1 %v466_v11  ;;  %485 = vmatpush.bf16.msra.mxu3 %v466_v11 }
  0x1a   :  { %200 = vmatpush.bf16.msra.mxu0 %v457_v12  ;;  %478 = vmatpush.bf16.msra.mxu2 %v457_v12 }
  0x1b   :  { %229 = vmatpush.bf16.msra.mxu1 %v465_v13  ;;  %486 = vmatpush.bf16.msra.mxu3 %v465_v13 }
  0x1e   :  { %201 = vmatpush.bf16.msra.mxu0 %v456_v14  ;;  %479 = vmatpush.bf16.msra.mxu2 %v456_v14 }
  0x1f   :  { %230 = vmatpush.bf16.msra.mxu1 %v464_v15  ;;  %487 = vmatpush.bf16.msra.mxu3 %v464_v15 }
  0x21   :  { %202 = vmatmul.bf16.vlgmr.msra.gmra.mxu0 %v355_v24  ;;  %212 = vmatmul.bf16.vlgmr.msra.gmra.mxu2 %v371_v25 }
  0x22   :  { %231 = vmatmul.bf16.vlgmr.msra.gmra.mxu1 %v359_v26  ;;  %241 = vmatmul.bf16.vlgmr.msra.gmra.mxu3 %v375_v27 }
  0x31   :  { %207 = vmatmul.bf16.gmra.mxu0 %v363_v36  ;;  %217 = vmatmul.bf16.gmra.mxu2 %v379_v37 }
  0x32   :  { %236 = vmatmul.bf16.gmra.mxu1 %v367_v38  ;;  %246 = vmatmul.bf16.gmra.mxu3 %v383_v39 }
  0x9e   :  { %v203_v41 = vpop.f32.mrf.mxu0 }
  0x9f   :  { %v204_v42 = vadd.f32 %v488_v40, %v203_v41  ;;  %v232_v43 = vpop.f32.mrf.mxu1 }
  0xa1   :  { %v640_v44 = vadd.f32 %v232_v43, %v204_v42 }
  0xa3   :  { %252 = vmax.xlane.f32.xlu0 %v640_v44 }
  0xa4   :  { %v213_v45 = vpop.f32.mrf.mxu2 }
  0xa5   :  { %v214_v46 = vadd.f32 %v488_v40, %v213_v45  ;;  %v242_v47 = vpop.f32.mrf.mxu3 }
  0xa6   :  { %v205_v48 = vpop.f32.mrf.mxu0 }
  0xa7   :  { %v643_v49 = vadd.f32 %v242_v47, %v214_v46  ;;  %v206_v50 = vadd.f32 %v488_v40, %v205_v48  ;;  %v234_v51 = vpop.f32.mrf.mxu1 }
  0xa9   :  { %v645_v52 = vadd.f32 %v234_v51, %v206_v50  ;;  %260 = vmax.xlane.f32.xlu2 %v643_v49 }
  0xab   :  { %254 = vmax.xlane.f32.xlu0 %v645_v52 }
  0xac   :  { %v215_v53 = vpop.f32.mrf.mxu2 }
  0xad   :  { %v216_v54 = vadd.f32 %v488_v40, %v215_v53  ;;  %v244_v55 = vpop.f32.mrf.mxu3 }
  0xae   :  { %v208_v56 = vpop.f32.mrf.mxu0 }
  0xaf   :  { %v649_v57 = vadd.f32 %v244_v55, %v216_v54  ;;  %v209_v58 = vadd.f32 %v488_v40, %v208_v56  ;;  %v237_v59 = vpop.f32.mrf.mxu1 }
  0xb1   :  { %v651_v60 = vadd.f32 %v237_v59, %v209_v58  ;;  %262 = vmax.xlane.f32.xlu2 %v649_v57 }
  0xb3   :  { %256 = vmax.xlane.f32.xlu1 %v651_v60 }
  0xb4   :  { %v218_v61 = vpop.f32.mrf.mxu2 }
  0xb5   :  { %v219_v62 = vadd.f32 %v488_v40, %v218_v61  ;;  %v247_v63 = vpop.f32.mrf.mxu3 }
  0xb6   :  { %v210_v0 = vpop.f32.mrf.mxu0 }
  0xb7   :  { %v655_v1 = vadd.f32 %v247_v63, %v219_v62  ;;  %v211_v2 = vadd.f32 %v488_v40, %v210_v0  ;;  %v239_v3 = vpop.f32.mrf.mxu1 }
  0xb9   :  { %v657_v4 = vadd.f32 %v239_v3, %v211_v2  ;;  %264 = vmax.xlane.f32.xlu0 %v655_v1 }
  0xbb   :  { %258 = vmax.xlane.f32.xlu1 %v657_v4 }
  0xbc   :  { %v220_v5 = vpop.f32.mrf.mxu2 }
  0xbd   :  { %v221_v6 = vadd.f32 %v488_v40, %v220_v5  ;;  %v249_v7 = vpop.f32.mrf.mxu3 }
  0xbf   :  { %v661_v8 = vadd.f32 %v249_v7, %v221_v6 }
  0xc3   :  { %266 = vmax.xlane.f32.xlu1 %v661_v8 }
 0x116   :  { %v253_v9 = vpop.xlane.xlu0 %252 }
 0x117   :  { %v268_v10 = vsub.f32 %v640_v44, %v253_v9 }
 0x119   :  { %v276_v11 = vmul.f32 1.442695, %v268_v10 }
 0x11b   :  { %489 = vpow2.f32 %v276_v11 }
 0x11c   :  { %v261_v12 = vpop.xlane.xlu2 %260 }
 0x11d   :  { %v272_v13 = vsub.f32 %v643_v49, %v261_v12 }
 0x11e   :  { %v666_v14 = vpop.xlane.xlu0 %254 }
 0x11f   :  { %v284_v15 = vmul.f32 1.442695, %v272_v13  ;;  %v269_v17 = vsub.f32 %v645_v52, %v666_v14 }
 0x121   :  { %v490_v16 = vpop.eup %489  ;;  %491 = vpow2.f32 %v284_v15  ;;  %v278_v18 = vmul.f32 1.442695, %v269_v17 }
 0x122   :  { %292 = vadd.xlane.f32.xlu2 %v490_v16 }
 0x123   :  { %493 = vpow2.f32 %v278_v18 }
 0x124   :  { %v672_v21 = vpop.xlane.xlu2 %262 }
 0x125   :  { %v273_v24 = vsub.f32 %v649_v57, %v672_v21 }
 0x126   :  { %v670_v19 = vpop.xlane.xlu1 %256 }
 0x127   :  { %v492_v20 = vpop.eup %491  ;;  %v270_v22 = vsub.f32 %v651_v60, %v670_v19  ;;  %v286_v25 = vmul.f32 1.442695, %v273_v24 }
 0x128   :  { %300 = vadd.xlane.f32.xlu0 %v492_v20 }
 0x129   :  { %v280_v23 = vmul.f32 1.442695, %v270_v22  ;;  %v494_v27 = vpop.eup %493 }
 0x12b   :  { %495 = vpow2.f32 %v280_v23 }
 0x12c   :  { %v680_v28 = vpop.xlane.xlu0 %264  ;;  %497 = vpow2.f32 %v286_v25 }
 0x12d   :  { %v274_v32 = vsub.f32 %v655_v1, %v680_v28 }
 0x12e   :  { %v678_v26 = vpop.xlane.xlu1 %258 }
 0x12f   :  { %v271_v29 = vsub.f32 %v657_v4, %v678_v26  ;;  %v288_v33 = vmul.f32 1.442695, %v274_v32 }
 0x130   :  { %294 = vadd.xlane.f32.xlu0 %v494_v27 }
 0x131   :  { %v496_v30 = vpop.eup %495  ;;  %v282_v31 = vmul.f32 1.442695, %v271_v29 }
 0x132   :  { %296 = vadd.xlane.f32.xlu1 %v496_v30  ;;  %v498_v36 = vpop.eup %497 }
 0x133   :  { %499 = vpow2.f32 %v282_v31 }
 0x134   :  { %501 = vpow2.f32 %v288_v33 }
 0x136   :  { %v686_v34 = vpop.xlane.xlu1 %266 }
 0x137   :  { %v275_v35 = vsub.f32 %v661_v8, %v686_v34 }
 0x139   :  { %v500_v37 = vpop.eup %499  ;;  %v290_v38 = vmul.f32 1.442695, %v275_v35 }
 0x13a   :  { %302 = vadd.xlane.f32.xlu1 %v498_v36  ;;  %298 = vadd.xlane.f32.xlu2 %v500_v37  ;;  %v502_v39 = vpop.eup %501 }
 0x13b   :  { %503 = vpow2.f32 %v290_v38 }
 0x141   :  { %v504_v40 = vpop.eup %503 }
 0x142   :  { %306 = vadd.xlane.f32.xlu0 %v504_v40  ;;  %304 = vadd.xlane.f32.xlu2 %v502_v39 }
 0x195   :  { %v293_v41 = vpop.xlane.xlu2 %292 }
 0x196   :  { %505 = vlog2.f32 %v293_v41 }
 0x19b   :  { %v301_v42 = vpop.xlane.xlu0 %300 }
 0x19c   :  { %v506_v43 = vpop.eup %505  ;;  %507 = vlog2.f32 %v301_v42 }
 0x19d   :  { %v309_v45 = vmul.f32 0.6931472, %v506_v43 }
 0x19f   :  { %v324_v46 = vadd.f32 %v309_v45, %v253_v9 }
 0x1a1   :  { %v332_v47 = vsub.f32 %v640_v44, %v324_v46 }
 0x1a2   :  { %v508_v48 = vpop.eup %507 }
 0x1a3   :  { %340 = vst [vmem:[%s731_s3] sm:$0xff] %v332_v47  ;;  %v317_v50 = vmul.f32 0.6931472, %v508_v48  ;;  %v295_v51 = vpop.xlane.xlu0 %294 }
 0x1a4   :  { %509 = vlog2.f32 %v295_v51 }
 0x1a5   :  { %v328_v53 = vadd.f32 %v317_v50, %v261_v12  ;;  %v297_v54 = vpop.xlane.xlu1 %296 }
 0x1a6   :  { %511 = vlog2.f32 %v297_v54 }
 0x1a7   :  { %v336_v55 = vsub.f32 %v643_v49, %v328_v53 }
 0x1a9   :  { %344 = vst [vmem:[%s731_s3 + $0x20] sm:$0xff] %v336_v55 }
 0x1aa   :  { %v510_v56 = vpop.eup %509 }
 0x1ab   :  { %v311_v58 = vmul.f32 0.6931472, %v510_v56 }
 0x1ac   :  { %v512_v44 = vpop.eup %511 }
 0x1ad   :  { %v325_v59 = vadd.f32 %v311_v58, %v666_v14  ;;  %v313_v61 = vmul.f32 0.6931472, %v512_v44  ;;  %v303_v62 = vpop.xlane.xlu1 %302  ;;  %v299_v63 = vpop.xlane.xlu2 %298 }
 0x1ae   :  { %513 = vlog2.f32 %v303_v62 }
 0x1af   :  { %v333_v0 = vsub.f32 %v645_v52, %v325_v59  ;;  %v326_v2 = vadd.f32 %v313_v61, %v670_v19  ;;  %515 = vlog2.f32 %v299_v63 }
 0x1b1   :  { %341 = vst [vmem:[%s731_s3 + $0x8] sm:$0xff] %v333_v0  ;;  %v334_v49 = vsub.f32 %v651_v60, %v326_v2 }
 0x1b3   :  { %342 = vst [vmem:[%s731_s3 + $0x10] sm:$0xff] %v334_v49 }
 0x1b4   :  { %v514_v3 = vpop.eup %513 }
 0x1b5   :  { %v516_v5 = vpop.eup %515  ;;  %v319_v6 = vmul.f32 0.6931472, %v514_v3  ;;  %v305_v7 = vpop.xlane.xlu2 %304 }
 0x1b6   :  { %v307_v9 = vpop.xlane.xlu0 %306  ;;  %v315_v10 = vmul.f32 0.6931472, %v516_v5  ;;  %517 = vlog2.f32 %v305_v7 }
 0x1b7   :  { %v329_v52 = vadd.f32 %v319_v6, %v672_v21  ;;  %519 = vlog2.f32 %v307_v9 }
 0x1b8   :  { %v327_v11 = vadd.f32 %v315_v10, %v678_v26 }
 0x1b9   :  { %v337_v12 = vsub.f32 %v649_v57, %v329_v52 }
 0x1ba   :  { %v335_v60 = vsub.f32 %v657_v4, %v327_v11 }
 0x1bb   :  { %345 = vst [vmem:[%s731_s3 + $0x28] sm:$0xff] %v337_v12 }
 0x1bc   :  { %v518_v13 = vpop.eup %517  ;;  %343 = vst [vmem:[%s731_s3 + $0x18] sm:$0xff] %v335_v60 }
 0x1bd   :  { %v520_v14 = vpop.eup %519  ;;  %v321_v15 = vmul.f32 0.6931472, %v518_v13 }
 0x1be   :  { %v323_v16 = vmul.f32 0.6931472, %v520_v14 }
 0x1bf   :  { %v330_v17 = vadd.f32 %v321_v15, %v680_v28 }
 0x1c0   :  { %v331_v18 = vadd.f32 %v323_v16, %v686_v34 }
 0x1c1   :  { %v338_v57 = vsub.f32 %v655_v1, %v330_v17 }
 0x1c2   :  { %v339_v4 = vsub.f32 %v661_v8, %v331_v18 }
 0x1c3   :  { %346 = vst [vmem:[%s731_s3 + $0x30] sm:$0xff] %v338_v57 }
 0x1c4   :  { %347 = vst [vmem:[%s731_s3 + $0x38] sm:$0xff] %v339_v4 }

// kernel: lstm_lm_forward.2
= control target key start
LH: loop header
LB: loop body
LE: loop exit
PB: predicated region body
PF: predicated region fallthrough
CT: control target
= control target key end

     0   :  { %s22350_s1 = inlined_call_operand.vmem [shape: bf16[256,1024], index: 1, kind: input, shape index: {}]   ;;  %s22351_s2 = inlined_call_operand.vmem [shape: f32[8,256], index: 2, kind: input, shape index: {}]   ;;  %s22352_s0 = inlined_call_operand.vmem [shape: f32[8,8,1024], index: 0, kind: input, shape index: {}]   ;;  %s22353_s3 = inlined_call_operand.vmem [shape: f32[8,256], index: 3, kind: input, shape index: {}]   ;;  %s22354_s4 = inlined_call_operand.vmem [shape: f32[8,8,256], index: 4, kind: output, shape index: {0}]   ;;  %s22355_s6 = inlined_call_operand.vmem [shape: f32[8,256], index: 6, kind: output, shape index: {2}]   ;;  %s22356_s5 = inlined_call_operand.vmem [shape: f32[8,256], index: 5, kind: output, shape index: {1}]  }
   0x1   :  { %v9279_v0 = vld [vmem:[%s22350_s1 + $0x1c0] sm:$0xf]  ;;  %v13323_v5 = vld [vmem:[%s22350_s1 + $0x1c4] sm:$0xf] }
   0x2   :  { %v13327_v1 = vld [vmem:[%s22350_s1 + $0x1dc] sm:$0xf0]  ;;  %v9281_v6 = vld [vmem:[%s22350_s1 + $0x1e0] sm:$0xf0] }
   0x3   :  { %v9535_v2 = vld [vmem:[%s22350_s1 + $0x3c0] sm:$0xf]  ;;  %v9280_v3 = vor.u32 %v13327_v1, %v9279_v0  ;;  %v9284_v8 = vor.u32 %v13323_v5, %v9281_v6  ;;  %v13387_v9 = vld [vmem:[%s22350_s1 + $0x3c4] sm:$0xf] }
   0x4   :  { %v13391_v4 = vld [vmem:[%s22350_s1 + $0x3dc] sm:$0xf0]  ;;  %v9537_v10 = vld [vmem:[%s22350_s1 + $0x3e0] sm:$0xf0] }
   0x5   :  { %v9536_v7 = vor.u32 %v13391_v4, %v9535_v2  ;;  %v9247_v11 = vld [vmem:[%s22350_s1 + $0x180] sm:$0xf]  ;;  %814 = vmatpush.bf16.msra.mxu0 %v9280_v3  ;;  %v9540_v12 = vor.u32 %v13387_v9, %v9537_v10  ;;  %840 = vmatpush.bf16.msra.mxu2 %v9284_v8  ;;  %v13315_v18 = vld [vmem:[%s22350_s1 + $0x184] sm:$0xf] }
   0x6   :  { %v13319_v13 = vld [vmem:[%s22350_s1 + $0x19c] sm:$0xf0]  ;;  %v9249_v19 = vld [vmem:[%s22350_s1 + $0x1a0] sm:$0xf0] }
   0x7   :  { %v9503_v14 = vld [vmem:[%s22350_s1 + $0x380] sm:$0xf]  ;;  %827 = vmatpush.bf16.msra.mxu1 %v9536_v7  ;;  %v9248_v16 = vor.u32 %v13319_v13, %v9247_v11  ;;  %v13379_v20 = vld [vmem:[%s22350_s1 + $0x384] sm:$0xf]  ;;  %853 = vmatpush.bf16.msra.mxu3 %v9540_v12  ;;  %v9252_v21 = vor.u32 %v13315_v18, %v9249_v19 }
   0x8   :  { %v13383_v15 = vld [vmem:[%s22350_s1 + $0x39c] sm:$0xf0]  ;;  %v9505_v22 = vld [vmem:[%s22350_s1 + $0x3a0] sm:$0xf0] }
   0x9   :  { %v9504_v17 = vor.u32 %v13383_v15, %v9503_v14  ;;  %v9215_v23 = vld [vmem:[%s22350_s1 + $0x140] sm:$0xf]  ;;  %v9508_v25 = vor.u32 %v13379_v20, %v9505_v22  ;;  %v13307_v28 = vld [vmem:[%s22350_s1 + $0x144] sm:$0xf]  ;;  %815 = vmatpush.bf16.msra.mxu0 %v9248_v16  ;;  %841 = vmatpush.bf16.msra.mxu2 %v9252_v21 }
   0xa   :  { %v13311_v24 = vld [vmem:[%s22350_s1 + $0x15c] sm:$0xf0]  ;;  %v9217_v30 = vld [vmem:[%s22350_s1 + $0x160] sm:$0xf0] }
   0xb   :  { %v9471_v26 = vld [vmem:[%s22350_s1 + $0x340] sm:$0xf]  ;;  %v9216_v29 = vor.u32 %v13311_v24, %v9215_v23  ;;  %v13371_v31 = vld [vmem:[%s22350_s1 + $0x344] sm:$0xf]  ;;  %828 = vmatpush.bf16.msra.mxu1 %v9504_v17  ;;  %v9220_v34 = vor.u32 %v13307_v28, %v9217_v30  ;;  %854 = vmatpush.bf16.msra.mxu3 %v9508_v25  ;;  %v9287_v28 = vld [vmem:[%s22350_s1 + $0x1c8] sm:$0xf] }
   0xc   :  { %v13375_v27 = vld [vmem:[%s22350_s1 + $0x35c] sm:$0xf0]  ;;  %v9473_v32 = vld [vmem:[%s22350_s1 + $0x360] sm:$0xf0]  ;;  %v9543_v30 = vld [vmem:[%s22350_s1 + $0x3c8] sm:$0xf] }
   0xd   :  { %v9472_v33 = vor.u32 %v13375_v27, %v9471_v26  ;;  %v9183_v35 = vld [vmem:[%s22350_s1 + $0x100] sm:$0xf]  ;;  %v9476_v38 = vor.u32 %v13371_v31, %v9473_v32  ;;  %v13299_v40 = vld [vmem:[%s22350_s1 + $0x104] sm:$0xf]  ;;  %816 = vmatpush.bf16.msra.mxu0 %v9216_v29  ;;  %842 = vmatpush.bf16.msra.mxu2 %v9220_v34  ;;  %v13328_v29 = vld [vmem:[%s22350_s1 + $0x1e4] sm:$0xf0] }
   0xe   :  { %v13303_v36 = vld [vmem:[%s22350_s1 + $0x11c] sm:$0xf0]  ;;  %v9185_v41 = vld [vmem:[%s22350_s1 + $0x120] sm:$0xf0]  ;;  %v13392_v32 = vld [vmem:[%s22350_s1 + $0x3e4] sm:$0xf0] }
   0xf   :  { %v9439_v37 = vld [vmem:[%s22350_s1 + $0x300] sm:$0xf]  ;;  %v13363_v42 = vld [vmem:[%s22350_s1 + $0x304] sm:$0xf]  ;;  %v9184_v44 = vor.u32 %v13303_v36, %v9183_v35  ;;  %829 = vmatpush.bf16.msra.mxu1 %v9472_v33  ;;  %v9188_v46 = vor.u32 %v13299_v40, %v9185_v41  ;;  %855 = vmatpush.bf16.msra.mxu3 %v9476_v38  ;;  %v13324_v33 = vld [vmem:[%s22350_s1 + $0x1cc] sm:$0xf]  ;;  %v9288_v40 = vor.u32 %v13328_v29, %v9287_v28 }
  0x10   :  { %v13367_v39 = vld [vmem:[%s22350_s1 + $0x31c] sm:$0xf0]  ;;  %v9441_v43 = vld [vmem:[%s22350_s1 + $0x320] sm:$0xf0]  ;;  %v9289_v34 = vld [vmem:[%s22350_s1 + $0x1e8] sm:$0xf0] }
  0x11   :  { %v9440_v45 = vor.u32 %v13367_v39, %v9439_v37  ;;  %v9151_v47 = vld [vmem:[%s22350_s1 + $0xc0] sm:$0xf]  ;;  %v9444_v50 = vor.u32 %v13363_v42, %v9441_v43  ;;  %v13291_v52 = vld [vmem:[%s22350_s1 + $0xc4] sm:$0xf]  ;;  %817 = vmatpush.bf16.msra.mxu0 %v9184_v44  ;;  %843 = vmatpush.bf16.msra.mxu2 %v9188_v46  ;;  %v13388_v37 = vld [vmem:[%s22350_s1 + $0x3cc] sm:$0xf]  ;;  %v9544_v42 = vor.u32 %v13392_v32, %v9543_v30 }
  0x12   :  { %v13295_v48 = vld [vmem:[%s22350_s1 + $0xdc] sm:$0xf0]  ;;  %v9153_v53 = vld [vmem:[%s22350_s1 + $0xe0] sm:$0xf0]  ;;  %v9545_v38 = vld [vmem:[%s22350_s1 + $0x3e8] sm:$0xf0]  ;;  %v9292_v43 = vor.u32 %v13324_v33, %v9289_v34 }
  0x13   :  { %v9407_v49 = vld [vmem:[%s22350_s1 + $0x2c0] sm:$0xf]  ;;  %v13355_v54 = vld [vmem:[%s22350_s1 + $0x2c4] sm:$0xf]  ;;  %v9152_v56 = vor.u32 %v13295_v48, %v9151_v47  ;;  %830 = vmatpush.bf16.msra.mxu1 %v9440_v45  ;;  %v9156_v58 = vor.u32 %v13291_v52, %v9153_v53  ;;  %856 = vmatpush.bf16.msra.mxu3 %v9444_v50  ;;  %v9255_v41 = vld [vmem:[%s22350_s1 + $0x188] sm:$0xf]  ;;  %v9548_v47 = vor.u32 %v13388_v37, %v9545_v38 }
  0x14   :  { %v13359_v51 = vld [vmem:[%s22350_s1 + $0x2dc] sm:$0xf0]  ;;  %v9409_v55 = vld [vmem:[%s22350_s1 + $0x2e0] sm:$0xf0]  ;;  %v13320_v44 = vld [vmem:[%s22350_s1 + $0x1a4] sm:$0xf0] }
  0x15   :  { %v9408_v57 = vor.u32 %v13359_v51, %v9407_v49  ;;  %v9119_v59 = vld [vmem:[%s22350_s1 + $0x80] sm:$0xf]  ;;  %v9412_v62 = vor.u32 %v13355_v54, %v9409_v55  ;;  %v13283_v0 = vld [vmem:[%s22350_s1 + $0x84] sm:$0xf]  ;;  %818 = vmatpush.bf16.msra.mxu0 %v9152_v56  ;;  %844 = vmatpush.bf16.msra.mxu2 %v9156_v58  ;;  %v9511_v45 = vld [vmem:[%s22350_s1 + $0x388] sm:$0xf]  ;;  %v9256_v54 = vor.u32 %v13320_v44, %v9255_v41 }
  0x16   :  { %v13287_v60 = vld [vmem:[%s22350_s1 + $0x9c] sm:$0xf0]  ;;  %v9121_v1 = vld [vmem:[%s22350_s1 + $0xa0] sm:$0xf0]  ;;  %v13384_v46 = vld [vmem:[%s22350_s1 + $0x3a4] sm:$0xf0] }
  0x17   :  { %v9375_v61 = vld [vmem:[%s22350_s1 + $0x280] sm:$0xf]  ;;  %v13347_v2 = vld [vmem:[%s22350_s1 + $0x284] sm:$0xf]  ;;  %v9120_v4 = vor.u32 %v13287_v60, %v9119_v59  ;;  %831 = vmatpush.bf16.msra.mxu1 %v9408_v57  ;;  %v9124_v6 = vor.u32 %v13283_v0, %v9121_v1  ;;  %857 = vmatpush.bf16.msra.mxu3 %v9412_v62  ;;  %v13316_v48 = vld [vmem:[%s22350_s1 + $0x18c] sm:$0xf]  ;;  %v9512_v57 = vor.u32 %v13384_v46, %v9511_v45 }
  0x18   :  { %v13351_v63 = vld [vmem:[%s22350_s1 + $0x29c] sm:$0xf0]  ;;  %v9377_v3 = vld [vmem:[%s22350_s1 + $0x2a0] sm:$0xf0]  ;;  %v9257_v49 = vld [vmem:[%s22350_s1 + $0x1a8] sm:$0xf0] }
  0x19   :  { %v9376_v5 = vor.u32 %v13351_v63, %v9375_v61  ;;  %v9087_v7 = vld [vmem:[%s22350_s1 + $0x40] sm:$0xf]  ;;  %v9380_v10 = vor.u32 %v13347_v2, %v9377_v3  ;;  %v13275_v12 = vld [vmem:[%s22350_s1 + $0x44] sm:$0xf]  ;;  %819 = vmatpush.bf16.msra.mxu0 %v9120_v4  ;;  %845 = vmatpush.bf16.msra.mxu2 %v9124_v6  ;;  %v13380_v50 = vld [vmem:[%s22350_s1 + $0x38c] sm:$0xf]  ;;  %v9260_v58 = vor.u32 %v13316_v48, %v9257_v49 }
  0x1a   :  { %v13279_v8 = vld [vmem:[%s22350_s1 + $0x5c] sm:$0xf0]  ;;  %v9089_v13 = vld [vmem:[%s22350_s1 + $0x60] sm:$0xf0]  ;;  %v9513_v51 = vld [vmem:[%s22350_s1 + $0x3a8] sm:$0xf0] }
  0x1b   :  { %v9343_v9 = vld [vmem:[%s22350_s1 + $0x240] sm:$0xf]  ;;  %v13339_v14 = vld [vmem:[%s22350_s1 + $0x244] sm:$0xf]  ;;  %v9088_v16 = vor.u32 %v13279_v8, %v9087_v7  ;;  %832 = vmatpush.bf16.msra.mxu1 %v9376_v5  ;;  %v9092_v20 = vor.u32 %v13275_v12, %v9089_v13  ;;  %858 = vmatpush.bf16.msra.mxu3 %v9380_v10  ;;  %v25_v53 = vld [vmem:[%s22351_s2 + $0x8] sm:$0xff]  ;;  %v9516_v62 = vor.u32 %v13380_v50, %v9513_v51 }
  0x1c   :  { %v13343_v11 = vld [vmem:[%s22350_s1 + $0x25c] sm:$0xf0]  ;;  %v9345_v15 = vld [vmem:[%s22350_s1 + $0x260] sm:$0xf0]  ;;  %v14830_v56 = vpack.c.bf16 %v25_v53, %v25_v53  ;;  %v9223_v59 = vld [vmem:[%s22350_s1 + $0x148] sm:$0xf] }
  0x1d   :  { %v9055_v17 = vld [vmem:[%s22350_s1] sm:$0xf]  ;;  %v9344_v19 = vor.u32 %v13343_v11, %v9343_v9  ;;  %v13267_v23 = vld [vmem:[%s22350_s1 + $0x4] sm:$0xf]  ;;  %v9348_v24 = vor.u32 %v13339_v14, %v9345_v15  ;;  %820 = vmatpush.bf16.msra.mxu0 %v9088_v16  ;;  %846 = vmatpush.bf16.msra.mxu2 %v9092_v20  ;;  %v13312_v60 = vld [vmem:[%s22350_s1 + $0x164] sm:$0xf0] }
  0x1e   :  { %v13271_v18 = vld [vmem:[%s22350_s1 + $0x1c] sm:$0xf0]  ;;  %v9057_v25 = vld [vmem:[%s22350_s1 + $0x20] sm:$0xf0]  ;;  %v9479_v61 = vld [vmem:[%s22350_s1 + $0x348] sm:$0xf]  ;;  %v9224_v4 = vor.u32 %v13312_v60, %v9223_v59 }
  0x1f   :  { %v9311_v21 = vld [vmem:[%s22350_s1 + $0x200] sm:$0xf]  ;;  %v13331_v26 = vld [vmem:[%s22350_s1 + $0x204] sm:$0xf]  ;;  %v9056_v31 = vor.u32 %v13271_v18, %v9055_v17  ;;  %833 = vmatpush.bf16.msra.mxu1 %v9344_v19  ;;  %v9060_v36 = vor.u32 %v13267_v23, %v9057_v25  ;;  %859 = vmatpush.bf16.msra.mxu3 %v9348_v24  ;;  %v13376_v63 = vld [vmem:[%s22350_s1 + $0x364] sm:$0xf0] }
  0x20   :  { %v13335_v22 = vld [vmem:[%s22350_s1 + $0x21c] sm:$0xf0]  ;;  %v9313_v27 = vld [vmem:[%s22350_s1 + $0x220] sm:$0xf0]  ;;  %v13308_v0 = vld [vmem:[%s22350_s1 + $0x14c] sm:$0xf]  ;;  %v9480_v5 = vor.u32 %v13376_v63, %v9479_v61 }
  0x21   :  { %v9312_v35 = vor.u32 %v13335_v22, %v9311_v21  ;;  %v9316_v39 = vor.u32 %v13331_v26, %v9313_v27  ;;  %821 = vmatpush.bf16.msra.mxu0 %v9056_v31  ;;  %847 = vmatpush.bf16.msra.mxu2 %v9060_v36  ;;  %v24_v52 = vld [vmem:[%s22351_s2] sm:$0xff]  ;;  %v9225_v1 = vld [vmem:[%s22350_s1 + $0x168] sm:$0xf0]  ;;  %v9191_v7 = vld [vmem:[%s22350_s1 + $0x108] sm:$0xf] }
  0x22   :  { %v14828_v55 = vpack.c.bf16 %v24_v52, %v24_v52  ;;  %v13372_v2 = vld [vmem:[%s22350_s1 + $0x34c] sm:$0xf]  ;;  %v9228_v6 = vor.u32 %v13308_v0, %v9225_v1  ;;  %v13304_v8 = vld [vmem:[%s22350_s1 + $0x124] sm:$0xf0] }
  0x23   :  { %834 = vmatpush.bf16.msra.mxu1 %v9312_v35  ;;  %860 = vmatpush.bf16.msra.mxu3 %v9316_v39  ;;  %v9481_v3 = vld [vmem:[%s22350_s1 + $0x368] sm:$0xf0]  ;;  %v9447_v9 = vld [vmem:[%s22350_s1 + $0x308] sm:$0xf]  ;;  %v9192_v16 = vor.u32 %v13304_v8, %v9191_v7  ;;  %v13325_v7 = vld [vmem:[%s22350_s1 + $0x1d4] sm:$0xf] }
  0x24   :  { %848 = vmatmul.bf16.vlgmr.msra.gmra.mxu2 %v14828_v55  ;;  %822 = vmatmul.bf16.vlgmr.msra.gmra.mxu0 %v14828_v55  ;;  %v9484_v10 = vor.u32 %v13372_v2, %v9481_v3  ;;  %v13368_v11 = vld [vmem:[%s22350_s1 + $0x324] sm:$0xf0]  ;;  %v13300_v12 = vld [vmem:[%s22350_s1 + $0x10c] sm:$0xf]  ;;  %v9295_v2 = vld [vmem:[%s22350_s1 + $0x1d0] sm:$0xf] }
  0x25   :  { %866 = vmatpush.bf16.msrb.mxu0 %v9288_v40  ;;  %892 = vmatpush.bf16.msrb.mxu2 %v9292_v43  ;;  %v9193_v13 = vld [vmem:[%s22350_s1 + $0x128] sm:$0xf0]  ;;  %v9448_v17 = vor.u32 %v13368_v11, %v9447_v9  ;;  %v9159_v19 = vld [vmem:[%s22350_s1 + $0xc8] sm:$0xf]  ;;  %v13329_v3 = vld [vmem:[%s22350_s1 + $0x1ec] sm:$0xf0] }
  0x26   :  { %861 = vmatmul.bf16.vlgmr.msra.gmra.mxu3 %v14830_v56  ;;  %835 = vmatmul.bf16.vlgmr.msra.gmra.mxu1 %v14830_v56  ;;  %v13364_v14 = vld [vmem:[%s22350_s1 + $0x30c] sm:$0xf]  ;;  %v9196_v18 = vor.u32 %v13300_v12, %v9193_v13  ;;  %v13296_v20 = vld [vmem:[%s22350_s1 + $0xe4] sm:$0xf0]  ;;  %v9297_v8 = vld [vmem:[%s22350_s1 + $0x1f0] sm:$0xf0] }
  0x27   :  { %879 = vmatpush.bf16.msrb.mxu1 %v9544_v42  ;;  %905 = vmatpush.bf16.msrb.mxu3 %v9548_v47  ;;  %v9449_v15 = vld [vmem:[%s22350_s1 + $0x328] sm:$0xf0]  ;;  %v9415_v21 = vld [vmem:[%s22350_s1 + $0x2c8] sm:$0xf]  ;;  %v9160_v28 = vor.u32 %v13296_v20, %v9159_v19  ;;  %v13389_v11 = vld [vmem:[%s22350_s1 + $0x3d4] sm:$0xf] }
  0x28   :  { %v9452_v22 = vor.u32 %v13364_v14, %v9449_v15  ;;  %v13360_v23 = vld [vmem:[%s22350_s1 + $0x2e4] sm:$0xf0]  ;;  %v13292_v24 = vld [vmem:[%s22350_s1 + $0xcc] sm:$0xf]  ;;  %v9553_v12 = vld [vmem:[%s22350_s1 + $0x3f0] sm:$0xf0]  ;;  %v9296_v14 = vor.u32 %v13329_v3, %v9295_v2 }
  0x29   :  { %867 = vmatpush.bf16.msrb.mxu0 %v9256_v54  ;;  %893 = vmatpush.bf16.msrb.mxu2 %v9260_v58  ;;  %v9161_v25 = vld [vmem:[%s22350_s1 + $0xe8] sm:$0xf0]  ;;  %v9416_v29 = vor.u32 %v13360_v23, %v9415_v21  ;;  %v9127_v31 = vld [vmem:[%s22350_s1 + $0x88] sm:$0xf]  ;;  %v9519_v19 = vld [vmem:[%s22350_s1 + $0x390] sm:$0xf]  ;;  %v9556_v20 = vor.u32 %v13389_v11, %v9553_v12 }
  0x2a   :  { %v13356_v26 = vld [vmem:[%s22350_s1 + $0x2cc] sm:$0xf]  ;;  %v9164_v30 = vor.u32 %v13292_v24, %v9161_v25  ;;  %v13288_v32 = vld [vmem:[%s22350_s1 + $0xa4] sm:$0xf0]  ;;  %v13385_v21 = vld [vmem:[%s22350_s1 + $0x3ac] sm:$0xf0] }
  0x2b   :  { %880 = vmatpush.bf16.msrb.mxu1 %v9512_v57  ;;  %906 = vmatpush.bf16.msrb.mxu3 %v9516_v62  ;;  %v9417_v27 = vld [vmem:[%s22350_s1 + $0x2e8] sm:$0xf0]  ;;  %v9383_v33 = vld [vmem:[%s22350_s1 + $0x288] sm:$0xf]  ;;  %v9128_v40 = vor.u32 %v13288_v32, %v9127_v31  ;;  %v9265_v23 = vld [vmem:[%s22350_s1 + $0x1b0] sm:$0xf0] }
  0x2c   :  { %v9420_v34 = vor.u32 %v13356_v26, %v9417_v27  ;;  %v13352_v35 = vld [vmem:[%s22350_s1 + $0x2a4] sm:$0xf0]  ;;  %v13284_v36 = vld [vmem:[%s22350_s1 + $0x8c] sm:$0xf]  ;;  %v13381_v24 = vld [vmem:[%s22350_s1 + $0x394] sm:$0xf]  ;;  %v9520_v27 = vor.u32 %v13385_v21, %v9519_v19 }
  0x2d   :  { %868 = vmatpush.bf16.msrb.mxu0 %v9224_v4  ;;  %894 = vmatpush.bf16.msrb.mxu2 %v9228_v6  ;;  %v9129_v37 = vld [vmem:[%s22350_s1 + $0xa8] sm:$0xf0]  ;;  %v9384_v41 = vor.u32 %v13352_v35, %v9383_v33  ;;  %v9095_v43 = vld [vmem:[%s22350_s1 + $0x48] sm:$0xf]  ;;  %v9551_v4 = vld [vmem:[%s22350_s1 + $0x3d0] sm:$0xf] }
  0x2e   :  { %v13348_v38 = vld [vmem:[%s22350_s1 + $0x28c] sm:$0xf]  ;;  %v9132_v42 = vor.u32 %v13284_v36, %v9129_v37  ;;  %v13280_v44 = vld [vmem:[%s22350_s1 + $0x64] sm:$0xf0]  ;;  %v13393_v6 = vld [vmem:[%s22350_s1 + $0x3ec] sm:$0xf0] }
  0x2f   :  { %881 = vmatpush.bf16.msrb.mxu1 %v9480_v5  ;;  %907 = vmatpush.bf16.msrb.mxu3 %v9484_v10  ;;  %v9385_v39 = vld [vmem:[%s22350_s1 + $0x2a8] sm:$0xf0]  ;;  %v9351_v45 = vld [vmem:[%s22350_s1 + $0x248] sm:$0xf]  ;;  %v9096_v52 = vor.u32 %v13280_v44, %v9095_v43  ;;  %v9552_v15 = vor.u32 %v13393_v6, %v9551_v4  ;;  %v9521_v25 = vld [vmem:[%s22350_s1 + $0x3b0] sm:$0xf0] }
  0x30   :  { %v9388_v46 = vor.u32 %v13348_v38, %v9385_v39  ;;  %v13344_v47 = vld [vmem:[%s22350_s1 + $0x264] sm:$0xf0]  ;;  %v13276_v48 = vld [vmem:[%s22350_s1 + $0x4c] sm:$0xf]  ;;  %v9487_v31 = vld [vmem:[%s22350_s1 + $0x350] sm:$0xf]  ;;  %v9524_v32 = vor.u32 %v13381_v24, %v9521_v25 }
  0x31   :  { %869 = vmatpush.bf16.msrb.mxu0 %v9192_v16  ;;  %895 = vmatpush.bf16.msrb.mxu2 %v9196_v18  ;;  %v9097_v49 = vld [vmem:[%s22350_s1 + $0x68] sm:$0xf0]  ;;  %v9063_v53 = vld [vmem:[%s22350_s1 + $0x8] sm:$0xf]  ;;  %v9352_v57 = vor.u32 %v13344_v47, %v9351_v45  ;;  %v9300_v16 = vor.u32 %v13325_v7, %v9297_v8  ;;  %v13321_v18 = vld [vmem:[%s22350_s1 + $0x1ac] sm:$0xf0] }
  0x32   :  { %v13340_v50 = vld [vmem:[%s22350_s1 + $0x24c] sm:$0xf]  ;;  %v13272_v54 = vld [vmem:[%s22350_s1 + $0x24] sm:$0xf0]  ;;  %v9100_v58 = vor.u32 %v13276_v48, %v9097_v49  ;;  %v13377_v33 = vld [vmem:[%s22350_s1 + $0x36c] sm:$0xf0] }
  0x33   :  { %882 = vmatpush.bf16.msrb.mxu1 %v9448_v17  ;;  %908 = vmatpush.bf16.msrb.mxu3 %v9452_v22  ;;  %v9353_v51 = vld [vmem:[%s22350_s1 + $0x268] sm:$0xf0]  ;;  %v9319_v59 = vld [vmem:[%s22350_s1 + $0x208] sm:$0xf]  ;;  %v9064_v5 = vor.u32 %v13272_v54, %v9063_v53  ;;  %v9263_v17 = vld [vmem:[%s22350_s1 + $0x190] sm:$0xf]  ;;  %v9488_v39 = vor.u32 %v13377_v33, %v9487_v31 }
  0x34   :  { %v13336_v60 = vld [vmem:[%s22350_s1 + $0x224] sm:$0xf0]  ;;  %v13268_v61 = vld [vmem:[%s22350_s1 + $0xc] sm:$0xf]  ;;  %v9356_v62 = vor.u32 %v13340_v50, %v9353_v51  ;;  %v13317_v22 = vld [vmem:[%s22350_s1 + $0x194] sm:$0xf]  ;;  %v9264_v26 = vor.u32 %v13321_v18, %v9263_v17 }
  0x35   :  { %870 = vmatpush.bf16.msrb.mxu0 %v9160_v28  ;;  %896 = vmatpush.bf16.msrb.mxu2 %v9164_v30  ;;  %v9065_v63 = vld [vmem:[%s22350_s1 + $0x28] sm:$0xf0]  ;;  %v9320_v9 = vor.u32 %v13336_v60, %v9319_v59  ;;  %v9268_v28 = vor.u32 %v13317_v22, %v9265_v23  ;;  %v13313_v30 = vld [vmem:[%s22350_s1 + $0x16c] sm:$0xf0]  ;;  %v9233_v35 = vld [vmem:[%s22350_s1 + $0x170] sm:$0xf0] }
  0x36   :  { %v13332_v0 = vld [vmem:[%s22350_s1 + $0x20c] sm:$0xf]  ;;  %v9068_v10 = vor.u32 %v13268_v61, %v9065_v63  ;;  %v13373_v36 = vld [vmem:[%s22350_s1 + $0x354] sm:$0xf]  ;;  %v9455_v43 = vld [vmem:[%s22350_s1 + $0x310] sm:$0xf] }
  0x37   :  { %883 = vmatpush.bf16.msrb.mxu1 %v9416_v29  ;;  %909 = vmatpush.bf16.msrb.mxu3 %v9420_v34  ;;  %v9321_v1 = vld [vmem:[%s22350_s1 + $0x228] sm:$0xf0]  ;;  %v9231_v29 = vld [vmem:[%s22350_s1 + $0x150] sm:$0xf]  ;;  %v13309_v34 = vld [vmem:[%s22350_s1 + $0x154] sm:$0xf] }
  0x38   :  { %v9324_v13 = vor.u32 %v13332_v0, %v9321_v1  ;;  %v9489_v37 = vld [vmem:[%s22350_s1 + $0x370] sm:$0xf0]  ;;  %v9232_v38 = vor.u32 %v13313_v30, %v9231_v29  ;;  %v13369_v45 = vld [vmem:[%s22350_s1 + $0x32c] sm:$0xf0] }
  0x39   :  { %871 = vmatpush.bf16.msrb.mxu0 %v9128_v40  ;;  %897 = vmatpush.bf16.msrb.mxu2 %v9132_v42  ;;  %v9236_v40 = vor.u32 %v13309_v34, %v9233_v35  ;;  %v13305_v42 = vld [vmem:[%s22350_s1 + $0x12c] sm:$0xf0]  ;;  %v9492_v44 = vor.u32 %v13373_v36, %v9489_v37  ;;  %v9201_v47 = vld [vmem:[%s22350_s1 + $0x130] sm:$0xf0]  ;;  %v9456_v51 = vor.u32 %v13369_v45, %v9455_v43  ;;  %v9303_v36 = vld [vmem:[%s22350_s1 + $0x1d8] sm:$0xf] }
  0x3a   :  { %v13365_v48 = vld [vmem:[%s22350_s1 + $0x314] sm:$0xf]  ;;  %v9167_v53 = vld [vmem:[%s22350_s1 + $0xd0] sm:$0xf]  ;;  %v13330_v37 = vld [vmem:[%s22350_s1 + $0x1f4] sm:$0xf0] }
  0x3b   :  { %884 = vmatpush.bf16.msrb.mxu1 %v9384_v41  ;;  %910 = vmatpush.bf16.msrb.mxu3 %v9388_v46  ;;  %v9199_v41 = vld [vmem:[%s22350_s1 + $0x110] sm:$0xf]  ;;  %v13301_v46 = vld [vmem:[%s22350_s1 + $0x114] sm:$0xf]  ;;  %v13390_v45 = vld [vmem:[%s22350_s1 + $0x3dc] sm:$0xf] }
  0x3c   :  { %v9457_v49 = vld [vmem:[%s22350_s1 + $0x330] sm:$0xf0]  ;;  %v9200_v50 = vor.u32 %v13305_v42, %v9199_v41  ;;  %v13297_v54 = vld [vmem:[%s22350_s1 + $0xec] sm:$0xf0]  ;;  %v13326_v41 = vld [vmem:[%s22350_s1 + $0x1dc] sm:$0xf] }
  0x3d   :  { %872 = vmatpush.bf16.msrb.mxu0 %v9096_v52  ;;  %898 = vmatpush.bf16.msrb.mxu2 %v9100_v58  ;;  %v9204_v52 = vor.u32 %v13301_v46, %v9201_v47  ;;  %v9460_v58 = vor.u32 %v13365_v48, %v9457_v49  ;;  %v13361_v59 = vld [vmem:[%s22350_s1 + $0x2ec] sm:$0xf0]  ;;  %v13293_v60 = vld [vmem:[%s22350_s1 + $0xd4] sm:$0xf]  ;;  %v9168_v0 = vor.u32 %v13297_v54, %v9167_v53  ;;  %v9305_v42 = vld [vmem:[%s22350_s1 + $0x1f8] sm:$0xf0] }
  0x3e   :  { %v9169_v61 = vld [vmem:[%s22350_s1 + $0xf0] sm:$0xf0]  ;;  %v9135_v3 = vld [vmem:[%s22350_s1 + $0x90] sm:$0xf]  ;;  %v9561_v46 = vld [vmem:[%s22350_s1 + $0x3f8] sm:$0xf0]  ;;  %v9304_v48 = vor.u32 %v13330_v37, %v9303_v36 }
  0x3f   :  { %885 = vmatpush.bf16.msrb.mxu1 %v9352_v57  ;;  %911 = vmatpush.bf16.msrb.mxu3 %v9356_v62  ;;  %v9423_v57 = vld [vmem:[%s22350_s1 + $0x2d0] sm:$0xf]  ;;  %v13357_v62 = vld [vmem:[%s22350_s1 + $0x2d4] sm:$0xf]  ;;  %v9172_v2 = vor.u32 %v13293_v60, %v9169_v61  ;;  %v9527_v53 = vld [vmem:[%s22350_s1 + $0x398] sm:$0xf]  ;;  %v9564_v54 = vor.u32 %v13390_v45, %v9561_v46 }
  0x40   :  { %v9425_v63 = vld [vmem:[%s22350_s1 + $0x2f0] sm:$0xf0]  ;;  %v9424_v1 = vor.u32 %v13361_v59, %v9423_v57  ;;  %v13289_v4 = vld [vmem:[%s22350_s1 + $0xac] sm:$0xf0]  ;;  %v13386_v57 = vld [vmem:[%s22350_s1 + $0x3b4] sm:$0xf0] }
  0x41   :  { %873 = vmatpush.bf16.msrb.mxu0 %v9064_v5  ;;  %899 = vmatpush.bf16.msrb.mxu2 %v9068_v10  ;;  %v9391_v5 = vld [vmem:[%s22350_s1 + $0x290] sm:$0xf]  ;;  %v9428_v6 = vor.u32 %v13357_v62, %v9425_v63  ;;  %v13285_v8 = vld [vmem:[%s22350_s1 + $0x94] sm:$0xf]  ;;  %v9136_v12 = vor.u32 %v13289_v4, %v9135_v3  ;;  %v9273_v59 = vld [vmem:[%s22350_s1 + $0x1b8] sm:$0xf0]  ;;  %v9528_v63 = vor.u32 %v13386_v57, %v9527_v53 }
  0x42   :  { %v13353_v7 = vld [vmem:[%s22350_s1 + $0x2ac] sm:$0xf0]  ;;  %v13349_v10 = vld [vmem:[%s22350_s1 + $0x294] sm:$0xf]  ;;  %v13382_v60 = vld [vmem:[%s22350_s1 + $0x39c] sm:$0xf] }
  0x43   :  { %886 = vmatpush.bf16.msrb.mxu1 %v9320_v9  ;;  %912 = vmatpush.bf16.msrb.mxu3 %v9324_v13  ;;  %v9137_v9 = vld [vmem:[%s22350_s1 + $0xb0] sm:$0xf0]  ;;  %v9392_v13 = vor.u32 %v13353_v7, %v9391_v5  ;;  %v9359_v17 = vld [vmem:[%s22350_s1 + $0x250] sm:$0xf]  ;;  %v9529_v61 = vld [vmem:[%s22350_s1 + $0x3b8] sm:$0xf0] }
  0x44   :  { %900 = vmatmul.bf16.vlgmr.msrb.gmra.mxu2 %v14828_v55  ;;  %874 = vmatmul.bf16.vlgmr.msrb.gmra.mxu0 %v14828_v55  ;;  %v9393_v11 = vld [vmem:[%s22350_s1 + $0x2b0] sm:$0xf0]  ;;  %v13345_v19 = vld [vmem:[%s22350_s1 + $0x26c] sm:$0xf0]  ;;  %v9495_v3 = vld [vmem:[%s22350_s1 + $0x358] sm:$0xf]  ;;  %v9532_v4 = vor.u32 %v13382_v60, %v9529_v61 }
  0x45   :  { %918 = vmatpush.bf16.msra.mxu0 %v9296_v14  ;;  %944 = vmatpush.bf16.msra.mxu2 %v9300_v16  ;;  %v9140_v14 = vor.u32 %v13285_v8, %v9137_v9  ;;  %v13281_v16 = vld [vmem:[%s22350_s1 + $0x6c] sm:$0xf0]  ;;  %v9396_v18 = vor.u32 %v13349_v10, %v9393_v11  ;;  %v9105_v21 = vld [vmem:[%s22350_s1 + $0x70] sm:$0xf0]  ;;  %v13378_v5 = vld [vmem:[%s22350_s1 + $0x374] sm:$0xf0] }
  0x46   :  { %913 = vmatmul.bf16.vlgmr.msrb.gmra.mxu3 %v14830_v56  ;;  %887 = vmatmul.bf16.vlgmr.msrb.gmra.mxu1 %v14830_v56  ;;  %v13341_v22 = vld [vmem:[%s22350_s1 + $0x254] sm:$0xf]  ;;  %v9071_v25 = vld [vmem:[%s22350_s1 + $0x10] sm:$0xf]  ;;  %v9241_v7 = vld [vmem:[%s22350_s1 + $0x178] sm:$0xf0]  ;;  %v9496_v11 = vor.u32 %v13378_v5, %v9495_v3 }
  0x47   :  { %931 = vmatpush.bf16.msra.mxu1 %v9552_v15  ;;  %957 = vmatpush.bf16.msra.mxu3 %v9556_v20  ;;  %v9103_v15 = vld [vmem:[%s22350_s1 + $0x50] sm:$0xf]  ;;  %v13277_v20 = vld [vmem:[%s22350_s1 + $0x54] sm:$0xf]  ;;  %v13374_v8 = vld [vmem:[%s22350_s1 + $0x35c] sm:$0xf] }
  0x48   :  { %v9361_v23 = vld [vmem:[%s22350_s1 + $0x270] sm:$0xf0]  ;;  %v9104_v24 = vor.u32 %v13281_v16, %v9103_v15  ;;  %v9327_v29 = vld [vmem:[%s22350_s1 + $0x210] sm:$0xf]  ;;  %v9497_v9 = vld [vmem:[%s22350_s1 + $0x378] sm:$0xf0] }
  0x49   :  { %919 = vmatpush.bf16.msra.mxu0 %v9264_v26  ;;  %945 = vmatpush.bf16.msra.mxu2 %v9268_v28  ;;  %v13273_v26 = vld [vmem:[%s22350_s1 + $0x2c] sm:$0xf0]  ;;  %v9108_v28 = vor.u32 %v13277_v20, %v9105_v21  ;;  %v13269_v31 = vld [vmem:[%s22350_s1 + $0x14] sm:$0xf]  ;;  %v9463_v15 = vld [vmem:[%s22350_s1 + $0x318] sm:$0xf]  ;;  %v9500_v16 = vor.u32 %v13374_v8, %v9497_v9 }
  0x4a   :  { %v13337_v30 = vld [vmem:[%s22350_s1 + $0x22c] sm:$0xf0]  ;;  %v9073_v33 = vld [vmem:[%s22350_s1 + $0x30] sm:$0xf0]  ;;  %v13366_v20 = vld [vmem:[%s22350_s1 + $0x31c] sm:$0xf] }
  0x4b   :  { %932 = vmatpush.bf16.msra.mxu1 %v9520_v27  ;;  %958 = vmatpush.bf16.msra.mxu3 %v9524_v32  ;;  %v9360_v27 = vor.u32 %v13345_v19, %v9359_v17  ;;  %v9364_v32 = vor.u32 %v13341_v22, %v9361_v23  ;;  %v13333_v34 = vld [vmem:[%s22350_s1 + $0x214] sm:$0xf]  ;;  %v9328_v43 = vor.u32 %v13337_v30, %v9327_v29  ;;  %v13370_v17 = vld [vmem:[%s22350_s1 + $0x334] sm:$0xf0]  ;;  %v9209_v19 = vld [vmem:[%s22350_s1 + $0x138] sm:$0xf0] }
  0x4c   :  { %v9329_v35 = vld [vmem:[%s22350_s1 + $0x230] sm:$0xf0]  ;;  %v9465_v21 = vld [vmem:[%s22350_s1 + $0x338] sm:$0xf0]  ;;  %v9464_v23 = vor.u32 %v13370_v17, %v9463_v15  ;;  %v13362_v29 = vld [vmem:[%s22350_s1 + $0x2f4] sm:$0xf0] }
  0x4d   :  { %920 = vmatpush.bf16.msra.mxu0 %v9232_v38  ;;  %946 = vmatpush.bf16.msra.mxu2 %v9236_v40  ;;  %v9559_v38 = vld [vmem:[%s22350_s1 + $0x3d8] sm:$0xf]  ;;  %v9332_v47 = vor.u32 %v13333_v34, %v9329_v35  ;;  %v13294_v30 = vld [vmem:[%s22350_s1 + $0xdc] sm:$0xf] }
  0x4e   :  { %v13394_v40 = vld [vmem:[%s22350_s1 + $0x3f4] sm:$0xf0]  ;;  %v9401_v45 = vld [vmem:[%s22350_s1 + $0x2b8] sm:$0xf0] }
  0x4f   :  { %933 = vmatpush.bf16.msra.mxu1 %v9488_v39  ;;  %959 = vmatpush.bf16.msra.mxu3 %v9492_v44  ;;  %v9072_v39 = vor.u32 %v13273_v26, %v9071_v25  ;;  %v9076_v44 = vor.u32 %v13269_v31, %v9073_v33  ;;  %v9560_v49 = vor.u32 %v13394_v40, %v9559_v38  ;;  %v9175_v25 = vld [vmem:[%s22350_s1 + $0xd8] sm:$0xf]  ;;  %v9177_v31 = vld [vmem:[%s22350_s1 + $0xf8] sm:$0xf0] }
  0x50   :  { %v13298_v26 = vld [vmem:[%s22350_s1 + $0xf4] sm:$0xf0]  ;;  %v9433_v33 = vld [vmem:[%s22350_s1 + $0x2f8] sm:$0xf0]  ;;  %v9180_v36 = vor.u32 %v13294_v30, %v9177_v31  ;;  %v9775_v30 = vld [vmem:[%s22350_s1 + $0x1a0] sm:$0xf0] }
  0x51   :  { %921 = vmatpush.bf16.msra.mxu0 %v9200_v50  ;;  %947 = vmatpush.bf16.msra.mxu2 %v9204_v52  ;;  %v9308_v50 = vor.u32 %v13326_v41, %v9305_v42  ;;  %v13322_v52 = vld [vmem:[%s22350_s1 + $0x1b4] sm:$0xf0]  ;;  %v9176_v34 = vor.u32 %v13298_v26, %v9175_v25  ;;  %v13286_v42 = vld [vmem:[%s22350_s1 + $0x9c] sm:$0xf]  ;;  %v9773_v26 = vld [vmem:[%s22350_s1 + $0x180] sm:$0xf] }
  0x52   :  { %v9143_v37 = vld [vmem:[%s22350_s1 + $0x98] sm:$0xf]  ;;  %v9113_v57 = vld [vmem:[%s22350_s1 + $0x78] sm:$0xf0] }
  0x53   :  { %934 = vmatpush.bf16.msra.mxu1 %v9456_v51  ;;  %960 = vmatpush.bf16.msra.mxu3 %v9460_v58  ;;  %v9271_v51 = vld [vmem:[%s22350_s1 + $0x198] sm:$0xf]  ;;  %v13318_v58 = vld [vmem:[%s22350_s1 + $0x19c] sm:$0xf] }
  0x54   :  { %v9272_v62 = vor.u32 %v13322_v52, %v9271_v51  ;;  %v13290_v38 = vld [vmem:[%s22350_s1 + $0xb4] sm:$0xf0]  ;;  %v9081_v5 = vld [vmem:[%s22350_s1 + $0x38] sm:$0xf0] }
  0x55   :  { %922 = vmatpush.bf16.msra.mxu0 %v9168_v0  ;;  %948 = vmatpush.bf16.msra.mxu2 %v9172_v2  ;;  %v9276_v0 = vor.u32 %v13318_v58, %v9273_v59  ;;  %v13314_v2 = vld [vmem:[%s22350_s1 + $0x174] sm:$0xf0]  ;;  %v9144_v46 = vor.u32 %v13290_v38, %v9143_v37  ;;  %v13342_v58 = vld [vmem:[%s22350_s1 + $0x25c] sm:$0xf]  ;;  %v10063_v38 = vld [vmem:[%s22350_s1 + $0x3e0] sm:$0xf0] }
  0x56   :  { %v13354_v41 = vld [vmem:[%s22350_s1 + $0x2b4] sm:$0xf0]  ;;  %v9369_v59 = vld [vmem:[%s22350_s1 + $0x278] sm:$0xf0] }
  0x57   :  { %935 = vmatpush.bf16.msra.mxu1 %v9424_v1  ;;  %961 = vmatpush.bf16.msra.mxu3 %v9428_v6  ;;  %v9239_v1 = vld [vmem:[%s22350_s1 + $0x158] sm:$0xf]  ;;  %v13310_v6 = vld [vmem:[%s22350_s1 + $0x15c] sm:$0xf] }
  0x58   :  { %v9240_v10 = vor.u32 %v13314_v2, %v9239_v1  ;;  %v9367_v51 = vld [vmem:[%s22350_s1 + $0x258] sm:$0xf]  ;;  %v9372_v2 = vor.u32 %v13342_v58, %v9369_v59  ;;  %v13427_v59 = vld [vmem:[%s22350_s1 + $0x104] sm:$0xf] }
  0x59   :  { %923 = vmatpush.bf16.msra.mxu0 %v9136_v12  ;;  %949 = vmatpush.bf16.msra.mxu2 %v9140_v14  ;;  %v9244_v12 = vor.u32 %v13310_v6, %v9241_v7  ;;  %v13306_v14 = vld [vmem:[%s22350_s1 + $0x134] sm:$0xf0]  ;;  %v13334_v6 = vld [vmem:[%s22350_s1 + $0x21c] sm:$0xf] }
  0x5a   :  { %v13346_v53 = vld [vmem:[%s22350_s1 + $0x274] sm:$0xf0]  ;;  %v9337_v7 = vld [vmem:[%s22350_s1 + $0x238] sm:$0xf0] }
  0x5b   :  { %936 = vmatpush.bf16.msra.mxu1 %v9392_v13  ;;  %962 = vmatpush.bf16.msra.mxu3 %v9396_v18  ;;  %v9207_v13 = vld [vmem:[%s22350_s1 + $0x118] sm:$0xf]  ;;  %v13302_v18 = vld [vmem:[%s22350_s1 + $0x11c] sm:$0xf]  ;;  %v9368_v61 = vor.u32 %v13346_v53, %v9367_v51  ;;  %v10031_v51 = vld [vmem:[%s22350_s1 + $0x3a0] sm:$0xf0] }
  0x5c   :  { %v9208_v22 = vor.u32 %v13306_v14, %v9207_v13  ;;  %v9335_v1 = vld [vmem:[%s22350_s1 + $0x218] sm:$0xf] }
  0x5d   :  { %924 = vmatpush.bf16.msra.mxu0 %v9104_v24  ;;  %950 = vmatpush.bf16.msra.mxu2 %v9108_v28  ;;  %v9212_v24 = vor.u32 %v13302_v18, %v9209_v19  ;;  %v9468_v28 = vor.u32 %v13366_v20, %v9465_v21  ;;  %v13338_v3 = vld [vmem:[%s22350_s1 + $0x234] sm:$0xf0] }
  0x5e   :  { %v9336_v9 = vor.u32 %v13338_v3, %v9335_v1  ;;  %v13499_v1 = vld [vmem:[%s22350_s1 + $0x344] sm:$0xf] }
  0x5f   :  { %937 = vmatpush.bf16.msra.mxu1 %v9360_v27  ;;  %963 = vmatpush.bf16.msra.mxu3 %v9364_v32  ;;  %v9431_v27 = vld [vmem:[%s22350_s1 + $0x2d8] sm:$0xf]  ;;  %v13358_v32 = vld [vmem:[%s22350_s1 + $0x2dc] sm:$0xf] }
  0x60   :  { %v9432_v35 = vor.u32 %v13362_v29, %v9431_v27  ;;  %v9436_v40 = vor.u32 %v13358_v32, %v9433_v33  ;;  %v13447_v27 = vld [vmem:[%s22350_s1 + $0x19c] sm:$0xf0] }
  0x61   :  { %925 = vmatpush.bf16.msra.mxu0 %v9072_v39  ;;  %951 = vmatpush.bf16.msra.mxu2 %v9076_v44  ;;  %v9399_v39 = vld [vmem:[%s22350_s1 + $0x298] sm:$0xf]  ;;  %v13350_v44 = vld [vmem:[%s22350_s1 + $0x29c] sm:$0xf]  ;;  %v9774_v29 = vor.u32 %v13447_v27, %v9773_v26  ;;  %v10061_v33 = vld [vmem:[%s22350_s1 + $0x3c0] sm:$0xf] }
  0x62   :  { %v9404_v52 = vor.u32 %v13350_v44, %v9401_v45  ;;  %v9743_v44 = vld [vmem:[%s22350_s1 + $0x160] sm:$0xf0] }
  0x63   :  { %938 = vmatpush.bf16.msra.mxu1 %v9328_v43  ;;  %964 = vmatpush.bf16.msra.mxu3 %v9332_v47  ;;  %v9145_v43 = vld [vmem:[%s22350_s1 + $0xb8] sm:$0xf0]  ;;  %v9400_v47 = vor.u32 %v13354_v41, %v9399_v39  ;;  %v13439_v41 = vld [vmem:[%s22350_s1 + $0x15c] sm:$0xf0] }
  0x64   :  { %952 = vmatmul.bf16.vlgmr.msra.gmra.mxu2 %v14828_v55  ;;  %926 = vmatmul.bf16.vlgmr.msra.gmra.mxu0 %v14828_v55  ;;  %v36_v26 = vld [vmem:[%s22352_s0] sm:$0xff] }
  0x65   :  { %970 = vmatpush.bf16.msrb.mxu0 %v9304_v48  ;;  %996 = vmatpush.bf16.msrb.mxu2 %v9308_v50  ;;  %v9148_v48 = vor.u32 %v13286_v42, %v9145_v43  ;;  %v13282_v50 = vld [vmem:[%s22350_s1 + $0x74] sm:$0xf0]  ;;  %v13435_v42 = vld [vmem:[%s22350_s1 + $0x144] sm:$0xf] }
  0x66   :  { %965 = vmatmul.bf16.vlgmr.msra.gmra.mxu3 %v14830_v56  ;;  %939 = vmatmul.bf16.vlgmr.msra.gmra.mxu1 %v14830_v56  ;;  %v9746_v45 = vor.u32 %v13435_v42, %v9743_v44 }
  0x67   :  { %983 = vmatpush.bf16.msrb.mxu1 %v9560_v49  ;;  %1009 = vmatpush.bf16.msrb.mxu3 %v9564_v54  ;;  %v9111_v49 = vld [vmem:[%s22350_s1 + $0x58] sm:$0xf]  ;;  %v13278_v54 = vld [vmem:[%s22350_s1 + $0x5c] sm:$0xf] }
  0x68   :  { %v9112_v60 = vor.u32 %v13282_v50, %v9111_v49 }
  0x69   :  { %971 = vmatpush.bf16.msrb.mxu0 %v9272_v62  ;;  %997 = vmatpush.bf16.msrb.mxu2 %v9276_v0  ;;  %v9116_v62 = vor.u32 %v13278_v54, %v9113_v57  ;;  %v13274_v0 = vld [vmem:[%s22350_s1 + $0x34] sm:$0xf0]  ;;  %v9709_v54 = vld [vmem:[%s22350_s1 + $0x100] sm:$0xf] }
  0x6a   :  { %v13431_v57 = vld [vmem:[%s22350_s1 + $0x11c] sm:$0xf0] }
  0x6b   :  { %984 = vmatpush.bf16.msrb.mxu1 %v9528_v63  ;;  %1010 = vmatpush.bf16.msrb.mxu3 %v9532_v4  ;;  %v9079_v63 = vld [vmem:[%s22350_s1 + $0x18] sm:$0xf]  ;;  %v13270_v4 = vld [vmem:[%s22350_s1 + $0x1c] sm:$0xf]  ;;  %v9710_v58 = vor.u32 %v13431_v57, %v9709_v54  ;;  %v9581_v54 = vld [vmem:[%s22350_s1] sm:$0xf] }
  0x6c   :  { %v9080_v8 = vor.u32 %v13274_v0, %v9079_v63  ;;  %v9997_v63 = vld [vmem:[%s22350_s1 + $0x340] sm:$0xf] }
  0x6d   :  { %972 = vmatpush.bf16.msrb.mxu0 %v9240_v10  ;;  %998 = vmatpush.bf16.msrb.mxu2 %v9244_v12  ;;  %v9084_v10 = vor.u32 %v13270_v4, %v9081_v5  ;;  %v13503_v0 = vld [vmem:[%s22350_s1 + $0x35c] sm:$0xf0] }
  0x6e   :  { %v9998_v5 = vor.u32 %v13503_v0, %v9997_v63  ;;  %v13399_v57 = vld [vmem:[%s22350_s1 + $0x1c] sm:$0xf0]  ;;  %v13456_v63 = vld [vmem:[%s22350_s1 + $0x1e4] sm:$0xf0]  ;;  %v13452_v0 = vld [vmem:[%s22350_s1 + $0x1cc] sm:$0xf] }
  0x6f   :  { %985 = vmatpush.bf16.msrb.mxu1 %v9496_v11  ;;  %1011 = vmatpush.bf16.msrb.mxu3 %v9500_v16  ;;  %v9340_v11 = vor.u32 %v13334_v6, %v9337_v7  ;;  %v9999_v6 = vld [vmem:[%s22350_s1 + $0x360] sm:$0xf0] }
  0x70   :  { %v10002_v7 = vor.u32 %v13499_v1, %v9999_v6 }
  0x71   :  { %973 = vmatpush.bf16.msrb.mxu0 %v9208_v22  ;;  %999 = vmatpush.bf16.msrb.mxu2 %v9212_v24  ;;  %v9805_v22 = vld [vmem:[%s22350_s1 + $0x1c0] sm:$0xf]  ;;  %v9807_v24 = vld [vmem:[%s22350_s1 + $0x1e0] sm:$0xf0] }
  0x73   :  { %986 = vmatpush.bf16.msrb.mxu1 %v9464_v23  ;;  %1012 = vmatpush.bf16.msrb.mxu3 %v9468_v28  ;;  %v13443_v28 = vld [vmem:[%s22350_s1 + $0x184] sm:$0xf] }
  0x74   :  { %v9778_v32 = vor.u32 %v13443_v28, %v9775_v30  ;;  %v9647_v28 = vld [vmem:[%s22350_s1 + $0xa0] sm:$0xf0]  ;;  %v9933_v30 = vld [vmem:[%s22350_s1 + $0x2c0] sm:$0xf] }
  0x75   :  { %974 = vmatpush.bf16.msrb.mxu0 %v9176_v34  ;;  %1000 = vmatpush.bf16.msrb.mxu2 %v9180_v36  ;;  %v13519_v34 = vld [vmem:[%s22350_s1 + $0x3dc] sm:$0xf0] }
  0x76   :  { %v10062_v37 = vor.u32 %v13519_v34, %v10061_v33 }
  0x77   :  { %987 = vmatpush.bf16.msrb.mxu1 %v9432_v35  ;;  %1013 = vmatpush.bf16.msrb.mxu3 %v9436_v40  ;;  %v13515_v35 = vld [vmem:[%s22350_s1 + $0x3c4] sm:$0xf]  ;;  %v9741_v40 = vld [vmem:[%s22350_s1 + $0x140] sm:$0xf] }
  0x78   :  { %v10066_v39 = vor.u32 %v13515_v35, %v10063_v38  ;;  %v9742_v43 = vor.u32 %v13439_v41, %v9741_v40  ;;  %v9935_v35 = vld [vmem:[%s22350_s1 + $0x2e0] sm:$0xf0]  ;;  %v13407_v40 = vld [vmem:[%s22350_s1 + $0x5c] sm:$0xf0] }
  0x79   :  { %975 = vmatpush.bf16.msrb.mxu0 %v9144_v46  ;;  %1001 = vmatpush.bf16.msrb.mxu2 %v9148_v48  ;;  %v10029_v46 = vld [vmem:[%s22350_s1 + $0x380] sm:$0xf]  ;;  %v13507_v48 = vld [vmem:[%s22350_s1 + $0x384] sm:$0xf] }
  0x7a   :  { %v10034_v53 = vor.u32 %v13507_v48, %v10031_v51  ;;  %v13403_v41 = vld [vmem:[%s22350_s1 + $0x44] sm:$0xf] }
  0x7b   :  { %988 = vmatpush.bf16.msrb.mxu1 %v9400_v47  ;;  %1014 = vmatpush.bf16.msrb.mxu3 %v9404_v52  ;;  %v13511_v47 = vld [vmem:[%s22350_s1 + $0x39c] sm:$0xf0] }
  0x7c   :  { %v10030_v50 = vor.u32 %v13511_v47, %v10029_v46  ;;  %v13479_v46 = vld [vmem:[%s22350_s1 + $0x29c] sm:$0xf0]  ;;  %v37_v47 = vld [vmem:[%s22352_s0 + $0x8] sm:$0xff] }
  0x7d   :  { %976 = vmatpush.bf16.msrb.mxu0 %v9112_v60  ;;  %1002 = vmatpush.bf16.msrb.mxu2 %v9116_v62  ;;  %v9711_v60 = vld [vmem:[%s22350_s1 + $0x120] sm:$0xf0] }
  0x7e   :  { %v9714_v62 = vor.u32 %v13427_v59, %v9711_v60  ;;  %v13395_v59 = vld [vmem:[%s22350_s1 + $0x4] sm:$0xf] }
  0x7f   :  { %989 = vmatpush.bf16.msrb.mxu1 %v9368_v61  ;;  %1015 = vmatpush.bf16.msrb.mxu3 %v9372_v2  ;;  %v38_v2 = vld [vmem:[%s22352_s0 + $0x10] sm:$0xff]  ;;  %v9583_v60 = vld [vmem:[%s22350_s1 + $0x20] sm:$0xf0] }
  0x81   :  { %977 = vmatpush.bf16.msrb.mxu0 %v9080_v8  ;;  %1003 = vmatpush.bf16.msrb.mxu2 %v9084_v10  ;;  %v9677_v8 = vld [vmem:[%s22350_s1 + $0xc0] sm:$0xf]  ;;  %v13419_v10 = vld [vmem:[%s22350_s1 + $0xc4] sm:$0xf] }
  0x83   :  { %990 = vmatpush.bf16.msrb.mxu1 %v9336_v9  ;;  %1016 = vmatpush.bf16.msrb.mxu3 %v9340_v11  ;;  %v13423_v9 = vld [vmem:[%s22350_s1 + $0xdc] sm:$0xf0] }
  0x84   :  { %978 = vmatmul.bf16.vlgmr.msrb.gmra.mxu0 %v14828_v55  ;;  %1004 = vmatmul.bf16.vlgmr.msrb.gmra.mxu2 %v14828_v55  ;;  %v13455_v55 = vld [vmem:[%s22350_s1 + $0x1dc] sm:$0xf0]  ;;  %v9678_v11 = vor.u32 %v13423_v9, %v9677_v8  ;;  %v13467_v8 = vld [vmem:[%s22350_s1 + $0x244] sm:$0xf] }
  0x85   :  { %v9806_v23 = vor.u32 %v13455_v55, %v9805_v22  ;;  %v9967_v22 = vld [vmem:[%s22350_s1 + $0x320] sm:$0xf0] }
  0x86   :  { %991 = vmatmul.bf16.vlgmr.msrb.gmra.mxu1 %v14830_v56  ;;  %1017 = vmatmul.bf16.vlgmr.msrb.gmra.mxu3 %v14830_v56  ;;  %v13451_v56 = vld [vmem:[%s22350_s1 + $0x1c4] sm:$0xf] }
  0x87   :  { %v9810_v25 = vor.u32 %v13451_v56, %v9807_v24  ;;  %1937 = vmatpush.bf16.msra.mxu0 %v9806_v23  ;;  %1950 = vmatpush.bf16.msra.mxu1 %v10062_v37  ;;  %v9645_v23 = vld [vmem:[%s22350_s1 + $0x80] sm:$0xf] }
  0x88   :  { %1976 = vmatpush.bf16.msra.mxu3 %v10066_v39  ;;  %v13415_v24 = vld [vmem:[%s22350_s1 + $0x9c] sm:$0xf0] }
  0x89   :  { %1963 = vmatpush.bf16.msra.mxu2 %v9810_v25  ;;  %v13411_v25 = vld [vmem:[%s22350_s1 + $0x84] sm:$0xf]  ;;  %v9646_v27 = vor.u32 %v13415_v24, %v9645_v23  ;;  %v9613_v39 = vld [vmem:[%s22350_s1 + $0x40] sm:$0xf] }
  0x8a   :  { %v9614_v42 = vor.u32 %v13407_v40, %v9613_v39  ;;  %v13436_v40 = vld [vmem:[%s22350_s1 + $0x14c] sm:$0xf] }
  0x8b   :  { %1938 = vmatpush.bf16.msra.mxu0 %v9774_v29  ;;  %1951 = vmatpush.bf16.msra.mxu1 %v10030_v50  ;;  %v9650_v29 = vor.u32 %v13411_v25, %v9647_v28  ;;  %v9903_v50 = vld [vmem:[%s22350_s1 + $0x2a0] sm:$0xf0] }
  0x8c   :  { %1977 = vmatpush.bf16.msra.mxu3 %v10034_v53  ;;  %v40_v28 = vld [vmem:[%s22352_s0 + $0x20] sm:$0xff] }
  0x8d   :  { %1964 = vmatpush.bf16.msra.mxu2 %v9778_v32  ;;  %v13483_v32 = vld [vmem:[%s22350_s1 + $0x2c4] sm:$0xf] }
  0x8e   :  { %v9938_v38 = vor.u32 %v13483_v32, %v9935_v35  ;;  %v9749_v35 = vld [vmem:[%s22350_s1 + $0x148] sm:$0xf] }
  0x8f   :  { %1939 = vmatpush.bf16.msra.mxu0 %v9742_v43  ;;  %1952 = vmatpush.bf16.msra.mxu1 %v9998_v5  ;;  %v9615_v43 = vld [vmem:[%s22350_s1 + $0x60] sm:$0xf0] }
  0x90   :  { %1978 = vmatpush.bf16.msra.mxu3 %v10002_v7  ;;  %v9618_v44 = vor.u32 %v13403_v41, %v9615_v43  ;;  %v13471_v7 = vld [vmem:[%s22350_s1 + $0x25c] sm:$0xf0]  ;;  %v9751_v41 = vld [vmem:[%s22350_s1 + $0x168] sm:$0xf0] }
  0x91   :  { %1965 = vmatpush.bf16.msra.mxu2 %v9746_v45  ;;  %v9901_v45 = vld [vmem:[%s22350_s1 + $0x280] sm:$0xf]  ;;  %v9754_v43 = vor.u32 %v13436_v40, %v9751_v41  ;;  %v9621_v41 = vld [vmem:[%s22350_s1 + $0x48] sm:$0xf] }
  0x92   :  { %v9902_v48 = vor.u32 %v13479_v46, %v9901_v45  ;;  %v13508_v45 = vld [vmem:[%s22350_s1 + $0x38c] sm:$0xf] }
  0x93   :  { %1940 = vmatpush.bf16.msra.mxu0 %v9710_v58  ;;  %v9582_v58 = vor.u32 %v13399_v57, %v9581_v54  ;;  %v10039_v46 = vld [vmem:[%s22350_s1 + $0x3a8] sm:$0xf0] }
  0x94   :  { %v41_v57 = vld [vmem:[%s22352_s0 + $0x28] sm:$0xff] }
  0x95   :  { %1966 = vmatpush.bf16.msra.mxu2 %v9714_v62  ;;  %v9586_v62 = vor.u32 %v13395_v59, %v9583_v60  ;;  %v9719_v60 = vld [vmem:[%s22350_s1 + $0x128] sm:$0xf0] }
  0x97   :  { %1941 = vmatpush.bf16.msra.mxu0 %v9678_v11  ;;  %v13448_v11 = vld [vmem:[%s22350_s1 + $0x1a4] sm:$0xf0] }
  0x9b   :  { %1942 = vmatpush.bf16.msra.mxu0 %v9646_v27 }
  0x9f   :  { %1943 = vmatpush.bf16.msra.mxu0 %v9614_v42 }
  0xa1   :  { %v823_v12 = vpop.f32.mrf.mxu0 }
  0xa3   :  { %v836_v13 = vpop.f32.mrf.mxu1  ;;  %1944 = vmatpush.bf16.msra.mxu0 %v9582_v58 }
  0xa4   :  { %v15376_v14 = vadd.f32 %v836_v13, %v823_v12  ;;  %v9679_v12 = vld [vmem:[%s22350_s1 + $0xe0] sm:$0xf0] }
  0xa5   :  { %v9682_v13 = vor.u32 %v13419_v10, %v9679_v12  ;;  %v9871_v10 = vld [vmem:[%s22350_s1 + $0x260] sm:$0xf0] }
  0xa7   :  { %v849_v15 = vpop.f32.mrf.mxu2  ;;  %1967 = vmatpush.bf16.msra.mxu2 %v9682_v13  ;;  %v9874_v13 = vor.u32 %v13467_v8, %v9871_v10  ;;  %v13424_v10 = vld [vmem:[%s22350_s1 + $0xe4] sm:$0xf0] }
  0xa9   :  { %v862_v16 = vpop.f32.mrf.mxu3  ;;  %v825_v18 = vpop.f32.mrf.mxu0 }
  0xaa   :  { %v15378_v17 = vadd.f32 %v862_v16, %v849_v15  ;;  %v9965_v15 = vld [vmem:[%s22350_s1 + $0x300] sm:$0xf]  ;;  %v13491_v18 = vld [vmem:[%s22350_s1 + $0x304] sm:$0xf] }
  0xab   :  { %v838_v19 = vpop.f32.mrf.mxu1  ;;  %v13495_v16 = vld [vmem:[%s22350_s1 + $0x31c] sm:$0xf0]  ;;  %v9970_v56 = vor.u32 %v13491_v18, %v9967_v22  ;;  %1968 = vmatpush.bf16.msra.mxu2 %v9650_v29  ;;  %v9783_v18 = vld [vmem:[%s22350_s1 + $0x1a8] sm:$0xf0]  ;;  %v13459_v22 = vld [vmem:[%s22350_s1 + $0x204] sm:$0xf] }
  0xad   :  { %1979 = vmatpush.bf16.msra.mxu3 %v9970_v56 }
  0xaf   :  { %v851_v20 = vpop.f32.mrf.mxu2  ;;  %1969 = vmatpush.bf16.msra.mxu2 %v9618_v44  ;;  %v13512_v44 = vld [vmem:[%s22350_s1 + $0x3a4] sm:$0xf0] }
  0xb1   :  { %v864_v21 = vpop.f32.mrf.mxu3  ;;  %1980 = vmatpush.bf16.msra.mxu3 %v9938_v38 }
  0xb2   :  { %v9966_v21 = vor.u32 %v13495_v16, %v9965_v15  ;;  %v13444_v16 = vld [vmem:[%s22350_s1 + $0x18c] sm:$0xf] }
  0xb3   :  { %1970 = vmatpush.bf16.msra.mxu2 %v9586_v62 }
  0xb4   :  { %1953 = vmatpush.bf16.msra.mxu1 %v9966_v21  ;;  %v13463_v21 = vld [vmem:[%s22350_s1 + $0x21c] sm:$0xf0] }
  0xc1   :  { %v875_v31 = vpop.f32.mrf.mxu0 }
  0xc3   :  { %v888_v36 = vpop.f32.mrf.mxu1 }
  0xc4   :  { %v889_v3 = vadd.f32 %v888_v36, %v875_v31  ;;  %v13487_v31 = vld [vmem:[%s22350_s1 + $0x2dc] sm:$0xf0]  ;;  %v1022_v36 = vadd.f32 %v15376_v14, %v36_v26  ;;  %v39_v14 = vld [vmem:[%s22352_s0 + $0x18] sm:$0xff]  ;;  %v10069_v26 = vld [vmem:[%s22350_s1 + $0x3c8] sm:$0xf] }
  0xc5   :  { %v9934_v34 = vor.u32 %v13487_v31, %v9933_v30  ;;  %v13520_v30 = vld [vmem:[%s22350_s1 + $0x3e4] sm:$0xf0]  ;;  %v13516_v31 = vld [vmem:[%s22350_s1 + $0x3cc] sm:$0xf] }
  0xc6   :  { %v1024_v19 = vadd.f32 %v889_v3, %v38_v2  ;;  %v9565_v51 = vmul.f32 -1.442695, %v1022_v36  ;;  %v9815_v2 = vld [vmem:[%s22350_s1 + $0x1e8] sm:$0xf0]  ;;  %v9869_v3 = vld [vmem:[%s22350_s1 + $0x240] sm:$0xf] }
  0xc7   :  { %v15437_v49 = vpop.f32.mrf.mxu2  ;;  %1954 = vmatpush.bf16.msra.mxu1 %v9934_v34  ;;  %v9818_v6 = vor.u32 %v13452_v0, %v9815_v2  ;;  %v9870_v9 = vor.u32 %v13471_v7, %v9869_v3  ;;  %v10071_v34 = vld [vmem:[%s22350_s1 + $0x3e8] sm:$0xf0]  ;;  %v13440_v36 = vld [vmem:[%s22350_s1 + $0x164] sm:$0xf0] }
  0xc8   :  { %v9567_v33 = vmul.f32 -1.442695, %v1024_v19  ;;  %v9837_v19 = vld [vmem:[%s22350_s1 + $0x200] sm:$0xf]  ;;  %v10074_v38 = vor.u32 %v13516_v31, %v10071_v34  ;;  %v9750_v39 = vor.u32 %v13440_v36, %v9749_v35  ;;  %v13504_v0 = vld [vmem:[%s22350_s1 + $0x364] sm:$0xf0] }
  0xc9   :  { %v914_v52 = vpop.f32.mrf.mxu3  ;;  %v877_v61 = vpop.f32.mrf.mxu0  ;;  %2015 = vmatpush.bf16.msrb.mxu2 %v9818_v6  ;;  %v9838_v24 = vor.u32 %v13463_v21, %v9837_v19  ;;  %v13496_v19 = vld [vmem:[%s22350_s1 + $0x324] sm:$0xf0]  ;;  %v9655_v31 = vld [vmem:[%s22350_s1 + $0xa8] sm:$0xf0] }
  0xca   :  { %v915_v37 = vadd.f32 %v914_v52, %v15437_v49  ;;  %v13475_v49 = vld [vmem:[%s22350_s1 + $0x284] sm:$0xf]  ;;  %14291 = vpow2.f32 %v9567_v33  ;;  %v9813_v61 = vld [vmem:[%s22350_s1 + $0x1c8] sm:$0xf]  ;;  %v10070_v33 = vor.u32 %v13520_v30, %v10069_v26  ;;  %v13412_v26 = vld [vmem:[%s22350_s1 + $0x8c] sm:$0xf] }
  0xcb   :  { %v890_v4 = vpop.f32.mrf.mxu1  ;;  %v9906_v53 = vor.u32 %v13475_v49, %v9903_v50  ;;  %1955 = vmatpush.bf16.msra.mxu1 %v9902_v48  ;;  %v9814_v1 = vor.u32 %v13456_v63, %v9813_v61  ;;  %14293 = vpow2.f32 %v9565_v51  ;;  %v10042_v49 = vor.u32 %v13508_v45, %v10039_v46  ;;  %v9717_v50 = vld [vmem:[%s22350_s1 + $0x108] sm:$0xf] }
  0xcc   :  { %v1025_v52 = vadd.f32 %v915_v37, %v39_v14  ;;  %v1023_v4 = vadd.f32 %v15378_v17, %v37_v47  ;;  %v9781_v17 = vld [vmem:[%s22350_s1 + $0x188] sm:$0xf] }
  0xcd   :  { %1981 = vmatpush.bf16.msra.mxu3 %v9906_v53  ;;  %1989 = vmatpush.bf16.msrb.mxu0 %v9814_v1  ;;  %v9782_v15 = vor.u32 %v13448_v11, %v9781_v17  ;;  %v10037_v14 = vld [vmem:[%s22350_s1 + $0x388] sm:$0xf]  ;;  %v13500_v1 = vld [vmem:[%s22350_s1 + $0x34c] sm:$0xf] }
  0xce   :  { %v9568_v5 = vmul.f32 -1.442695, %v1025_v52  ;;  %v9566_v56 = vmul.f32 -1.442695, %v1023_v4  ;;  %v10038_v48 = vor.u32 %v13512_v44, %v10037_v14  ;;  %v13432_v51 = vld [vmem:[%s22350_s1 + $0x124] sm:$0xf0] }
  0xcf   :  { %v903_v20 = vpop.f32.mrf.mxu2  ;;  %1956 = vmatpush.bf16.msra.mxu1 %v9870_v9  ;;  %v13428_v52 = vld [vmem:[%s22350_s1 + $0x10c] sm:$0xf]  ;;  %v9718_v59 = vor.u32 %v13432_v51, %v9717_v50  ;;  %v10005_v63 = vld [vmem:[%s22350_s1 + $0x348] sm:$0xf] }
  0xd0   :  { %v14292_v12 = vpop.eup %14291  ;;  %v9786_v20 = vor.u32 %v13444_v16, %v9783_v18  ;;  %14295 = vpow2.f32 %v9568_v5  ;;  %v9722_v62 = vor.u32 %v13428_v52, %v9719_v60  ;;  %v10006_v4 = vor.u32 %v13504_v0, %v10005_v63  ;;  %v10007_v5 = vld [vmem:[%s22350_s1 + $0x368] sm:$0xf0]  ;;  %v9685_v9 = vld [vmem:[%s22350_s1 + $0xc8] sm:$0xf] }
  0xd1   :  { %v916_v55 = vpop.f32.mrf.mxu3  ;;  %1982 = vmatpush.bf16.msra.mxu3 %v9874_v13  ;;  %v15616_v27 = vadd.f32 1.0, %v14292_v12  ;;  %1990 = vmatpush.bf16.msrb.mxu0 %v9782_v15  ;;  %v14294_v37 = vpop.eup %14293  ;;  %14297 = vpow2.f32 %v9566_v56  ;;  %v10010_v8 = vor.u32 %v13500_v1, %v10007_v5  ;;  %v13420_v17 = vld [vmem:[%s22350_s1 + $0xcc] sm:$0xf]  ;;  %v9686_v11 = vor.u32 %v13424_v10, %v9685_v9  ;;  %v9973_v18 = vld [vmem:[%s22350_s1 + $0x308] sm:$0xf] }
  0xd2   :  { %v9839_v55 = vld [vmem:[%s22350_s1 + $0x220] sm:$0xf0]  ;;  %2016 = vmatpush.bf16.msrb.mxu2 %v9786_v20  ;;  %v15663_v53 = vadd.f32 1.0, %v14294_v37  ;;  %v9687_v12 = vld [vmem:[%s22350_s1 + $0xe8] sm:$0xf0]  ;;  %v9974_v21 = vor.u32 %v13496_v19, %v9973_v18 }
  0xd3   :  { %v9842_v25 = vor.u32 %v13459_v22, %v9839_v55  ;;  %1957 = vmatpush.bf16.msra.mxu1 %v9838_v24  ;;  %14299 = vrcp.f32 %v15616_v27  ;;  %v9690_v16 = vor.u32 %v13420_v17, %v9687_v12  ;;  %v13492_v22 = vld [vmem:[%s22350_s1 + $0x30c] sm:$0xf]  ;;  %v9653_v24 = vld [vmem:[%s22350_s1 + $0x88] sm:$0xf]  ;;  %vm1089_vm1 = vweird.f32 %v15616_v27 }
  0xd4   :  { %v9975_v55 = vld [vmem:[%s22350_s1 + $0x328] sm:$0xf0]  ;;  %v9941_v34 = vld [vmem:[%s22350_s1 + $0x2c8] sm:$0xf]  ;;  %vm1059_vm0 = vweird.f32 %v15663_v53 }
  0xd5   :  { %1983 = vmatpush.bf16.msra.mxu3 %v9842_v25  ;;  %1991 = vmatpush.bf16.msrb.mxu0 %v9750_v39  ;;  %v13416_v25 = vld [vmem:[%s22350_s1 + $0xa4] sm:$0xf0]  ;;  %v9943_v39 = vld [vmem:[%s22350_s1 + $0x2e8] sm:$0xf0] }
  0xd6   :  { %2017 = vmatpush.bf16.msrb.mxu2 %v9754_v43  ;;  %v14296_v2 = vpop.eup %14295  ;;  %v9654_v30 = vor.u32 %v13416_v25, %v9653_v24  ;;  %v13488_v35 = vld [vmem:[%s22350_s1 + $0x2e4] sm:$0xf0]  ;;  %v13404_v43 = vld [vmem:[%s22350_s1 + $0x4c] sm:$0xf]  ;;  %v42_v24 = vld [vmem:[%s22352_s0 + $0x30] sm:$0xff] }
  0xd7   :  { %2002 = vmatpush.bf16.msrb.mxu1 %v10070_v33  ;;  %v14298_v13 = vpop.eup %14297  ;;  %v15697_v15 = vadd.f32 1.0, %v14296_v2  ;;  %v9658_v33 = vor.u32 %v13412_v26, %v9655_v31  ;;  %v9942_v37 = vor.u32 %v13488_v35, %v9941_v34  ;;  %v9623_v44 = vld [vmem:[%s22350_s1 + $0x68] sm:$0xf0]  ;;  %v13480_v50 = vld [vmem:[%s22350_s1 + $0x2a4] sm:$0xf0] }
  0xd8   :  { %v13400_v60 = vld [vmem:[%s22350_s1 + $0x24] sm:$0xf0]  ;;  %v9591_v63 = vld [vmem:[%s22350_s1 + $0x28] sm:$0xf0]  ;;  %v1063_v34 = vand.u32 2147483647, %v15663_v53 }
  0xd9   :  { %2028 = vmatpush.bf16.msrb.mxu3 %v10074_v38  ;;  %1992 = vmatpush.bf16.msrb.mxu0 %v9718_v59  ;;  %v13484_v38 = vld [vmem:[%s22350_s1 + $0x2cc] sm:$0xf]  ;;  %v9589_v59 = vld [vmem:[%s22350_s1 + $0x8] sm:$0xf]  ;;  %vm1104_vm8 = vweird.f32 %v15697_v15 }
  0xda   :  { %2018 = vmatpush.bf16.msrb.mxu2 %v9722_v62  ;;  %v9946_v14 = vor.u32 %v13484_v38, %v9943_v39  ;;  %v9590_v2 = vor.u32 %v13400_v60, %v9589_v59  ;;  %vm15855_vm6 = vcmp.eq.f32.partialorder %v1063_v34, 8.507059e+37  ;;  %v13457_v38 = vld [vmem:[%s22350_s1 + $0x1ec] sm:$0xf0] }
  0xdb   :  { %2003 = vmatpush.bf16.msrb.mxu1 %v10038_v48  ;;  %v9626_v48 = vor.u32 %v13404_v43, %v9623_v44 }
  0xdd   :  { %2029 = vmatpush.bf16.msrb.mxu3 %v10042_v49  ;;  %1993 = vmatpush.bf16.msrb.mxu0 %v9686_v11  ;;  %v9909_v49 = vld [vmem:[%s22350_s1 + $0x288] sm:$0xf]  ;;  %v9879_v11 = vld [vmem:[%s22350_s1 + $0x268] sm:$0xf0] }
  0xde   :  { %2019 = vmatpush.bf16.msrb.mxu2 %v9690_v16  ;;  %v9910_v52 = vor.u32 %v13480_v50, %v9909_v49 }
  0xdf   :  { %2004 = vmatpush.bf16.msrb.mxu1 %v10006_v4 }
  0xe1   :  { %v927_v23 = vpop.f32.mrf.mxu0  ;;  %2030 = vmatpush.bf16.msrb.mxu3 %v10010_v8  ;;  %1994 = vmatpush.bf16.msrb.mxu0 %v9654_v30  ;;  %v13468_v8 = vld [vmem:[%s22350_s1 + $0x24c] sm:$0xf] }
  0xe2   :  { %2020 = vmatpush.bf16.msrb.mxu2 %v9658_v33  ;;  %v9882_v16 = vor.u32 %v13468_v8, %v9879_v11 }
  0xe3   :  { %v940_v29 = vpop.f32.mrf.mxu1  ;;  %2005 = vmatpush.bf16.msrb.mxu1 %v9974_v21  ;;  %v9845_v21 = vld [vmem:[%s22350_s1 + $0x208] sm:$0xf] }
  0xe4   :  { %v941_v32 = vadd.f32 %v940_v29, %v927_v23  ;;  %v9978_v23 = vor.u32 %v13492_v22, %v9975_v55  ;;  %v13464_v22 = vld [vmem:[%s22350_s1 + $0x224] sm:$0xf0]  ;;  %v13460_v55 = vld [vmem:[%s22350_s1 + $0x20c] sm:$0xf] }
  0xe5   :  { %v9846_v26 = vor.u32 %v13464_v22, %v9845_v21 }
  0xe6   :  { %v1026_v42 = vadd.f32 %v941_v32, %v40_v28  ;;  %v15720_v28 = vadd.f32 1.0, %v14298_v13  ;;  %v15725_v32 = vpop.eup %14299  ;;  %2031 = vmatpush.bf16.msrb.mxu3 %v9978_v23  ;;  %2021 = vmatpush.bf16.msrb.mxu2 %v9626_v48  ;;  %v1065_v13 = vand.u32 2147483648, %v15663_v53  ;;  %v1095_v23 = vand.u32 2147483648, %v15616_v27 }
  0xe7   :  { %v953_v47 = vpop.f32.mrf.mxu2  ;;  %v1085_v45 = vmul.f32 %v15725_v32, %v15616_v27  ;;  %2006 = vmatpush.bf16.msrb.mxu1 %v9942_v37  ;;  %vm1090_vm2 = vweird.f32 %v15725_v32 }
  0xe8   :  { %v9569_v54 = vmul.f32 -1.442695, %v1026_v42  ;;  %v13408_v42 = vld [vmem:[%s22350_s1 + $0x64] sm:$0xf0]  ;;  %vm15841_vm4 = vmor %vm1089_vm1, %vm1090_vm2  ;;  %vm1074_vm10 = vweird.f32 %v15720_v28 }
  0xe9   :  { %v966_v58 = vpop.f32.mrf.mxu3  ;;  %v929_v3 = vpop.f32.mrf.mxu0  ;;  %v1086_v1 = vsub.f32 1.0, %v1085_v45  ;;  %v1066_v45 = vor.u32 1.1754944e-38, %v1065_v13  ;;  %v9725_v13 = vld [vmem:[%s22350_s1 + $0x110] sm:$0xf] }
  0xea   :  { %v967_v61 = vadd.f32 %v966_v58, %v953_v47  ;;  %14301 = vpow2.f32 %v9569_v54  ;;  %v9622_v47 = vor.u32 %v13408_v42, %v9621_v41  ;;  %v13476_v54 = vld [vmem:[%s22350_s1 + $0x28c] sm:$0xf]  ;;  %2032 = vmatpush.bf16.msrb.mxu3 %v9946_v14  ;;  %v1096_v42 = vor.u32 1.1754944e-38, %v1095_v23 }
  0xeb   :  { %v942_v7 = vpop.f32.mrf.mxu1  ;;  %14303 = vrcp.f32 %v15663_v53  ;;  %2007 = vmatpush.bf16.msrb.mxu1 %v9910_v52  ;;  %v1087_v12 = vmul.f32 %v15725_v32, %v1086_v1  ;;  %v1108_v1 = vand.u32 2147483647, %v15697_v15 }
  0xec   :  { %v1027_v6 = vadd.f32 %v967_v61, %v41_v57  ;;  %14305 = vrcp.f32 %v15697_v15  ;;  %v9911_v57 = vld [vmem:[%s22350_s1 + $0x2a8] sm:$0xf0]  ;;  %1995 = vmatpush.bf16.msrb.mxu0 %v9622_v47  ;;  %v13472_v7 = vld [vmem:[%s22350_s1 + $0x264] sm:$0xf0] }
  0xed   :  { %v9914_v58 = vor.u32 %v13476_v54, %v9911_v57  ;;  %v13396_v61 = vld [vmem:[%s22350_s1 + $0xc] sm:$0xf]  ;;  %v1088_v35 = vadd.f32 %v15725_v32, %v1087_v12  ;;  %v1110_v57 = vand.u32 2147483648, %v15697_v15 }
  0xee   :  { %v9570_v20 = vmul.f32 -1.442695, %v1027_v6  ;;  %v9594_v3 = vor.u32 %v13396_v61, %v9591_v63  ;;  %v9877_v6 = vld [vmem:[%s22350_s1 + $0x248] sm:$0xf]  ;;  %v28_v61 = vld [vmem:[%s22353_s3] sm:$0xff] }
  0xef   :  { %v955_v56 = vpop.f32.mrf.mxu2  ;;  %2033 = vmatpush.bf16.msrb.mxu3 %v9914_v58  ;;  %v9878_v17 = vor.u32 %v13472_v7, %v9877_v6  ;;  %v1092_v47 = vsel %vm15841_vm4, %v15725_v32, %v1088_v35 }
  0xf0   :  { %v14302_v36 = vpop.eup %14301  ;;  %14307 = vpow2.f32 %v9570_v20  ;;  %1996 = vmatpush.bf16.msrb.mxu0 %v9590_v2  ;;  %2022 = vmatpush.bf16.msrb.mxu2 %v9594_v3 }
  0xf1   :  { %v968_v29 = vpop.f32.mrf.mxu3  ;;  %v15740_v40 = vpop.eup %14303  ;;  %14309 = vrcp.f32 %v15720_v28  ;;  %v15757_v46 = vadd.f32 1.0, %v14302_v36  ;;  %2008 = vmatpush.bf16.msrb.mxu1 %v9878_v17  ;;  %v1093_v36 = vand.u32 2147483647, %v15616_v27  ;;  %v1111_v17 = vor.u32 1.1754944e-38, %v1110_v57  ;;  %v13521_v57 = vld [vmem:[%s22350_s1 + $0x3ec] sm:$0xf0] }
  0xf2   :  { %v1055_v51 = vmul.f32 %v15740_v40, %v15663_v53  ;;  %v15782_v62 = vpop.eup %14305  ;;  %v9847_v29 = vld [vmem:[%s22350_s1 + $0x228] sm:$0xf0]  ;;  %vm1060_vm3 = vweird.f32 %v15740_v40 }
  0xf3   :  { %14311 = vrcp.f32 %v15757_v46  ;;  %v1100_v9 = vmul.f32 %v15782_v62, %v15697_v15  ;;  %2034 = vmatpush.bf16.msrb.mxu3 %v9882_v16  ;;  %v9850_v33 = vor.u32 %v13460_v55, %v9847_v29  ;;  %vm15851_vm5 = vmor %vm1059_vm0, %vm1060_vm3  ;;  %vm15862_vm7 = vcmp.eq.f32.partialorder %v1093_v36, 8.507059e+37  ;;  %v9821_v36 = vld [vmem:[%s22350_s1 + $0x1d0] sm:$0xf] }
  0xf4   :  { %v1056_v5 = vsub.f32 1.0, %v1055_v51  ;;  %vm1105_vm9 = vweird.f32 %v15782_v62  ;;  %v43_v51 = vld [vmem:[%s22352_s0 + $0x38] sm:$0xff]  ;;  %v1097_v63 = vsel %vm15862_vm7, %v1096_v42, %v1092_v47  ;;  %v1078_v15 = vand.u32 2147483647, %v15720_v28 }
  0xf5   :  { %v1101_v30 = vsub.f32 1.0, %v1100_v9  ;;  %2009 = vmatpush.bf16.msrb.mxu1 %v9846_v26  ;;  %vm15891_vm12 = vmor %vm1104_vm8, %vm1105_vm9  ;;  %v1146_v11 = vmul.f32 %v1097_v63, %v28_v61  ;;  %vm1119_vm14 = vweird.f32 %v15757_v46  ;;  %vm1109_vm0 = vcmp.eq.f32.partialorder %v1108_v1, 8.507059e+37  ;;  %v9757_v61 = vld [vmem:[%s22350_s1 + $0x150] sm:$0xf] }
  0xf6   :  { %v14308_v0 = vpop.eup %14307  ;;  %v1057_v20 = vmul.f32 %v15740_v40, %v1056_v5  ;;  %v1080_v5 = vand.u32 2147483648, %v15720_v28  ;;  %v1123_v55 = vand.u32 2147483647, %v15757_v46  ;;  %vm1079_vm1 = vcmp.eq.f32.partialorder %v1078_v15, 8.507059e+37  ;;  %v13441_v1 = vld [vmem:[%s22350_s1 + $0x16c] sm:$0xf0] }
  0xf7   :  { %v15788_v4 = vpop.eup %14309  ;;  %v15801_v10 = vadd.f32 1.0, %v14308_v0  ;;  %2035 = vmatpush.bf16.msrb.mxu3 %v9850_v33  ;;  %v1102_v43 = vmul.f32 %v15782_v62, %v1101_v30  ;;  %v9822_v47 = vor.u32 %v13457_v38, %v9821_v36  ;;  %v9983_v36 = vld [vmem:[%s22350_s1 + $0x330] sm:$0xf0] }
  0xf8   :  { %v1070_v18 = vmul.f32 %v15788_v4, %v15720_v28  ;;  %v1058_v14 = vadd.f32 %v15740_v40, %v1057_v20  ;;  %vm1075_vm11 = vweird.f32 %v15788_v4  ;;  %v1081_v28 = vor.u32 1.1754944e-38, %v1080_v5 }
  0xf9   :  { %v15821_v56 = vpop.eup %14311  ;;  %14313 = vrcp.f32 %v15801_v10  ;;  %v1103_v0 = vadd.f32 %v15782_v62, %v1102_v43  ;;  %vm15907_vm13 = vmor %vm1074_vm10, %vm1075_vm11  ;;  %vm1124_vm3 = vcmp.eq.f32.partialorder %v1123_v55, 8.507059e+37  ;;  %vm1134_vm4 = vweird.f32 %v15801_v10 }
  0xfa   :  { %v1071_v37 = vsub.f32 1.0, %v1070_v18  ;;  %v1115_v39 = vmul.f32 %v15821_v56, %v15757_v46  ;;  %v1062_v58 = vsel %vm15851_vm5, %v15740_v40, %v1058_v14  ;;  %vm1120_vm15 = vweird.f32 %v15821_v56  ;;  %v13437_v40 = vld [vmem:[%s22350_s1 + $0x154] sm:$0xf] }
  0xfb   :  { %v1067_v8 = vsel %vm15855_vm6, %v1066_v45, %v1062_v58  ;;  %v1107_v16 = vsel %vm15891_vm12, %v15782_v62, %v1103_v0  ;;  %v1125_v18 = vand.u32 2147483648, %v15757_v46  ;;  %vm15924_vm2 = vmor %vm1119_vm14, %vm1120_vm15  ;;  %v1140_v35 = vand.u32 2147483648, %v15801_v10  ;;  %v13501_v62 = vld [vmem:[%s22350_s1 + $0x354] sm:$0xf] }
  0xfc   :  { %v1116_v50 = vsub.f32 1.0, %v1115_v39  ;;  %v1072_v54 = vmul.f32 %v15788_v4, %v1071_v37  ;;  %v1112_v26 = vsel %vm1109_vm0, %v1111_v17, %v1107_v16  ;;  %v9823_v39 = vld [vmem:[%s22350_s1 + $0x1f0] sm:$0xf0]  ;;  %v1138_v43 = vand.u32 2147483647, %v15801_v10 }
  0xfd   :  { %v1126_v30 = vor.u32 1.1754944e-38, %v1125_v18  ;;  %v1141_v45 = vor.u32 1.1754944e-38, %v1140_v35  ;;  %v9758_v17 = vor.u32 %v13441_v1, %v9757_v61  ;;  %v13433_v16 = vld [vmem:[%s22350_s1 + $0x12c] sm:$0xf0]  ;;  %v13429_v18 = vld [vmem:[%s22350_s1 + $0x114] sm:$0xf] }
  0xfe   :  { %v1117_v7 = vmul.f32 %v15821_v56, %v1116_v50  ;;  %v1073_v9 = vadd.f32 %v15788_v4, %v1072_v54  ;;  %vm1139_vm7 = vcmp.eq.f32.partialorder %v1138_v43, 8.507059e+37  ;;  %v9726_v55 = vor.u32 %v13433_v16, %v9725_v13  ;;  %v13493_v35 = vld [vmem:[%s22350_s1 + $0x314] sm:$0xf]  ;;  %v9597_v1 = vld [vmem:[%s22350_s1 + $0x10] sm:$0xf] }
  0xff   :  { %v15866_v53 = vpop.eup %14313  ;;  %v9986_v44 = vor.u32 %v13493_v35, %v9983_v36  ;;  %v9919_v61 = vld [vmem:[%s22350_s1 + $0x2b0] sm:$0xf0] }
 0x100   :  { %v1130_v2 = vmul.f32 %v15866_v53, %v15801_v10  ;;  %v1118_v22 = vadd.f32 %v15821_v56, %v1117_v7  ;;  %v1077_v23 = vsel %vm15907_vm13, %v15788_v4, %v1073_v9  ;;  %vm1135_vm5 = vweird.f32 %v15866_v53  ;;  %v13449_v10 = vld [vmem:[%s22350_s1 + $0x1ac] sm:$0xf0]  ;;  %v13509_v9 = vld [vmem:[%s22350_s1 + $0x394] sm:$0xf] }
 0x101   :  { %v979_v19 = vpop.f32.mrf.mxu0  ;;  %vm15955_vm6 = vmor %vm1134_vm4, %vm1135_vm5  ;;  %v10045_v7 = vld [vmem:[%s22350_s1 + $0x390] sm:$0xf]  ;;  %v13469_v13 = vld [vmem:[%s22350_s1 + $0x254] sm:$0xf] }
 0x102   :  { %v1122_v4 = vsel %vm15924_vm2, %v15821_v56, %v1118_v22  ;;  %v13453_v56 = vld [vmem:[%s22350_s1 + $0x1d4] sm:$0xf]  ;;  %v10013_v22 = vld [vmem:[%s22350_s1 + $0x350] sm:$0xf] }
 0x103   :  { %v992_v25 = vpop.f32.mrf.mxu1  ;;  %v1127_v14 = vsel %vm1124_vm3, %v1126_v30, %v1122_v4  ;;  %v9826_v48 = vor.u32 %v13453_v56, %v9823_v39  ;;  %v13421_v30 = vld [vmem:[%s22350_s1 + $0xd4] sm:$0xf]  ;;  %v9661_v39 = vld [vmem:[%s22350_s1 + $0x90] sm:$0xf] }
 0x104   :  { %v993_v31 = vadd.f32 %v992_v25, %v979_v19  ;;  %v1131_v19 = vsub.f32 1.0, %v1130_v2  ;;  %v29_v25 = vld [vmem:[%s22353_s3 + $0x8] sm:$0xff]  ;;  %v9759_v2 = vld [vmem:[%s22350_s1 + $0x170] sm:$0xf0] }
 0x105   :  { %v1147_v33 = vmul.f32 %v1112_v26, %v29_v25  ;;  %v10015_v25 = vld [vmem:[%s22350_s1 + $0x370] sm:$0xf0]  ;;  %v9693_v26 = vld [vmem:[%s22350_s1 + $0xd0] sm:$0xf] }
 0x106   :  { %v1028_v41 = vadd.f32 %v993_v31, %v42_v24  ;;  %v1132_v46 = vmul.f32 %v15866_v53, %v1131_v19  ;;  %v1082_v31 = vsel %vm1079_vm1, %v1081_v28, %v1077_v23  ;;  %v9727_v19 = vld [vmem:[%s22350_s1 + $0x130] sm:$0xf0]  ;;  %v10018_v4 = vor.u32 %v13501_v62, %v10015_v25  ;;  %v9799_v25 = vld [vmem:[%s22350_s1 + $0x1b8] sm:$0xf0] }
 0x107   :  { %v1005_v49 = vpop.f32.mrf.mxu2  ;;  %v9730_v23 = vor.u32 %v13429_v18, %v9727_v19  ;;  %v9887_v16 = vld [vmem:[%s22350_s1 + $0x270] sm:$0xf0] }
 0x108   :  { %14315 = vtanh.f32 %v1028_v41  ;;  %v1133_v42 = vadd.f32 %v15866_v53, %v1132_v46  ;;  %v9695_v46 = vld [vmem:[%s22350_s1 + $0xf0] sm:$0xf0]  ;;  %v9890_v62 = vor.u32 %v13469_v13, %v9887_v16  ;;  %v9669_v13 = vld [vmem:[%s22350_s1 + $0x98] sm:$0xf] }
 0x109   :  { %v1018_v52 = vpop.f32.mrf.mxu3  ;;  %v981_v32 = vpop.f32.mrf.mxu0  ;;  %v9698_v56 = vor.u32 %v13421_v30, %v9695_v46  ;;  %v13461_v30 = vld [vmem:[%s22350_s1 + $0x214] sm:$0xf]  ;;  %v13418_v16 = vld [vmem:[%s22350_s1 + $0xb4] sm:$0xf0] }
 0x10a   :  { %v1019_v59 = vadd.f32 %v1018_v52, %v1005_v49  ;;  %v9789_v49 = vld [vmem:[%s22350_s1 + $0x190] sm:$0xf]  ;;  %v9791_v52 = vld [vmem:[%s22350_s1 + $0x1b0] sm:$0xf0]  ;;  %v1137_v54 = vsel %vm15955_vm6, %v15866_v53, %v1133_v42 }
 0x10b   :  { %v994_v60 = vpop.f32.mrf.mxu1  ;;  %v10077_v32 = vld [vmem:[%s22350_s1 + $0x3d0] sm:$0xf]  ;;  %v9790_v58 = vor.u32 %v13449_v10, %v9789_v49  ;;  %v13517_v53 = vld [vmem:[%s22350_s1 + $0x3d4] sm:$0xf]  ;;  %v1142_v0 = vsel %vm1139_vm7, %v1141_v45, %v1137_v54 }
 0x10c   :  { %v1029_v3 = vadd.f32 %v1019_v59, %v43_v51  ;;  %v13445_v51 = vld [vmem:[%s22350_s1 + $0x194] sm:$0xf]  ;;  %v10078_v5 = vor.u32 %v13521_v57, %v10077_v32  ;;  %v13489_v45 = vld [vmem:[%s22350_s1 + $0x2ec] sm:$0xf0] }
 0x10d   :  { %v9794_v59 = vor.u32 %v13445_v51, %v9791_v52  ;;  %v10079_v60 = vld [vmem:[%s22350_s1 + $0x3f0] sm:$0xf0]  ;;  %v9629_v51 = vld [vmem:[%s22350_s1 + $0x50] sm:$0xf] }
 0x10e   :  { %v14316_v6 = vpop.eup %14315  ;;  %14317 = vtanh.f32 %v1029_v3  ;;  %v9663_v42 = vld [vmem:[%s22350_s1 + $0xb0] sm:$0xf0]  ;;  %v13409_v52 = vld [vmem:[%s22350_s1 + $0x6c] sm:$0xf0] }
 0x10f   :  { %v1148_v12 = vmul.f32 %v14316_v6, %v1067_v8  ;;  %v1007_v21 = vpop.f32.mrf.mxu2  ;;  %v10082_v6 = vor.u32 %v13517_v53, %v10079_v60  ;;  %v13513_v8 = vld [vmem:[%s22350_s1 + $0x3ac] sm:$0xf0]  ;;  %v13405_v54 = vld [vmem:[%s22350_s1 + $0x54] sm:$0xf] }
 0x110   :  { %v10046_v28 = vor.u32 %v13513_v8, %v10045_v7  ;;  %v9631_v32 = vld [vmem:[%s22350_s1 + $0x70] sm:$0xf0]  ;;  %v13481_v53 = vld [vmem:[%s22350_s1 + $0x2ac] sm:$0xf0] }
 0x111   :  { %v15917_v20 = vadd.f32 %v1148_v12, %v1146_v11  ;;  %v1020_v24 = vpop.f32.mrf.mxu3  ;;  %v9762_v11 = vor.u32 %v13437_v40, %v9759_v2  ;;  %v10047_v12 = vld [vmem:[%s22350_s1 + $0x3b0] sm:$0xf0]  ;;  %v13401_v40 = vld [vmem:[%s22350_s1 + $0x2c] sm:$0xf0] }
 0x112   :  { %v10050_v21 = vor.u32 %v13509_v9, %v10047_v12  ;;  %v13505_v24 = vld [vmem:[%s22350_s1 + $0x36c] sm:$0xf0]  ;;  %v13477_v60 = vld [vmem:[%s22350_s1 + $0x294] sm:$0xf]  ;;  %v13454_v9 = vld [vmem:[%s22350_s1 + $0x1dc] sm:$0xf]  ;;  %v9598_v18 = vor.u32 %v13401_v40, %v9597_v1 }
 0x113   :  { %14319 = vtanh.f32 %v15917_v20  ;;  %v13397_v2 = vld [vmem:[%s22350_s1 + $0x14] sm:$0xf]  ;;  %v9922_v8 = vor.u32 %v13477_v60, %v9919_v61  ;;  %v13473_v12 = vld [vmem:[%s22350_s1 + $0x26c] sm:$0xf0]  ;;  %v13502_v60 = vld [vmem:[%s22350_s1 + $0x35c] sm:$0xf] }
 0x114   :  { %v14318_v29 = vpop.eup %14317  ;;  %v9855_v46 = vld [vmem:[%s22350_s1 + $0x230] sm:$0xf0]  ;;  %v10023_v61 = vld [vmem:[%s22350_s1 + $0x378] sm:$0xf0]  ;;  %v9701_v1 = vld [vmem:[%s22350_s1 + $0xd8] sm:$0xf] }
 0x115   :  { %v1149_v34 = vmul.f32 %v14318_v29, %v1082_v31  ;;  %v13425_v29 = vld [vmem:[%s22350_s1 + $0xec] sm:$0xf0]  ;;  %v10014_v31 = vor.u32 %v13505_v24, %v10013_v22  ;;  %v9797_v22 = vld [vmem:[%s22350_s1 + $0x198] sm:$0xf] }
 0x116   :  { %v9694_v38 = vor.u32 %v13425_v29, %v9693_v26  ;;  %v9853_v26 = vld [vmem:[%s22350_s1 + $0x210] sm:$0xf]  ;;  %v13426_v40 = vld [vmem:[%s22350_s1 + $0xf4] sm:$0xf0] }
 0x117   :  { %v15942_v37 = vadd.f32 %v1149_v34, %v1147_v33  ;;  %v9981_v33 = vld [vmem:[%s22350_s1 + $0x310] sm:$0xf] }
 0x118   :  { %v13497_v34 = vld [vmem:[%s22350_s1 + $0x32c] sm:$0xf0] }
 0x119   :  { %v14320_v41 = vpop.eup %14319  ;;  %14321 = vtanh.f32 %v15942_v37  ;;  %v9982_v43 = vor.u32 %v13497_v34, %v9981_v33  ;;  %v13465_v29 = vld [vmem:[%s22350_s1 + $0x22c] sm:$0xf0]  ;;  %v13518_v33 = vld [vmem:[%s22350_s1 + $0x3dc] sm:$0xf] }
 0x11a   :  { %v1154_v27 = vmul.f32 %v14320_v41, %v1127_v14  ;;  %v13417_v41 = vld [vmem:[%s22350_s1 + $0xac] sm:$0xf0]  ;;  %v13413_v14 = vld [vmem:[%s22350_s1 + $0x94] sm:$0xf]  ;;  %v10087_v34 = vld [vmem:[%s22350_s1 + $0x3f8] sm:$0xf0] }
 0x11b   :  { %v9662_v49 = vor.u32 %v13417_v41, %v9661_v39  ;;  %v9666_v10 = vor.u32 %v13413_v14, %v9663_v42  ;;  %v9858_v39 = vor.u32 %v13461_v30, %v9855_v46  ;;  %v13442_v41 = vld [vmem:[%s22350_s1 + $0x174] sm:$0xf0]  ;;  %v13438_v14 = vld [vmem:[%s22350_s1 + $0x15c] sm:$0xf] }
 0x11c   :  { %1156 = vst [vmem:[%s22354_s4] sm:$0xff] %v1154_v27  ;;  %v15966_v50 = vpack.c.bf16 %v1154_v27, %v1154_v27  ;;  %v9949_v27 = vld [vmem:[%s22350_s1 + $0x2d0] sm:$0xf]  ;;  %v9767_v42 = vld [vmem:[%s22350_s1 + $0x178] sm:$0xf0] }
 0x11d   :  { %v9950_v57 = vor.u32 %v13489_v45, %v9949_v27  ;;  %v10053_v27 = vld [vmem:[%s22350_s1 + $0x398] sm:$0xf]  ;;  %v13406_v30 = vld [vmem:[%s22350_s1 + $0x5c] sm:$0xf] }
 0x11e   :  { %1945 = vmatmul.bf16.vlgmr.msra.gmra.mxu0 %v15966_v50  ;;  %1971 = vmatmul.bf16.vlgmr.msra.gmra.mxu2 %v15966_v50  ;;  %v13514_v45 = vld [vmem:[%s22350_s1 + $0x3b4] sm:$0xf0]  ;;  %v9639_v46 = vld [vmem:[%s22350_s1 + $0x78] sm:$0xf0] }
 0x11f   :  { %2041 = vmatpush.bf16.msra.mxu0 %v9822_v47  ;;  %2067 = vmatpush.bf16.msra.mxu2 %v9826_v48  ;;  %v14322_v63 = vpop.eup %14321  ;;  %v13485_v47 = vld [vmem:[%s22350_s1 + $0x2d4] sm:$0xf] }
 0x120   :  { %v1155_v3 = vmul.f32 %v14322_v63, %v1142_v0  ;;  %v9951_v48 = vld [vmem:[%s22350_s1 + $0x2f0] sm:$0xf0]  ;;  %v9630_v63 = vor.u32 %v13409_v52, %v9629_v51  ;;  %v9634_v0 = vor.u32 %v13405_v54, %v9631_v32  ;;  %v9733_v51 = vld [vmem:[%s22350_s1 + $0x118] sm:$0xf]  ;;  %v13430_v54 = vld [vmem:[%s22350_s1 + $0x11c] sm:$0xf] }
 0x121   :  { %v13434_v52 = vld [vmem:[%s22350_s1 + $0x134] sm:$0xf0]  ;;  %v9735_v32 = vld [vmem:[%s22350_s1 + $0x138] sm:$0xf0] }
 0x122   :  { %1157 = vst [vmem:[%s22354_s4 + $0x8] sm:$0xff] %v1155_v3  ;;  %v16018_v15 = vpack.c.bf16 %v1155_v3, %v1155_v3  ;;  %v9599_v3 = vld [vmem:[%s22350_s1 + $0x30] sm:$0xf0] }
 0x123   :  { %2042 = vmatpush.bf16.msra.mxu0 %v9790_v58  ;;  %2068 = vmatpush.bf16.msra.mxu2 %v9794_v59  ;;  %v9954_v58 = vor.u32 %v13485_v47, %v9951_v48  ;;  %v9917_v59 = vld [vmem:[%s22350_s1 + $0x290] sm:$0xf]  ;;  %v9602_v19 = vor.u32 %v13397_v2, %v9599_v3  ;;  %v13510_v47 = vld [vmem:[%s22350_s1 + $0x39c] sm:$0xf] }
 0x124   :  { %1958 = vmatmul.bf16.vlgmr.msra.gmra.mxu1 %v16018_v15  ;;  %1984 = vmatmul.bf16.vlgmr.msra.gmra.mxu3 %v16018_v15  ;;  %v9918_v7 = vor.u32 %v13481_v53, %v9917_v59  ;;  %v10055_v48 = vld [vmem:[%s22350_s1 + $0x3b8] sm:$0xf0]  ;;  %v10021_v59 = vld [vmem:[%s22350_s1 + $0x358] sm:$0xf] }
 0x125   :  { %2054 = vmatpush.bf16.msra.mxu1 %v10078_v5  ;;  %2080 = vmatpush.bf16.msra.mxu3 %v10082_v6  ;;  %v9829_v5 = vld [vmem:[%s22350_s1 + $0x1d8] sm:$0xf]  ;;  %v13422_v2 = vld [vmem:[%s22350_s1 + $0xdc] sm:$0xf] }
 0x126   :  { %v13458_v6 = vld [vmem:[%s22350_s1 + $0x1f4] sm:$0xf0]  ;;  %v9703_v3 = vld [vmem:[%s22350_s1 + $0xf8] sm:$0xf0] }
 0x127   :  { %2043 = vmatpush.bf16.msra.mxu0 %v9758_v17  ;;  %2069 = vmatpush.bf16.msra.mxu2 %v9762_v11  ;;  %v9831_v17 = vld [vmem:[%s22350_s1 + $0x1f8] sm:$0xf0]  ;;  %v9885_v11 = vld [vmem:[%s22350_s1 + $0x250] sm:$0xf]  ;;  %v13506_v53 = vld [vmem:[%s22350_s1 + $0x374] sm:$0xf0] }
 0x128   :  { %v9886_v24 = vor.u32 %v13473_v12, %v9885_v11  ;;  %v9702_v11 = vor.u32 %v13426_v40, %v9701_v1  ;;  %v9706_v12 = vor.u32 %v13422_v2, %v9703_v3  ;;  %v10335_v1 = vld [vmem:[%s22350_s1 + $0x1e0] sm:$0xf0]  ;;  %v10301_v3 = vld [vmem:[%s22350_s1 + $0x180] sm:$0xf] }
 0x129   :  { %2055 = vmatpush.bf16.msra.mxu1 %v10046_v28  ;;  %2081 = vmatpush.bf16.msra.mxu3 %v10050_v21  ;;  %v9830_v28 = vor.u32 %v13458_v6, %v9829_v5  ;;  %v9834_v21 = vor.u32 %v13454_v9, %v9831_v17  ;;  %v10022_v5 = vor.u32 %v13506_v53, %v10021_v59  ;;  %v13494_v9 = vld [vmem:[%s22350_s1 + $0x31c] sm:$0xf] }
 0x12a   :  { %v10026_v6 = vor.u32 %v13502_v60, %v10023_v61  ;;  %v9991_v17 = vld [vmem:[%s22350_s1 + $0x338] sm:$0xf0]  ;;  %v10333_v61 = vld [vmem:[%s22350_s1 + $0x1c0] sm:$0xf] }
 0x12b   :  { %2044 = vmatpush.bf16.msra.mxu0 %v9726_v55  ;;  %2070 = vmatpush.bf16.msra.mxu2 %v9730_v23  ;;  %v13450_v55 = vld [vmem:[%s22350_s1 + $0x1b4] sm:$0xf0]  ;;  %v13446_v23 = vld [vmem:[%s22350_s1 + $0x19c] sm:$0xf] }
 0x12c   :  { %v9798_v35 = vor.u32 %v13450_v55, %v9797_v22  ;;  %v9802_v36 = vor.u32 %v13446_v23, %v9799_v25  ;;  %v9957_v22 = vld [vmem:[%s22350_s1 + $0x2d8] sm:$0xf]  ;;  %v13486_v23 = vld [vmem:[%s22350_s1 + $0x2dc] sm:$0xf] }
 0x12d   :  { %2056 = vmatpush.bf16.msra.mxu1 %v10014_v31  ;;  %2082 = vmatpush.bf16.msra.mxu3 %v10018_v4  ;;  %v10085_v31 = vld [vmem:[%s22350_s1 + $0x3d8] sm:$0xf] }
 0x12e   :  { %1997 = vmatmul.bf16.vlgmr.msrb.gmra.mxu0 %v15966_v50  ;;  %2023 = vmatmul.bf16.vlgmr.msrb.gmra.mxu2 %v15966_v50  ;;  %v13522_v4 = vld [vmem:[%s22350_s1 + $0x3f4] sm:$0xf0] }
 0x12f   :  { %2045 = vmatpush.bf16.msra.mxu0 %v9694_v38  ;;  %2071 = vmatpush.bf16.msra.mxu2 %v9698_v56  ;;  %v9765_v38 = vld [vmem:[%s22350_s1 + $0x158] sm:$0xf]  ;;  %v9854_v56 = vor.u32 %v13465_v29, %v9853_v26 }
 0x130   :  { %v13490_v55 = vld [vmem:[%s22350_s1 + $0x2f4] sm:$0xf0] }
 0x131   :  { %2057 = vmatpush.bf16.msra.mxu1 %v9982_v43  ;;  %2083 = vmatpush.bf16.msra.mxu3 %v9986_v44  ;;  %v10086_v43 = vor.u32 %v13522_v4, %v10085_v31  ;;  %v10090_v44 = vor.u32 %v13518_v33, %v10087_v34  ;;  %v9637_v26 = vld [vmem:[%s22350_s1 + $0x58] sm:$0xf]  ;;  %v9958_v31 = vor.u32 %v13490_v55, %v9957_v22  ;;  %v13563_v22 = vld [vmem:[%s22350_s1 + $0x144] sm:$0xf] }
 0x132   :  { %v13410_v29 = vld [vmem:[%s22350_s1 + $0x74] sm:$0xf0] }
 0x133   :  { %2046 = vmatpush.bf16.msra.mxu0 %v9662_v49  ;;  %2072 = vmatpush.bf16.msra.mxu2 %v9666_v10  ;;  %v9766_v49 = vor.u32 %v13442_v41, %v9765_v38  ;;  %v9770_v10 = vor.u32 %v13438_v14, %v9767_v42  ;;  %v9925_v33 = vld [vmem:[%s22350_s1 + $0x298] sm:$0xf]  ;;  %v9638_v38 = vor.u32 %v13410_v29, %v9637_v26  ;;  %v13398_v14 = vld [vmem:[%s22350_s1 + $0x1c] sm:$0xf]  ;;  %v13639_v26 = vld [vmem:[%s22350_s1 + $0x39c] sm:$0xf0] }
 0x134   :  { %2010 = vmatmul.bf16.vlgmr.msrb.gmra.mxu1 %v16018_v15  ;;  %2036 = vmatmul.bf16.vlgmr.msrb.gmra.mxu3 %v16018_v15  ;;  %v13482_v34 = vld [vmem:[%s22350_s1 + $0x2b4] sm:$0xf0]  ;;  %v9607_v42 = vld [vmem:[%s22350_s1 + $0x38] sm:$0xf0]  ;;  %v13635_v29 = vld [vmem:[%s22350_s1 + $0x384] sm:$0xf] }
 0x135   :  { %2058 = vmatpush.bf16.msra.mxu1 %v9950_v57  ;;  %2084 = vmatpush.bf16.msra.mxu3 %v9954_v58  ;;  %v10054_v57 = vor.u32 %v13514_v45, %v10053_v27  ;;  %v10058_v58 = vor.u32 %v13510_v47, %v10055_v48  ;;  %v13402_v41 = vld [vmem:[%s22350_s1 + $0x34] sm:$0xf0]  ;;  %v13470_v47 = vld [vmem:[%s22350_s1 + $0x25c] sm:$0xf] }
 0x136   :  { %v9893_v27 = vld [vmem:[%s22350_s1 + $0x258] sm:$0xf]  ;;  %v9895_v48 = vld [vmem:[%s22350_s1 + $0x278] sm:$0xf0] }
 0x137   :  { %2047 = vmatpush.bf16.msra.mxu0 %v9630_v63  ;;  %2073 = vmatpush.bf16.msra.mxu2 %v9634_v0  ;;  %v9734_v63 = vor.u32 %v13434_v52, %v9733_v51  ;;  %v9738_v0 = vor.u32 %v13430_v54, %v9735_v32  ;;  %v13474_v45 = vld [vmem:[%s22350_s1 + $0x274] sm:$0xf0]  ;;  %v9898_v52 = vor.u32 %v13470_v47, %v9895_v48  ;;  %v10205_v47 = vld [vmem:[%s22350_s1 + $0xc0] sm:$0xf] }
 0x138   :  { %v9894_v51 = vor.u32 %v13474_v45, %v9893_v27  ;;  %v9861_v54 = vld [vmem:[%s22350_s1 + $0x218] sm:$0xf]  ;;  %v10527_v27 = vld [vmem:[%s22350_s1 + $0x360] sm:$0xf0]  ;;  %v13551_v48 = vld [vmem:[%s22350_s1 + $0xdc] sm:$0xf0] }
 0x139   :  { %2059 = vmatpush.bf16.msra.mxu1 %v9918_v7  ;;  %2085 = vmatpush.bf16.msra.mxu3 %v9922_v8  ;;  %v9989_v7 = vld [vmem:[%s22350_s1 + $0x318] sm:$0xf] }
 0x13a   :  { %v13498_v8 = vld [vmem:[%s22350_s1 + $0x334] sm:$0xf0] }
 0x13b   :  { %2048 = vmatpush.bf16.msra.mxu0 %v9598_v18  ;;  %2074 = vmatpush.bf16.msra.mxu2 %v9602_v19  ;;  %v13414_v18 = vld [vmem:[%s22350_s1 + $0x9c] sm:$0xf]  ;;  %v13466_v32 = vld [vmem:[%s22350_s1 + $0x234] sm:$0xf0] }
 0x13c   :  { %v9671_v19 = vld [vmem:[%s22350_s1 + $0xb8] sm:$0xf0]  ;;  %v9862_v59 = vor.u32 %v13466_v32, %v9861_v54 }
 0x13d   :  { %2060 = vmatpush.bf16.msra.mxu1 %v9886_v24  ;;  %2086 = vmatpush.bf16.msra.mxu3 %v9890_v62  ;;  %v9959_v24 = vld [vmem:[%s22350_s1 + $0x2f8] sm:$0xf0]  ;;  %v9670_v62 = vor.u32 %v13418_v16, %v9669_v13  ;;  %v9674_v25 = vor.u32 %v13414_v18, %v9671_v19  ;;  %v13643_v13 = vld [vmem:[%s22350_s1 + $0x3c4] sm:$0xf] }
 0x13e   :  { %2049 = vmatmul.bf16.vlgmr.msra.gmra.mxu0 %v15966_v50  ;;  %2075 = vmatmul.bf16.vlgmr.msra.gmra.mxu2 %v15966_v50  ;;  %v9962_v4 = vor.u32 %v13486_v23, %v9959_v24  ;;  %v10591_v18 = vld [vmem:[%s22350_s1 + $0x3e0] sm:$0xf0] }
 0x13f   :  { %2093 = vmatpush.bf16.msrb.mxu0 %v9830_v28  ;;  %2119 = vmatpush.bf16.msrb.mxu2 %v9834_v21  ;;  %v9990_v28 = vor.u32 %v13498_v8, %v9989_v7  ;;  %v9994_v21 = vor.u32 %v13494_v9, %v9991_v17  ;;  %v10303_v9 = vld [vmem:[%s22350_s1 + $0x1a0] sm:$0xf0]  ;;  %v10594_v19 = vor.u32 %v13643_v13, %v10591_v18 }
 0x140   :  { %v10271_v23 = vld [vmem:[%s22350_s1 + $0x160] sm:$0xf0] }
 0x141   :  { %2061 = vmatpush.bf16.msra.mxu1 %v9854_v56  ;;  %2087 = vmatpush.bf16.msra.mxu3 %v9858_v39  ;;  %v9642_v56 = vor.u32 %v13406_v30, %v9639_v46  ;;  %v9605_v39 = vld [vmem:[%s22350_s1 + $0x18] sm:$0xf] }
 0x143   :  { %2094 = vmatpush.bf16.msrb.mxu0 %v9798_v35  ;;  %2120 = vmatpush.bf16.msrb.mxu2 %v9802_v36  ;;  %v13478_v35 = vld [vmem:[%s22350_s1 + $0x29c] sm:$0xf] }
 0x144   :  { %2062 = vmatmul.bf16.vlgmr.msra.gmra.mxu1 %v16018_v15  ;;  %2088 = vmatmul.bf16.vlgmr.msra.gmra.mxu3 %v16018_v15  ;;  %v9927_v36 = vld [vmem:[%s22350_s1 + $0x2b8] sm:$0xf0] }
 0x145   :  { %2106 = vmatpush.bf16.msrb.mxu1 %v10086_v43  ;;  %2132 = vmatpush.bf16.msrb.mxu3 %v10090_v44  ;;  %v9926_v43 = vor.u32 %v13482_v34, %v9925_v33  ;;  %v9930_v44 = vor.u32 %v13478_v35, %v9927_v36  ;;  %v10237_v34 = vld [vmem:[%s22350_s1 + $0x100] sm:$0xf]  ;;  %v13555_v36 = vld [vmem:[%s22350_s1 + $0x104] sm:$0xf] }
 0x146   :  { %v13559_v35 = vld [vmem:[%s22350_s1 + $0x11c] sm:$0xf0] }
 0x147   :  { %2095 = vmatpush.bf16.msrb.mxu0 %v9766_v49  ;;  %2121 = vmatpush.bf16.msrb.mxu2 %v9770_v10  ;;  %v9606_v49 = vor.u32 %v13402_v41, %v9605_v39  ;;  %v9610_v10 = vor.u32 %v13398_v14, %v9607_v42  ;;  %v10525_v14 = vld [vmem:[%s22350_s1 + $0x340] sm:$0xf] }
 0x148   :  { %v13631_v42 = vld [vmem:[%s22350_s1 + $0x35c] sm:$0xf0] }
 0x149   :  { %2107 = vmatpush.bf16.msrb.mxu1 %v10054_v57  ;;  %2133 = vmatpush.bf16.msrb.mxu3 %v10058_v58  ;;  %v13462_v57 = vld [vmem:[%s22350_s1 + $0x21c] sm:$0xf] }
 0x14a   :  { %v9863_v58 = vld [vmem:[%s22350_s1 + $0x238] sm:$0xf0] }
 0x14b   :  { %2096 = vmatpush.bf16.msrb.mxu0 %v9734_v63  ;;  %2122 = vmatpush.bf16.msrb.mxu2 %v9738_v0  ;;  %v9866_v53 = vor.u32 %v13462_v57, %v9863_v58  ;;  %v13583_v63 = vld [vmem:[%s22350_s1 + $0x1dc] sm:$0xf0] }
 0x14c   :  { %v10334_v0 = vor.u32 %v13583_v63, %v10333_v61  ;;  %v10493_v57 = vld [vmem:[%s22350_s1 + $0x300] sm:$0xf]  ;;  %v13619_v63 = vld [vmem:[%s22350_s1 + $0x304] sm:$0xf] }
 0x14d   :  { %2108 = vmatpush.bf16.msrb.mxu1 %v10022_v5  ;;  %2134 = vmatpush.bf16.msrb.mxu3 %v10026_v6  ;;  %v13575_v5 = vld [vmem:[%s22350_s1 + $0x19c] sm:$0xf0]  ;;  %v13571_v6 = vld [vmem:[%s22350_s1 + $0x184] sm:$0xf] }
 0x14e   :  { %v10302_v8 = vor.u32 %v13575_v5, %v10301_v3  ;;  %v10306_v17 = vor.u32 %v13571_v6, %v10303_v9  ;;  %v13623_v58 = vld [vmem:[%s22350_s1 + $0x31c] sm:$0xf0]  ;;  %v13539_v3 = vld [vmem:[%s22350_s1 + $0x84] sm:$0xf] }
 0x14f   :  { %2097 = vmatpush.bf16.msrb.mxu0 %v9702_v11  ;;  %2123 = vmatpush.bf16.msrb.mxu2 %v9706_v12  ;;  %v10589_v11 = vld [vmem:[%s22350_s1 + $0x3c0] sm:$0xf]  ;;  %v10494_v61 = vor.u32 %v13623_v58, %v10493_v57 }
 0x150   :  { %v13647_v12 = vld [vmem:[%s22350_s1 + $0x3dc] sm:$0xf0] }
 0x151   :  { %2109 = vmatpush.bf16.msrb.mxu1 %v9990_v28  ;;  %2135 = vmatpush.bf16.msrb.mxu3 %v9994_v21  ;;  %v10590_v16 = vor.u32 %v13647_v12, %v10589_v11  ;;  %v10269_v28 = vld [vmem:[%s22350_s1 + $0x140] sm:$0xf]  ;;  %v13611_v12 = vld [vmem:[%s22350_s1 + $0x2c4] sm:$0xf] }
 0x152   :  { %v13567_v21 = vld [vmem:[%s22350_s1 + $0x15c] sm:$0xf0] }
 0x153   :  { %2098 = vmatpush.bf16.msrb.mxu0 %v9670_v62  ;;  %2124 = vmatpush.bf16.msrb.mxu2 %v9674_v25  ;;  %v10270_v55 = vor.u32 %v13567_v21, %v10269_v28  ;;  %v10274_v62 = vor.u32 %v13563_v22, %v10271_v23  ;;  %v10557_v25 = vld [vmem:[%s22350_s1 + $0x380] sm:$0xf] }
 0x154   :  { %v10558_v46 = vor.u32 %v13639_v26, %v10557_v25  ;;  %v13615_v11 = vld [vmem:[%s22350_s1 + $0x2dc] sm:$0xf0]  ;;  %v10143_v25 = vld [vmem:[%s22350_s1 + $0x60] sm:$0xf0] }
 0x155   :  { %2110 = vmatpush.bf16.msrb.mxu1 %v9958_v31  ;;  %2136 = vmatpush.bf16.msrb.mxu3 %v9962_v4  ;;  %v10559_v31 = vld [vmem:[%s22350_s1 + $0x3a0] sm:$0xf0]  ;;  %v10141_v21 = vld [vmem:[%s22350_s1 + $0x40] sm:$0xf] }
 0x156   :  { %v10562_v33 = vor.u32 %v13635_v29, %v10559_v31  ;;  %v13535_v22 = vld [vmem:[%s22350_s1 + $0x5c] sm:$0xf0]  ;;  %v13603_v31 = vld [vmem:[%s22350_s1 + $0x284] sm:$0xf] }
 0x157   :  { %2099 = vmatpush.bf16.msrb.mxu0 %v9638_v38  ;;  %2125 = vmatpush.bf16.msrb.mxu2 %v9642_v56  ;;  %v10238_v38 = vor.u32 %v13559_v35, %v10237_v34  ;;  %v10239_v56 = vld [vmem:[%s22350_s1 + $0x120] sm:$0xf0]  ;;  %v10142_v23 = vor.u32 %v13535_v22, %v10141_v21  ;;  %v13599_v57 = vld [vmem:[%s22350_s1 + $0x25c] sm:$0xf0]  ;;  %v13648_v21 = vld [vmem:[%s22350_s1 + $0x3e4] sm:$0xf0] }
 0x158   :  { %v10242_v41 = vor.u32 %v13555_v36, %v10239_v56  ;;  %v10431_v36 = vld [vmem:[%s22350_s1 + $0x2a0] sm:$0xf0]  ;;  %v13644_v22 = vld [vmem:[%s22350_s1 + $0x3cc] sm:$0xf] }
 0x159   :  { %2111 = vmatpush.bf16.msrb.mxu1 %v9926_v43  ;;  %2137 = vmatpush.bf16.msrb.mxu3 %v9930_v44  ;;  %v10526_v43 = vor.u32 %v13631_v42, %v10525_v14  ;;  %v13627_v44 = vld [vmem:[%s22350_s1 + $0x344] sm:$0xf]  ;;  %v10109_v14 = vld [vmem:[%s22350_s1] sm:$0xf] }
 0x15a   :  { %v10530_v45 = vor.u32 %v13627_v44, %v10527_v27  ;;  %v13527_v42 = vld [vmem:[%s22350_s1 + $0x1c] sm:$0xf0]  ;;  %v10111_v44 = vld [vmem:[%s22350_s1 + $0x20] sm:$0xf0]  ;;  %v10341_v27 = vld [vmem:[%s22350_s1 + $0x1c8] sm:$0xf] }
 0x15b   :  { %2100 = vmatpush.bf16.msrb.mxu0 %v9606_v49  ;;  %2126 = vmatpush.bf16.msrb.mxu2 %v9610_v10  ;;  %v13547_v49 = vld [vmem:[%s22350_s1 + $0xc4] sm:$0xf]  ;;  %v10206_v10 = vor.u32 %v13551_v48, %v10205_v47 }
 0x15d   :  { %2112 = vmatpush.bf16.msrb.mxu1 %v9894_v51  ;;  %2138 = vmatpush.bf16.msrb.mxu3 %v9898_v52  ;;  %v10207_v51 = vld [vmem:[%s22350_s1 + $0xe0] sm:$0xf0] }
 0x15e   :  { %2101 = vmatmul.bf16.vlgmr.msrb.gmra.mxu0 %v15966_v50  ;;  %2127 = vmatmul.bf16.vlgmr.msrb.gmra.mxu2 %v15966_v50  ;;  %v13579_v50 = vld [vmem:[%s22350_s1 + $0x1c4] sm:$0xf]  ;;  %v10210_v32 = vor.u32 %v13547_v49, %v10207_v51  ;;  %v13584_v49 = vld [vmem:[%s22350_s1 + $0x1e4] sm:$0xf0]  ;;  %v10343_v51 = vld [vmem:[%s22350_s1 + $0x1e8] sm:$0xf0] }
 0x15f   :  { %3061 = vmatpush.bf16.msra.mxu0 %v10334_v0  ;;  %v9571_v52 = vld [vmem:[%s22352_s0 + $0x40] sm:$0xff] }
 0x161   :  { %2113 = vmatpush.bf16.msrb.mxu1 %v9862_v59  ;;  %2139 = vmatpush.bf16.msrb.mxu3 %v9866_v53  ;;  %v9573_v53 = vld [vmem:[%s22352_s0 + $0x50] sm:$0xff] }
 0x163   :  { %3062 = vmatpush.bf16.msra.mxu0 %v10302_v8 }
 0x164   :  { %2114 = vmatmul.bf16.vlgmr.msrb.gmra.mxu1 %v16018_v15  ;;  %2140 = vmatmul.bf16.vlgmr.msrb.gmra.mxu3 %v16018_v15  ;;  %v10338_v15 = vor.u32 %v13579_v50, %v10335_v1  ;;  %v10495_v50 = vld [vmem:[%s22350_s1 + $0x320] sm:$0xf0] }
 0x165   :  { %3074 = vmatpush.bf16.msra.mxu1 %v10590_v16  ;;  %3100 = vmatpush.bf16.msra.mxu3 %v10594_v19  ;;  %v10463_v19 = vld [vmem:[%s22350_s1 + $0x2e0] sm:$0xf0] }
 0x166   :  { %3087 = vmatpush.bf16.msra.mxu2 %v10338_v15  ;;  %v10498_v15 = vor.u32 %v13619_v63, %v10495_v50  ;;  %v10466_v28 = vor.u32 %v13611_v12, %v10463_v19  ;;  %v10309_v50 = vld [vmem:[%s22350_s1 + $0x188] sm:$0xf] }
 0x167   :  { %3063 = vmatpush.bf16.msra.mxu0 %v10270_v55  ;;  %v9574_v55 = vld [vmem:[%s22352_s0 + $0x58] sm:$0xff]  ;;  %v10597_v12 = vld [vmem:[%s22350_s1 + $0x3c8] sm:$0xf] }
 0x169   :  { %3075 = vmatpush.bf16.msra.mxu1 %v10558_v46  ;;  %3101 = vmatpush.bf16.msra.mxu3 %v10562_v33  ;;  %v13607_v46 = vld [vmem:[%s22350_s1 + $0x29c] sm:$0xf0] }
 0x16a   :  { %3088 = vmatpush.bf16.msra.mxu2 %v10306_v17  ;;  %v10461_v17 = vld [vmem:[%s22350_s1 + $0x2c0] sm:$0xf] }
 0x16b   :  { %3064 = vmatpush.bf16.msra.mxu0 %v10238_v38  ;;  %v10462_v18 = vor.u32 %v13615_v11, %v10461_v17  ;;  %v10367_v11 = vld [vmem:[%s22350_s1 + $0x220] sm:$0xf0] }
 0x16d   :  { %3076 = vmatpush.bf16.msra.mxu1 %v10526_v43  ;;  %3102 = vmatpush.bf16.msra.mxu3 %v10530_v45  ;;  %v13523_v43 = vld [vmem:[%s22350_s1 + $0x4] sm:$0xf] }
 0x16e   :  { %3089 = vmatpush.bf16.msra.mxu2 %v10274_v62  ;;  %v13531_v62 = vld [vmem:[%s22350_s1 + $0x44] sm:$0xf]  ;;  %v10114_v48 = vor.u32 %v13523_v43, %v10111_v44  ;;  %v10565_v43 = vld [vmem:[%s22350_s1 + $0x388] sm:$0xf] }
 0x16f   :  { %3065 = vmatpush.bf16.msra.mxu0 %v10206_v10  ;;  %v10146_v29 = vor.u32 %v13531_v62, %v10143_v25  ;;  %v13580_v10 = vld [vmem:[%s22350_s1 + $0x1cc] sm:$0xf]  ;;  %v10598_v25 = vor.u32 %v13648_v21, %v10597_v12  ;;  %v13640_v44 = vld [vmem:[%s22350_s1 + $0x3a4] sm:$0xf0] }
 0x171   :  { %3077 = vmatpush.bf16.msra.mxu1 %v10494_v61  ;;  %3103 = vmatpush.bf16.msra.mxu3 %v10498_v15  ;;  %v10399_v61 = vld [vmem:[%s22350_s1 + $0x260] sm:$0xf0] }
 0x172   :  { %3090 = vmatpush.bf16.msra.mxu2 %v10242_v41  ;;  %v10434_v41 = vor.u32 %v13603_v31, %v10431_v36  ;;  %v13568_v36 = vld [vmem:[%s22350_s1 + $0x164] sm:$0xf0] }
 0x175   :  { %3078 = vmatpush.bf16.msra.mxu1 %v10462_v18  ;;  %3104 = vmatpush.bf16.msra.mxu3 %v10466_v28 }
 0x176   :  { %3091 = vmatpush.bf16.msra.mxu2 %v10210_v32  ;;  %v10397_v32 = vld [vmem:[%s22350_s1 + $0x240] sm:$0xf] }
 0x179   :  { %3105 = vmatpush.bf16.msra.mxu3 %v10434_v41 }
 0x19b   :  { %v16361_v60 = vpop.f32.mrf.mxu0 }
 0x1a1   :  { %v16375_v40 = vpop.f32.mrf.mxu2  ;;  %v16377_v2 = vpop.f32.mrf.mxu1 }
 0x1a2   :  { %v1960_v59 = vadd.f32 %v16377_v2, %v16361_v60  ;;  %v10173_v60 = vld [vmem:[%s22350_s1 + $0x80] sm:$0xf] }
 0x1a3   :  { %v1948_v7 = vpop.f32.mrf.mxu0  ;;  %v13543_v2 = vld [vmem:[%s22350_s1 + $0x9c] sm:$0xf0] }
 0x1a4   :  { %v10174_v6 = vor.u32 %v13543_v2, %v10173_v60  ;;  %v10175_v7 = vld [vmem:[%s22350_s1 + $0xa0] sm:$0xf0]  ;;  %v2145_v13 = vadd.f32 %v9571_v52, %v1960_v59  ;;  %v10342_v52 = vor.u32 %v13584_v49, %v10341_v27  ;;  %v10398_v59 = vor.u32 %v13599_v57, %v10397_v32  ;;  %v13636_v27 = vld [vmem:[%s22350_s1 + $0x38c] sm:$0xf] }
 0x1a5   :  { %v10178_v9 = vor.u32 %v13539_v3, %v10175_v7  ;;  %v10311_v3 = vld [vmem:[%s22350_s1 + $0x1a8] sm:$0xf0]  ;;  %v13591_v7 = vld [vmem:[%s22350_s1 + $0x21c] sm:$0xf0] }
 0x1a6   :  { %3066 = vmatpush.bf16.msra.mxu0 %v10174_v6  ;;  %v10567_v49 = vld [vmem:[%s22350_s1 + $0x3a8] sm:$0xf0] }
 0x1a7   :  { %v16415_v24 = vpop.f32.mrf.mxu3  ;;  %3092 = vmatpush.bf16.msra.mxu2 %v10178_v9  ;;  %v13556_v57 = vld [vmem:[%s22350_s1 + $0x10c] sm:$0xf] }
 0x1a8   :  { %v1986_v38 = vadd.f32 %v16415_v24, %v16375_v40  ;;  %v9572_v40 = vld [vmem:[%s22352_s0 + $0x48] sm:$0xff]  ;;  %v10110_v24 = vor.u32 %v13527_v42, %v10109_v14 }
 0x1a9   :  { %v1974_v30 = vpop.f32.mrf.mxu2  ;;  %v1961_v4 = vpop.f32.mrf.mxu1  ;;  %v10279_v42 = vld [vmem:[%s22350_s1 + $0x168] sm:$0xf0] }
 0x1aa   :  { %v10429_v30 = vld [vmem:[%s22350_s1 + $0x280] sm:$0xf]  ;;  %v10091_v4 = vmul.f32 -1.442695, %v2145_v13  ;;  %3067 = vmatpush.bf16.msra.mxu0 %v10142_v23  ;;  %v2146_v58 = vadd.f32 %v9572_v40, %v1986_v38  ;;  %v13564_v38 = vld [vmem:[%s22350_s1 + $0x14c] sm:$0xf] }
 0x1ab   :  { %v1998_v39 = vpop.f32.mrf.mxu0  ;;  %v10430_v35 = vor.u32 %v13607_v46, %v10429_v30  ;;  %3093 = vmatpush.bf16.msra.mxu2 %v10146_v29 }
 0x1ac   :  { %14323 = vpow2.f32 %v10091_v4  ;;  %v10092_v9 = vmul.f32 -1.442695, %v2146_v58  ;;  %v10247_v58 = vld [vmem:[%s22350_s1 + $0x128] sm:$0xf0] }
 0x1ad   :  { %3079 = vmatpush.bf16.msra.mxu1 %v10430_v35 }
 0x1ae   :  { %3068 = vmatpush.bf16.msra.mxu0 %v10110_v24  ;;  %v10282_v24 = vor.u32 %v13564_v38, %v10279_v42  ;;  %v13612_v38 = vld [vmem:[%s22350_s1 + $0x2cc] sm:$0xf]  ;;  %v13536_v42 = vld [vmem:[%s22350_s1 + $0x64] sm:$0xf0] }
 0x1af   :  { %v1987_v54 = vpop.f32.mrf.mxu3  ;;  %3094 = vmatpush.bf16.msra.mxu2 %v10114_v48  ;;  %v10566_v48 = vor.u32 %v13640_v44, %v10565_v43  ;;  %v13532_v43 = vld [vmem:[%s22350_s1 + $0x4c] sm:$0xf] }
 0x1b0   :  { %v10346_v54 = vor.u32 %v13580_v10, %v10343_v51  ;;  %v10245_v10 = vld [vmem:[%s22350_s1 + $0x108] sm:$0xf] }
 0x1b1   :  { %v2011_v0 = vpop.f32.mrf.mxu1  ;;  %v2024_v1 = vpop.f32.mrf.mxu2  ;;  %3080 = vmatpush.bf16.msra.mxu1 %v10398_v59  ;;  %v13560_v51 = vld [vmem:[%s22350_s1 + $0x124] sm:$0xf0] }
 0x1b2   :  { %v2012_v5 = vadd.f32 %v2011_v0, %v1998_v39  ;;  %3113 = vmatpush.bf16.msrb.mxu0 %v10342_v52  ;;  %v13576_v0 = vld [vmem:[%s22350_s1 + $0x1a4] sm:$0xf0]  ;;  %v14324_v13 = vpop.eup %14323  ;;  %v10246_v32 = vor.u32 %v13560_v51, %v10245_v10  ;;  %v13604_v51 = vld [vmem:[%s22350_s1 + $0x28c] sm:$0xf] }
 0x1b3   :  { %v2000_v8 = vpop.f32.mrf.mxu0  ;;  %3139 = vmatpush.bf16.msrb.mxu2 %v10346_v54  ;;  %v10310_v2 = vor.u32 %v13576_v0, %v10309_v50  ;;  %v16616_v30 = vadd.f32 1.0, %v14324_v13  ;;  %v10570_v54 = vor.u32 %v13636_v27, %v10567_v49  ;;  %v10501_v13 = vld [vmem:[%s22350_s1 + $0x308] sm:$0xf] }
 0x1b4   :  { %v2147_v16 = vadd.f32 %v9573_v53, %v2012_v5  ;;  %v13595_v53 = vld [vmem:[%s22350_s1 + $0x244] sm:$0xf]  ;;  %v10365_v5 = vld [vmem:[%s22350_s1 + $0x200] sm:$0xf]  ;;  %v10437_v49 = vld [vmem:[%s22350_s1 + $0x288] sm:$0xf] }
 0x1b5   :  { %v10402_v63 = vor.u32 %v13595_v53, %v10399_v61  ;;  %v13587_v8 = vld [vmem:[%s22350_s1 + $0x204] sm:$0xf]  ;;  %v10366_v19 = vor.u32 %v13591_v7, %v10365_v5  ;;  %v10250_v53 = vor.u32 %v13556_v57, %v10247_v58  ;;  %v10533_v61 = vld [vmem:[%s22350_s1 + $0x348] sm:$0xf]  ;;  %v10439_v58 = vld [vmem:[%s22350_s1 + $0x2a8] sm:$0xf0]  ;;  %vm2182_vm12 = vweird.f32 %v16616_v30 }
 0x1b6   :  { %v10093_v33 = vmul.f32 -1.442695, %v2147_v16  ;;  %v9575_v16 = vld [vmem:[%s22352_s0 + $0x60] sm:$0xff]  ;;  %3114 = vmatpush.bf16.msrb.mxu0 %v10310_v2  ;;  %v10370_v28 = vor.u32 %v13587_v8, %v10367_v11  ;;  %v13552_v5 = vld [vmem:[%s22350_s1 + $0xe4] sm:$0xf0] }
 0x1b7   :  { %v2037_v26 = vpop.f32.mrf.mxu3  ;;  %3106 = vmatpush.bf16.msra.mxu3 %v10402_v63  ;;  %3081 = vmatpush.bf16.msra.mxu1 %v10366_v19  ;;  %v13632_v63 = vld [vmem:[%s22350_s1 + $0x364] sm:$0xf0]  ;;  %v10503_v19 = vld [vmem:[%s22350_s1 + $0x328] sm:$0xf0] }
 0x1b8   :  { %v2038_v34 = vadd.f32 %v2037_v26, %v2024_v1  ;;  %14325 = vpow2.f32 %v10093_v33  ;;  %v13572_v1 = vld [vmem:[%s22350_s1 + $0x18c] sm:$0xf]  ;;  %v10277_v33 = vld [vmem:[%s22350_s1 + $0x148] sm:$0xf]  ;;  %v10534_v0 = vor.u32 %v13632_v63, %v10533_v61 }
 0x1b9   :  { %v2013_v56 = vpop.f32.mrf.mxu1  ;;  %v2026_v39 = vpop.f32.mrf.mxu2  ;;  %v10314_v6 = vor.u32 %v13572_v1, %v10311_v3  ;;  %v10599_v26 = vld [vmem:[%s22350_s1 + $0x3e8] sm:$0xf0]  ;;  %v10278_v14 = vor.u32 %v13568_v36, %v10277_v33  ;;  %v10213_v3 = vld [vmem:[%s22350_s1 + $0xc8] sm:$0xf] }
 0x1ba   :  { %v2148_v45 = vadd.f32 %v9574_v55, %v2038_v34  ;;  %v10602_v29 = vor.u32 %v13644_v22, %v10599_v26  ;;  %v9576_v34 = vld [vmem:[%s22352_s0 + $0x68] sm:$0xff]  ;;  %v10214_v8 = vor.u32 %v13552_v5, %v10213_v3  ;;  %v9577_v5 = vld [vmem:[%s22352_s0 + $0x70] sm:$0xff] }
 0x1bb   :  { %v2050_v47 = vpop.f32.mrf.mxu0  ;;  %3140 = vmatpush.bf16.msrb.mxu2 %v10314_v6  ;;  %3107 = vmatpush.bf16.msra.mxu3 %v10370_v28  ;;  %v13628_v1 = vld [vmem:[%s22350_s1 + $0x34c] sm:$0xf]  ;;  %v10181_v22 = vld [vmem:[%s22350_s1 + $0x88] sm:$0xf] }
 0x1bc   :  { %v10094_v15 = vmul.f32 -1.442695, %v2148_v45  ;;  %3126 = vmatpush.bf16.msrb.mxu1 %v10598_v25  ;;  %3115 = vmatpush.bf16.msrb.mxu0 %v10278_v14  ;;  %v10469_v33 = vld [vmem:[%s22350_s1 + $0x2c8] sm:$0xf] }
 0x1bd   :  { %v10149_v14 = vld [vmem:[%s22350_s1 + $0x48] sm:$0xf] }
 0x1be   :  { %v14326_v55 = vpop.eup %14325  ;;  %14327 = vpow2.f32 %v10094_v15  ;;  %v10535_v15 = vld [vmem:[%s22350_s1 + $0x368] sm:$0xf0]  ;;  %v13608_v10 = vld [vmem:[%s22350_s1 + $0x2a4] sm:$0xf0] }
 0x1bf   :  { %v2039_v60 = vpop.f32.mrf.mxu3  ;;  %14329 = vpow2.f32 %v10092_v9  ;;  %v16618_v31 = vadd.f32 1.0, %v14326_v55  ;;  %3152 = vmatpush.bf16.msrb.mxu3 %v10602_v29  ;;  %3141 = vmatpush.bf16.msrb.mxu2 %v10282_v24  ;;  %v10538_v2 = vor.u32 %v13628_v1, %v10535_v15  ;;  %v13548_v9 = vld [vmem:[%s22350_s1 + $0xcc] sm:$0xf]  ;;  %v13544_v55 = vld [vmem:[%s22350_s1 + $0xa4] sm:$0xf0]  ;;  %v10438_v57 = vor.u32 %v13608_v10, %v10437_v49 }
 0x1c0   :  { %14331 = vrcp.f32 %v16616_v30  ;;  %3127 = vmatpush.bf16.msrb.mxu1 %v10566_v48  ;;  %3116 = vmatpush.bf16.msrb.mxu0 %v10246_v32  ;;  %v10182_v26 = vor.u32 %v13544_v55, %v10181_v22  ;;  %v13540_v29 = vld [vmem:[%s22350_s1 + $0x8c] sm:$0xf]  ;;  %v10150_v48 = vor.u32 %v13536_v42, %v10149_v14  ;;  %v10117_v61 = vld [vmem:[%s22350_s1 + $0x8] sm:$0xf] }
 0x1c1   :  { %v2076_v17 = vpop.f32.mrf.mxu2  ;;  %v2063_v18 = vpop.f32.mrf.mxu1  ;;  %14333 = vrcp.f32 %v16618_v31  ;;  %v13528_v63 = vld [vmem:[%s22350_s1 + $0x24] sm:$0xf0]  ;;  %v13524_v15 = vld [vmem:[%s22350_s1 + $0xc] sm:$0xf]  ;;  %vm2212_vm10 = vweird.f32 %v16618_v31 }
 0x1c2   :  { %v2064_v23 = vadd.f32 %v2063_v18, %v2050_v47  ;;  %v13620_v18 = vld [vmem:[%s22350_s1 + $0x30c] sm:$0xf]  ;;  %v10118_v1 = vor.u32 %v13528_v63, %v10117_v61 }
 0x1c3   :  { %v2052_v62 = vpop.f32.mrf.mxu0  ;;  %3153 = vmatpush.bf16.msrb.mxu3 %v10570_v54  ;;  %3142 = vmatpush.bf16.msrb.mxu2 %v10250_v53  ;;  %v10506_v21 = vor.u32 %v13620_v18, %v10503_v19  ;;  %v10442_v53 = vor.u32 %v13604_v51, %v10439_v58  ;;  %v13596_v18 = vld [vmem:[%s22350_s1 + $0x24c] sm:$0xf] }
 0x1c4   :  { %v2149_v46 = vadd.f32 %v9575_v16, %v2064_v23  ;;  %v14328_v56 = vpop.eup %14327  ;;  %3128 = vmatpush.bf16.msrb.mxu1 %v10534_v0  ;;  %v13624_v16 = vld [vmem:[%s22350_s1 + $0x324] sm:$0xf0]  ;;  %3117 = vmatpush.bf16.msrb.mxu0 %v10214_v8  ;;  %v2186_v8 = vand.u32 2147483647, %v16616_v30  ;;  %v10407_v22 = vld [vmem:[%s22350_s1 + $0x268] sm:$0xf0] }
 0x1c5   :  { %v14330_v45 = vpop.eup %14329  ;;  %v16655_v52 = vadd.f32 1.0, %v14328_v56  ;;  %v10502_v28 = vor.u32 %v13624_v16, %v10501_v13  ;;  %v10471_v56 = vld [vmem:[%s22350_s1 + $0x2e8] sm:$0xf0]  ;;  %v10405_v13 = vld [vmem:[%s22350_s1 + $0x248] sm:$0xf] }
 0x1c6   :  { %v10095_v4 = vmul.f32 -1.442695, %v2149_v46  ;;  %v16669_v50 = vadd.f32 1.0, %v14330_v45  ;;  %v16677_v60 = vpop.eup %14331  ;;  %v10183_v46 = vld [vmem:[%s22350_s1 + $0xa8] sm:$0xf0]  ;;  %vm16837_vm13 = vcmp.eq.f32.partialorder %v2186_v8, 8.507059e+37 }
 0x1c7   :  { %v2089_v35 = vpop.f32.mrf.mxu3  ;;  %v16685_v6 = vpop.eup %14333  ;;  %3154 = vmatpush.bf16.msrb.mxu3 %v10538_v2  ;;  %v2178_v23 = vmul.f32 %v16677_v60, %v16616_v30  ;;  %v10151_v45 = vld [vmem:[%s22350_s1 + $0x68] sm:$0xf0]  ;;  %v13600_v16 = vld [vmem:[%s22350_s1 + $0x264] sm:$0xf0]  ;;  %vm2183_vm8 = vweird.f32 %v16677_v60  ;;  %vm2227_vm2 = vweird.f32 %v16655_v52 }
 0x1c8   :  { %v2090_v39 = vadd.f32 %v2089_v35, %v2076_v17  ;;  %14335 = vpow2.f32 %v10095_v4  ;;  %v10215_v17 = vld [vmem:[%s22350_s1 + $0xe8] sm:$0xf0]  ;;  %v2208_v62 = vmul.f32 %v16685_v6, %v16618_v31  ;;  %3129 = vmatpush.bf16.msrb.mxu1 %v10502_v28  ;;  %v10186_v4 = vor.u32 %v13540_v29, %v10183_v46  ;;  %3118 = vmatpush.bf16.msrb.mxu0 %v10182_v26  ;;  %vm16850_vm14 = vmor %vm2182_vm12, %vm2183_vm8 }
 0x1c9   :  { %v2078_v41 = vpop.f32.mrf.mxu2  ;;  %v2065_v40 = vpop.f32.mrf.mxu1  ;;  %14337 = vrcp.f32 %v16655_v52  ;;  %v10218_v12 = vor.u32 %v13548_v9, %v10215_v17  ;;  %v2179_v24 = vsub.f32 1.0, %v2178_v23  ;;  %v10154_v32 = vor.u32 %v13532_v43, %v10151_v45  ;;  %v10119_v2 = vld [vmem:[%s22350_s1 + $0x28] sm:$0xf0]  ;;  %v9578_v45 = vld [vmem:[%s22352_s0 + $0x78] sm:$0xff] }
 0x1ca   :  { %v2150_v47 = vadd.f32 %v9576_v34, %v2090_v39  ;;  %v13616_v34 = vld [vmem:[%s22350_s1 + $0x2e4] sm:$0xf0]  ;;  %v10474_v41 = vor.u32 %v13612_v38, %v10471_v56  ;;  %v2209_v44 = vsub.f32 1.0, %v2208_v62  ;;  %v10122_v9 = vor.u32 %v13524_v15, %v10119_v2  ;;  %v10375_v14 = vld [vmem:[%s22350_s1 + $0x228] sm:$0xf0] }
 0x1cb   :  { %3143 = vmatpush.bf16.msrb.mxu2 %v10218_v12  ;;  %3155 = vmatpush.bf16.msrb.mxu3 %v10506_v21  ;;  %v10470_v36 = vor.u32 %v13616_v34, %v10469_v33  ;;  %v2188_v21 = vand.u32 2147483648, %v16616_v30  ;;  %vm2213_vm9 = vweird.f32 %v16685_v6  ;;  %v10406_v62 = vor.u32 %v13600_v16, %v10405_v13  ;;  %v10373_v34 = vld [vmem:[%s22350_s1 + $0x208] sm:$0xf] }
 0x1cc   :  { %v10096_v59 = vmul.f32 -1.442695, %v2150_v47  ;;  %3119 = vmatpush.bf16.msrb.mxu0 %v10150_v48  ;;  %v2210_v0 = vmul.f32 %v16685_v6, %v2209_v44  ;;  %v10410_v26 = vor.u32 %v13596_v18, %v10407_v22  ;;  %v2218_v29 = vand.u32 2147483648, %v16618_v31  ;;  %vm16830_vm11 = vmor %vm2212_vm10, %vm2213_vm9 }
 0x1cd   :  { %3130 = vmatpush.bf16.msrb.mxu1 %v10470_v36  ;;  %v13592_v36 = vld [vmem:[%s22350_s1 + $0x224] sm:$0xf0]  ;;  %v2216_v56 = vand.u32 2147483647, %v16618_v31  ;;  %v2189_v44 = vor.u32 1.1754944e-38, %v2188_v21  ;;  %vm2197_vm15 = vweird.f32 %v16669_v50 }
 0x1ce   :  { %v14336_v11 = vpop.eup %14335  ;;  %14339 = vpow2.f32 %v10096_v59  ;;  %v2211_v55 = vadd.f32 %v16685_v6, %v2210_v0  ;;  %v2219_v48 = vor.u32 1.1754944e-38, %v2218_v29 }
 0x1cf   :  { %v2091_v7 = vpop.f32.mrf.mxu3  ;;  %14341 = vrcp.f32 %v16669_v50  ;;  %v16717_v25 = vadd.f32 1.0, %v14336_v11  ;;  %v16731_v35 = vpop.eup %14337  ;;  %3144 = vmatpush.bf16.msrb.mxu2 %v10186_v4  ;;  %3156 = vmatpush.bf16.msrb.mxu3 %v10474_v41  ;;  %v13588_v41 = vld [vmem:[%s22350_s1 + $0x20c] sm:$0xf]  ;;  %vm2217_vm1 = vcmp.eq.f32.partialorder %v2216_v56, 8.507059e+37 }
 0x1d0   :  { %v2223_v47 = vmul.f32 %v16731_v35, %v16655_v52  ;;  %v2180_v7 = vmul.f32 %v16677_v60, %v2179_v24  ;;  %3120 = vmatpush.bf16.msrb.mxu0 %v10118_v1  ;;  %v10378_v31 = vor.u32 %v13588_v41, %v10375_v14  ;;  %vm2228_vm0 = vweird.f32 %v16731_v35  ;;  %v13577_v24 = vld [vmem:[%s22350_s1 + $0x1ac] sm:$0xf0] }
 0x1d1   :  { %14343 = vrcp.f32 %v16717_v25  ;;  %3131 = vmatpush.bf16.msrb.mxu1 %v10438_v57  ;;  %vm16869_vm4 = vmor %vm2227_vm2, %vm2228_vm0  ;;  %v2248_v21 = vand.u32 2147483648, %v16717_v25  ;;  %vm2242_vm9 = vweird.f32 %v16717_v25  ;;  %v10477_v41 = vld [vmem:[%s22350_s1 + $0x2d0] sm:$0xf] }
 0x1d2   :  { %v2224_v3 = vsub.f32 1.0, %v2223_v47  ;;  %v2181_v33 = vadd.f32 %v16677_v60, %v2180_v7 }
 0x1d3   :  { %3145 = vmatpush.bf16.msrb.mxu2 %v10154_v32  ;;  %3157 = vmatpush.bf16.msrb.mxu3 %v10442_v53  ;;  %v2249_v29 = vor.u32 1.1754944e-38, %v2248_v21  ;;  %v10221_v21 = vld [vmem:[%s22350_s1 + $0xd0] sm:$0xf] }
 0x1d4   :  { %v14340_v39 = vpop.eup %14339  ;;  %v2225_v38 = vmul.f32 %v16731_v35, %v2224_v3 }
 0x1d5   :  { %v16748_v40 = vpop.eup %14341  ;;  %v16765_v54 = vadd.f32 1.0, %v14340_v39  ;;  %3132 = vmatpush.bf16.msrb.mxu1 %v10406_v62  ;;  %v10374_v39 = vor.u32 %v13592_v36, %v10373_v34 }
 0x1d6   :  { %v2193_v59 = vmul.f32 %v16748_v40, %v16669_v50  ;;  %v2226_v32 = vadd.f32 %v16731_v35, %v2225_v38  ;;  %vm2198_vm3 = vweird.f32 %v16748_v40 }
 0x1d7   :  { %v16790_v17 = vpop.eup %14343  ;;  %14345 = vrcp.f32 %v16765_v54  ;;  %3146 = vmatpush.bf16.msrb.mxu2 %v10122_v9  ;;  %3158 = vmatpush.bf16.msrb.mxu3 %v10410_v26  ;;  %vm16884_vm5 = vmor %vm2197_vm15, %vm2198_vm3  ;;  %v2261_v38 = vand.u32 2147483647, %v16765_v54  ;;  %v2263_v56 = vand.u32 2147483648, %v16765_v54 }
 0x1d8   :  { %v2194_v19 = vsub.f32 1.0, %v2193_v59  ;;  %v2238_v46 = vmul.f32 %v16790_v17, %v16717_v25  ;;  %v2233_v59 = vand.u32 2147483648, %v16655_v52  ;;  %v2230_v9 = vsel %vm16869_vm4, %v16731_v35, %v2226_v32 }
 0x1d9   :  { %3133 = vmatpush.bf16.msrb.mxu1 %v10374_v39  ;;  %vm2243_vm7 = vweird.f32 %v16790_v17  ;;  %vm2262_vm15 = vcmp.eq.f32.partialorder %v2261_v38, 8.507059e+37  ;;  %v10191_v38 = vld [vmem:[%s22350_s1 + $0xb0] sm:$0xf0] }
 0x1da   :  { %v2195_v30 = vmul.f32 %v16748_v40, %v2194_v19  ;;  %v2239_v49 = vsub.f32 1.0, %v2238_v46  ;;  %vm2244_vm10 = vmor %vm2242_vm9, %vm2243_vm7 }
 0x1db   :  { %v2102_v27 = vpop.f32.mrf.mxu0  ;;  %3159 = vmatpush.bf16.msrb.mxu3 %v10378_v31  ;;  %v10317_v31 = vld [vmem:[%s22350_s1 + $0x190] sm:$0xf] }
 0x1dc   :  { %v2196_v0 = vadd.f32 %v16748_v40, %v2195_v30  ;;  %v2240_v2 = vmul.f32 %v16790_v17, %v2239_v49  ;;  %v13649_v30 = vld [vmem:[%s22350_s1 + $0x3ec] sm:$0xf0]  ;;  %v10607_v49 = vld [vmem:[%s22350_s1 + $0x3f0] sm:$0xf0] }
 0x1dd   :  { %v16835_v43 = vpop.eup %14345 }
 0x1de   :  { %v2253_v53 = vmul.f32 %v16835_v43, %v16765_v54  ;;  %v2241_v19 = vadd.f32 %v16790_v17, %v2240_v2  ;;  %vm2258_vm12 = vweird.f32 %v16835_v43  ;;  %v13637_v2 = vld [vmem:[%s22350_s1 + $0x394] sm:$0xf] }
 0x1e0   :  { %v2245_v26 = vsel %vm2244_vm10, %v16790_v17, %v2241_v19  ;;  %v10351_v17 = vld [vmem:[%s22350_s1 + $0x1f0] sm:$0xf0] }
 0x1e1   :  { %v2115_v11 = vpop.f32.mrf.mxu1  ;;  %v2128_v12 = vpop.f32.mrf.mxu2  ;;  %v13629_v19 = vld [vmem:[%s22350_s1 + $0x354] sm:$0xf] }
 0x1e2   :  { %v2116_v28 = vadd.f32 %v2115_v11, %v2102_v27  ;;  %v2215_v27 = vsel %vm16830_vm11, %v16685_v6, %v2211_v55  ;;  %v2185_v6 = vsel %vm16850_vm14, %v16677_v60, %v2181_v33  ;;  %v2231_v60 = vand.u32 2147483647, %v16655_v52 }
 0x1e3   :  { %v2104_v23 = vpop.f32.mrf.mxu0  ;;  %v2220_v61 = vsel %vm2217_vm1, %v2219_v48, %v2215_v27  ;;  %v2190_v3 = vsel %vm16837_vm13, %v2189_v44, %v2185_v6  ;;  %v2201_v52 = vand.u32 2147483647, %v16669_v50  ;;  %v2234_v11 = vor.u32 1.1754944e-38, %v2233_v59  ;;  %v13573_v27 = vld [vmem:[%s22350_s1 + $0x194] sm:$0xf] }
 0x1e4   :  { %v2151_v4 = vadd.f32 %v9577_v5, %v2116_v28  ;;  %v2203_v5 = vand.u32 2147483648, %v16669_v50  ;;  %v2269_v7 = vmul.f32 %v2220_v61, %v15917_v20  ;;  %v2200_v20 = vsel %vm16884_vm5, %v16748_v40, %v2196_v0  ;;  %v13645_v48 = vld [vmem:[%s22350_s1 + $0x3d4] sm:$0xf]  ;;  %v13569_v59 = vld [vmem:[%s22350_s1 + $0x16c] sm:$0xf0] }
 0x1e5   :  { %vm2232_vm6 = vcmp.eq.f32.partialorder %v2231_v60, 8.507059e+37  ;;  %v2246_v50 = vand.u32 2147483647, %v16717_v25  ;;  %vm2202_vm8 = vcmp.eq.f32.partialorder %v2201_v52, 8.507059e+37  ;;  %v13585_v25 = vld [vmem:[%s22350_s1 + $0x1ec] sm:$0xf0]  ;;  %vm2257_vm13 = vweird.f32 %v16765_v54 }
 0x1e6   :  { %14347 = vtanh.f32 %v2151_v4  ;;  %v2204_v35 = vor.u32 1.1754944e-38, %v2203_v5  ;;  %v2235_v28 = vsel %vm2232_vm6, %v2234_v11, %v2230_v9  ;;  %v10349_v4 = vld [vmem:[%s22350_s1 + $0x1d0] sm:$0xf]  ;;  %vm16922_vm14 = vmor %vm2257_vm13, %vm2258_vm12  ;;  %v10318_v6 = vor.u32 %v13577_v24, %v10317_v31  ;;  %v10287_v61 = vld [vmem:[%s22350_s1 + $0x170] sm:$0xf0] }
 0x1e7   :  { %v2141_v47 = vpop.f32.mrf.mxu3  ;;  %v2270_v23 = vmul.f32 %v2235_v28, %v15942_v37  ;;  %vm2247_vm11 = vcmp.eq.f32.partialorder %v2246_v50, 8.507059e+37  ;;  %v13581_v37 = vld [vmem:[%s22350_s1 + $0x1d4] sm:$0xf]  ;;  %v10350_v14 = vor.u32 %v13585_v25, %v10349_v4  ;;  %v10610_v0 = vor.u32 %v13645_v48, %v10607_v49  ;;  %v10573_v60 = vld [vmem:[%s22350_s1 + $0x390] sm:$0xf] }
 0x1e8   :  { %v2142_v51 = vadd.f32 %v2141_v47, %v2128_v12  ;;  %v2254_v12 = vsub.f32 1.0, %v2253_v53  ;;  %v2205_v55 = vsel %vm2202_vm8, %v2204_v35, %v2200_v20  ;;  %v2250_v36 = vsel %vm2247_vm11, %v2249_v29, %v2245_v26  ;;  %v13565_v53 = vld [vmem:[%s22350_s1 + $0x154] sm:$0xf]  ;;  %v13561_v52 = vld [vmem:[%s22350_s1 + $0x12c] sm:$0xf0] }
 0x1e9   :  { %v2117_v57 = vpop.f32.mrf.mxu1  ;;  %v2130_v58 = vpop.f32.mrf.mxu2  ;;  %v10354_v42 = vor.u32 %v13581_v37, %v10351_v17  ;;  %v2264_v47 = vor.u32 1.1754944e-38, %v2263_v56  ;;  %v13557_v9 = vld [vmem:[%s22350_s1 + $0x114] sm:$0xf]  ;;  %v10541_v20 = vld [vmem:[%s22350_s1 + $0x350] sm:$0xf] }
 0x1ea   :  { %v2152_v63 = vadd.f32 %v9578_v45, %v2142_v51  ;;  %v2255_v40 = vmul.f32 %v16835_v43, %v2254_v12  ;;  %v10319_v45 = vld [vmem:[%s22350_s1 + $0x1b0] sm:$0xf0]  ;;  %v10285_v57 = vld [vmem:[%s22350_s1 + $0x150] sm:$0xf] }
 0x1eb   :  { %v10322_v32 = vor.u32 %v13573_v27, %v10319_v45  ;;  %v10286_v5 = vor.u32 %v13569_v59, %v10285_v57  ;;  %v10255_v11 = vld [vmem:[%s22350_s1 + $0x130] sm:$0xf0]  ;;  %v10509_v26 = vld [vmem:[%s22350_s1 + $0x310] sm:$0xf] }
 0x1ec   :  { %v14348_v1 = vpop.eup %14347  ;;  %14349 = vtanh.f32 %v2152_v63  ;;  %v2256_v33 = vadd.f32 %v16835_v43, %v2255_v40  ;;  %v10543_v35 = vld [vmem:[%s22350_s1 + $0x370] sm:$0xf0]  ;;  %v10258_v50 = vor.u32 %v13557_v9, %v10255_v11  ;;  %v13625_v29 = vld [vmem:[%s22350_s1 + $0x32c] sm:$0xf0] }
 0x1ed   :  { %v2271_v8 = vmul.f32 %v14348_v1, %v2190_v3  ;;  %v13641_v1 = vld [vmem:[%s22350_s1 + $0x3ac] sm:$0xf0]  ;;  %v10575_v3 = vld [vmem:[%s22350_s1 + $0x3b0] sm:$0xf0]  ;;  %v10510_v56 = vor.u32 %v13625_v29, %v10509_v26  ;;  %v13646_v26 = vld [vmem:[%s22350_s1 + $0x3dc] sm:$0xf] }
 0x1ee   :  { %v2260_v44 = vsel %vm16922_vm14, %v16835_v43, %v2256_v33  ;;  %v10605_v43 = vld [vmem:[%s22350_s1 + $0x3d0] sm:$0xf]  ;;  %v10574_v12 = vor.u32 %v13641_v1, %v10573_v60  ;;  %v10578_v13 = vor.u32 %v13637_v2, %v10575_v3  ;;  %v13549_v40 = vld [vmem:[%s22350_s1 + $0xd4] sm:$0xf]  ;;  %v13582_v2 = vld [vmem:[%s22350_s1 + $0x1dc] sm:$0xf] }
 0x1ef   :  { %v16888_v16 = vadd.f32 %v2271_v8, %v2269_v7  ;;  %v2143_v18 = vpop.f32.mrf.mxu3  ;;  %v2265_v51 = vsel %vm2262_vm15, %v2264_v47, %v2260_v44  ;;  %v10606_v63 = vor.u32 %v13649_v30, %v10605_v43  ;;  %v10290_v7 = vor.u32 %v13565_v53, %v10287_v61  ;;  %v10253_v8 = vld [vmem:[%s22350_s1 + $0x110] sm:$0xf]  ;;  %v13621_v4 = vld [vmem:[%s22350_s1 + $0x314] sm:$0xf]  ;;  %v10359_v3 = vld [vmem:[%s22350_s1 + $0x1f8] sm:$0xf0] }
 0x1f0   :  { %v13633_v18 = vld [vmem:[%s22350_s1 + $0x36c] sm:$0xf0]  ;;  %v10254_v28 = vor.u32 %v13561_v52, %v10253_v8  ;;  %v10511_v33 = vld [vmem:[%s22350_s1 + $0x330] sm:$0xf0]  ;;  %v10615_v29 = vld [vmem:[%s22350_s1 + $0x3f8] sm:$0xf0] }
 0x1f1   :  { %14351 = vtanh.f32 %v16888_v16  ;;  %v10189_v17 = vld [vmem:[%s22350_s1 + $0x90] sm:$0xf]  ;;  %v10479_v31 = vld [vmem:[%s22350_s1 + $0x2f0] sm:$0xf0] }
 0x1f2   :  { %v14350_v22 = vpop.eup %14349  ;;  %v10157_v27 = vld [vmem:[%s22350_s1 + $0x50] sm:$0xf]  ;;  %v13533_v47 = vld [vmem:[%s22350_s1 + $0x54] sm:$0xf] }
 0x1f3   :  { %v2272_v62 = vmul.f32 %v14350_v22, %v2205_v55  ;;  %v13553_v22 = vld [vmem:[%s22350_s1 + $0xec] sm:$0xf0]  ;;  %v10223_v55 = vld [vmem:[%s22350_s1 + $0xf0] sm:$0xf0] }
 0x1f4   :  { %v10222_v25 = vor.u32 %v13553_v22, %v10221_v21  ;;  %v10226_v37 = vor.u32 %v13549_v40, %v10223_v55  ;;  %v13537_v45 = vld [vmem:[%s22350_s1 + $0x6c] sm:$0xf0]  ;;  %v10159_v43 = vld [vmem:[%s22350_s1 + $0x70] sm:$0xf0] }
 0x1f5   :  { %v16902_v46 = vadd.f32 %v2272_v62, %v2270_v23  ;;  %v10542_v23 = vor.u32 %v13633_v18, %v10541_v20  ;;  %v10546_v62 = vor.u32 %v13629_v19, %v10543_v35  ;;  %v10445_v49 = vld [vmem:[%s22350_s1 + $0x290] sm:$0xf]  ;;  %v10162_v57 = vor.u32 %v13533_v47, %v10159_v43  ;;  %v13525_v53 = vld [vmem:[%s22350_s1 + $0x14] sm:$0xf]  ;;  %v10325_v20 = vld [vmem:[%s22350_s1 + $0x198] sm:$0xf] }
 0x1f6   :  { %v13529_v59 = vld [vmem:[%s22350_s1 + $0x2c] sm:$0xf0]  ;;  %v10127_v61 = vld [vmem:[%s22350_s1 + $0x30] sm:$0xf0]  ;;  %v13578_v18 = vld [vmem:[%s22350_s1 + $0x1b4] sm:$0xf0] }
 0x1f7   :  { %v14352_v34 = vpop.eup %14351  ;;  %14353 = vtanh.f32 %v16902_v46  ;;  %v13597_v8 = vld [vmem:[%s22350_s1 + $0x254] sm:$0xf]  ;;  %v10130_v11 = vor.u32 %v13525_v53, %v10127_v61  ;;  %v13574_v19 = vld [vmem:[%s22350_s1 + $0x19c] sm:$0xf]  ;;  %v10381_v21 = vld [vmem:[%s22350_s1 + $0x210] sm:$0xf] }
 0x1f8   :  { %v2277_v39 = vmul.f32 %v14352_v34, %v2250_v36  ;;  %v13545_v34 = vld [vmem:[%s22350_s1 + $0xac] sm:$0xf0]  ;;  %v13541_v36 = vld [vmem:[%s22350_s1 + $0x94] sm:$0xf]  ;;  %v13558_v47 = vld [vmem:[%s22350_s1 + $0x11c] sm:$0xf] }
 0x1f9   :  { %v10190_v24 = vor.u32 %v13545_v34, %v10189_v17  ;;  %v10194_v44 = vor.u32 %v13541_v36, %v10191_v38  ;;  %v10415_v52 = vld [vmem:[%s22350_s1 + $0x270] sm:$0xf0]  ;;  %v13593_v22 = vld [vmem:[%s22350_s1 + $0x22c] sm:$0xf0]  ;;  %v13570_v34 = vld [vmem:[%s22350_s1 + $0x174] sm:$0xf0] }
 0x1fa   :  { %10097 = vst [vmem:[%s22354_s4 + $0x10] sm:$0xff] %v2277_v39  ;;  %v16938_v54 = vpack.c.bf16 %v2277_v39, %v2277_v39  ;;  %v10514_v39 = vor.u32 %v13621_v4, %v10511_v33  ;;  %v13589_v40 = vld [vmem:[%s22350_s1 + $0x214] sm:$0xf]  ;;  %v10326_v4 = vor.u32 %v13578_v18, %v10325_v20  ;;  %v13566_v36 = vld [vmem:[%s22350_s1 + $0x15c] sm:$0xf] }
 0x1fb   :  { %v10383_v55 = vld [vmem:[%s22350_s1 + $0x230] sm:$0xf0]  ;;  %v10295_v38 = vld [vmem:[%s22350_s1 + $0x178] sm:$0xf0]  ;;  %v10485_v20 = vld [vmem:[%s22350_s1 + $0x2d8] sm:$0xf] }
 0x1fc   :  { %3069 = vmatmul.bf16.vlgmr.msra.gmra.mxu0 %v16938_v54  ;;  %3095 = vmatmul.bf16.vlgmr.msra.gmra.mxu2 %v16938_v54  ;;  %v10386_v17 = vor.u32 %v13589_v40, %v10383_v55  ;;  %v10263_v43 = vld [vmem:[%s22350_s1 + $0x138] sm:$0xf0]  ;;  %v13618_v18 = vld [vmem:[%s22350_s1 + $0x2f4] sm:$0xf0] }
 0x1fd   :  { %v14354_v10 = vpop.eup %14353  ;;  %3165 = vmatpush.bf16.msra.mxu0 %v10350_v14  ;;  %3191 = vmatpush.bf16.msra.mxu2 %v10354_v42  ;;  %v13617_v14 = vld [vmem:[%s22350_s1 + $0x2ec] sm:$0xf0]  ;;  %v13613_v42 = vld [vmem:[%s22350_s1 + $0x2d4] sm:$0xf]  ;;  %v13550_v53 = vld [vmem:[%s22350_s1 + $0xdc] sm:$0xf] }
 0x1fe   :  { %v2278_v58 = vmul.f32 %v14354_v10, %v2265_v51  ;;  %v10478_v30 = vor.u32 %v13617_v14, %v10477_v41  ;;  %v10482_v48 = vor.u32 %v13613_v42, %v10479_v31  ;;  %v13609_v10 = vld [vmem:[%s22350_s1 + $0x2ac] sm:$0xf0]  ;;  %v13605_v51 = vld [vmem:[%s22350_s1 + $0x294] sm:$0xf]  ;;  %v10581_v41 = vld [vmem:[%s22350_s1 + $0x398] sm:$0xf] }
 0x1ff   :  { %v10446_v60 = vor.u32 %v13609_v10, %v10445_v49  ;;  %v13642_v14 = vld [vmem:[%s22350_s1 + $0x3b4] sm:$0xf0]  ;;  %v13638_v42 = vld [vmem:[%s22350_s1 + $0x39c] sm:$0xf] }
 0x200   :  { %10098 = vst [vmem:[%s22354_s4 + $0x18] sm:$0xff] %v2278_v58  ;;  %v16981_v15 = vpack.c.bf16 %v2278_v58, %v2278_v58  ;;  %v10125_v58 = vld [vmem:[%s22350_s1 + $0x10] sm:$0xf]  ;;  %v10583_v31 = vld [vmem:[%s22350_s1 + $0x3b8] sm:$0xf0] }
 0x201   :  { %3166 = vmatpush.bf16.msra.mxu0 %v10318_v6  ;;  %3192 = vmatpush.bf16.msra.mxu2 %v10322_v32  ;;  %v10447_v6 = vld [vmem:[%s22350_s1 + $0x2b0] sm:$0xf0]  ;;  %v10158_v32 = vor.u32 %v13537_v45, %v10157_v27  ;;  %v10126_v9 = vor.u32 %v13529_v59, %v10125_v58  ;;  %v10261_v27 = vld [vmem:[%s22350_s1 + $0x118] sm:$0xf]  ;;  %v10231_v61 = vld [vmem:[%s22350_s1 + $0xf8] sm:$0xf0] }
 0x202   :  { %3082 = vmatmul.bf16.vlgmr.msra.gmra.mxu1 %v16981_v15  ;;  %3108 = vmatmul.bf16.vlgmr.msra.gmra.mxu3 %v16981_v15  ;;  %v10450_v1 = vor.u32 %v13605_v51, %v10447_v6  ;;  %v13562_v45 = vld [vmem:[%s22350_s1 + $0x134] sm:$0xf0]  ;;  %v13630_v51 = vld [vmem:[%s22350_s1 + $0x35c] sm:$0xf] }
 0x203   :  { %3178 = vmatpush.bf16.msra.mxu1 %v10606_v63  ;;  %3204 = vmatpush.bf16.msra.mxu3 %v10610_v0  ;;  %v10357_v63 = vld [vmem:[%s22350_s1 + $0x1d8] sm:$0xf]  ;;  %v10551_v6 = vld [vmem:[%s22350_s1 + $0x378] sm:$0xf0] }
 0x204   :  { %v13586_v0 = vld [vmem:[%s22350_s1 + $0x1f4] sm:$0xf0]  ;;  %v13534_v40 = vld [vmem:[%s22350_s1 + $0x5c] sm:$0xf] }
 0x205   :  { %3167 = vmatpush.bf16.msra.mxu0 %v10286_v5  ;;  %3193 = vmatpush.bf16.msra.mxu2 %v10290_v7  ;;  %v10413_v5 = vld [vmem:[%s22350_s1 + $0x250] sm:$0xf]  ;;  %v10549_v49 = vld [vmem:[%s22350_s1 + $0x358] sm:$0xf]  ;;  %v10167_v55 = vld [vmem:[%s22350_s1 + $0x78] sm:$0xf0] }
 0x206   :  { %v13601_v7 = vld [vmem:[%s22350_s1 + $0x26c] sm:$0xf0]  ;;  %v13634_v10 = vld [vmem:[%s22350_s1 + $0x374] sm:$0xf0] }
 0x207   :  { %3179 = vmatpush.bf16.msra.mxu1 %v10574_v12  ;;  %3205 = vmatpush.bf16.msra.mxu3 %v10578_v13  ;;  %v10358_v12 = vor.u32 %v13586_v0, %v10357_v63  ;;  %v10362_v13 = vor.u32 %v13582_v2, %v10359_v3  ;;  %v10414_v35 = vor.u32 %v13601_v7, %v10413_v5  ;;  %v10229_v58 = vld [vmem:[%s22350_s1 + $0xd8] sm:$0xf]  ;;  %v13622_v2 = vld [vmem:[%s22350_s1 + $0x31c] sm:$0xf] }
 0x208   :  { %v13554_v59 = vld [vmem:[%s22350_s1 + $0xf4] sm:$0xf0]  ;;  %v10550_v63 = vor.u32 %v13634_v10, %v10549_v49  ;;  %v10554_v0 = vor.u32 %v13630_v51, %v10551_v6  ;;  %v10519_v3 = vld [vmem:[%s22350_s1 + $0x338] sm:$0xf0]  ;;  %v10234_v7 = vor.u32 %v13550_v53, %v10231_v61 }
 0x209   :  { %3168 = vmatpush.bf16.msra.mxu0 %v10254_v28  ;;  %3194 = vmatpush.bf16.msra.mxu2 %v10258_v50  ;;  %v10418_v28 = vor.u32 %v13597_v8, %v10415_v52  ;;  %v10327_v50 = vld [vmem:[%s22350_s1 + $0x1b8] sm:$0xf0]  ;;  %v10230_v5 = vor.u32 %v13554_v59, %v10229_v58  ;;  %v10197_v8 = vld [vmem:[%s22350_s1 + $0x98] sm:$0xf]  ;;  %v13711_v58 = vld [vmem:[%s22350_s1 + $0x1dc] sm:$0xf0] }
 0x20a   :  { %v10330_v33 = vor.u32 %v13574_v19, %v10327_v50  ;;  %v13546_v52 = vld [vmem:[%s22350_s1 + $0xb4] sm:$0xf0]  ;;  %v13614_v19 = vld [vmem:[%s22350_s1 + $0x2dc] sm:$0xf] }
 0x20b   :  { %3180 = vmatpush.bf16.msra.mxu1 %v10542_v23  ;;  %3206 = vmatpush.bf16.msra.mxu3 %v10546_v62  ;;  %v10613_v23 = vld [vmem:[%s22350_s1 + $0x3d8] sm:$0xf] }
 0x20c   :  { %3121 = vmatmul.bf16.vlgmr.msrb.gmra.mxu0 %v16938_v54  ;;  %3147 = vmatmul.bf16.vlgmr.msrb.gmra.mxu2 %v16938_v54  ;;  %v13650_v62 = vld [vmem:[%s22350_s1 + $0x3f4] sm:$0xf0] }
 0x20d   :  { %3169 = vmatpush.bf16.msra.mxu0 %v10222_v25  ;;  %3195 = vmatpush.bf16.msra.mxu2 %v10226_v37  ;;  %v10293_v25 = vld [vmem:[%s22350_s1 + $0x158] sm:$0xf]  ;;  %v10382_v37 = vor.u32 %v13593_v22, %v10381_v21 }
 0x20e   :  { %v10165_v21 = vld [vmem:[%s22350_s1 + $0x58] sm:$0xf] }
 0x20f   :  { %3181 = vmatpush.bf16.msra.mxu1 %v10510_v56  ;;  %3207 = vmatpush.bf16.msra.mxu3 %v10514_v39  ;;  %v10614_v56 = vor.u32 %v13650_v62, %v10613_v23  ;;  %v10618_v39 = vor.u32 %v13646_v26, %v10615_v29  ;;  %v13538_v22 = vld [vmem:[%s22350_s1 + $0x74] sm:$0xf0]  ;;  %v10486_v23 = vor.u32 %v13618_v18, %v10485_v20  ;;  %v10797_v18 = vld [vmem:[%s22350_s1 + $0x140] sm:$0xf] }
 0x210   :  { %v10453_v26 = vld [vmem:[%s22350_s1 + $0x298] sm:$0xf] }
 0x211   :  { %3170 = vmatpush.bf16.msra.mxu0 %v10190_v24  ;;  %3196 = vmatpush.bf16.msra.mxu2 %v10194_v44  ;;  %v10294_v24 = vor.u32 %v13570_v34, %v10293_v25  ;;  %v10298_v44 = vor.u32 %v13566_v36, %v10295_v38  ;;  %v13610_v29 = vld [vmem:[%s22350_s1 + $0x2b4] sm:$0xf0]  ;;  %v10166_v25 = vor.u32 %v13538_v22, %v10165_v21  ;;  %v13526_v36 = vld [vmem:[%s22350_s1 + $0x1c] sm:$0xf] }
 0x212   :  { %3134 = vmatmul.bf16.vlgmr.msrb.gmra.mxu1 %v16981_v15  ;;  %3160 = vmatmul.bf16.vlgmr.msrb.gmra.mxu3 %v16981_v15  ;;  %v13530_v34 = vld [vmem:[%s22350_s1 + $0x34] sm:$0xf0]  ;;  %v10135_v38 = vld [vmem:[%s22350_s1 + $0x38] sm:$0xf0] }
 0x213   :  { %3182 = vmatpush.bf16.msra.mxu1 %v10478_v30  ;;  %3208 = vmatpush.bf16.msra.mxu3 %v10482_v48  ;;  %v10582_v30 = vor.u32 %v13642_v14, %v10581_v41  ;;  %v10586_v48 = vor.u32 %v13638_v42, %v10583_v31  ;;  %v10421_v41 = vld [vmem:[%s22350_s1 + $0x258] sm:$0xf]  ;;  %v13598_v42 = vld [vmem:[%s22350_s1 + $0x25c] sm:$0xf] }
 0x214   :  { %v13602_v14 = vld [vmem:[%s22350_s1 + $0x274] sm:$0xf0]  ;;  %v10423_v31 = vld [vmem:[%s22350_s1 + $0x278] sm:$0xf0] }
 0x215   :  { %3171 = vmatpush.bf16.msra.mxu0 %v10158_v32  ;;  %3197 = vmatpush.bf16.msra.mxu2 %v10162_v57  ;;  %v10262_v32 = vor.u32 %v13562_v45, %v10261_v27  ;;  %v10266_v57 = vor.u32 %v13558_v47, %v10263_v43  ;;  %v10422_v27 = vor.u32 %v13602_v14, %v10421_v41  ;;  %v10389_v47 = vld [vmem:[%s22350_s1 + $0x218] sm:$0xf]  ;;  %v13759_v41 = vld [vmem:[%s22350_s1 + $0x35c] sm:$0xf0]  ;;  %v10101_v14 = vld [vmem:[%s22352_s0 + $0x90] sm:$0xff] }
 0x216   :  { %v10426_v45 = vor.u32 %v13598_v42, %v10423_v31  ;;  %v13594_v43 = vld [vmem:[%s22350_s1 + $0x234] sm:$0xf0]  ;;  %v13755_v31 = vld [vmem:[%s22350_s1 + $0x344] sm:$0xf] }
 0x217   :  { %3183 = vmatpush.bf16.msra.mxu1 %v10446_v60  ;;  %3209 = vmatpush.bf16.msra.mxu3 %v10450_v1  ;;  %v10517_v60 = vld [vmem:[%s22350_s1 + $0x318] sm:$0xf]  ;;  %v10390_v49 = vor.u32 %v13594_v43, %v10389_v47  ;;  %v10733_v47 = vld [vmem:[%s22350_s1 + $0xc0] sm:$0xf] }
 0x218   :  { %v13626_v1 = vld [vmem:[%s22350_s1 + $0x334] sm:$0xf0]  ;;  %v13679_v43 = vld [vmem:[%s22350_s1 + $0xdc] sm:$0xf0] }
 0x219   :  { %3172 = vmatpush.bf16.msra.mxu0 %v10126_v9  ;;  %3198 = vmatpush.bf16.msra.mxu2 %v10130_v11  ;;  %v13542_v9 = vld [vmem:[%s22350_s1 + $0x9c] sm:$0xf] }
 0x21a   :  { %v10199_v11 = vld [vmem:[%s22350_s1 + $0xb8] sm:$0xf0] }
 0x21b   :  { %3184 = vmatpush.bf16.msra.mxu1 %v10414_v35  ;;  %3210 = vmatpush.bf16.msra.mxu3 %v10418_v28  ;;  %v10487_v35 = vld [vmem:[%s22350_s1 + $0x2f8] sm:$0xf0]  ;;  %v10198_v28 = vor.u32 %v13546_v52, %v10197_v8  ;;  %v10202_v50 = vor.u32 %v13542_v9, %v10199_v11  ;;  %v13775_v8 = vld [vmem:[%s22350_s1 + $0x3dc] sm:$0xf0]  ;;  %v13771_v52 = vld [vmem:[%s22350_s1 + $0x3c4] sm:$0xf] }
 0x21c   :  { %3173 = vmatmul.bf16.vlgmr.msra.gmra.mxu0 %v16938_v54  ;;  %3199 = vmatmul.bf16.vlgmr.msra.gmra.mxu2 %v16938_v54  ;;  %v10490_v62 = vor.u32 %v13614_v19, %v10487_v35  ;;  %v11119_v11 = vld [vmem:[%s22350_s1 + $0x3e0] sm:$0xf0]  ;;  %v13695_v19 = vld [vmem:[%s22350_s1 + $0x15c] sm:$0xf0] }
 0x21d   :  { %3217 = vmatpush.bf16.msrb.mxu0 %v10358_v12  ;;  %3243 = vmatpush.bf16.msrb.mxu2 %v10362_v13  ;;  %v10518_v12 = vor.u32 %v13626_v1, %v10517_v60  ;;  %v10522_v13 = vor.u32 %v13622_v2, %v10519_v3  ;;  %v13699_v60 = vld [vmem:[%s22350_s1 + $0x184] sm:$0xf]  ;;  %v11122_v20 = vor.u32 %v13771_v52, %v11119_v11  ;;  %v13743_v11 = vld [vmem:[%s22350_s1 + $0x2dc] sm:$0xf0] }
 0x21e   :  { %v10831_v2 = vld [vmem:[%s22350_s1 + $0x1a0] sm:$0xf0]  ;;  %v10798_v35 = vor.u32 %v13695_v19, %v10797_v18 }
 0x21f   :  { %3185 = vmatpush.bf16.msra.mxu1 %v10382_v37  ;;  %3211 = vmatpush.bf16.msra.mxu3 %v10386_v17  ;;  %v10170_v37 = vor.u32 %v13534_v40, %v10167_v55  ;;  %v10133_v17 = vld [vmem:[%s22350_s1 + $0x18] sm:$0xf]  ;;  %v11085_v40 = vld [vmem:[%s22350_s1 + $0x380] sm:$0xf] }
 0x220   :  { %v13767_v55 = vld [vmem:[%s22350_s1 + $0x39c] sm:$0xf0] }
 0x221   :  { %3218 = vmatpush.bf16.msrb.mxu0 %v10326_v4  ;;  %3244 = vmatpush.bf16.msrb.mxu2 %v10330_v33  ;;  %v13606_v4 = vld [vmem:[%s22350_s1 + $0x29c] sm:$0xf] }
 0x222   :  { %3186 = vmatmul.bf16.vlgmr.msra.gmra.mxu1 %v16981_v15  ;;  %3212 = vmatmul.bf16.vlgmr.msra.gmra.mxu3 %v16981_v15  ;;  %v10455_v33 = vld [vmem:[%s22350_s1 + $0x2b8] sm:$0xf0] }
 0x223   :  { %3230 = vmatpush.bf16.msrb.mxu1 %v10614_v56  ;;  %3256 = vmatpush.bf16.msrb.mxu3 %v10618_v39  ;;  %v10454_v56 = vor.u32 %v13610_v29, %v10453_v26  ;;  %v10458_v39 = vor.u32 %v13606_v4, %v10455_v33  ;;  %v11087_v26 = vld [vmem:[%s22350_s1 + $0x3a0] sm:$0xf0]  ;;  %v10765_v4 = vld [vmem:[%s22350_s1 + $0x100] sm:$0xf] }
 0x224   :  { %v13687_v33 = vld [vmem:[%s22350_s1 + $0x11c] sm:$0xf0] }
 0x225   :  { %3219 = vmatpush.bf16.msrb.mxu0 %v10294_v24  ;;  %3245 = vmatpush.bf16.msrb.mxu2 %v10298_v44  ;;  %v10134_v24 = vor.u32 %v13530_v34, %v10133_v17  ;;  %v10138_v44 = vor.u32 %v13526_v36, %v10135_v38  ;;  %v10766_v17 = vor.u32 %v13687_v33, %v10765_v4  ;;  %v10767_v34 = vld [vmem:[%s22350_s1 + $0x120] sm:$0xf0] }
 0x226   :  { %v10099_v36 = vld [vmem:[%s22352_s0 + $0x80] sm:$0xff] }
 0x227   :  { %3231 = vmatpush.bf16.msrb.mxu1 %v10582_v30  ;;  %3257 = vmatpush.bf16.msrb.mxu3 %v10586_v48  ;;  %v13590_v30 = vld [vmem:[%s22350_s1 + $0x21c] sm:$0xf] }
 0x228   :  { %v10391_v48 = vld [vmem:[%s22350_s1 + $0x238] sm:$0xf0] }
 0x229   :  { %3220 = vmatpush.bf16.msrb.mxu0 %v10262_v32  ;;  %3246 = vmatpush.bf16.msrb.mxu2 %v10266_v57  ;;  %v10394_v10 = vor.u32 %v13590_v30, %v10391_v48  ;;  %v10861_v57 = vld [vmem:[%s22350_s1 + $0x1c0] sm:$0xf]  ;;  %v13675_v30 = vld [vmem:[%s22350_s1 + $0xc4] sm:$0xf] }
 0x22a   :  { %v10862_v59 = vor.u32 %v13711_v58, %v10861_v57  ;;  %v11021_v58 = vld [vmem:[%s22350_s1 + $0x300] sm:$0xf] }
 0x22b   :  { %3232 = vmatpush.bf16.msrb.mxu1 %v10550_v63  ;;  %3258 = vmatpush.bf16.msrb.mxu3 %v10554_v0  ;;  %v10829_v63 = vld [vmem:[%s22350_s1 + $0x180] sm:$0xf] }
 0x22c   :  { %v13703_v0 = vld [vmem:[%s22350_s1 + $0x19c] sm:$0xf0] }
 0x22d   :  { %3221 = vmatpush.bf16.msrb.mxu0 %v10230_v5  ;;  %3247 = vmatpush.bf16.msrb.mxu2 %v10234_v7  ;;  %v10830_v1 = vor.u32 %v13703_v0, %v10829_v63  ;;  %v10834_v5 = vor.u32 %v13699_v60, %v10831_v2  ;;  %v11117_v7 = vld [vmem:[%s22350_s1 + $0x3c0] sm:$0xf] }
 0x22e   :  { %v11118_v9 = vor.u32 %v13775_v8, %v11117_v7  ;;  %v10701_v0 = vld [vmem:[%s22350_s1 + $0x80] sm:$0xf]  ;;  %v10703_v7 = vld [vmem:[%s22350_s1 + $0xa0] sm:$0xf0] }
 0x22f   :  { %3233 = vmatpush.bf16.msrb.mxu1 %v10518_v12  ;;  %3259 = vmatpush.bf16.msrb.mxu3 %v10522_v13  ;;  %v13671_v60 = vld [vmem:[%s22350_s1 + $0x9c] sm:$0xf0] }
 0x230   :  { %v10702_v2 = vor.u32 %v13671_v60, %v10701_v0  ;;  %v10837_v0 = vld [vmem:[%s22350_s1 + $0x188] sm:$0xf] }
 0x231   :  { %3222 = vmatpush.bf16.msrb.mxu0 %v10198_v28  ;;  %3248 = vmatpush.bf16.msrb.mxu2 %v10202_v50  ;;  %v13691_v28 = vld [vmem:[%s22350_s1 + $0x144] sm:$0xf]  ;;  %v13704_v60 = vld [vmem:[%s22350_s1 + $0x1a4] sm:$0xf0] }
 0x232   :  { %v10799_v50 = vld [vmem:[%s22350_s1 + $0x160] sm:$0xf0] }
 0x233   :  { %3234 = vmatpush.bf16.msrb.mxu1 %v10486_v23  ;;  %3260 = vmatpush.bf16.msrb.mxu3 %v10490_v62  ;;  %v10802_v22 = vor.u32 %v13691_v28, %v10799_v50  ;;  %v13763_v23 = vld [vmem:[%s22350_s1 + $0x384] sm:$0xf]  ;;  %v11086_v62 = vor.u32 %v13767_v55, %v11085_v40  ;;  %v13663_v40 = vld [vmem:[%s22350_s1 + $0x5c] sm:$0xf0] }
 0x234   :  { %v11090_v29 = vor.u32 %v13763_v23, %v11087_v26  ;;  %v13659_v55 = vld [vmem:[%s22350_s1 + $0x44] sm:$0xf]  ;;  %v10100_v23 = vld [vmem:[%s22352_s0 + $0x88] sm:$0xff] }
 0x235   :  { %3223 = vmatpush.bf16.msrb.mxu0 %v10166_v25  ;;  %3249 = vmatpush.bf16.msrb.mxu2 %v10170_v37  ;;  %v13683_v25 = vld [vmem:[%s22350_s1 + $0x104] sm:$0xf] }
 0x237   :  { %3235 = vmatpush.bf16.msrb.mxu1 %v10454_v56  ;;  %3261 = vmatpush.bf16.msrb.mxu3 %v10458_v39  ;;  %v10770_v56 = vor.u32 %v13683_v25, %v10767_v34  ;;  %v11053_v39 = vld [vmem:[%s22350_s1 + $0x340] sm:$0xf]  ;;  %v10959_v34 = vld [vmem:[%s22350_s1 + $0x2a0] sm:$0xf0] }
 0x238   :  { %v11054_v42 = vor.u32 %v13759_v41, %v11053_v39  ;;  %v13651_v39 = vld [vmem:[%s22350_s1 + $0x4] sm:$0xf] }
 0x239   :  { %3224 = vmatpush.bf16.msrb.mxu0 %v10134_v24  ;;  %3250 = vmatpush.bf16.msrb.mxu2 %v10138_v44  ;;  %v11055_v24 = vld [vmem:[%s22350_s1 + $0x360] sm:$0xf0] }
 0x23b   :  { %3236 = vmatpush.bf16.msrb.mxu1 %v10422_v27  ;;  %3262 = vmatpush.bf16.msrb.mxu3 %v10426_v45  ;;  %v11058_v45 = vor.u32 %v13755_v31, %v11055_v24  ;;  %v10869_v31 = vld [vmem:[%s22350_s1 + $0x1c8] sm:$0xf] }
 0x23c   :  { %3225 = vmatmul.bf16.vlgmr.msrb.gmra.mxu0 %v16938_v54  ;;  %3251 = vmatmul.bf16.vlgmr.msrb.gmra.mxu2 %v16938_v54  ;;  %v13707_v54 = vld [vmem:[%s22350_s1 + $0x1c4] sm:$0xf]  ;;  %v13712_v24 = vld [vmem:[%s22350_s1 + $0x1e4] sm:$0xf0] }
 0x23d   :  { %4185 = vmatpush.bf16.msra.mxu0 %v10862_v59  ;;  %v13747_v59 = vld [vmem:[%s22350_s1 + $0x304] sm:$0xf] }
 0x23f   :  { %3237 = vmatpush.bf16.msrb.mxu1 %v10390_v49  ;;  %3263 = vmatpush.bf16.msrb.mxu3 %v10394_v10  ;;  %v10734_v10 = vor.u32 %v13679_v43, %v10733_v47  ;;  %v10870_v47 = vor.u32 %v13712_v24, %v10869_v31  ;;  %v13708_v43 = vld [vmem:[%s22350_s1 + $0x1cc] sm:$0xf]  ;;  %v13768_v31 = vld [vmem:[%s22350_s1 + $0x3a4] sm:$0xf0] }
 0x240   :  { %v13764_v24 = vld [vmem:[%s22350_s1 + $0x38c] sm:$0xf] }
 0x241   :  { %4186 = vmatpush.bf16.msra.mxu0 %v10830_v1 }
 0x242   :  { %3238 = vmatmul.bf16.vlgmr.msrb.gmra.mxu1 %v16981_v15  ;;  %3264 = vmatmul.bf16.vlgmr.msrb.gmra.mxu3 %v16981_v15  ;;  %v10863_v15 = vld [vmem:[%s22350_s1 + $0x1e0] sm:$0xf0] }
 0x243   :  { %v10866_v61 = vor.u32 %v13707_v54, %v10863_v15  ;;  %4198 = vmatpush.bf16.msra.mxu1 %v11118_v9  ;;  %4224 = vmatpush.bf16.msra.mxu3 %v11122_v20  ;;  %v13751_v54 = vld [vmem:[%s22350_s1 + $0x31c] sm:$0xf0]  ;;  %v10102_v20 = vld [vmem:[%s22352_s0 + $0x98] sm:$0xff] }
 0x244   :  { %v10989_v9 = vld [vmem:[%s22350_s1 + $0x2c0] sm:$0xf] }
 0x245   :  { %4211 = vmatpush.bf16.msra.mxu2 %v10866_v61  ;;  %4187 = vmatpush.bf16.msra.mxu0 %v10798_v35  ;;  %v11023_v61 = vld [vmem:[%s22350_s1 + $0x320] sm:$0xf0]  ;;  %v10990_v19 = vor.u32 %v13743_v11, %v10989_v9  ;;  %v10893_v9 = vld [vmem:[%s22350_s1 + $0x200] sm:$0xf] }
 0x246   :  { %v11026_v63 = vor.u32 %v13747_v59, %v11023_v61  ;;  %v10991_v35 = vld [vmem:[%s22350_s1 + $0x2e0] sm:$0xf0]  ;;  %v13719_v11 = vld [vmem:[%s22350_s1 + $0x21c] sm:$0xf0] }
 0x247   :  { %4199 = vmatpush.bf16.msra.mxu1 %v11086_v62  ;;  %4225 = vmatpush.bf16.msra.mxu3 %v11090_v29  ;;  %v10671_v29 = vld [vmem:[%s22350_s1 + $0x60] sm:$0xf0] }
 0x248   :  { %v10674_v25 = vor.u32 %v13659_v55, %v10671_v29  ;;  %v10927_v59 = vld [vmem:[%s22350_s1 + $0x260] sm:$0xf0]  ;;  %v11127_v55 = vld [vmem:[%s22350_s1 + $0x3e8] sm:$0xf0] }
 0x249   :  { %4212 = vmatpush.bf16.msra.mxu2 %v10834_v5  ;;  %4188 = vmatpush.bf16.msra.mxu0 %v10766_v17  ;;  %v13667_v5 = vld [vmem:[%s22350_s1 + $0x84] sm:$0xf]  ;;  %v13735_v17 = vld [vmem:[%s22350_s1 + $0x29c] sm:$0xf0] }
 0x24a   :  { %v10706_v52 = vor.u32 %v13667_v5, %v10703_v7  ;;  %v10838_v5 = vor.u32 %v13704_v60, %v10837_v0  ;;  %v13700_v7 = vld [vmem:[%s22350_s1 + $0x18c] sm:$0xf]  ;;  %v10741_v0 = vld [vmem:[%s22350_s1 + $0xc8] sm:$0xf] }
 0x24b   :  { %4200 = vmatpush.bf16.msra.mxu1 %v11054_v42  ;;  %4226 = vmatpush.bf16.msra.mxu3 %v11058_v45  ;;  %v10639_v42 = vld [vmem:[%s22350_s1 + $0x20] sm:$0xf0]  ;;  %v13680_v60 = vld [vmem:[%s22350_s1 + $0xe4] sm:$0xf0] }
 0x24c   :  { %v10642_v45 = vor.u32 %v13651_v39, %v10639_v42  ;;  %v10807_v39 = vld [vmem:[%s22350_s1 + $0x168] sm:$0xf0] }
 0x24d   :  { %4213 = vmatpush.bf16.msra.mxu2 %v10802_v22  ;;  %4189 = vmatpush.bf16.msra.mxu0 %v10734_v10  ;;  %v10669_v22 = vld [vmem:[%s22350_s1 + $0x40] sm:$0xf] }
 0x24e   :  { %v10670_v26 = vor.u32 %v13663_v40, %v10669_v22  ;;  %v13727_v10 = vld [vmem:[%s22350_s1 + $0x25c] sm:$0xf0]  ;;  %v13772_v22 = vld [vmem:[%s22350_s1 + $0x3cc] sm:$0xf] }
 0x24f   :  { %4227 = vmatpush.bf16.msra.mxu3 %v11026_v63  ;;  %v11130_v29 = vor.u32 %v13772_v22, %v11127_v55  ;;  %v10709_v22 = vld [vmem:[%s22350_s1 + $0x88] sm:$0xf] }
 0x251   :  { %4214 = vmatpush.bf16.msra.mxu2 %v10770_v56  ;;  %4190 = vmatpush.bf16.msra.mxu0 %v10702_v2  ;;  %v13655_v56 = vld [vmem:[%s22350_s1 + $0x1c] sm:$0xf0] }
 0x255   :  { %4191 = vmatpush.bf16.msra.mxu0 %v10670_v26 }
 0x279   :  { %v3070_v51 = vpop.f32.mrf.mxu0 }
 0x27f   :  { %v3083_v6 = vpop.f32.mrf.mxu1  ;;  %v17327_v32 = vpop.f32.mrf.mxu2 }
 0x280   :  { %v3084_v37 = vadd.f32 %v3083_v6, %v3070_v51  ;;  %v10735_v51 = vld [vmem:[%s22350_s1 + $0xe0] sm:$0xf0] }
 0x281   :  { %v3072_v53 = vpop.f32.mrf.mxu0  ;;  %v10738_v57 = vor.u32 %v13675_v30, %v10735_v51  ;;  %v10871_v30 = vld [vmem:[%s22350_s1 + $0x1e8] sm:$0xf0] }
 0x282   :  { %v3269_v48 = vadd.f32 %v10099_v36, %v3084_v37  ;;  %v11022_v53 = vor.u32 %v13751_v54, %v11021_v58  ;;  %v10957_v37 = vld [vmem:[%s22350_s1 + $0x280] sm:$0xf]  ;;  %v13723_v54 = vld [vmem:[%s22350_s1 + $0x244] sm:$0xf] }
 0x283   :  { %4215 = vmatpush.bf16.msra.mxu2 %v10738_v57  ;;  %v10930_v63 = vor.u32 %v13723_v54, %v10927_v59  ;;  %v11061_v54 = vld [vmem:[%s22350_s1 + $0x348] sm:$0xf] }
 0x284   :  { %v10619_v1 = vmul.f32 -1.442695, %v3269_v48  ;;  %4201 = vmatpush.bf16.msra.mxu1 %v11022_v53  ;;  %v10874_v48 = vor.u32 %v13708_v43, %v10871_v30  ;;  %v13760_v59 = vld [vmem:[%s22350_s1 + $0x364] sm:$0xf0] }
 0x285   :  { %v17353_v3 = vpop.f32.mrf.mxu3 }
 0x286   :  { %v3110_v62 = vadd.f32 %v17353_v3, %v17327_v32  ;;  %14355 = vpow2.f32 %v10619_v1  ;;  %v13731_v32 = vld [vmem:[%s22350_s1 + $0x284] sm:$0xf]  ;;  %v10958_v3 = vor.u32 %v13735_v17, %v10957_v37  ;;  %v10805_v17 = vld [vmem:[%s22350_s1 + $0x148] sm:$0xf] }
 0x287   :  { %v3085_v12 = vpop.f32.mrf.mxu1  ;;  %v3098_v13 = vpop.f32.mrf.mxu2  ;;  %4216 = vmatpush.bf16.msra.mxu2 %v10706_v52  ;;  %v10962_v36 = vor.u32 %v13731_v32, %v10959_v34  ;;  %v13692_v34 = vld [vmem:[%s22350_s1 + $0x14c] sm:$0xf] }
 0x288   :  { %v13739_v12 = vld [vmem:[%s22350_s1 + $0x2c4] sm:$0xf]  ;;  %4202 = vmatpush.bf16.msra.mxu1 %v10990_v19  ;;  %v3270_v41 = vadd.f32 %v10100_v23, %v3110_v62  ;;  %v10104_v23 = vld [vmem:[%s22352_s0 + $0xa8] sm:$0xff]  ;;  %v10810_v42 = vor.u32 %v13692_v34, %v10807_v39 }
 0x289   :  { %v3122_v21 = vpop.f32.mrf.mxu0  ;;  %v13715_v19 = vld [vmem:[%s22350_s1 + $0x204] sm:$0xf]  ;;  %v10999_v34 = vld [vmem:[%s22350_s1 + $0x2e8] sm:$0xf0] }
 0x28a   :  { %v10620_v53 = vmul.f32 -1.442695, %v3270_v41  ;;  %v11093_v41 = vld [vmem:[%s22350_s1 + $0x388] sm:$0xf] }
 0x28b   :  { %4217 = vmatpush.bf16.msra.mxu2 %v10674_v25 }
 0x28c   :  { %4203 = vmatpush.bf16.msra.mxu1 %v10958_v3  ;;  %v14356_v51 = vpop.eup %14355  ;;  %v13696_v3 = vld [vmem:[%s22350_s1 + $0x164] sm:$0xf0] }
 0x28d   :  { %v3111_v38 = vpop.f32.mrf.mxu3 }
 0x28e   :  { %v10637_v38 = vld [vmem:[%s22350_s1] sm:$0xf] }
 0x28f   :  { %v3135_v44 = vpop.f32.mrf.mxu1  ;;  %v3148_v27 = vpop.f32.mrf.mxu2  ;;  %4218 = vmatpush.bf16.msra.mxu2 %v10642_v45  ;;  %v10773_v45 = vld [vmem:[%s22350_s1 + $0x108] sm:$0xf] }
 0x290   :  { %v3136_v49 = vadd.f32 %v3135_v44, %v3122_v21  ;;  %v10994_v21 = vor.u32 %v13739_v12, %v10991_v35  ;;  %v17558_v12 = vadd.f32 1.0, %v14356_v51  ;;  %v10895_v35 = vld [vmem:[%s22350_s1 + $0x220] sm:$0xf0]  ;;  %v10775_v51 = vld [vmem:[%s22350_s1 + $0x128] sm:$0xf0] }
 0x291   :  { %v3124_v6 = vpop.f32.mrf.mxu0 }
 0x292   :  { %v3271_v15 = vadd.f32 %v10101_v14, %v3136_v49  ;;  %4228 = vmatpush.bf16.msra.mxu3 %v10994_v21  ;;  %v10638_v14 = vor.u32 %v13655_v56, %v10637_v38  ;;  %v10925_v49 = vld [vmem:[%s22350_s1 + $0x240] sm:$0xf]  ;;  %v13776_v21 = vld [vmem:[%s22350_s1 + $0x3e4] sm:$0xf0]  ;;  %v10806_v56 = vor.u32 %v13696_v3, %v10805_v17  ;;  %v13740_v3 = vld [vmem:[%s22350_s1 + $0x2cc] sm:$0xf]  ;;  %vm3306_vm4 = vweird.f32 %v17558_v12 }
 0x293   :  { %v10103_v6 = vld [vmem:[%s22352_s0 + $0xa0] sm:$0xff]  ;;  %v10926_v58 = vor.u32 %v13727_v10, %v10925_v49  ;;  %4263 = vmatpush.bf16.msrb.mxu2 %v10874_v48  ;;  %v13684_v10 = vld [vmem:[%s22350_s1 + $0x10c] sm:$0xf] }
 0x294   :  { %v10621_v13 = vmul.f32 -1.442695, %v3271_v15  ;;  %4192 = vmatpush.bf16.msra.mxu0 %v10638_v14 }
 0x295   :  { %v3161_v8 = vpop.f32.mrf.mxu3  ;;  %4204 = vmatpush.bf16.msra.mxu1 %v10926_v58  ;;  %v10778_v58 = vor.u32 %v13684_v10, %v10775_v51  ;;  %v10965_v10 = vld [vmem:[%s22350_s1 + $0x288] sm:$0xf] }
 0x296   :  { %v3162_v18 = vadd.f32 %v3161_v8, %v3148_v27  ;;  %14357 = vpow2.f32 %v10621_v13  ;;  %4229 = vmatpush.bf16.msra.mxu3 %v10962_v36  ;;  %v10839_v8 = vld [vmem:[%s22350_s1 + $0x1a8] sm:$0xf0]  ;;  %v13736_v51 = vld [vmem:[%s22350_s1 + $0x2a4] sm:$0xf0] }
 0x297   :  { %v3137_v28 = vpop.f32.mrf.mxu1  ;;  %v3150_v50 = vpop.f32.mrf.mxu2  ;;  %v10842_v52 = vor.u32 %v13700_v7, %v10839_v8  ;;  %v13676_v7 = vld [vmem:[%s22350_s1 + $0xcc] sm:$0xf] }
 0x298   :  { %v3272_v4 = vadd.f32 %v10102_v20, %v3162_v18  ;;  %4237 = vmatpush.bf16.msrb.mxu0 %v10870_v47  ;;  %v10894_v18 = vor.u32 %v13719_v11, %v10893_v9  ;;  %v10898_v28 = vor.u32 %v13715_v19, %v10895_v35  ;;  %v11125_v50 = vld [vmem:[%s22350_s1 + $0x3c8] sm:$0xf]  ;;  %v10743_v8 = vld [vmem:[%s22350_s1 + $0xe8] sm:$0xf0] }
 0x299   :  { %v3174_v33 = vpop.f32.mrf.mxu0  ;;  %4264 = vmatpush.bf16.msrb.mxu2 %v10842_v52  ;;  %v11126_v26 = vor.u32 %v13776_v21, %v11125_v50  ;;  %v13688_v47 = vld [vmem:[%s22350_s1 + $0x124] sm:$0xf0]  ;;  %v10746_v11 = vor.u32 %v13676_v7, %v10743_v8  ;;  %v13748_v35 = vld [vmem:[%s22350_s1 + $0x30c] sm:$0xf] }
 0x29a   :  { %v10622_v44 = vmul.f32 -1.442695, %v3272_v4  ;;  %4230 = vmatpush.bf16.msra.mxu3 %v10930_v63  ;;  %4205 = vmatpush.bf16.msra.mxu1 %v10894_v18  ;;  %v10774_v49 = vor.u32 %v13688_v47, %v10773_v45  ;;  %v11063_v63 = vld [vmem:[%s22350_s1 + $0x368] sm:$0xf0]  ;;  %v13752_v18 = vld [vmem:[%s22350_s1 + $0x324] sm:$0xf0] }
 0x29b   :  { %v10679_v45 = vld [vmem:[%s22350_s1 + $0x68] sm:$0xf0] }
 0x29c   :  { %v14358_v15 = vpop.eup %14357  ;;  %14359 = vpow2.f32 %v10622_v44  ;;  %4238 = vmatpush.bf16.msrb.mxu0 %v10838_v5  ;;  %v11094_v44 = vor.u32 %v13768_v31, %v11093_v41  ;;  %v10742_v5 = vor.u32 %v13680_v60, %v10741_v0  ;;  %v11002_v41 = vor.u32 %v13740_v3, %v10999_v34  ;;  %v10647_v7 = vld [vmem:[%s22350_s1 + $0x28] sm:$0xf0]  ;;  %v13720_v3 = vld [vmem:[%s22350_s1 + $0x224] sm:$0xf0] }
 0x29d   :  { %v3163_v27 = vpop.f32.mrf.mxu3  ;;  %v17560_v13 = vadd.f32 1.0, %v14358_v15  ;;  %14361 = vpow2.f32 %v10620_v53  ;;  %4265 = vmatpush.bf16.msrb.mxu2 %v10810_v42  ;;  %v11062_v53 = vor.u32 %v13760_v59, %v11061_v54  ;;  %v13664_v42 = vld [vmem:[%s22350_s1 + $0x64] sm:$0xf0]  ;;  %v10967_v54 = vld [vmem:[%s22350_s1 + $0x2a8] sm:$0xf0] }
 0x29e   :  { %4231 = vmatpush.bf16.msra.mxu3 %v10898_v28  ;;  %14363 = vrcp.f32 %v17558_v12  ;;  %4250 = vmatpush.bf16.msrb.mxu1 %v11126_v26  ;;  %v11095_v27 = vld [vmem:[%s22350_s1 + $0x3a8] sm:$0xf0]  ;;  %v10645_v59 = vld [vmem:[%s22350_s1 + $0x8] sm:$0xf] }
 0x29f   :  { %v3200_v57 = vpop.f32.mrf.mxu2  ;;  %v3187_v61 = vpop.f32.mrf.mxu1  ;;  %14365 = vrcp.f32 %v17560_v13  ;;  %v11098_v48 = vor.u32 %v13764_v24, %v11095_v27  ;;  %v11031_v28 = vld [vmem:[%s22350_s1 + $0x328] sm:$0xf0]  ;;  %v3310_v24 = vand.u32 2147483647, %v17558_v12  ;;  %vm3336_vm2 = vweird.f32 %v17560_v13 }
 0x2a0   :  { %v3188_v1 = vadd.f32 %v3187_v61, %v3174_v33  ;;  %4239 = vmatpush.bf16.msrb.mxu0 %v10806_v56  ;;  %v13756_v61 = vld [vmem:[%s22350_s1 + $0x34c] sm:$0xf]  ;;  %v11034_v21 = vor.u32 %v13748_v35, %v11031_v28  ;;  %v10933_v28 = vld [vmem:[%s22350_s1 + $0x248] sm:$0xf] }
 0x2a1   :  { %v3176_v2 = vpop.f32.mrf.mxu0  ;;  %4266 = vmatpush.bf16.msrb.mxu2 %v10778_v58  ;;  %v13668_v26 = vld [vmem:[%s22350_s1 + $0x8c] sm:$0xf]  ;;  %v10966_v58 = vor.u32 %v13736_v51, %v10965_v10  ;;  %vm17785_vm5 = vcmp.eq.f32.partialorder %v3310_v24, 8.507059e+37 }
 0x2a2   :  { %v3273_v20 = vadd.f32 %v10103_v6, %v3188_v1  ;;  %v14360_v4 = vpop.eup %14359  ;;  %4276 = vmatpush.bf16.msrb.mxu3 %v11130_v29  ;;  %4251 = vmatpush.bf16.msrb.mxu1 %v11094_v44  ;;  %v11066_v2 = vor.u32 %v13756_v61, %v11063_v63  ;;  %v10711_v29 = vld [vmem:[%s22350_s1 + $0xa8] sm:$0xf0]  ;;  %v10105_v63 = vld [vmem:[%s22352_s0 + $0xb0] sm:$0xff] }
 0x2a3   :  { %v14362_v36 = vpop.eup %14361  ;;  %v17594_v38 = vadd.f32 1.0, %v14360_v4  ;;  %v10714_v17 = vor.u32 %v13668_v26, %v10711_v29  ;;  %v13660_v27 = vld [vmem:[%s22350_s1 + $0x4c] sm:$0xf] }
 0x2a4   :  { %v10623_v40 = vmul.f32 -1.442695, %v3273_v20  ;;  %v17617_v43 = vpop.eup %14363  ;;  %v17619_v30 = vadd.f32 1.0, %v14362_v36  ;;  %4240 = vmatpush.bf16.msrb.mxu0 %v10774_v49  ;;  %v11029_v20 = vld [vmem:[%s22350_s1 + $0x308] sm:$0xf]  ;;  %v10682_v49 = vor.u32 %v13660_v27, %v10679_v45 }
 0x2a5   :  { %v3213_v62 = vpop.f32.mrf.mxu3  ;;  %v17627_v6 = vpop.eup %14365  ;;  %v3302_v1 = vmul.f32 %v17617_v43, %v17558_v12  ;;  %v11030_v19 = vor.u32 %v13752_v18, %v11029_v20  ;;  %4267 = vmatpush.bf16.msrb.mxu2 %v10746_v11  ;;  %vm3307_vm0 = vweird.f32 %v17617_v43  ;;  %v3312_v11 = vand.u32 2147483648, %v17558_v12  ;;  %v10935_v26 = vld [vmem:[%s22350_s1 + $0x268] sm:$0xf0]  ;;  %v11135_v27 = vld [vmem:[%s22350_s1 + $0x3f0] sm:$0xf0] }
 0x2a6   :  { %v3214_v33 = vadd.f32 %v3213_v62, %v3200_v57  ;;  %14367 = vpow2.f32 %v10623_v40  ;;  %4277 = vmatpush.bf16.msrb.mxu3 %v11098_v48  ;;  %v3332_v52 = vmul.f32 %v17627_v6, %v17560_v13  ;;  %4252 = vmatpush.bf16.msrb.mxu1 %v11062_v53  ;;  %v13672_v40 = vld [vmem:[%s22350_s1 + $0xa4] sm:$0xf0]  ;;  %vm3337_vm1 = vweird.f32 %v17627_v6  ;;  %v10903_v24 = vld [vmem:[%s22350_s1 + $0x228] sm:$0xf0]  ;;  %vm17815_vm7 = vmor %vm3306_vm4, %vm3307_vm0 }
 0x2a7   :  { %v3202_v25 = vpop.f32.mrf.mxu2  ;;  %v3189_v37 = vpop.f32.mrf.mxu1  ;;  %14369 = vrcp.f32 %v17594_v38  ;;  %v10710_v62 = vor.u32 %v13672_v40, %v10709_v22  ;;  %v3342_v22 = vand.u32 2147483648, %v17560_v13  ;;  %vm17780_vm3 = vmor %vm3336_vm2, %vm3337_vm1  ;;  %vm3321_vm6 = vweird.f32 %v17619_v30 }
 0x2a8   :  { %v3274_v32 = vadd.f32 %v10104_v23, %v3214_v33  ;;  %4241 = vmatpush.bf16.msrb.mxu0 %v10742_v5  ;;  %v3303_v23 = vsub.f32 1.0, %v3302_v1  ;;  %v3333_v4 = vsub.f32 1.0, %v3332_v52  ;;  %v10997_v25 = vld [vmem:[%s22350_s1 + $0x2c8] sm:$0xf]  ;;  %v13652_v5 = vld [vmem:[%s22350_s1 + $0xc] sm:$0xf]  ;;  %vm3351_vm10 = vweird.f32 %v17594_v38 }
 0x2a9   :  { %4268 = vmatpush.bf16.msrb.mxu2 %v10714_v17  ;;  %v10650_v35 = vor.u32 %v13652_v5, %v10647_v7  ;;  %v3357_v12 = vand.u32 2147483648, %v17594_v38 }
 0x2aa   :  { %v10624_v14 = vmul.f32 -1.442695, %v3274_v32  ;;  %4278 = vmatpush.bf16.msrb.mxu3 %v11066_v2  ;;  %4253 = vmatpush.bf16.msrb.mxu1 %v11030_v19  ;;  %v13744_v32 = vld [vmem:[%s22350_s1 + $0x2e4] sm:$0xf0]  ;;  %v3304_v31 = vmul.f32 %v17617_v43, %v3303_v23  ;;  %v3334_v48 = vmul.f32 %v17627_v6, %v3333_v4  ;;  %v3340_v4 = vand.u32 2147483647, %v17560_v13 }
 0x2ab   :  { %v10998_v39 = vor.u32 %v13744_v32, %v10997_v25  ;;  %v3313_v32 = vor.u32 1.1754944e-38, %v3312_v11  ;;  %v10901_v13 = vld [vmem:[%s22350_s1 + $0x208] sm:$0xf]  ;;  %v3358_v7 = vor.u32 1.1754944e-38, %v3357_v12  ;;  %v13697_v12 = vld [vmem:[%s22350_s1 + $0x16c] sm:$0xf0] }
 0x2ac   :  { %v14368_v15 = vpop.eup %14367  ;;  %14371 = vpow2.f32 %v10624_v14  ;;  %4242 = vmatpush.bf16.msrb.mxu0 %v10710_v62  ;;  %v10677_v14 = vld [vmem:[%s22350_s1 + $0x48] sm:$0xf]  ;;  %v17754_v52 = vadd.f32 %v17617_v43, %v3304_v31  ;;  %v3335_v18 = vadd.f32 %v17627_v6, %v3334_v48  ;;  %v13724_v62 = vld [vmem:[%s22350_s1 + $0x24c] sm:$0xf]  ;;  %vm3341_vm9 = vcmp.eq.f32.partialorder %v3340_v4, 8.507059e+37 }
 0x2ad   :  { %v3215_v57 = vpop.f32.mrf.mxu3  ;;  %14373 = vrcp.f32 %v17619_v30  ;;  %v17659_v9 = vadd.f32 1.0, %v14368_v15  ;;  %v17673_v50 = vpop.eup %14369  ;;  %v10678_v44 = vor.u32 %v13664_v42, %v10677_v14  ;;  %v13656_v15 = vld [vmem:[%s22350_s1 + $0x24] sm:$0xf0]  ;;  %4269 = vmatpush.bf16.msrb.mxu2 %v10682_v49  ;;  %v10902_v42 = vor.u32 %v13720_v3, %v10901_v13  ;;  %v13716_v31 = vld [vmem:[%s22350_s1 + $0x20c] sm:$0xf] }
 0x2ae   :  { %4279 = vmatpush.bf16.msrb.mxu3 %v11034_v21  ;;  %v3347_v36 = vmul.f32 %v17673_v50, %v17594_v38  ;;  %4254 = vmatpush.bf16.msrb.mxu1 %v10998_v39  ;;  %v13732_v57 = vld [vmem:[%s22350_s1 + $0x28c] sm:$0xf]  ;;  %v10646_v2 = vor.u32 %v13656_v15, %v10645_v59  ;;  %v13728_v21 = vld [vmem:[%s22350_s1 + $0x264] sm:$0xf0]  ;;  %v10106_v39 = vld [vmem:[%s22352_s0 + $0xb8] sm:$0xff]  ;;  %vm3352_vm8 = vweird.f32 %v17673_v50  ;;  %v3309_v48 = vsel %vm17815_vm7, %v17617_v43, %v17754_v52 }
 0x2af   :  { %14375 = vrcp.f32 %v17659_v9  ;;  %v10970_v1 = vor.u32 %v13732_v57, %v10967_v54  ;;  %v10934_v23 = vor.u32 %v13728_v21, %v10933_v28  ;;  %v3355_v43 = vand.u32 2147483647, %v17594_v38  ;;  %vm17834_vm12 = vmor %vm3351_vm10, %vm3352_vm8  ;;  %v11005_v13 = vld [vmem:[%s22350_s1 + $0x2d0] sm:$0xf] }
 0x2b0   :  { %v3348_v61 = vsub.f32 1.0, %v3347_v36  ;;  %4243 = vmatpush.bf16.msrb.mxu0 %v10678_v44  ;;  %v3339_v36 = vsel %vm17780_vm3, %v17627_v6, %v3335_v18  ;;  %v3343_v6 = vor.u32 1.1754944e-38, %v3342_v22  ;;  %vm3366_vm1 = vweird.f32 %v17659_v9 }
 0x2b1   :  { %4270 = vmatpush.bf16.msrb.mxu2 %v10650_v35  ;;  %vm3356_vm14 = vcmp.eq.f32.partialorder %v3355_v43, 8.507059e+37  ;;  %v3372_v35 = vand.u32 2147483648, %v17659_v9  ;;  %v11101_v43 = vld [vmem:[%s22350_s1 + $0x390] sm:$0xf] }
 0x2b2   :  { %v14372_v55 = vpop.eup %14371  ;;  %4280 = vmatpush.bf16.msrb.mxu3 %v11002_v41  ;;  %4255 = vmatpush.bf16.msrb.mxu1 %v10966_v58  ;;  %v3349_v29 = vmul.f32 %v17673_v50, %v3348_v61  ;;  %v3344_v58 = vsel %vm3341_vm9, %v3343_v6, %v3339_v36  ;;  %v13777_v6 = vld [vmem:[%s22350_s1 + $0x3ec] sm:$0xf0] }
 0x2b3   :  { %v17691_v37 = vpop.eup %14373  ;;  %v17704_v56 = vadd.f32 1.0, %v14372_v55 }
 0x2b4   :  { %v3317_v47 = vmul.f32 %v17691_v37, %v17619_v30  ;;  %4244 = vmatpush.bf16.msrb.mxu0 %v10646_v2  ;;  %v3350_v49 = vadd.f32 %v17673_v50, %v3349_v29  ;;  %vm3322_vm11 = vweird.f32 %v17691_v37  ;;  %v3325_v2 = vand.u32 2147483647, %v17619_v30 }
 0x2b5   :  { %v17741_v53 = vpop.eup %14375  ;;  %14377 = vrcp.f32 %v17704_v56  ;;  %vm17851_vm13 = vmor %vm3321_vm6, %vm3322_vm11  ;;  %v3385_v25 = vand.u32 2147483647, %v17704_v56  ;;  %v3387_v17 = vand.u32 2147483648, %v17704_v56 }
 0x2b6   :  { %v3318_v20 = vsub.f32 1.0, %v3317_v47  ;;  %v3362_v40 = vmul.f32 %v17741_v53, %v17659_v9  ;;  %4281 = vmatpush.bf16.msrb.mxu3 %v10970_v1  ;;  %4256 = vmatpush.bf16.msrb.mxu1 %v10934_v23  ;;  %v10906_v47 = vor.u32 %v13716_v31, %v10903_v24  ;;  %v3393_v1 = vmul.f32 %v3344_v58, %v16888_v16  ;;  %v10847_v31 = vld [vmem:[%s22350_s1 + $0x1b0] sm:$0xf0] }
 0x2b7   :  { %v3354_v5 = vsel %vm17834_vm12, %v17673_v50, %v3350_v49  ;;  %vm3367_vm15 = vweird.f32 %v17741_v53  ;;  %vm3326_vm0 = vcmp.eq.f32.partialorder %v3325_v2, 8.507059e+37  ;;  %v3373_v23 = vor.u32 1.1754944e-38, %v3372_v35  ;;  %v10815_v58 = vld [vmem:[%s22350_s1 + $0x170] sm:$0xf0]  ;;  %v13689_v2 = vld [vmem:[%s22350_s1 + $0x12c] sm:$0xf0] }
 0x2b8   :  { %v3319_v14 = vmul.f32 %v17691_v37, %v3318_v20  ;;  %v3363_v44 = vsub.f32 1.0, %v3362_v40  ;;  %vm3368_vm2 = vmor %vm3366_vm1, %vm3367_vm15  ;;  %vm3386_vm7 = vcmp.eq.f32.partialorder %v3385_v25, 8.507059e+37  ;;  %v3388_v24 = vor.u32 1.1754944e-38, %v3387_v17  ;;  %v10749_v35 = vld [vmem:[%s22350_s1 + $0xd0] sm:$0xf] }
 0x2b9   :  { %v3226_v33 = vpop.f32.mrf.mxu0  ;;  %v10719_v25 = vld [vmem:[%s22350_s1 + $0xb0] sm:$0xf0] }
 0x2ba   :  { %v3320_v59 = vadd.f32 %v17691_v37, %v3319_v14  ;;  %4257 = vmatpush.bf16.msrb.mxu1 %v10902_v42  ;;  %v13701_v42 = vld [vmem:[%s22350_s1 + $0x194] sm:$0xf] }
 0x2bb   :  { %v17795_v34 = vpop.eup %14377  ;;  %v10850_v49 = vor.u32 %v13701_v42, %v10847_v31  ;;  %v10685_v42 = vld [vmem:[%s22350_s1 + $0x50] sm:$0xf] }
 0x2bc   :  { %v3377_v57 = vmul.f32 %v17795_v34, %v17704_v56  ;;  %v3324_v16 = vsel %vm17851_vm13, %v17691_v37, %v3320_v59  ;;  %vm3382_vm4 = vweird.f32 %v17795_v34  ;;  %v13665_v31 = vld [vmem:[%s22350_s1 + $0x6c] sm:$0xf0] }
 0x2bf   :  { %v3239_v0 = vpop.f32.mrf.mxu1  ;;  %v3252_v60 = vpop.f32.mrf.mxu2 }
 0x2c0   :  { %v3240_v8 = vadd.f32 %v3239_v0, %v3226_v33  ;;  %v10938_v33 = vor.u32 %v13724_v62, %v10935_v26  ;;  %v3314_v0 = vsel %vm17785_vm5, %v3313_v32, %v3309_v48  ;;  %v10877_v26 = vld [vmem:[%s22350_s1 + $0x1d0] sm:$0xf]  ;;  %vm3381_vm5 = vweird.f32 %v17704_v56 }
 0x2c1   :  { %v3228_v19 = vpop.f32.mrf.mxu0  ;;  %vm17889_vm6 = vmor %vm3381_vm5, %vm3382_vm4 }
 0x2c2   :  { %v3275_v55 = vadd.f32 %v10105_v63, %v3240_v8  ;;  %4282 = vmatpush.bf16.msrb.mxu3 %v10938_v33  ;;  %v3364_v63 = vmul.f32 %v17741_v53, %v3363_v44  ;;  %v3378_v8 = vsub.f32 1.0, %v3377_v57  ;;  %v3359_v19 = vsel %vm3356_vm14, %v3358_v7, %v3354_v5  ;;  %v13773_v44 = vld [vmem:[%s22350_s1 + $0x3d4] sm:$0xf] }
 0x2c3   :  { %v3394_v22 = vmul.f32 %v3359_v19, %v16902_v46  ;;  %v13709_v46 = vld [vmem:[%s22350_s1 + $0x1d4] sm:$0xf]  ;;  %v11138_v59 = vor.u32 %v13773_v44, %v11135_v27  ;;  %v10973_v27 = vld [vmem:[%s22350_s1 + $0x290] sm:$0xf] }
 0x2c4   :  { %14379 = vtanh.f32 %v3275_v55  ;;  %v3365_v50 = vadd.f32 %v17741_v53, %v3364_v63  ;;  %v3379_v37 = vmul.f32 %v17795_v34, %v3378_v8  ;;  %v13693_v57 = vld [vmem:[%s22350_s1 + $0x154] sm:$0xf] }
 0x2c5   :  { %v3265_v41 = vpop.f32.mrf.mxu3  ;;  %v13765_v63 = vld [vmem:[%s22350_s1 + $0x394] sm:$0xf] }
 0x2c6   :  { %v3266_v45 = vadd.f32 %v3265_v41, %v3252_v60  ;;  %v3327_v60 = vand.u32 2147483648, %v17619_v30  ;;  %4283 = vmatpush.bf16.msrb.mxu3 %v10906_v47  ;;  %v3370_v30 = vand.u32 2147483647, %v17659_v9  ;;  %v3369_v55 = vsel %vm3368_vm2, %v17741_v53, %v3365_v50  ;;  %v13713_v9 = vld [vmem:[%s22350_s1 + $0x1ec] sm:$0xf0] }
 0x2c7   :  { %v3241_v10 = vpop.f32.mrf.mxu1  ;;  %v3254_v51 = vpop.f32.mrf.mxu2  ;;  %v3380_v29 = vadd.f32 %v17795_v34, %v3379_v37  ;;  %v10879_v53 = vld [vmem:[%s22350_s1 + $0x1f0] sm:$0xf0]  ;;  %v10878_v3 = vor.u32 %v13713_v9, %v10877_v26  ;;  %v13705_v41 = vld [vmem:[%s22350_s1 + $0x1ac] sm:$0xf0] }
 0x2c8   :  { %v3276_v54 = vadd.f32 %v10106_v39, %v3266_v45  ;;  %v3328_v18 = vor.u32 1.1754944e-38, %v3327_v60  ;;  %vm3371_vm3 = vcmp.eq.f32.partialorder %v3370_v30, 8.507059e+37  ;;  %v10882_v36 = vor.u32 %v13709_v46, %v10879_v53  ;;  %v10845_v39 = vld [vmem:[%s22350_s1 + $0x190] sm:$0xf]  ;;  %v13685_v5 = vld [vmem:[%s22350_s1 + $0x114] sm:$0xf] }
 0x2c9   :  { %v3374_v33 = vsel %vm3371_vm3, %v3373_v23, %v3369_v55  ;;  %v3384_v14 = vsel %vm17889_vm6, %v17795_v34, %v3380_v29  ;;  %v11133_v34 = vld [vmem:[%s22350_s1 + $0x3d0] sm:$0xf]  ;;  %v10846_v48 = vor.u32 %v13705_v41, %v10845_v39  ;;  %v10783_v7 = vld [vmem:[%s22350_s1 + $0x130] sm:$0xf0] }
 0x2ca   :  { %v14380_v15 = vpop.eup %14379  ;;  %14381 = vtanh.f32 %v3276_v54  ;;  %v3329_v21 = vsel %vm3326_vm0, %v3328_v18, %v3324_v16  ;;  %v3389_v47 = vsel %vm3386_vm7, %v3388_v24, %v3384_v14  ;;  %v10813_v10 = vld [vmem:[%s22350_s1 + $0x150] sm:$0xf]  ;;  %v11134_v54 = vor.u32 %v13777_v6, %v11133_v34  ;;  %v13757_v50 = vld [vmem:[%s22350_s1 + $0x354] sm:$0xf] }
 0x2cb   :  { %v3395_v38 = vmul.f32 %v14380_v15, %v3314_v0  ;;  %v13769_v15 = vld [vmem:[%s22350_s1 + $0x3ac] sm:$0xf0]  ;;  %v11103_v0 = vld [vmem:[%s22350_s1 + $0x3b0] sm:$0xf0]  ;;  %v10814_v60 = vor.u32 %v13697_v12, %v10813_v10  ;;  %v10786_v30 = vor.u32 %v13685_v5, %v10783_v7 }
 0x2cc   :  { %v11102_v8 = vor.u32 %v13769_v15, %v11101_v43  ;;  %v11106_v52 = vor.u32 %v13765_v63, %v11103_v0  ;;  %v11069_v16 = vld [vmem:[%s22350_s1 + $0x350] sm:$0xf]  ;;  %v11071_v18 = vld [vmem:[%s22350_s1 + $0x370] sm:$0xf0]  ;;  %v13710_v63 = vld [vmem:[%s22350_s1 + $0x1dc] sm:$0xf] }
 0x2cd   :  { %v17855_v11 = vadd.f32 %v3395_v38, %v3393_v1  ;;  %v3267_v20 = vpop.f32.mrf.mxu3  ;;  %v10818_v1 = vor.u32 %v13693_v57, %v10815_v58  ;;  %v10781_v38 = vld [vmem:[%s22350_s1 + $0x110] sm:$0xf]  ;;  %v13677_v37 = vld [vmem:[%s22350_s1 + $0xd4] sm:$0xf]  ;;  %v10887_v0 = vld [vmem:[%s22350_s1 + $0x1f8] sm:$0xf0] }
 0x2ce   :  { %v13761_v20 = vld [vmem:[%s22350_s1 + $0x36c] sm:$0xf0]  ;;  %v10782_v19 = vor.u32 %v13689_v2, %v10781_v38  ;;  %v13749_v26 = vld [vmem:[%s22350_s1 + $0x314] sm:$0xf] }
 0x2cf   :  { %14383 = vtanh.f32 %v17855_v11  ;;  %v11037_v55 = vld [vmem:[%s22350_s1 + $0x310] sm:$0xf]  ;;  %v11039_v29 = vld [vmem:[%s22350_s1 + $0x330] sm:$0xf0] }
 0x2d0   :  { %v14382_v28 = vpop.eup %14381  ;;  %v13753_v23 = vld [vmem:[%s22350_s1 + $0x32c] sm:$0xf0]  ;;  %v11007_v39 = vld [vmem:[%s22350_s1 + $0x2f0] sm:$0xf0] }
 0x2d1   :  { %v3396_v40 = vmul.f32 %v14382_v28, %v3329_v21  ;;  %v13681_v28 = vld [vmem:[%s22350_s1 + $0xec] sm:$0xf0]  ;;  %v10751_v21 = vld [vmem:[%s22350_s1 + $0xf0] sm:$0xf0]  ;;  %v11038_v17 = vor.u32 %v13753_v23, %v11037_v55  ;;  %v13774_v55 = vld [vmem:[%s22350_s1 + $0x3dc] sm:$0xf] }
 0x2d2   :  { %v10750_v9 = vor.u32 %v13681_v28, %v10749_v35  ;;  %v10754_v46 = vor.u32 %v13677_v37, %v10751_v21  ;;  %v10717_v53 = vld [vmem:[%s22350_s1 + $0x90] sm:$0xf]  ;;  %v13661_v24 = vld [vmem:[%s22350_s1 + $0x54] sm:$0xf]  ;;  %v11143_v23 = vld [vmem:[%s22350_s1 + $0x3f8] sm:$0xf0] }
 0x2d3   :  { %v17869_v62 = vadd.f32 %v3396_v40, %v3394_v22  ;;  %v11070_v22 = vor.u32 %v13761_v20, %v11069_v16  ;;  %v11074_v40 = vor.u32 %v13757_v50, %v11071_v18  ;;  %v10687_v34 = vld [vmem:[%s22350_s1 + $0x70] sm:$0xf0]  ;;  %v13657_v12 = vld [vmem:[%s22350_s1 + $0x2c] sm:$0xf0]  ;;  %v10853_v16 = vld [vmem:[%s22350_s1 + $0x198] sm:$0xf] }
 0x2d4   :  { %v10690_v10 = vor.u32 %v13661_v24, %v10687_v34  ;;  %v13653_v57 = vld [vmem:[%s22350_s1 + $0x14] sm:$0xf]  ;;  %v13706_v20 = vld [vmem:[%s22350_s1 + $0x1b4] sm:$0xf0]  ;;  %v13702_v50 = vld [vmem:[%s22350_s1 + $0x19c] sm:$0xf] }
 0x2d5   :  { %v14384_v4 = vpop.eup %14383  ;;  %14385 = vtanh.f32 %v17869_v62  ;;  %v10655_v58 = vld [vmem:[%s22350_s1 + $0x30] sm:$0xf0]  ;;  %v10909_v35 = vld [vmem:[%s22350_s1 + $0x210] sm:$0xf]  ;;  %v13686_v24 = vld [vmem:[%s22350_s1 + $0x11c] sm:$0xf] }
 0x2d6   :  { %v3401_v32 = vmul.f32 %v14384_v4, %v3374_v33  ;;  %v13673_v4 = vld [vmem:[%s22350_s1 + $0xac] sm:$0xf0]  ;;  %v13669_v33 = vld [vmem:[%s22350_s1 + $0x94] sm:$0xf]  ;;  %v10658_v7 = vor.u32 %v13653_v57, %v10655_v58  ;;  %v10791_v34 = vld [vmem:[%s22350_s1 + $0x138] sm:$0xf0] }
 0x2d7   :  { %v10718_v41 = vor.u32 %v13673_v4, %v10717_v53  ;;  %v10722_v14 = vor.u32 %v13669_v33, %v10719_v25  ;;  %v13725_v38 = vld [vmem:[%s22350_s1 + $0x254] sm:$0xf]  ;;  %v13721_v28 = vld [vmem:[%s22350_s1 + $0x22c] sm:$0xf0]  ;;  %v13698_v4 = vld [vmem:[%s22350_s1 + $0x174] sm:$0xf0] }
 0x2d8   :  { %10625 = vst [vmem:[%s22354_s4 + $0x20] sm:$0xff] %v3401_v32  ;;  %v17905_v56 = vpack.c.bf16 %v3401_v32, %v3401_v32  ;;  %v11042_v32 = vor.u32 %v13749_v26, %v11039_v29  ;;  %v10943_v2 = vld [vmem:[%s22350_s1 + $0x270] sm:$0xf0]  ;;  %v10854_v26 = vor.u32 %v13706_v20, %v10853_v16  ;;  %v13694_v33 = vld [vmem:[%s22350_s1 + $0x15c] sm:$0xf] }
 0x2d9   :  { %v13717_v37 = vld [vmem:[%s22350_s1 + $0x214] sm:$0xf]  ;;  %v10823_v25 = vld [vmem:[%s22350_s1 + $0x178] sm:$0xf0]  ;;  %v11013_v16 = vld [vmem:[%s22350_s1 + $0x2d8] sm:$0xf] }
 0x2da   :  { %4193 = vmatmul.bf16.vlgmr.msra.gmra.mxu0 %v17905_v56  ;;  %4219 = vmatmul.bf16.vlgmr.msra.gmra.mxu2 %v17905_v56  ;;  %v10911_v21 = vld [vmem:[%s22350_s1 + $0x230] sm:$0xf0]  ;;  %v13678_v57 = vld [vmem:[%s22350_s1 + $0xdc] sm:$0xf]  ;;  %v13746_v20 = vld [vmem:[%s22350_s1 + $0x2f4] sm:$0xf0] }
 0x2db   :  { %v14386_v45 = vpop.eup %14385  ;;  %4289 = vmatpush.bf16.msra.mxu0 %v10878_v3  ;;  %4315 = vmatpush.bf16.msra.mxu2 %v10882_v36  ;;  %v13745_v3 = vld [vmem:[%s22350_s1 + $0x2ec] sm:$0xf0]  ;;  %v13741_v36 = vld [vmem:[%s22350_s1 + $0x2d4] sm:$0xf]  ;;  %v10914_v53 = vor.u32 %v13717_v37, %v10911_v21  ;;  %v10759_v58 = vld [vmem:[%s22350_s1 + $0xf8] sm:$0xf0] }
 0x2dc   :  { %v3402_v51 = vmul.f32 %v14386_v45, %v3389_v47  ;;  %v11006_v6 = vor.u32 %v13745_v3, %v11005_v13  ;;  %v11010_v44 = vor.u32 %v13741_v36, %v11007_v39  ;;  %v13737_v45 = vld [vmem:[%s22350_s1 + $0x2ac] sm:$0xf0]  ;;  %v13733_v47 = vld [vmem:[%s22350_s1 + $0x294] sm:$0xf]  ;;  %v11109_v13 = vld [vmem:[%s22350_s1 + $0x398] sm:$0xf] }
 0x2dd   :  { %v10974_v43 = vor.u32 %v13737_v45, %v10973_v27  ;;  %v13770_v3 = vld [vmem:[%s22350_s1 + $0x3b4] sm:$0xf0]  ;;  %v13766_v36 = vld [vmem:[%s22350_s1 + $0x39c] sm:$0xf] }
 0x2de   :  { %10626 = vst [vmem:[%s22354_s4 + $0x28] sm:$0xff] %v3402_v51  ;;  %v17948_v61 = vpack.c.bf16 %v3402_v51, %v3402_v51  ;;  %v10653_v51 = vld [vmem:[%s22350_s1 + $0x10] sm:$0xf]  ;;  %v11111_v39 = vld [vmem:[%s22350_s1 + $0x3b8] sm:$0xf0] }
 0x2df   :  { %4290 = vmatpush.bf16.msra.mxu0 %v10846_v48  ;;  %4316 = vmatpush.bf16.msra.mxu2 %v10850_v49  ;;  %v10975_v48 = vld [vmem:[%s22350_s1 + $0x2b0] sm:$0xf0]  ;;  %v10686_v49 = vor.u32 %v13665_v31, %v10685_v42  ;;  %v10654_v5 = vor.u32 %v13657_v12, %v10653_v51  ;;  %v10789_v42 = vld [vmem:[%s22350_s1 + $0x118] sm:$0xf]  ;;  %v13662_v37 = vld [vmem:[%s22350_s1 + $0x5c] sm:$0xf] }
 0x2e0   :  { %4206 = vmatmul.bf16.vlgmr.msra.gmra.mxu1 %v17948_v61  ;;  %4232 = vmatmul.bf16.vlgmr.msra.gmra.mxu3 %v17948_v61  ;;  %v10978_v15 = vor.u32 %v13733_v47, %v10975_v48  ;;  %v13690_v31 = vld [vmem:[%s22350_s1 + $0x134] sm:$0xf0]  ;;  %v13758_v47 = vld [vmem:[%s22350_s1 + $0x35c] sm:$0xf] }
 0x2e1   :  { %4302 = vmatpush.bf16.msra.mxu1 %v11134_v54  ;;  %4328 = vmatpush.bf16.msra.mxu3 %v11138_v59  ;;  %v10885_v54 = vld [vmem:[%s22350_s1 + $0x1d8] sm:$0xf]  ;;  %v11079_v48 = vld [vmem:[%s22350_s1 + $0x378] sm:$0xf0] }
 0x2e2   :  { %v13714_v59 = vld [vmem:[%s22350_s1 + $0x1f4] sm:$0xf0]  ;;  %v10695_v21 = vld [vmem:[%s22350_s1 + $0x78] sm:$0xf0] }
 0x2e3   :  { %4291 = vmatpush.bf16.msra.mxu0 %v10814_v60  ;;  %4317 = vmatpush.bf16.msra.mxu2 %v10818_v1  ;;  %v10941_v60 = vld [vmem:[%s22350_s1 + $0x250] sm:$0xf]  ;;  %v11077_v27 = vld [vmem:[%s22350_s1 + $0x358] sm:$0xf] }
 0x2e4   :  { %v13729_v1 = vld [vmem:[%s22350_s1 + $0x26c] sm:$0xf0]  ;;  %v13762_v45 = vld [vmem:[%s22350_s1 + $0x374] sm:$0xf0] }
 0x2e5   :  { %4303 = vmatpush.bf16.msra.mxu1 %v11102_v8  ;;  %4329 = vmatpush.bf16.msra.mxu3 %v11106_v52  ;;  %v10886_v8 = vor.u32 %v13714_v59, %v10885_v54  ;;  %v10890_v52 = vor.u32 %v13710_v63, %v10887_v0  ;;  %v10942_v18 = vor.u32 %v13729_v1, %v10941_v60  ;;  %v10757_v51 = vld [vmem:[%s22350_s1 + $0xd8] sm:$0xf]  ;;  %v13750_v63 = vld [vmem:[%s22350_s1 + $0x31c] sm:$0xf] }
 0x2e6   :  { %v13682_v12 = vld [vmem:[%s22350_s1 + $0xf4] sm:$0xf0]  ;;  %v11078_v54 = vor.u32 %v13762_v45, %v11077_v27  ;;  %v11082_v59 = vor.u32 %v13758_v47, %v11079_v48  ;;  %v11047_v0 = vld [vmem:[%s22350_s1 + $0x338] sm:$0xf0]  ;;  %v10762_v1 = vor.u32 %v13678_v57, %v10759_v58 }
 0x2e7   :  { %4292 = vmatpush.bf16.msra.mxu0 %v10782_v19  ;;  %4318 = vmatpush.bf16.msra.mxu2 %v10786_v30  ;;  %v10946_v19 = vor.u32 %v13725_v38, %v10943_v2  ;;  %v10855_v30 = vld [vmem:[%s22350_s1 + $0x1b8] sm:$0xf0]  ;;  %v10758_v60 = vor.u32 %v13682_v12, %v10757_v51  ;;  %v10725_v38 = vld [vmem:[%s22350_s1 + $0x98] sm:$0xf]  ;;  %v11389_v51 = vld [vmem:[%s22350_s1 + $0x1c0] sm:$0xf] }
 0x2e8   :  { %v10858_v29 = vor.u32 %v13702_v50, %v10855_v30  ;;  %v13674_v2 = vld [vmem:[%s22350_s1 + $0xb4] sm:$0xf0]  ;;  %v13742_v50 = vld [vmem:[%s22350_s1 + $0x2dc] sm:$0xf]  ;;  %v13839_v12 = vld [vmem:[%s22350_s1 + $0x1dc] sm:$0xf0] }
 0x2e9   :  { %4304 = vmatpush.bf16.msra.mxu1 %v11070_v22  ;;  %4330 = vmatpush.bf16.msra.mxu3 %v11074_v40  ;;  %v11141_v22 = vld [vmem:[%s22350_s1 + $0x3d8] sm:$0xf]  ;;  %v11390_v57 = vor.u32 %v13839_v12, %v11389_v51 }
 0x2ea   :  { %4245 = vmatmul.bf16.vlgmr.msrb.gmra.mxu0 %v17905_v56  ;;  %4271 = vmatmul.bf16.vlgmr.msrb.gmra.mxu2 %v17905_v56  ;;  %v13778_v40 = vld [vmem:[%s22350_s1 + $0x3f4] sm:$0xf0] }
 0x2eb   :  { %4293 = vmatpush.bf16.msra.mxu0 %v10750_v9  ;;  %4319 = vmatpush.bf16.msra.mxu2 %v10754_v46  ;;  %v10821_v9 = vld [vmem:[%s22350_s1 + $0x158] sm:$0xf]  ;;  %v10910_v46 = vor.u32 %v13721_v28, %v10909_v35 }
 0x2ec   :  { %v10693_v35 = vld [vmem:[%s22350_s1 + $0x58] sm:$0xf] }
 0x2ed   :  { %4305 = vmatpush.bf16.msra.mxu1 %v11038_v17  ;;  %4331 = vmatpush.bf16.msra.mxu3 %v11042_v32  ;;  %v11142_v17 = vor.u32 %v13778_v40, %v11141_v22  ;;  %v11146_v32 = vor.u32 %v13774_v55, %v11143_v23  ;;  %v13666_v28 = vld [vmem:[%s22350_s1 + $0x74] sm:$0xf0]  ;;  %v11014_v22 = vor.u32 %v13746_v20, %v11013_v16  ;;  %v11647_v16 = vld [vmem:[%s22350_s1 + $0x3e0] sm:$0xf0] }
 0x2ee   :  { %v10981_v55 = vld [vmem:[%s22350_s1 + $0x298] sm:$0xf] }
 0x2ef   :  { %4294 = vmatpush.bf16.msra.mxu0 %v10718_v41  ;;  %4320 = vmatpush.bf16.msra.mxu2 %v10722_v14  ;;  %v10822_v41 = vor.u32 %v13698_v4, %v10821_v9  ;;  %v10826_v14 = vor.u32 %v13694_v33, %v10823_v25  ;;  %v13738_v23 = vld [vmem:[%s22350_s1 + $0x2b4] sm:$0xf0]  ;;  %v10694_v9 = vor.u32 %v13666_v28, %v10693_v35  ;;  %v13654_v33 = vld [vmem:[%s22350_s1 + $0x1c] sm:$0xf] }
 0x2f0   :  { %4258 = vmatmul.bf16.vlgmr.msrb.gmra.mxu1 %v17948_v61  ;;  %4284 = vmatmul.bf16.vlgmr.msrb.gmra.mxu3 %v17948_v61  ;;  %v13658_v4 = vld [vmem:[%s22350_s1 + $0x34] sm:$0xf0]  ;;  %v10663_v25 = vld [vmem:[%s22350_s1 + $0x38] sm:$0xf0] }
 0x2f1   :  { %4306 = vmatpush.bf16.msra.mxu1 %v11006_v6  ;;  %4332 = vmatpush.bf16.msra.mxu3 %v11010_v44  ;;  %v11110_v6 = vor.u32 %v13770_v3, %v11109_v13  ;;  %v11114_v44 = vor.u32 %v13766_v36, %v11111_v39  ;;  %v10949_v13 = vld [vmem:[%s22350_s1 + $0x258] sm:$0xf]  ;;  %v13726_v36 = vld [vmem:[%s22350_s1 + $0x25c] sm:$0xf] }
 0x2f2   :  { %v13730_v3 = vld [vmem:[%s22350_s1 + $0x274] sm:$0xf0]  ;;  %v10951_v39 = vld [vmem:[%s22350_s1 + $0x278] sm:$0xf0] }
 0x2f3   :  { %4295 = vmatpush.bf16.msra.mxu0 %v10686_v49  ;;  %4321 = vmatpush.bf16.msra.mxu2 %v10690_v10  ;;  %v10790_v49 = vor.u32 %v13690_v31, %v10789_v42  ;;  %v10794_v10 = vor.u32 %v13686_v24, %v10791_v34  ;;  %v10950_v42 = vor.u32 %v13730_v3, %v10949_v13  ;;  %v10917_v24 = vld [vmem:[%s22350_s1 + $0x218] sm:$0xf]  ;;  %v10629_v13 = vld [vmem:[%s22352_s0 + $0xd0] sm:$0xff] }
 0x2f4   :  { %v10954_v31 = vor.u32 %v13726_v36, %v10951_v39  ;;  %v13722_v34 = vld [vmem:[%s22350_s1 + $0x234] sm:$0xf0]  ;;  %v11581_v39 = vld [vmem:[%s22350_s1 + $0x340] sm:$0xf] }
 0x2f5   :  { %4307 = vmatpush.bf16.msra.mxu1 %v10974_v43  ;;  %4333 = vmatpush.bf16.msra.mxu3 %v10978_v15  ;;  %v11045_v43 = vld [vmem:[%s22350_s1 + $0x318] sm:$0xf]  ;;  %v10918_v27 = vor.u32 %v13722_v34, %v10917_v24  ;;  %v13883_v24 = vld [vmem:[%s22350_s1 + $0x344] sm:$0xf] }
 0x2f6   :  { %v13754_v15 = vld [vmem:[%s22350_s1 + $0x334] sm:$0xf0]  ;;  %v11583_v34 = vld [vmem:[%s22350_s1 + $0x360] sm:$0xf0] }
 0x2f7   :  { %4296 = vmatpush.bf16.msra.mxu0 %v10654_v5  ;;  %4322 = vmatpush.bf16.msra.mxu2 %v10658_v7  ;;  %v13670_v5 = vld [vmem:[%s22350_s1 + $0x9c] sm:$0xf] }
 0x2f8   :  { %v10727_v7 = vld [vmem:[%s22350_s1 + $0xb8] sm:$0xf0] }
 0x2f9   :  { %4308 = vmatpush.bf16.msra.mxu1 %v10942_v18  ;;  %4334 = vmatpush.bf16.msra.mxu3 %v10946_v19  ;;  %v11015_v18 = vld [vmem:[%s22350_s1 + $0x2f8] sm:$0xf0]  ;;  %v10726_v19 = vor.u32 %v13674_v2, %v10725_v38  ;;  %v10730_v30 = vor.u32 %v13670_v5, %v10727_v7  ;;  %v11645_v2 = vld [vmem:[%s22350_s1 + $0x3c0] sm:$0xf]  ;;  %v13899_v7 = vld [vmem:[%s22350_s1 + $0x3c4] sm:$0xf] }
 0x2fa   :  { %4297 = vmatmul.bf16.vlgmr.msra.gmra.mxu0 %v17905_v56  ;;  %4323 = vmatmul.bf16.vlgmr.msra.gmra.mxu2 %v17905_v56  ;;  %v11018_v40 = vor.u32 %v13742_v50, %v11015_v18  ;;  %v13903_v5 = vld [vmem:[%s22350_s1 + $0x3dc] sm:$0xf0]  ;;  %v11650_v20 = vor.u32 %v13899_v7, %v11647_v16  ;;  %v10630_v51 = vld [vmem:[%s22352_s0 + $0xd8] sm:$0xff] }
 0x2fb   :  { %4341 = vmatpush.bf16.msrb.mxu0 %v10886_v8  ;;  %4367 = vmatpush.bf16.msrb.mxu2 %v10890_v52  ;;  %v11046_v8 = vor.u32 %v13754_v15, %v11045_v43  ;;  %v11050_v52 = vor.u32 %v13750_v63, %v11047_v0  ;;  %v13831_v43 = vld [vmem:[%s22350_s1 + $0x19c] sm:$0xf0]  ;;  %v13827_v15 = vld [vmem:[%s22350_s1 + $0x184] sm:$0xf] }
 0x2fc   :  { %v11325_v50 = vld [vmem:[%s22350_s1 + $0x140] sm:$0xf] }
 0x2fd   :  { %4309 = vmatpush.bf16.msra.mxu1 %v10910_v46  ;;  %4335 = vmatpush.bf16.msra.mxu3 %v10914_v53  ;;  %v10698_v46 = vor.u32 %v13662_v37, %v10695_v21  ;;  %v10661_v53 = vld [vmem:[%s22350_s1 + $0x18] sm:$0xf]  ;;  %v13823_v18 = vld [vmem:[%s22350_s1 + $0x15c] sm:$0xf0] }
 0x2fe   :  { %v11326_v35 = vor.u32 %v13823_v18, %v11325_v50  ;;  %v11613_v37 = vld [vmem:[%s22350_s1 + $0x380] sm:$0xf] }
 0x2ff   :  { %4342 = vmatpush.bf16.msrb.mxu0 %v10854_v26  ;;  %4368 = vmatpush.bf16.msrb.mxu2 %v10858_v29  ;;  %v13734_v26 = vld [vmem:[%s22350_s1 + $0x29c] sm:$0xf]  ;;  %v13895_v21 = vld [vmem:[%s22350_s1 + $0x39c] sm:$0xf0] }
 0x300   :  { %4310 = vmatmul.bf16.vlgmr.msra.gmra.mxu1 %v17948_v61  ;;  %4336 = vmatmul.bf16.vlgmr.msra.gmra.mxu3 %v17948_v61  ;;  %v10983_v29 = vld [vmem:[%s22350_s1 + $0x2b8] sm:$0xf0]  ;;  %v11517_v50 = vld [vmem:[%s22350_s1 + $0x2c0] sm:$0xf] }
 0x301   :  { %4354 = vmatpush.bf16.msrb.mxu1 %v11142_v17  ;;  %4380 = vmatpush.bf16.msrb.mxu3 %v11146_v32  ;;  %v10982_v17 = vor.u32 %v13738_v23, %v10981_v55  ;;  %v10986_v32 = vor.u32 %v13734_v26, %v10983_v29  ;;  %v11614_v26 = vor.u32 %v13895_v21, %v11613_v37  ;;  %v11615_v29 = vld [vmem:[%s22350_s1 + $0x3a0] sm:$0xf0]  ;;  %v13871_v18 = vld [vmem:[%s22350_s1 + $0x2dc] sm:$0xf0] }
 0x303   :  { %4343 = vmatpush.bf16.msrb.mxu0 %v10822_v41  ;;  %4369 = vmatpush.bf16.msrb.mxu2 %v10826_v14  ;;  %v10662_v41 = vor.u32 %v13658_v4, %v10661_v53  ;;  %v10666_v14 = vor.u32 %v13654_v33, %v10663_v25  ;;  %v13815_v53 = vld [vmem:[%s22350_s1 + $0x11c] sm:$0xf0]  ;;  %v13811_v4 = vld [vmem:[%s22350_s1 + $0x104] sm:$0xf] }
 0x305   :  { %4355 = vmatpush.bf16.msrb.mxu1 %v11110_v6  ;;  %4381 = vmatpush.bf16.msrb.mxu3 %v11114_v44  ;;  %v13718_v6 = vld [vmem:[%s22350_s1 + $0x21c] sm:$0xf] }
 0x306   :  { %v10919_v44 = vld [vmem:[%s22350_s1 + $0x238] sm:$0xf0] }
 0x307   :  { %4344 = vmatpush.bf16.msrb.mxu0 %v10790_v49  ;;  %4370 = vmatpush.bf16.msrb.mxu2 %v10794_v10  ;;  %v10922_v45 = vor.u32 %v13718_v6, %v10919_v44  ;;  %v11586_v6 = vor.u32 %v13883_v24, %v11583_v34  ;;  %v11261_v44 = vld [vmem:[%s22350_s1 + $0xc0] sm:$0xf] }
 0x309   :  { %4356 = vmatpush.bf16.msrb.mxu1 %v11078_v54  ;;  %4382 = vmatpush.bf16.msrb.mxu3 %v11082_v59  ;;  %v11357_v59 = vld [vmem:[%s22350_s1 + $0x180] sm:$0xf] }
 0x30b   :  { %4345 = vmatpush.bf16.msrb.mxu0 %v10758_v60  ;;  %4371 = vmatpush.bf16.msrb.mxu2 %v10762_v1  ;;  %v11358_v60 = vor.u32 %v13831_v43, %v11357_v59  ;;  %v11359_v1 = vld [vmem:[%s22350_s1 + $0x1a0] sm:$0xf0] }
 0x30c   :  { %v11362_v38 = vor.u32 %v13827_v15, %v11359_v1  ;;  %v13875_v43 = vld [vmem:[%s22350_s1 + $0x304] sm:$0xf]  ;;  %v11229_v1 = vld [vmem:[%s22350_s1 + $0x80] sm:$0xf] }
 0x30d   :  { %4357 = vmatpush.bf16.msrb.mxu1 %v11046_v8  ;;  %4383 = vmatpush.bf16.msrb.mxu3 %v11050_v52  ;;  %v11646_v52 = vor.u32 %v13903_v5, %v11645_v2  ;;  %v11551_v15 = vld [vmem:[%s22350_s1 + $0x320] sm:$0xf0] }
 0x30e   :  { %v13795_v2 = vld [vmem:[%s22350_s1 + $0x84] sm:$0xf] }
 0x30f   :  { %4346 = vmatpush.bf16.msrb.mxu0 %v10726_v19  ;;  %4372 = vmatpush.bf16.msrb.mxu2 %v10730_v30  ;;  %v13819_v19 = vld [vmem:[%s22350_s1 + $0x144] sm:$0xf] }
 0x310   :  { %v11327_v30 = vld [vmem:[%s22350_s1 + $0x160] sm:$0xf0] }
 0x311   :  { %4358 = vmatpush.bf16.msrb.mxu1 %v11014_v22  ;;  %4384 = vmatpush.bf16.msrb.mxu3 %v11018_v40  ;;  %v11330_v28 = vor.u32 %v13819_v19, %v11327_v30  ;;  %v13891_v22 = vld [vmem:[%s22350_s1 + $0x384] sm:$0xf]  ;;  %v11518_v30 = vor.u32 %v13871_v18, %v11517_v50  ;;  %v13847_v50 = vld [vmem:[%s22350_s1 + $0x21c] sm:$0xf0] }
 0x312   :  { %v10627_v40 = vld [vmem:[%s22352_s0 + $0xc0] sm:$0xff] }
 0x313   :  { %4347 = vmatpush.bf16.msrb.mxu0 %v10694_v9  ;;  %4373 = vmatpush.bf16.msrb.mxu2 %v10698_v46  ;;  %v11618_v9 = vor.u32 %v13891_v22, %v11615_v29  ;;  %v11293_v46 = vld [vmem:[%s22350_s1 + $0x100] sm:$0xf]  ;;  %v11199_v29 = vld [vmem:[%s22350_s1 + $0x60] sm:$0xf0] }
 0x314   :  { %v11197_v22 = vld [vmem:[%s22350_s1 + $0x40] sm:$0xf]  ;;  %v13843_v18 = vld [vmem:[%s22350_s1 + $0x204] sm:$0xf] }
 0x315   :  { %4359 = vmatpush.bf16.msrb.mxu1 %v10982_v17  ;;  %4385 = vmatpush.bf16.msrb.mxu3 %v10986_v32  ;;  %v11294_v17 = vor.u32 %v13815_v53, %v11293_v46  ;;  %v11295_v32 = vld [vmem:[%s22350_s1 + $0x120] sm:$0xf0]  ;;  %v11485_v46 = vld [vmem:[%s22350_s1 + $0x280] sm:$0xf] }
 0x316   :  { %v11298_v36 = vor.u32 %v13811_v4, %v11295_v32  ;;  %v13863_v53 = vld [vmem:[%s22350_s1 + $0x29c] sm:$0xf0]  ;;  %v13859_v4 = vld [vmem:[%s22350_s1 + $0x284] sm:$0xf] }
 0x317   :  { %4348 = vmatpush.bf16.msrb.mxu0 %v10662_v41  ;;  %4374 = vmatpush.bf16.msrb.mxu2 %v10666_v14  ;;  %v13887_v41 = vld [vmem:[%s22350_s1 + $0x35c] sm:$0xf0] }
 0x319   :  { %4360 = vmatpush.bf16.msrb.mxu1 %v10950_v42  ;;  %4386 = vmatpush.bf16.msrb.mxu3 %v10954_v31  ;;  %v11582_v31 = vor.u32 %v13887_v41, %v11581_v39  ;;  %v10631_v39 = vld [vmem:[%s22352_s0 + $0xe0] sm:$0xff] }
 0x31a   :  { %4349 = vmatmul.bf16.vlgmr.msrb.gmra.mxu0 %v17905_v56  ;;  %4375 = vmatmul.bf16.vlgmr.msrb.gmra.mxu2 %v17905_v56  ;;  %v13835_v56 = vld [vmem:[%s22350_s1 + $0x1c4] sm:$0xf] }
 0x31b   :  { %5309 = vmatpush.bf16.msra.mxu0 %v11390_v57  ;;  %v13879_v57 = vld [vmem:[%s22350_s1 + $0x31c] sm:$0xf0] }
 0x31d   :  { %4361 = vmatpush.bf16.msrb.mxu1 %v10918_v27  ;;  %4387 = vmatpush.bf16.msrb.mxu3 %v10922_v45  ;;  %v13807_v27 = vld [vmem:[%s22350_s1 + $0xdc] sm:$0xf0]  ;;  %v13803_v45 = vld [vmem:[%s22350_s1 + $0xc4] sm:$0xf] }
 0x31f   :  { %5310 = vmatpush.bf16.msra.mxu0 %v11358_v60  ;;  %v11554_v60 = vor.u32 %v13875_v43, %v11551_v15 }
 0x320   :  { %4362 = vmatmul.bf16.vlgmr.msrb.gmra.mxu1 %v17948_v61  ;;  %4388 = vmatmul.bf16.vlgmr.msrb.gmra.mxu3 %v17948_v61  ;;  %v11391_v61 = vld [vmem:[%s22350_s1 + $0x1e0] sm:$0xf0] }
 0x321   :  { %v11394_v58 = vor.u32 %v13835_v56, %v11391_v61  ;;  %5322 = vmatpush.bf16.msra.mxu1 %v11646_v52  ;;  %5348 = vmatpush.bf16.msra.mxu3 %v11650_v20  ;;  %v11549_v56 = vld [vmem:[%s22350_s1 + $0x300] sm:$0xf]  ;;  %v11231_v52 = vld [vmem:[%s22350_s1 + $0xa0] sm:$0xf0] }
 0x322   :  { %v11550_v59 = vor.u32 %v13879_v57, %v11549_v56  ;;  %v11234_v20 = vor.u32 %v13795_v2, %v11231_v52  ;;  %v11453_v56 = vld [vmem:[%s22350_s1 + $0x240] sm:$0xf]  ;;  %v10632_v52 = vld [vmem:[%s22352_s0 + $0xe8] sm:$0xff] }
 0x323   :  { %5335 = vmatpush.bf16.msra.mxu2 %v11394_v58  ;;  %5311 = vmatpush.bf16.msra.mxu0 %v11326_v35  ;;  %v13867_v35 = vld [vmem:[%s22350_s1 + $0x2c4] sm:$0xf] }
 0x325   :  { %5323 = vmatpush.bf16.msra.mxu1 %v11614_v26  ;;  %5349 = vmatpush.bf16.msra.mxu3 %v11618_v9  ;;  %v13787_v26 = vld [vmem:[%s22350_s1 + $0x44] sm:$0xf] }
 0x326   :  { %v11202_v9 = vor.u32 %v13787_v26, %v11199_v29 }
 0x327   :  { %5336 = vmatpush.bf16.msra.mxu2 %v11362_v38  ;;  %5312 = vmatpush.bf16.msra.mxu0 %v11294_v17  ;;  %v13799_v38 = vld [vmem:[%s22350_s1 + $0x9c] sm:$0xf0]  ;;  %v11487_v17 = vld [vmem:[%s22350_s1 + $0x2a0] sm:$0xf0] }
 0x329   :  { %5324 = vmatpush.bf16.msra.mxu1 %v11582_v31  ;;  %5350 = vmatpush.bf16.msra.mxu3 %v11586_v6  ;;  %v11167_v31 = vld [vmem:[%s22350_s1 + $0x20] sm:$0xf0] }
 0x32b   :  { %5337 = vmatpush.bf16.msra.mxu2 %v11330_v28  ;;  %v11519_v28 = vld [vmem:[%s22350_s1 + $0x2e0] sm:$0xf0] }
 0x32c   :  { %v11522_v21 = vor.u32 %v13867_v35, %v11519_v28  ;;  %v11423_v28 = vld [vmem:[%s22350_s1 + $0x220] sm:$0xf0] }
 0x32d   :  { %5325 = vmatpush.bf16.msra.mxu1 %v11550_v59  ;;  %5351 = vmatpush.bf16.msra.mxu3 %v11554_v60  ;;  %v11455_v59 = vld [vmem:[%s22350_s1 + $0x260] sm:$0xf0]  ;;  %v11365_v60 = vld [vmem:[%s22350_s1 + $0x188] sm:$0xf] }
 0x32f   :  { %5338 = vmatpush.bf16.msra.mxu2 %v11298_v36  ;;  %v13783_v36 = vld [vmem:[%s22350_s1 + $0x1c] sm:$0xf0] }
 0x331   :  { %5326 = vmatpush.bf16.msra.mxu1 %v11518_v30  ;;  %5352 = vmatpush.bf16.msra.mxu3 %v11522_v21 }
 0x357   :  { %v4194_v47 = vpop.f32.mrf.mxu0 }
 0x35d   :  { %v4207_v48 = vpop.f32.mrf.mxu1  ;;  %v18294_v49 = vpop.f32.mrf.mxu2 }
 0x35e   :  { %v4208_v55 = vadd.f32 %v4207_v48, %v4194_v47  ;;  %v11262_v48 = vor.u32 %v13807_v27, %v11261_v44  ;;  %v11397_v44 = vld [vmem:[%s22350_s1 + $0x1c8] sm:$0xf] }
 0x35f   :  { %v4196_v10 = vpop.f32.mrf.mxu0  ;;  %v13840_v27 = vld [vmem:[%s22350_s1 + $0x1e4] sm:$0xf0] }
 0x360   :  { %v4393_v14 = vadd.f32 %v10627_v40, %v4208_v55  ;;  %v11263_v10 = vld [vmem:[%s22350_s1 + $0xe0] sm:$0xf0]  ;;  %5313 = vmatpush.bf16.msra.mxu0 %v11262_v48  ;;  %v13791_v40 = vld [vmem:[%s22350_s1 + $0x5c] sm:$0xf0] }
 0x361   :  { %v11266_v12 = vor.u32 %v13803_v45, %v11263_v10  ;;  %v13836_v45 = vld [vmem:[%s22350_s1 + $0x1cc] sm:$0xf] }
 0x362   :  { %v11147_v61 = vmul.f32 -1.442695, %v4393_v14 }
 0x363   :  { %v18308_v54 = vpop.f32.mrf.mxu3  ;;  %5339 = vmatpush.bf16.msra.mxu2 %v11266_v12  ;;  %v11399_v12 = vld [vmem:[%s22350_s1 + $0x1e8] sm:$0xf0] }
 0x364   :  { %14387 = vpow2.f32 %v11147_v61  ;;  %v11402_v57 = vor.u32 %v13836_v45, %v11399_v12  ;;  %v13855_v61 = vld [vmem:[%s22350_s1 + $0x25c] sm:$0xf0]  ;;  %v13816_v45 = vld [vmem:[%s22350_s1 + $0x124] sm:$0xf0] }
 0x365   :  { %v4209_v63 = vpop.f32.mrf.mxu1  ;;  %v4222_v0 = vpop.f32.mrf.mxu2  ;;  %v11589_v12 = vld [vmem:[%s22350_s1 + $0x348] sm:$0xf] }
 0x366   :  { %v4234_v63 = vadd.f32 %v18308_v54, %v18294_v49  ;;  %v10628_v49 = vld [vmem:[%s22352_s0 + $0xc8] sm:$0xff] }
 0x367   :  { %v4246_v8 = vpop.f32.mrf.mxu0  ;;  %5340 = vmatpush.bf16.msra.mxu2 %v11234_v20 }
 0x368   :  { %v4394_v37 = vadd.f32 %v10628_v49, %v4234_v63  ;;  %v11454_v63 = vor.u32 %v13855_v61, %v11453_v56  ;;  %v13828_v49 = vld [vmem:[%s22350_s1 + $0x18c] sm:$0xf]  ;;  %v13888_v56 = vld [vmem:[%s22350_s1 + $0x364] sm:$0xf0] }
 0x369   :  { %v13884_v61 = vld [vmem:[%s22350_s1 + $0x34c] sm:$0xf] }
 0x36a   :  { %v11148_v32 = vmul.f32 -1.442695, %v4394_v37  ;;  %v14388_v24 = vpop.eup %14387  ;;  %v11653_v37 = vld [vmem:[%s22350_s1 + $0x3c8] sm:$0xf] }
 0x36b   :  { %v4235_v23 = vpop.f32.mrf.mxu3  ;;  %5341 = vmatpush.bf16.msra.mxu2 %v11202_v9  ;;  %v18507_v43 = vadd.f32 1.0, %v14388_v24  ;;  %v11655_v9 = vld [vmem:[%s22350_s1 + $0x3e8] sm:$0xf0] }
 0x36c   :  { %v11198_v23 = vor.u32 %v13791_v40, %v11197_v22  ;;  %v11426_v40 = vor.u32 %v13843_v18, %v11423_v28  ;;  %v11623_v24 = vld [vmem:[%s22350_s1 + $0x3a8] sm:$0xf0] }
 0x36d   :  { %v4259_v33 = vpop.f32.mrf.mxu1  ;;  %v4272_v25 = vpop.f32.mrf.mxu2  ;;  %v13876_v18 = vld [vmem:[%s22350_s1 + $0x30c] sm:$0xf]  ;;  %vm4430_vm8 = vweird.f32 %v18507_v43 }
 0x36e   :  { %v4260_v3 = vadd.f32 %v4259_v33, %v4246_v8  ;;  %v11230_v8 = vor.u32 %v13799_v38, %v11229_v1  ;;  %v13832_v1 = vld [vmem:[%s22350_s1 + $0x1a4] sm:$0xf0] }
 0x36f   :  { %v4248_v42 = vpop.f32.mrf.mxu0  ;;  %v11366_v2 = vor.u32 %v13832_v1, %v11365_v60 }
 0x370   :  { %v4395_v47 = vadd.f32 %v10629_v13, %v4260_v3  ;;  %5314 = vmatpush.bf16.msra.mxu0 %v11230_v8  ;;  %v11490_v13 = vor.u32 %v13859_v4, %v11487_v17  ;;  %v11165_v3 = vld [vmem:[%s22350_s1] sm:$0xf]  ;;  %v13779_v42 = vld [vmem:[%s22350_s1 + $0x4] sm:$0xf]  ;;  %v11335_v17 = vld [vmem:[%s22350_s1 + $0x168] sm:$0xf0] }
 0x371   :  { %v11166_v14 = vor.u32 %v13783_v36, %v11165_v3  ;;  %v11170_v6 = vor.u32 %v13779_v42, %v11167_v31  ;;  %v11421_v8 = vld [vmem:[%s22350_s1 + $0x200] sm:$0xf]  ;;  %v11621_v36 = vld [vmem:[%s22350_s1 + $0x388] sm:$0xf] }
 0x372   :  { %v11149_v54 = vmul.f32 -1.442695, %v4395_v47  ;;  %5353 = vmatpush.bf16.msra.mxu3 %v11490_v13  ;;  %v11422_v35 = vor.u32 %v13847_v50, %v11421_v8 }
 0x373   :  { %v4285_v58 = vpop.f32.mrf.mxu3  ;;  %5342 = vmatpush.bf16.msra.mxu2 %v11170_v6 }
 0x374   :  { %v4286_v0 = vadd.f32 %v4285_v58, %v4272_v25  ;;  %14389 = vpow2.f32 %v11149_v54  ;;  %v11486_v25 = vor.u32 %v13863_v53, %v11485_v46  ;;  %5315 = vmatpush.bf16.msra.mxu0 %v11198_v23  ;;  %v13851_v58 = vld [vmem:[%s22350_s1 + $0x244] sm:$0xf]  ;;  %v11367_v54 = vld [vmem:[%s22350_s1 + $0x1a8] sm:$0xf0]  ;;  %v11333_v46 = vld [vmem:[%s22350_s1 + $0x148] sm:$0xf] }
 0x375   :  { %v4261_v5 = vpop.f32.mrf.mxu1  ;;  %v4274_v7 = vpop.f32.mrf.mxu2  ;;  %v11370_v20 = vor.u32 %v13828_v49, %v11367_v54  ;;  %v13900_v23 = vld [vmem:[%s22350_s1 + $0x3cc] sm:$0xf] }
 0x376   :  { %v4396_v16 = vadd.f32 %v10630_v51, %v4286_v0  ;;  %5327 = vmatpush.bf16.msra.mxu1 %v11486_v25  ;;  %v11398_v51 = vor.u32 %v13840_v27, %v11397_v44  ;;  %v11458_v0 = vor.u32 %v13851_v58, %v11455_v59  ;;  %v11658_v4 = vor.u32 %v13900_v23, %v11655_v9  ;;  %v13820_v25 = vld [vmem:[%s22350_s1 + $0x14c] sm:$0xf] }
 0x377   :  { %v4298_v19 = vpop.f32.mrf.mxu0  ;;  %5387 = vmatpush.bf16.msrb.mxu2 %v11402_v57  ;;  %v11338_v3 = vor.u32 %v13820_v25, %v11335_v17  ;;  %v11591_v58 = vld [vmem:[%s22350_s1 + $0x368] sm:$0xf0] }
 0x378   :  { %v11150_v55 = vmul.f32 -1.442695, %v4396_v16  ;;  %5316 = vmatpush.bf16.msra.mxu0 %v11166_v14  ;;  %5354 = vmatpush.bf16.msra.mxu3 %v11458_v0  ;;  %v13808_v0 = vld [vmem:[%s22350_s1 + $0xe4] sm:$0xf0]  ;;  %v11594_v49 = vor.u32 %v13884_v61, %v11591_v58 }
 0x379   :  { %v11173_v61 = vld [vmem:[%s22350_s1 + $0x8] sm:$0xf] }
 0x37a   :  { %14391 = vpow2.f32 %v11150_v55  ;;  %v14390_v47 = vpop.eup %14389  ;;  %5328 = vmatpush.bf16.msra.mxu1 %v11454_v63  ;;  %v13904_v55 = vld [vmem:[%s22350_s1 + $0x3e4] sm:$0xf0] }
 0x37b   :  { %v4287_v33 = vpop.f32.mrf.mxu3  ;;  %14393 = vpow2.f32 %v11148_v32  ;;  %v18515_v38 = vadd.f32 1.0, %v14390_v47  ;;  %5388 = vmatpush.bf16.msrb.mxu2 %v11370_v20  ;;  %v11654_v29 = vor.u32 %v13904_v55, %v11653_v37  ;;  %v13812_v47 = vld [vmem:[%s22350_s1 + $0x10c] sm:$0xf]  ;;  %v11269_v63 = vld [vmem:[%s22350_s1 + $0xc8] sm:$0xf] }
 0x37c   :  { %5361 = vmatpush.bf16.msrb.mxu0 %v11398_v51  ;;  %14395 = vrcp.f32 %v18507_v43  ;;  %5355 = vmatpush.bf16.msra.mxu3 %v11426_v40  ;;  %v13824_v33 = vld [vmem:[%s22350_s1 + $0x164] sm:$0xf0]  ;;  %v11303_v51 = vld [vmem:[%s22350_s1 + $0x128] sm:$0xf0]  ;;  %v11270_v54 = vor.u32 %v13808_v0, %v11269_v63 }
 0x37d   :  { %v4324_v41 = vpop.f32.mrf.mxu2  ;;  %v4311_v34 = vpop.f32.mrf.mxu1  ;;  %14397 = vrcp.f32 %v18515_v38  ;;  %v11334_v13 = vor.u32 %v13824_v33, %v11333_v46  ;;  %v11306_v59 = vor.u32 %v13812_v47, %v11303_v51  ;;  %v11237_v37 = vld [vmem:[%s22350_s1 + $0x88] sm:$0xf]  ;;  %v13796_v40 = vld [vmem:[%s22350_s1 + $0x8c] sm:$0xf]  ;;  %vm4460_vm11 = vweird.f32 %v18515_v38 }
 0x37e   :  { %v4312_v48 = vadd.f32 %v4311_v34, %v4298_v19  ;;  %5329 = vmatpush.bf16.msra.mxu1 %v11422_v35  ;;  %v11301_v34 = vld [vmem:[%s22350_s1 + $0x108] sm:$0xf]  ;;  %v13868_v33 = vld [vmem:[%s22350_s1 + $0x2cc] sm:$0xf] }
 0x37f   :  { %v4300_v10 = vpop.f32.mrf.mxu0  ;;  %5389 = vmatpush.bf16.msrb.mxu2 %v11338_v3  ;;  %v11205_v3 = vld [vmem:[%s22350_s1 + $0x48] sm:$0xf]  ;;  %v11207_v47 = vld [vmem:[%s22350_s1 + $0x68] sm:$0xf0] }
 0x380   :  { %v4397_v15 = vadd.f32 %v10631_v39, %v4312_v48  ;;  %v14392_v5 = vpop.eup %14391  ;;  %5362 = vmatpush.bf16.msrb.mxu0 %v11366_v2  ;;  %5400 = vmatpush.bf16.msrb.mxu3 %v11658_v4  ;;  %v13896_v39 = vld [vmem:[%s22350_s1 + $0x3a4] sm:$0xf0]  ;;  %v11302_v10 = vor.u32 %v13816_v45, %v11301_v34 }
 0x381   :  { %v18543_v21 = vadd.f32 1.0, %v14392_v5  ;;  %v14394_v53 = vpop.eup %14393  ;;  %v11622_v31 = vor.u32 %v13896_v39, %v11621_v36  ;;  %v13804_v5 = vld [vmem:[%s22350_s1 + $0xcc] sm:$0xf]  ;;  %v13872_v4 = vld [vmem:[%s22350_s1 + $0x2e4] sm:$0xf0] }
 0x382   :  { %v11151_v7 = vmul.f32 -1.442695, %v4397_v15  ;;  %5374 = vmatpush.bf16.msrb.mxu1 %v11654_v29  ;;  %v18576_v14 = vpop.eup %14395  ;;  %v18578_v42 = vadd.f32 1.0, %v14394_v53  ;;  %v11590_v15 = vor.u32 %v13888_v56, %v11589_v12  ;;  %v11239_v29 = vld [vmem:[%s22350_s1 + $0xa8] sm:$0xf0] }
 0x383   :  { %v4337_v16 = vpop.f32.mrf.mxu3  ;;  %v18586_v6 = vpop.eup %14397  ;;  %v4426_v57 = vmul.f32 %v18576_v14, %v18507_v43  ;;  %5390 = vmatpush.bf16.msrb.mxu2 %v11306_v59  ;;  %v11525_v53 = vld [vmem:[%s22350_s1 + $0x2c8] sm:$0xf]  ;;  %v11242_v17 = vor.u32 %v13796_v40, %v11239_v29  ;;  %v13860_v56 = vld [vmem:[%s22350_s1 + $0x28c] sm:$0xf]  ;;  %vm4431_vm9 = vweird.f32 %v18576_v14  ;;  %vm4475_vm2 = vweird.f32 %v18543_v21  ;;  %v11405_v40 = vld [vmem:[%s22350_s1 + $0x1d0] sm:$0xf] }
 0x384   :  { %v4338_v19 = vadd.f32 %v4337_v16, %v4324_v41  ;;  %14399 = vpow2.f32 %v11151_v7  ;;  %v13892_v41 = vld [vmem:[%s22350_s1 + $0x38c] sm:$0xf]  ;;  %5363 = vmatpush.bf16.msrb.mxu0 %v11334_v13  ;;  %v4456_v1 = vmul.f32 %v18586_v6, %v18515_v38  ;;  %v13880_v16 = vld [vmem:[%s22350_s1 + $0x324] sm:$0xf0]  ;;  %vm4461_vm10 = vweird.f32 %v18586_v6  ;;  %vm18752_vm12 = vmor %vm4430_vm8, %vm4431_vm9 }
 0x385   :  { %v4326_v30 = vpop.f32.mrf.mxu2  ;;  %v4313_v22 = vpop.f32.mrf.mxu1  ;;  %14401 = vrcp.f32 %v18543_v21  ;;  %v11626_v27 = vor.u32 %v13892_v41, %v11623_v24  ;;  %v11271_v7 = vld [vmem:[%s22350_s1 + $0xe8] sm:$0xf0]  ;;  %v4427_v20 = vsub.f32 1.0, %v4426_v57  ;;  %v13784_v0 = vld [vmem:[%s22350_s1 + $0x24] sm:$0xf0]  ;;  %vm18762_vm13 = vmor %vm4460_vm11, %vm4461_vm10  ;;  %vm4445_vm15 = vweird.f32 %v18578_v42 }
 0x386   :  { %v4398_v26 = vadd.f32 %v10632_v52, %v4338_v19  ;;  %5375 = vmatpush.bf16.msrb.mxu1 %v11622_v31  ;;  %v11274_v8 = vor.u32 %v13804_v5, %v11271_v7  ;;  %v11557_v52 = vld [vmem:[%s22350_s1 + $0x308] sm:$0xf]  ;;  %v11559_v19 = vld [vmem:[%s22350_s1 + $0x328] sm:$0xf0]  ;;  %v4457_v55 = vsub.f32 1.0, %v4456_v1  ;;  %v4436_v7 = vand.u32 2147483648, %v18507_v43 }
 0x387   :  { %5401 = vmatpush.bf16.msrb.mxu3 %v11626_v27  ;;  %v11558_v50 = vor.u32 %v13880_v16, %v11557_v52  ;;  %v11562_v28 = vor.u32 %v13876_v18, %v11559_v19  ;;  %v13800_v22 = vld [vmem:[%s22350_s1 + $0xa4] sm:$0xf0]  ;;  %v11527_v13 = vld [vmem:[%s22350_s1 + $0x2e8] sm:$0xf0]  ;;  %v4428_v39 = vmul.f32 %v18576_v14, %v4427_v20  ;;  %v10633_v27 = vld [vmem:[%s22352_s0 + $0xf0] sm:$0xff]  ;;  %v11174_v20 = vor.u32 %v13784_v0, %v11173_v61 }
 0x388   :  { %v11152_v32 = vmul.f32 -1.442695, %v4398_v26  ;;  %5364 = vmatpush.bf16.msrb.mxu0 %v11302_v10  ;;  %v4434_v26 = vand.u32 2147483647, %v18507_v43  ;;  %5391 = vmatpush.bf16.msrb.mxu2 %v11274_v8  ;;  %v11238_v46 = vor.u32 %v13800_v22, %v11237_v37  ;;  %v11530_v41 = vor.u32 %v13868_v33, %v11527_v13  ;;  %v13792_v31 = vld [vmem:[%s22350_s1 + $0x64] sm:$0xf0] }
 0x389   :  { %v13788_v24 = vld [vmem:[%s22350_s1 + $0x4c] sm:$0xf]  ;;  %v11206_v45 = vor.u32 %v13792_v31, %v11205_v3  ;;  %v13864_v10 = vld [vmem:[%s22350_s1 + $0x2a4] sm:$0xf0]  ;;  %v18727_v5 = vadd.f32 %v18576_v14, %v4428_v39  ;;  %v4466_v18 = vand.u32 2147483648, %v18515_v38 }
 0x38a   :  { %v14400_v48 = vpop.eup %14399  ;;  %14403 = vpow2.f32 %v11152_v32  ;;  %5376 = vmatpush.bf16.msrb.mxu1 %v11590_v15  ;;  %v11526_v32 = vor.u32 %v13872_v4, %v11525_v53  ;;  %v11210_v51 = vor.u32 %v13788_v24, %v11207_v47  ;;  %v11495_v57 = vld [vmem:[%s22350_s1 + $0x2a8] sm:$0xf0]  ;;  %vm18768_vm14 = vcmp.eq.f32.partialorder %v4434_v26, 8.507059e+37 }
 0x38b   :  { %v4339_v44 = vpop.f32.mrf.mxu3  ;;  %14405 = vrcp.f32 %v18578_v42  ;;  %v18618_v60 = vpop.eup %14401  ;;  %v18622_v2 = vadd.f32 1.0, %v14400_v48  ;;  %5402 = vmatpush.bf16.msrb.mxu3 %v11594_v49  ;;  %v11493_v48 = vld [vmem:[%s22350_s1 + $0x288] sm:$0xf]  ;;  %v11498_v63 = vor.u32 %v13860_v56, %v11495_v57  ;;  %v13780_v1 = vld [vmem:[%s22350_s1 + $0xc] sm:$0xf]  ;;  %v4437_v4 = vor.u32 1.1754944e-38, %v4436_v7 }
 0x38c   :  { %v18644_v35 = vmul.f32 %v18618_v60, %v18543_v21  ;;  %5365 = vmatpush.bf16.msrb.mxu0 %v11270_v54  ;;  %v4458_v44 = vmul.f32 %v18586_v6, %v4457_v55  ;;  %5392 = vmatpush.bf16.msrb.mxu2 %v11242_v17  ;;  %v11494_v12 = vor.u32 %v13864_v10, %v11493_v48  ;;  %v11175_v49 = vld [vmem:[%s22350_s1 + $0x28] sm:$0xf0]  ;;  %v4464_v55 = vand.u32 2147483647, %v18515_v38  ;;  %v10634_v38 = vld [vmem:[%s22352_s0 + $0xf8] sm:$0xff] }
 0x38d   :  { %14407 = vrcp.f32 %v18622_v2  ;;  %v13852_v37 = vld [vmem:[%s22350_s1 + $0x24c] sm:$0xf]  ;;  %v11429_v17 = vld [vmem:[%s22350_s1 + $0x208] sm:$0xf]  ;;  %v4433_v43 = vsel %vm18752_vm12, %v18576_v14, %v18727_v5  ;;  %vm4476_vm0 = vweird.f32 %v18618_v60  ;;  %v4481_v47 = vand.u32 2147483648, %v18543_v21 }
 0x38e   :  { %5377 = vmatpush.bf16.msrb.mxu1 %v11558_v50  ;;  %v4472_v36 = vsub.f32 1.0, %v18644_v35  ;;  %v4459_v52 = vadd.f32 %v18586_v6, %v4458_v44  ;;  %v11461_v50 = vld [vmem:[%s22350_s1 + $0x248] sm:$0xf]  ;;  %v11178_v35 = vor.u32 %v13780_v1, %v11175_v49  ;;  %v11463_v29 = vld [vmem:[%s22350_s1 + $0x268] sm:$0xf0]  ;;  %vm4465_vm1 = vcmp.eq.f32.partialorder %v4464_v55, 8.507059e+37  ;;  %vm18809_vm4 = vmor %vm4475_vm2, %vm4476_vm0 }
 0x38f   :  { %5403 = vmatpush.bf16.msrb.mxu3 %v11562_v28  ;;  %v13856_v28 = vld [vmem:[%s22350_s1 + $0x264] sm:$0xf0]  ;;  %v11466_v33 = vor.u32 %v13852_v37, %v11463_v29  ;;  %v13844_v39 = vld [vmem:[%s22350_s1 + $0x20c] sm:$0xf]  ;;  %v4479_v56 = vand.u32 2147483647, %v18543_v21  ;;  %vm4490_vm9 = vweird.f32 %v18622_v2 }
 0x390   :  { %v14404_v30 = vpop.eup %14403  ;;  %5366 = vmatpush.bf16.msrb.mxu0 %v11238_v46  ;;  %5393 = vmatpush.bf16.msrb.mxu2 %v11210_v51  ;;  %v4473_v22 = vmul.f32 %v18618_v60, %v4472_v36  ;;  %v4463_v26 = vsel %vm18762_vm13, %v18586_v6, %v4459_v52  ;;  %v13848_v36 = vld [vmem:[%s22350_s1 + $0x224] sm:$0xf0]  ;;  %v11431_v14 = vld [vmem:[%s22350_s1 + $0x228] sm:$0xf0]  ;;  %v4449_v21 = vand.u32 2147483647, %v18578_v42 }
 0x391   :  { %v18660_v9 = vpop.eup %14405  ;;  %v18671_v25 = vadd.f32 1.0, %v14404_v30  ;;  %v11430_v24 = vor.u32 %v13848_v36, %v11429_v17  ;;  %vm4480_vm6 = vcmp.eq.f32.partialorder %v4479_v56, 8.507059e+37  ;;  %v11375_v36 = vld [vmem:[%s22350_s1 + $0x1b0] sm:$0xf0]  ;;  %v11629_v56 = vld [vmem:[%s22350_s1 + $0x390] sm:$0xf] }
 0x392   :  { %v18689_v34 = vmul.f32 %v18660_v9, %v18578_v42  ;;  %5378 = vmatpush.bf16.msrb.mxu1 %v11526_v32  ;;  %vm4446_vm3 = vweird.f32 %v18660_v9  ;;  %vm4450_vm8 = vcmp.eq.f32.partialorder %v4449_v21, 8.507059e+37  ;;  %v13817_v21 = vld [vmem:[%s22350_s1 + $0x12c] sm:$0xf0] }
 0x393   :  { %v18713_v58 = vpop.eup %14407  ;;  %14409 = vrcp.f32 %v18671_v25  ;;  %5404 = vmatpush.bf16.msrb.mxu3 %v11530_v41  ;;  %v4467_v41 = vor.u32 1.1754944e-38, %v4466_v18  ;;  %vm18826_vm5 = vmor %vm4445_vm15, %vm4446_vm3  ;;  %v4509_v46 = vand.u32 2147483647, %v18671_v25  ;;  %v4511_v53 = vand.u32 2147483648, %v18671_v25 }
 0x394   :  { %5367 = vmatpush.bf16.msrb.mxu0 %v11206_v45  ;;  %v4442_v8 = vsub.f32 1.0, %v18689_v34  ;;  %v4486_v19 = vmul.f32 %v18713_v58, %v18622_v2  ;;  %5394 = vmatpush.bf16.msrb.mxu2 %v11178_v35  ;;  %v4474_v34 = vadd.f32 %v18618_v60, %v4473_v22  ;;  %v11434_v45 = vor.u32 %v13844_v39, %v11431_v14  ;;  %v13905_v14 = vld [vmem:[%s22350_s1 + $0x3ec] sm:$0xf0] }
 0x395   :  { %v4468_v10 = vsel %vm4465_vm1, %v4467_v41, %v4463_v26  ;;  %vm4491_vm7 = vweird.f32 %v18713_v58  ;;  %vm4505_vm13 = vweird.f32 %v18671_v25  ;;  %v13833_v26 = vld [vmem:[%s22350_s1 + $0x1ac] sm:$0xf0]  ;;  %vm4510_vm15 = vcmp.eq.f32.partialorder %v4509_v46, 8.507059e+37  ;;  %v13901_v41 = vld [vmem:[%s22350_s1 + $0x3d4] sm:$0xf] }
 0x396   :  { %5379 = vmatpush.bf16.msrb.mxu1 %v11494_v12  ;;  %v4443_v3 = vmul.f32 %v18660_v9, %v4442_v8  ;;  %v4487_v31 = vsub.f32 1.0, %v4486_v19  ;;  %v4517_v0 = vmul.f32 %v4468_v10, %v17855_v11  ;;  %v4478_v49 = vsel %vm18809_vm4, %v18618_v60, %v4474_v34  ;;  %vm4492_vm10 = vmor %vm4490_vm9, %vm4491_vm7  ;;  %v11343_v10 = vld [vmem:[%s22350_s1 + $0x170] sm:$0xf0] }
 0x397   :  { %v4350_v23 = vpop.f32.mrf.mxu0  ;;  %5405 = vmatpush.bf16.msrb.mxu3 %v11498_v63  ;;  %v4451_v63 = vand.u32 2147483648, %v18578_v42  ;;  %v4494_v42 = vand.u32 2147483647, %v18622_v2  ;;  %v4512_v39 = vor.u32 1.1754944e-38, %v4511_v53  ;;  %v11247_v46 = vld [vmem:[%s22350_s1 + $0xb0] sm:$0xf0] }
 0x398   :  { %5368 = vmatpush.bf16.msrb.mxu0 %v11174_v20  ;;  %v4444_v12 = vadd.f32 %v18660_v9, %v4443_v3  ;;  %v13829_v3 = vld [vmem:[%s22350_s1 + $0x194] sm:$0xf] }
 0x399   :  { %v18778_v32 = vpop.eup %14409  ;;  %vm4495_vm11 = vcmp.eq.f32.partialorder %v4494_v42, 8.507059e+37 }
 0x39a   :  { %v4501_v48 = vmul.f32 %v18778_v32, %v18671_v25  ;;  %v4448_v11 = vsel %vm18826_vm5, %v18660_v9, %v4444_v12  ;;  %vm4506_vm12 = vweird.f32 %v18778_v32 }
 0x39b   :  { %5406 = vmatpush.bf16.msrb.mxu3 %v11466_v33 }
 0x39c   :  { %v4502_v5 = vsub.f32 1.0, %v4501_v48  ;;  %v13821_v48 = vld [vmem:[%s22350_s1 + $0x154] sm:$0xf] }
 0x39d   :  { %v4363_v59 = vpop.f32.mrf.mxu1  ;;  %v4376_v15 = vpop.f32.mrf.mxu2 }
 0x39e   :  { %v4364_v54 = vadd.f32 %v4363_v59, %v4350_v23  ;;  %v11462_v23 = vor.u32 %v13856_v28, %v11461_v50  ;;  %v4488_v59 = vmul.f32 %v18713_v58, %v4487_v31  ;;  %v4496_v50 = vand.u32 2147483648, %v18622_v2  ;;  %v13841_v2 = vld [vmem:[%s22350_s1 + $0x1ec] sm:$0xf0]  ;;  %v11663_v31 = vld [vmem:[%s22350_s1 + $0x3f0] sm:$0xf0] }
 0x39f   :  { %v4352_v16 = vpop.f32.mrf.mxu0  ;;  %5407 = vmatpush.bf16.msrb.mxu3 %v11434_v45  ;;  %v4503_v9 = vmul.f32 %v18778_v32, %v4502_v5  ;;  %v11406_v33 = vor.u32 %v13841_v2, %v11405_v40  ;;  %v11666_v12 = vor.u32 %v13901_v41, %v11663_v31  ;;  %v13877_v40 = vld [vmem:[%s22350_s1 + $0x314] sm:$0xf]  ;;  %v11501_v31 = vld [vmem:[%s22350_s1 + $0x290] sm:$0xf] }
 0x3a0   :  { %v4399_v30 = vadd.f32 %v10633_v27, %v4364_v54  ;;  %5380 = vmatpush.bf16.msrb.mxu1 %v11462_v23  ;;  %v4482_v54 = vor.u32 1.1754944e-38, %v4481_v47  ;;  %v4489_v60 = vadd.f32 %v18713_v58, %v4488_v59  ;;  %v4452_v16 = vor.u32 1.1754944e-38, %v4451_v63  ;;  %v13825_v47 = vld [vmem:[%s22350_s1 + $0x16c] sm:$0xf0]  ;;  %v13893_v59 = vld [vmem:[%s22350_s1 + $0x394] sm:$0xf] }
 0x3a1   :  { %v4497_v37 = vor.u32 1.1754944e-38, %v4496_v50  ;;  %v4504_v55 = vadd.f32 %v18778_v32, %v4503_v9  ;;  %v11277_v50 = vld [vmem:[%s22350_s1 + $0xd0] sm:$0xf]  ;;  %v13805_v9 = vld [vmem:[%s22350_s1 + $0xd4] sm:$0xf] }
 0x3a2   :  { %14411 = vtanh.f32 %v4399_v30  ;;  %v4483_v20 = vsel %vm4480_vm6, %v4482_v54, %v4478_v49  ;;  %v4453_v19 = vsel %vm4450_vm8, %v4452_v16, %v4448_v11  ;;  %v4493_v28 = vsel %vm4492_vm10, %v18713_v58, %v4489_v60  ;;  %v11407_v58 = vld [vmem:[%s22350_s1 + $0x1f0] sm:$0xf0]  ;;  %v11597_v11 = vld [vmem:[%s22350_s1 + $0x350] sm:$0xf] }
 0x3a3   :  { %v4389_v13 = vpop.f32.mrf.mxu3  ;;  %v4518_v30 = vmul.f32 %v4483_v20, %v17869_v62  ;;  %v13837_v62 = vld [vmem:[%s22350_s1 + $0x1d4] sm:$0xf]  ;;  %v4498_v29 = vsel %vm4495_vm11, %v4497_v37, %v4493_v28  ;;  %v11565_v28 = vld [vmem:[%s22350_s1 + $0x310] sm:$0xf] }
 0x3a4   :  { %v4390_v6 = vadd.f32 %v4389_v13, %v4376_v15  ;;  %v4438_v15 = vsel %vm18768_vm14, %v4437_v4, %v4433_v43  ;;  %5381 = vmatpush.bf16.msrb.mxu1 %v11430_v24  ;;  %vm18864_vm14 = vmor %vm4505_vm13, %vm4506_vm12  ;;  %v11410_v17 = vor.u32 %v13837_v62, %v11407_v58  ;;  %v11373_v43 = vld [vmem:[%s22350_s1 + $0x190] sm:$0xf]  ;;  %v13813_v49 = vld [vmem:[%s22350_s1 + $0x114] sm:$0xf] }
 0x3a5   :  { %v4365_v44 = vpop.f32.mrf.mxu1  ;;  %v4378_v27 = vpop.f32.mrf.mxu2  ;;  %v4508_v13 = vsel %vm18864_vm14, %v18778_v32, %v4504_v55  ;;  %v11661_v32 = vld [vmem:[%s22350_s1 + $0x3d0] sm:$0xf]  ;;  %v11374_v34 = vor.u32 %v13833_v26, %v11373_v43  ;;  %v11311_v54 = vld [vmem:[%s22350_s1 + $0x130] sm:$0xf0] }
 0x3a6   :  { %v4400_v51 = vadd.f32 %v10634_v38, %v4390_v6  ;;  %v4513_v24 = vsel %vm4510_vm15, %v4512_v39, %v4508_v13  ;;  %v11378_v44 = vor.u32 %v13829_v3, %v11375_v36  ;;  %v11341_v27 = vld [vmem:[%s22350_s1 + $0x150] sm:$0xf]  ;;  %v13885_v60 = vld [vmem:[%s22350_s1 + $0x354] sm:$0xf]  ;;  %v11314_v42 = vor.u32 %v13813_v49, %v11311_v54 }
 0x3a7   :  { %v11342_v63 = vor.u32 %v13825_v47, %v11341_v27  ;;  %v11599_v16 = vld [vmem:[%s22350_s1 + $0x370] sm:$0xf0]  ;;  %v13881_v37 = vld [vmem:[%s22350_s1 + $0x32c] sm:$0xf0] }
 0x3a8   :  { %v14412_v57 = vpop.eup %14411  ;;  %14413 = vtanh.f32 %v4400_v51  ;;  %v11662_v51 = vor.u32 %v13905_v14, %v11661_v32  ;;  %v11567_v55 = vld [vmem:[%s22350_s1 + $0x330] sm:$0xf0]  ;;  %v11245_v58 = vld [vmem:[%s22350_s1 + $0x90] sm:$0xf]  ;;  %v11566_v53 = vor.u32 %v13881_v37, %v11565_v28  ;;  %v13902_v28 = vld [vmem:[%s22350_s1 + $0x3dc] sm:$0xf] }
 0x3a9   :  { %v4519_v1 = vmul.f32 %v14412_v57, %v4438_v15  ;;  %v13897_v57 = vld [vmem:[%s22350_s1 + $0x3ac] sm:$0xf0]  ;;  %v11631_v15 = vld [vmem:[%s22350_s1 + $0x3b0] sm:$0xf0]  ;;  %v11671_v37 = vld [vmem:[%s22350_s1 + $0x3f8] sm:$0xf0] }
 0x3aa   :  { %v11630_v5 = vor.u32 %v13897_v57, %v11629_v56  ;;  %v11634_v7 = vor.u32 %v13893_v59, %v11631_v15  ;;  %v11533_v38 = vld [vmem:[%s22350_s1 + $0x2d0] sm:$0xf]  ;;  %v11535_v43 = vld [vmem:[%s22350_s1 + $0x2f0] sm:$0xf0]  ;;  %v13838_v59 = vld [vmem:[%s22350_s1 + $0x1dc] sm:$0xf] }
 0x3ab   :  { %v18830_v8 = vadd.f32 %v4519_v1, %v4517_v0  ;;  %v4391_v52 = vpop.f32.mrf.mxu3  ;;  %v11346_v0 = vor.u32 %v13821_v48, %v11343_v10  ;;  %v11309_v1 = vld [vmem:[%s22350_s1 + $0x110] sm:$0xf]  ;;  %v13789_v39 = vld [vmem:[%s22350_s1 + $0x54] sm:$0xf]  ;;  %v11415_v15 = vld [vmem:[%s22350_s1 + $0x1f8] sm:$0xf0] }
 0x3ac   :  { %v13889_v52 = vld [vmem:[%s22350_s1 + $0x36c] sm:$0xf0]  ;;  %v11310_v20 = vor.u32 %v13817_v21, %v11309_v1  ;;  %v11215_v32 = vld [vmem:[%s22350_s1 + $0x70] sm:$0xf0] }
 0x3ad   :  { %14415 = vtanh.f32 %v18830_v8  ;;  %v11213_v3 = vld [vmem:[%s22350_s1 + $0x50] sm:$0xf]  ;;  %v11218_v27 = vor.u32 %v13789_v39, %v11215_v32  ;;  %v13781_v48 = vld [vmem:[%s22350_s1 + $0x14] sm:$0xf]  ;;  %v13814_v39 = vld [vmem:[%s22350_s1 + $0x11c] sm:$0xf] }
 0x3ae   :  { %v14414_v18 = vpop.eup %14413  ;;  %v13793_v36 = vld [vmem:[%s22350_s1 + $0x6c] sm:$0xf0]  ;;  %v11183_v10 = vld [vmem:[%s22350_s1 + $0x30] sm:$0xf0]  ;;  %v11319_v32 = vld [vmem:[%s22350_s1 + $0x138] sm:$0xf0] }
 0x3af   :  { %v4520_v35 = vmul.f32 %v14414_v18, %v4453_v19  ;;  %v13809_v18 = vld [vmem:[%s22350_s1 + $0xec] sm:$0xf0]  ;;  %v11279_v19 = vld [vmem:[%s22350_s1 + $0xf0] sm:$0xf0]  ;;  %v11186_v54 = vor.u32 %v13781_v48, %v11183_v10  ;;  %v13806_v48 = vld [vmem:[%s22350_s1 + $0xdc] sm:$0xf] }
 0x3b0   :  { %v11278_v2 = vor.u32 %v13809_v18, %v11277_v50  ;;  %v11282_v62 = vor.u32 %v13805_v9, %v11279_v19  ;;  %v13785_v47 = vld [vmem:[%s22350_s1 + $0x2c] sm:$0xf0]  ;;  %v13853_v1 = vld [vmem:[%s22350_s1 + $0x254] sm:$0xf]  ;;  %v11287_v10 = vld [vmem:[%s22350_s1 + $0xf8] sm:$0xf0] }
 0x3b1   :  { %v18844_v22 = vadd.f32 %v4520_v35, %v4518_v30  ;;  %v11598_v30 = vor.u32 %v13889_v52, %v11597_v11  ;;  %v11602_v35 = vor.u32 %v13885_v60, %v11599_v16  ;;  %v11471_v21 = vld [vmem:[%s22350_s1 + $0x270] sm:$0xf0]  ;;  %v11381_v11 = vld [vmem:[%s22350_s1 + $0x198] sm:$0xf]  ;;  %v13830_v60 = vld [vmem:[%s22350_s1 + $0x19c] sm:$0xf] }
 0x3b2   :  { %v13834_v52 = vld [vmem:[%s22350_s1 + $0x1b4] sm:$0xf0]  ;;  %v11437_v50 = vld [vmem:[%s22350_s1 + $0x210] sm:$0xf]  ;;  %v13845_v9 = vld [vmem:[%s22350_s1 + $0x214] sm:$0xf] }
 0x3b3   :  { %v14416_v23 = vpop.eup %14415  ;;  %14417 = vtanh.f32 %v18844_v22  ;;  %v13849_v18 = vld [vmem:[%s22350_s1 + $0x22c] sm:$0xf0]  ;;  %v11439_v19 = vld [vmem:[%s22350_s1 + $0x230] sm:$0xf0] }
 0x3b4   :  { %v4525_v4 = vmul.f32 %v14416_v23, %v4498_v29  ;;  %v13801_v23 = vld [vmem:[%s22350_s1 + $0xac] sm:$0xf0]  ;;  %v13797_v29 = vld [vmem:[%s22350_s1 + $0x94] sm:$0xf] }
 0x3b5   :  { %v11246_v26 = vor.u32 %v13801_v23, %v11245_v58  ;;  %v11250_v13 = vor.u32 %v13797_v29, %v11247_v46  ;;  %v11442_v58 = vor.u32 %v13845_v9, %v11439_v19  ;;  %v13826_v23 = vld [vmem:[%s22350_s1 + $0x174] sm:$0xf0]  ;;  %v13822_v29 = vld [vmem:[%s22350_s1 + $0x15c] sm:$0xf] }
 0x3b6   :  { %11153 = vst [vmem:[%s22354_s4 + $0x30] sm:$0xff] %v4525_v4  ;;  %v18880_v25 = vpack.c.bf16 %v4525_v4, %v4525_v4  ;;  %v11570_v4 = vor.u32 %v13877_v40, %v11567_v55  ;;  %v11382_v40 = vor.u32 %v13834_v52, %v11381_v11  ;;  %v11351_v46 = vld [vmem:[%s22350_s1 + $0x178] sm:$0xf0]  ;;  %v11541_v11 = vld [vmem:[%s22350_s1 + $0x2d8] sm:$0xf] }
 0x3b7   :  { %v13874_v52 = vld [vmem:[%s22350_s1 + $0x2f4] sm:$0xf0]  ;;  %v13790_v9 = vld [vmem:[%s22350_s1 + $0x5c] sm:$0xf] }
 0x3b8   :  { %5317 = vmatmul.bf16.vlgmr.msra.gmra.mxu0 %v18880_v25  ;;  %5343 = vmatmul.bf16.vlgmr.msra.gmra.mxu2 %v18880_v25  ;;  %v11223_v19 = vld [vmem:[%s22350_s1 + $0x78] sm:$0xf0] }
 0x3b9   :  { %v14418_v6 = vpop.eup %14417  ;;  %5413 = vmatpush.bf16.msra.mxu0 %v11406_v33  ;;  %5439 = vmatpush.bf16.msra.mxu2 %v11410_v17  ;;  %v13873_v33 = vld [vmem:[%s22350_s1 + $0x2ec] sm:$0xf0]  ;;  %v13869_v17 = vld [vmem:[%s22350_s1 + $0x2d4] sm:$0xf] }
 0x3ba   :  { %v4526_v45 = vmul.f32 %v14418_v6, %v4513_v24  ;;  %v11534_v14 = vor.u32 %v13873_v33, %v11533_v38  ;;  %v11538_v41 = vor.u32 %v13869_v17, %v11535_v43  ;;  %v13865_v6 = vld [vmem:[%s22350_s1 + $0x2ac] sm:$0xf0]  ;;  %v13861_v24 = vld [vmem:[%s22350_s1 + $0x294] sm:$0xf]  ;;  %v11637_v38 = vld [vmem:[%s22350_s1 + $0x398] sm:$0xf] }
 0x3bb   :  { %v11502_v56 = vor.u32 %v13865_v6, %v11501_v31  ;;  %v13898_v33 = vld [vmem:[%s22350_s1 + $0x3b4] sm:$0xf0]  ;;  %v13894_v17 = vld [vmem:[%s22350_s1 + $0x39c] sm:$0xf] }
 0x3bc   :  { %11154 = vst [vmem:[%s22354_s4 + $0x38] sm:$0xff] %v4526_v45  ;;  %v18923_v61 = vpack.c.bf16 %v4526_v45, %v4526_v45  ;;  %v11181_v45 = vld [vmem:[%s22350_s1 + $0x10] sm:$0xf]  ;;  %v11639_v43 = vld [vmem:[%s22350_s1 + $0x3b8] sm:$0xf0] }
 0x3bd   :  { %5414 = vmatpush.bf16.msra.mxu0 %v11374_v34  ;;  %5440 = vmatpush.bf16.msra.mxu2 %v11378_v44  ;;  %v11503_v34 = vld [vmem:[%s22350_s1 + $0x2b0] sm:$0xf0]  ;;  %v11214_v44 = vor.u32 %v13793_v36, %v11213_v3  ;;  %v11182_v49 = vor.u32 %v13785_v47, %v11181_v45  ;;  %v11317_v3 = vld [vmem:[%s22350_s1 + $0x118] sm:$0xf] }
 0x3be   :  { %5330 = vmatmul.bf16.vlgmr.msra.gmra.mxu1 %v18923_v61  ;;  %5356 = vmatmul.bf16.vlgmr.msra.gmra.mxu3 %v18923_v61  ;;  %v11506_v57 = vor.u32 %v13861_v24, %v11503_v34  ;;  %v13818_v36 = vld [vmem:[%s22350_s1 + $0x134] sm:$0xf0]  ;;  %v13886_v24 = vld [vmem:[%s22350_s1 + $0x35c] sm:$0xf] }
 0x3bf   :  { %5426 = vmatpush.bf16.msra.mxu1 %v11662_v51  ;;  %5452 = vmatpush.bf16.msra.mxu3 %v11666_v12  ;;  %v11413_v51 = vld [vmem:[%s22350_s1 + $0x1d8] sm:$0xf]  ;;  %v11607_v34 = vld [vmem:[%s22350_s1 + $0x378] sm:$0xf0] }
 0x3c0   :  { %v13842_v12 = vld [vmem:[%s22350_s1 + $0x1f4] sm:$0xf0] }
 0x3c1   :  { %5415 = vmatpush.bf16.msra.mxu0 %v11342_v63  ;;  %5441 = vmatpush.bf16.msra.mxu2 %v11346_v0  ;;  %v11469_v63 = vld [vmem:[%s22350_s1 + $0x250] sm:$0xf]  ;;  %v11605_v31 = vld [vmem:[%s22350_s1 + $0x358] sm:$0xf] }
 0x3c2   :  { %v13857_v0 = vld [vmem:[%s22350_s1 + $0x26c] sm:$0xf0]  ;;  %v13890_v6 = vld [vmem:[%s22350_s1 + $0x374] sm:$0xf0] }
 0x3c3   :  { %5427 = vmatpush.bf16.msra.mxu1 %v11630_v5  ;;  %5453 = vmatpush.bf16.msra.mxu3 %v11634_v7  ;;  %v11414_v5 = vor.u32 %v13842_v12, %v11413_v51  ;;  %v11418_v7 = vor.u32 %v13838_v59, %v11415_v15  ;;  %v11470_v16 = vor.u32 %v13857_v0, %v11469_v63  ;;  %v11285_v45 = vld [vmem:[%s22350_s1 + $0xd8] sm:$0xf]  ;;  %v13878_v59 = vld [vmem:[%s22350_s1 + $0x31c] sm:$0xf] }
 0x3c4   :  { %v13810_v47 = vld [vmem:[%s22350_s1 + $0xf4] sm:$0xf0]  ;;  %v11606_v51 = vor.u32 %v13890_v6, %v11605_v31  ;;  %v11610_v12 = vor.u32 %v13886_v24, %v11607_v34  ;;  %v11575_v15 = vld [vmem:[%s22350_s1 + $0x338] sm:$0xf0]  ;;  %v11290_v0 = vor.u32 %v13806_v48, %v11287_v10 }
 0x3c5   :  { %5416 = vmatpush.bf16.msra.mxu0 %v11310_v20  ;;  %5442 = vmatpush.bf16.msra.mxu2 %v11314_v42  ;;  %v11474_v20 = vor.u32 %v13853_v1, %v11471_v21  ;;  %v11383_v42 = vld [vmem:[%s22350_s1 + $0x1b8] sm:$0xf0]  ;;  %v11286_v63 = vor.u32 %v13810_v47, %v11285_v45  ;;  %v11253_v1 = vld [vmem:[%s22350_s1 + $0x98] sm:$0xf]  ;;  %v11917_v45 = vld [vmem:[%s22350_s1 + $0x1c0] sm:$0xf] }
 0x3c6   :  { %v11386_v55 = vor.u32 %v13830_v60, %v11383_v42  ;;  %v13802_v21 = vld [vmem:[%s22350_s1 + $0xb4] sm:$0xf0]  ;;  %v13870_v60 = vld [vmem:[%s22350_s1 + $0x2dc] sm:$0xf]  ;;  %v13967_v47 = vld [vmem:[%s22350_s1 + $0x1dc] sm:$0xf0] }
 0x3c7   :  { %5428 = vmatpush.bf16.msra.mxu1 %v11598_v30  ;;  %5454 = vmatpush.bf16.msra.mxu3 %v11602_v35  ;;  %v11669_v30 = vld [vmem:[%s22350_s1 + $0x3d8] sm:$0xf]  ;;  %v11918_v48 = vor.u32 %v13967_v47, %v11917_v45  ;;  %v12077_v47 = vld [vmem:[%s22350_s1 + $0x300] sm:$0xf] }
 0x3c8   :  { %5369 = vmatmul.bf16.vlgmr.msrb.gmra.mxu0 %v18880_v25  ;;  %5395 = vmatmul.bf16.vlgmr.msrb.gmra.mxu2 %v18880_v25  ;;  %v13906_v35 = vld [vmem:[%s22350_s1 + $0x3f4] sm:$0xf0] }
 0x3c9   :  { %5417 = vmatpush.bf16.msra.mxu0 %v11278_v2  ;;  %5443 = vmatpush.bf16.msra.mxu2 %v11282_v62  ;;  %v11349_v2 = vld [vmem:[%s22350_s1 + $0x158] sm:$0xf]  ;;  %v11438_v62 = vor.u32 %v13849_v18, %v11437_v50 }
 0x3ca   :  { %v11221_v50 = vld [vmem:[%s22350_s1 + $0x58] sm:$0xf] }
 0x3cb   :  { %5429 = vmatpush.bf16.msra.mxu1 %v11566_v53  ;;  %5455 = vmatpush.bf16.msra.mxu3 %v11570_v4  ;;  %v11670_v53 = vor.u32 %v13906_v35, %v11669_v30  ;;  %v11674_v4 = vor.u32 %v13902_v28, %v11671_v37  ;;  %v13794_v18 = vld [vmem:[%s22350_s1 + $0x74] sm:$0xf0]  ;;  %v11542_v30 = vor.u32 %v13874_v52, %v11541_v11 }
 0x3cc   :  { %v11509_v28 = vld [vmem:[%s22350_s1 + $0x298] sm:$0xf] }
 0x3cd   :  { %5418 = vmatpush.bf16.msra.mxu0 %v11246_v26  ;;  %5444 = vmatpush.bf16.msra.mxu2 %v11250_v13  ;;  %v11350_v26 = vor.u32 %v13826_v23, %v11349_v2  ;;  %v11354_v13 = vor.u32 %v13822_v29, %v11351_v46  ;;  %v13866_v37 = vld [vmem:[%s22350_s1 + $0x2b4] sm:$0xf0]  ;;  %v11222_v2 = vor.u32 %v13794_v18, %v11221_v50  ;;  %v13782_v29 = vld [vmem:[%s22350_s1 + $0x1c] sm:$0xf]  ;;  %v11855_v50 = vld [vmem:[%s22350_s1 + $0x160] sm:$0xf0] }
 0x3ce   :  { %5382 = vmatmul.bf16.vlgmr.msrb.gmra.mxu1 %v18923_v61  ;;  %5408 = vmatmul.bf16.vlgmr.msrb.gmra.mxu3 %v18923_v61  ;;  %v13786_v23 = vld [vmem:[%s22350_s1 + $0x34] sm:$0xf0]  ;;  %v11191_v46 = vld [vmem:[%s22350_s1 + $0x38] sm:$0xf0] }
 0x3cf   :  { %5430 = vmatpush.bf16.msra.mxu1 %v11534_v14  ;;  %5456 = vmatpush.bf16.msra.mxu3 %v11538_v41  ;;  %v11638_v14 = vor.u32 %v13898_v33, %v11637_v38  ;;  %v11642_v41 = vor.u32 %v13894_v17, %v11639_v43  ;;  %v11477_v38 = vld [vmem:[%s22350_s1 + $0x258] sm:$0xf]  ;;  %v13854_v17 = vld [vmem:[%s22350_s1 + $0x25c] sm:$0xf] }
 0x3d0   :  { %v13858_v33 = vld [vmem:[%s22350_s1 + $0x274] sm:$0xf0]  ;;  %v11479_v43 = vld [vmem:[%s22350_s1 + $0x278] sm:$0xf0] }
 0x3d1   :  { %5419 = vmatpush.bf16.msra.mxu0 %v11214_v44  ;;  %5445 = vmatpush.bf16.msra.mxu2 %v11218_v27  ;;  %v11318_v44 = vor.u32 %v13818_v36, %v11317_v3  ;;  %v11322_v27 = vor.u32 %v13814_v39, %v11319_v32  ;;  %v11478_v3 = vor.u32 %v13858_v33, %v11477_v38  ;;  %v11445_v39 = vld [vmem:[%s22350_s1 + $0x218] sm:$0xf] }
 0x3d2   :  { %v11482_v36 = vor.u32 %v13854_v17, %v11479_v43  ;;  %v13850_v32 = vld [vmem:[%s22350_s1 + $0x234] sm:$0xf0]  ;;  %v12109_v17 = vld [vmem:[%s22350_s1 + $0x340] sm:$0xf] }
 0x3d3   :  { %5431 = vmatpush.bf16.msra.mxu1 %v11502_v56  ;;  %5457 = vmatpush.bf16.msra.mxu3 %v11506_v57  ;;  %v11573_v56 = vld [vmem:[%s22350_s1 + $0x318] sm:$0xf]  ;;  %v11446_v31 = vor.u32 %v13850_v32, %v11445_v39  ;;  %v14015_v43 = vld [vmem:[%s22350_s1 + $0x35c] sm:$0xf0]  ;;  %v12111_v39 = vld [vmem:[%s22350_s1 + $0x360] sm:$0xf0] }
 0x3d4   :  { %v13882_v57 = vld [vmem:[%s22350_s1 + $0x334] sm:$0xf0] }
 0x3d5   :  { %5420 = vmatpush.bf16.msra.mxu0 %v11182_v49  ;;  %5446 = vmatpush.bf16.msra.mxu2 %v11186_v54  ;;  %v13798_v49 = vld [vmem:[%s22350_s1 + $0x9c] sm:$0xf] }
 0x3d6   :  { %v11255_v54 = vld [vmem:[%s22350_s1 + $0xb8] sm:$0xf0] }
 0x3d7   :  { %5432 = vmatpush.bf16.msra.mxu1 %v11470_v16  ;;  %5458 = vmatpush.bf16.msra.mxu3 %v11474_v20  ;;  %v11543_v16 = vld [vmem:[%s22350_s1 + $0x2f8] sm:$0xf0]  ;;  %v11254_v20 = vor.u32 %v13802_v21, %v11253_v1  ;;  %v11258_v42 = vor.u32 %v13798_v49, %v11255_v54  ;;  %v12173_v21 = vld [vmem:[%s22350_s1 + $0x3c0] sm:$0xf]  ;;  %v14027_v54 = vld [vmem:[%s22350_s1 + $0x3c4] sm:$0xf] }
 0x3d8   :  { %5421 = vmatmul.bf16.vlgmr.msra.gmra.mxu0 %v18880_v25  ;;  %5447 = vmatmul.bf16.vlgmr.msra.gmra.mxu2 %v18880_v25  ;;  %v11546_v35 = vor.u32 %v13870_v60, %v11543_v16  ;;  %v14031_v49 = vld [vmem:[%s22350_s1 + $0x3dc] sm:$0xf0] }
 0x3d9   :  { %5465 = vmatpush.bf16.msrb.mxu0 %v11414_v5  ;;  %5491 = vmatpush.bf16.msrb.mxu2 %v11418_v7  ;;  %v11574_v5 = vor.u32 %v13882_v57, %v11573_v56  ;;  %v11578_v7 = vor.u32 %v13878_v59, %v11575_v15  ;;  %v13959_v56 = vld [vmem:[%s22350_s1 + $0x19c] sm:$0xf0]  ;;  %v13955_v57 = vld [vmem:[%s22350_s1 + $0x184] sm:$0xf] }
 0x3da   :  { %v11887_v15 = vld [vmem:[%s22350_s1 + $0x1a0] sm:$0xf0]  ;;  %v11853_v60 = vld [vmem:[%s22350_s1 + $0x140] sm:$0xf] }
 0x3db   :  { %5433 = vmatpush.bf16.msra.mxu1 %v11438_v62  ;;  %5459 = vmatpush.bf16.msra.mxu3 %v11442_v58  ;;  %v11226_v62 = vor.u32 %v13790_v9, %v11223_v19  ;;  %v11189_v58 = vld [vmem:[%s22350_s1 + $0x18] sm:$0xf]  ;;  %v11890_v1 = vor.u32 %v13955_v57, %v11887_v15  ;;  %v13951_v16 = vld [vmem:[%s22350_s1 + $0x15c] sm:$0xf0] }
 0x3dc   :  { %v12141_v9 = vld [vmem:[%s22350_s1 + $0x380] sm:$0xf] }
 0x3dd   :  { %5466 = vmatpush.bf16.msrb.mxu0 %v11382_v40  ;;  %5492 = vmatpush.bf16.msrb.mxu2 %v11386_v55  ;;  %v13862_v40 = vld [vmem:[%s22350_s1 + $0x29c] sm:$0xf]  ;;  %v14023_v19 = vld [vmem:[%s22350_s1 + $0x39c] sm:$0xf0] }
 0x3de   :  { %5434 = vmatmul.bf16.vlgmr.msra.gmra.mxu1 %v18923_v61  ;;  %5460 = vmatmul.bf16.vlgmr.msra.gmra.mxu3 %v18923_v61  ;;  %v11511_v55 = vld [vmem:[%s22350_s1 + $0x2b8] sm:$0xf0]  ;;  %v13927_v15 = vld [vmem:[%s22350_s1 + $0x9c] sm:$0xf0] }
 0x3df   :  { %5478 = vmatpush.bf16.msrb.mxu1 %v11670_v53  ;;  %5504 = vmatpush.bf16.msrb.mxu3 %v11674_v4  ;;  %v11510_v53 = vor.u32 %v13866_v37, %v11509_v28  ;;  %v11514_v4 = vor.u32 %v13862_v40, %v11511_v55  ;;  %v12142_v28 = vor.u32 %v14023_v19, %v12141_v9  ;;  %v12143_v37 = vld [vmem:[%s22350_s1 + $0x3a0] sm:$0xf0]  ;;  %v11725_v19 = vld [vmem:[%s22350_s1 + $0x40] sm:$0xf] }
 0x3e0   :  { %v11155_v40 = vld [vmem:[%s22352_s0 + $0x100] sm:$0xff] }
 0x3e1   :  { %5467 = vmatpush.bf16.msrb.mxu0 %v11350_v26  ;;  %5493 = vmatpush.bf16.msrb.mxu2 %v11354_v13  ;;  %v11190_v26 = vor.u32 %v13786_v23, %v11189_v58  ;;  %v11194_v13 = vor.u32 %v13782_v29, %v11191_v46  ;;  %v13943_v58 = vld [vmem:[%s22350_s1 + $0x11c] sm:$0xf0]  ;;  %v13939_v29 = vld [vmem:[%s22350_s1 + $0x104] sm:$0xf] }
 0x3e2   :  { %v11823_v46 = vld [vmem:[%s22350_s1 + $0x120] sm:$0xf0] }
 0x3e3   :  { %5479 = vmatpush.bf16.msrb.mxu1 %v11638_v14  ;;  %5505 = vmatpush.bf16.msrb.mxu3 %v11642_v41  ;;  %v13846_v14 = vld [vmem:[%s22350_s1 + $0x21c] sm:$0xf]  ;;  %v11826_v33 = vor.u32 %v13939_v29, %v11823_v46  ;;  %v12015_v29 = vld [vmem:[%s22350_s1 + $0x2a0] sm:$0xf0] }
 0x3e4   :  { %v11447_v41 = vld [vmem:[%s22350_s1 + $0x238] sm:$0xf0] }
 0x3e5   :  { %5468 = vmatpush.bf16.msrb.mxu0 %v11318_v44  ;;  %5494 = vmatpush.bf16.msrb.mxu2 %v11322_v27  ;;  %v11450_v6 = vor.u32 %v13846_v14, %v11447_v41  ;;  %v11789_v41 = vld [vmem:[%s22350_s1 + $0xc0] sm:$0xf] }
 0x3e7   :  { %5480 = vmatpush.bf16.msrb.mxu1 %v11606_v51  ;;  %5506 = vmatpush.bf16.msrb.mxu3 %v11610_v12  ;;  %v11885_v12 = vld [vmem:[%s22350_s1 + $0x180] sm:$0xf] }
 0x3e8   :  { %v11886_v59 = vor.u32 %v13959_v56, %v11885_v12  ;;  %v12079_v12 = vld [vmem:[%s22350_s1 + $0x320] sm:$0xf0] }
 0x3e9   :  { %5469 = vmatpush.bf16.msrb.mxu0 %v11286_v63  ;;  %5495 = vmatpush.bf16.msrb.mxu2 %v11290_v0 }
 0x3eb   :  { %5481 = vmatpush.bf16.msrb.mxu1 %v11574_v5  ;;  %5507 = vmatpush.bf16.msrb.mxu3 %v11578_v7  ;;  %v12174_v5 = vor.u32 %v14031_v49, %v12173_v21  ;;  %v12175_v7 = vld [vmem:[%s22350_s1 + $0x3e0] sm:$0xf0]  ;;  %v11158_v49 = vld [vmem:[%s22352_s0 + $0x118] sm:$0xff] }
 0x3ec   :  { %v12178_v52 = vor.u32 %v14027_v54, %v12175_v7  ;;  %v11759_v7 = vld [vmem:[%s22350_s1 + $0xa0] sm:$0xf0] }
 0x3ed   :  { %5470 = vmatpush.bf16.msrb.mxu0 %v11254_v20  ;;  %5496 = vmatpush.bf16.msrb.mxu2 %v11258_v42  ;;  %v11854_v20 = vor.u32 %v13951_v16, %v11853_v60  ;;  %v13947_v42 = vld [vmem:[%s22350_s1 + $0x144] sm:$0xf] }
 0x3ee   :  { %v11858_v18 = vor.u32 %v13947_v42, %v11855_v50  ;;  %v13995_v16 = vld [vmem:[%s22350_s1 + $0x2c4] sm:$0xf] }
 0x3ef   :  { %5482 = vmatpush.bf16.msrb.mxu1 %v11542_v30  ;;  %5508 = vmatpush.bf16.msrb.mxu3 %v11546_v35  ;;  %v14019_v30 = vld [vmem:[%s22350_s1 + $0x384] sm:$0xf] }
 0x3f0   :  { %v12047_v42 = vld [vmem:[%s22350_s1 + $0x2e0] sm:$0xf0] }
 0x3f1   :  { %5471 = vmatpush.bf16.msrb.mxu0 %v11222_v2  ;;  %5497 = vmatpush.bf16.msrb.mxu2 %v11226_v62  ;;  %v12146_v2 = vor.u32 %v14019_v30, %v12143_v37  ;;  %v11821_v62 = vld [vmem:[%s22350_s1 + $0x100] sm:$0xf]  ;;  %v12050_v9 = vor.u32 %v13995_v16, %v12047_v42  ;;  %v13971_v16 = vld [vmem:[%s22350_s1 + $0x204] sm:$0xf]  ;;  %v12181_v42 = vld [vmem:[%s22350_s1 + $0x3c8] sm:$0xf] }
 0x3f2   :  { %v11822_v23 = vor.u32 %v13943_v58, %v11821_v62  ;;  %v13919_v30 = vld [vmem:[%s22350_s1 + $0x5c] sm:$0xf0]  ;;  %v13987_v58 = vld [vmem:[%s22350_s1 + $0x284] sm:$0xf] }
 0x3f3   :  { %5483 = vmatpush.bf16.msrb.mxu1 %v11510_v53  ;;  %5509 = vmatpush.bf16.msrb.mxu3 %v11514_v4  ;;  %v11157_v53 = vld [vmem:[%s22352_s0 + $0x110] sm:$0xff]  ;;  %v11726_v37 = vor.u32 %v13919_v30, %v11725_v19  ;;  %v13991_v62 = vld [vmem:[%s22350_s1 + $0x29c] sm:$0xf0]  ;;  %v14032_v30 = vld [vmem:[%s22350_s1 + $0x3e4] sm:$0xf0] }
 0x3f5   :  { %5472 = vmatpush.bf16.msrb.mxu0 %v11190_v26  ;;  %5498 = vmatpush.bf16.msrb.mxu2 %v11194_v13 }
 0x3f7   :  { %5484 = vmatpush.bf16.msrb.mxu1 %v11478_v3  ;;  %5510 = vmatpush.bf16.msrb.mxu3 %v11482_v36  ;;  %v12110_v3 = vor.u32 %v14015_v43, %v12109_v17  ;;  %v14011_v36 = vld [vmem:[%s22350_s1 + $0x344] sm:$0xf] }
 0x3f8   :  { %5473 = vmatmul.bf16.vlgmr.msrb.gmra.mxu0 %v18880_v25  ;;  %5499 = vmatmul.bf16.vlgmr.msrb.gmra.mxu2 %v18880_v25  ;;  %v13963_v25 = vld [vmem:[%s22350_s1 + $0x1c4] sm:$0xf]  ;;  %v12114_v14 = vor.u32 %v14011_v36, %v12111_v39 }
 0x3f9   :  { %6433 = vmatpush.bf16.msra.mxu0 %v11918_v48 }
 0x3fb   :  { %5485 = vmatpush.bf16.msrb.mxu1 %v11446_v31  ;;  %5511 = vmatpush.bf16.msrb.mxu3 %v11450_v6  ;;  %v13935_v31 = vld [vmem:[%s22350_s1 + $0xdc] sm:$0xf0]  ;;  %v13931_v6 = vld [vmem:[%s22350_s1 + $0xc4] sm:$0xf] }
 0x3fd   :  { %6434 = vmatpush.bf16.msra.mxu0 %v11886_v59  ;;  %v11757_v59 = vld [vmem:[%s22350_s1 + $0x80] sm:$0xf] }
 0x3fe   :  { %5486 = vmatmul.bf16.vlgmr.msrb.gmra.mxu1 %v18923_v61  ;;  %5512 = vmatmul.bf16.vlgmr.msrb.gmra.mxu3 %v18923_v61  ;;  %v11919_v61 = vld [vmem:[%s22350_s1 + $0x1e0] sm:$0xf0] }
 0x3ff   :  { %v11922_v10 = vor.u32 %v13963_v25, %v11919_v61  ;;  %6446 = vmatpush.bf16.msra.mxu1 %v12174_v5  ;;  %6472 = vmatpush.bf16.msra.mxu3 %v12178_v52  ;;  %v14007_v25 = vld [vmem:[%s22350_s1 + $0x31c] sm:$0xf0]  ;;  %v11758_v5 = vor.u32 %v13927_v15, %v11757_v59 }
 0x400   :  { %v12078_v61 = vor.u32 %v14007_v25, %v12077_v47 }
 0x401   :  { %6459 = vmatpush.bf16.msra.mxu2 %v11922_v10  ;;  %6435 = vmatpush.bf16.msra.mxu0 %v11854_v20  ;;  %v14003_v10 = vld [vmem:[%s22350_s1 + $0x304] sm:$0xf] }
 0x402   :  { %v12082_v57 = vor.u32 %v14003_v10, %v12079_v12  ;;  %v13979_v10 = vld [vmem:[%s22350_s1 + $0x244] sm:$0xf] }
 0x403   :  { %6447 = vmatpush.bf16.msra.mxu1 %v12142_v28  ;;  %6473 = vmatpush.bf16.msra.mxu3 %v12146_v2  ;;  %v12013_v2 = vld [vmem:[%s22350_s1 + $0x280] sm:$0xf] }
 0x405   :  { %6460 = vmatpush.bf16.msra.mxu2 %v11890_v1  ;;  %6436 = vmatpush.bf16.msra.mxu0 %v11822_v23  ;;  %v12014_v23 = vor.u32 %v13991_v62, %v12013_v2 }
 0x407   :  { %6448 = vmatpush.bf16.msra.mxu1 %v12110_v3  ;;  %6474 = vmatpush.bf16.msra.mxu3 %v12114_v14  ;;  %v11159_v3 = vld [vmem:[%s22352_s0 + $0x120] sm:$0xff]  ;;  %v13968_v14 = vld [vmem:[%s22350_s1 + $0x1e4] sm:$0xf0] }
 0x409   :  { %6461 = vmatpush.bf16.msra.mxu2 %v11858_v18 }
 0x40b   :  { %6449 = vmatpush.bf16.msra.mxu1 %v12078_v61  ;;  %6475 = vmatpush.bf16.msra.mxu3 %v12082_v57  ;;  %v13983_v61 = vld [vmem:[%s22350_s1 + $0x25c] sm:$0xf0]  ;;  %v11893_v57 = vld [vmem:[%s22350_s1 + $0x188] sm:$0xf] }
 0x40d   :  { %6462 = vmatpush.bf16.msra.mxu2 %v11826_v33  ;;  %v13911_v33 = vld [vmem:[%s22350_s1 + $0x1c] sm:$0xf0] }
 0x40f   :  { %6476 = vmatpush.bf16.msra.mxu3 %v12050_v9 }
 0x435   :  { %v5318_v24 = vpop.f32.mrf.mxu0 }
 0x43b   :  { %v5331_v34 = vpop.f32.mrf.mxu1  ;;  %v19269_v44 = vpop.f32.mrf.mxu2 }
 0x43c   :  { %v5332_v35 = vadd.f32 %v5331_v34, %v5318_v24  ;;  %v11790_v34 = vor.u32 %v13935_v31, %v11789_v41 }
 0x43d   :  { %v5320_v27 = vpop.f32.mrf.mxu0 }
 0x43e   :  { %v5517_v26 = vadd.f32 %v11155_v40, %v5332_v35  ;;  %v11791_v27 = vld [vmem:[%s22350_s1 + $0xe0] sm:$0xf0]  ;;  %6437 = vmatpush.bf16.msra.mxu0 %v11790_v34  ;;  %v11927_v34 = vld [vmem:[%s22350_s1 + $0x1e8] sm:$0xf0] }
 0x43f   :  { %v11794_v45 = vor.u32 %v13931_v6, %v11791_v27  ;;  %v13915_v35 = vld [vmem:[%s22350_s1 + $0x44] sm:$0xf]  ;;  %v11981_v27 = vld [vmem:[%s22350_s1 + $0x240] sm:$0xf] }
 0x440   :  { %v11675_v48 = vmul.f32 -1.442695, %v5517_v26  ;;  %v11727_v40 = vld [vmem:[%s22350_s1 + $0x60] sm:$0xf0]  ;;  %v11982_v12 = vor.u32 %v13983_v61, %v11981_v27  ;;  %v11831_v27 = vld [vmem:[%s22350_s1 + $0x128] sm:$0xf0] }
 0x441   :  { %v19283_v51 = vpop.f32.mrf.mxu3  ;;  %6463 = vmatpush.bf16.msra.mxu2 %v11794_v45  ;;  %v13907_v26 = vld [vmem:[%s22350_s1 + $0x4] sm:$0xf]  ;;  %v14012_v61 = vld [vmem:[%s22350_s1 + $0x34c] sm:$0xf] }
 0x442   :  { %v5358_v1 = vadd.f32 %v19283_v51, %v19269_v44  ;;  %v12045_v44 = vld [vmem:[%s22350_s1 + $0x2c0] sm:$0xf]  ;;  %6438 = vmatpush.bf16.msra.mxu0 %v11758_v5  ;;  %14419 = vpow2.f32 %v11675_v48 }
 0x443   :  { %v5333_v63 = vpop.f32.mrf.mxu1  ;;  %v5346_v0 = vpop.f32.mrf.mxu2  ;;  %v13999_v51 = vld [vmem:[%s22350_s1 + $0x2dc] sm:$0xf0] }
 0x444   :  { %v13923_v63 = vld [vmem:[%s22350_s1 + $0x84] sm:$0xf]  ;;  %v11156_v0 = vld [vmem:[%s22352_s0 + $0x108] sm:$0xff]  ;;  %v12046_v20 = vor.u32 %v13999_v51, %v12045_v44  ;;  %v11949_v5 = vld [vmem:[%s22350_s1 + $0x200] sm:$0xf] }
 0x445   :  { %v5370_v11 = vpop.f32.mrf.mxu0  ;;  %v11762_v60 = vor.u32 %v13923_v63, %v11759_v7  ;;  %v5518_v28 = vadd.f32 %v11156_v0, %v5358_v1  ;;  %v13960_v0 = vld [vmem:[%s22350_s1 + $0x1a4] sm:$0xf0]  ;;  %v13956_v1 = vld [vmem:[%s22350_s1 + $0x18c] sm:$0xf] }
 0x446   :  { %6450 = vmatpush.bf16.msra.mxu1 %v12046_v20  ;;  %6439 = vmatpush.bf16.msra.mxu0 %v11726_v37  ;;  %v11951_v20 = vld [vmem:[%s22350_s1 + $0x220] sm:$0xf0] }
 0x447   :  { %6464 = vmatpush.bf16.msra.mxu2 %v11762_v60  ;;  %v11676_v17 = vmul.f32 -1.442695, %v5518_v28  ;;  %v11954_v19 = vor.u32 %v13971_v16, %v11951_v20 }
 0x448   :  { %v14420_v41 = vpop.eup %14419 }
 0x449   :  { %v5359_v55 = vpop.f32.mrf.mxu3  ;;  %v19485_v59 = vadd.f32 1.0, %v14420_v41  ;;  %v13944_v41 = vld [vmem:[%s22350_s1 + $0x124] sm:$0xf0] }
 0x44a   :  { %v11730_v55 = vor.u32 %v13915_v35, %v11727_v40  ;;  %6451 = vmatpush.bf16.msra.mxu1 %v12014_v23  ;;  %v14028_v35 = vld [vmem:[%s22350_s1 + $0x3cc] sm:$0xf]  ;;  %v12182_v40 = vor.u32 %v14032_v30, %v12181_v42  ;;  %v13952_v23 = vld [vmem:[%s22350_s1 + $0x164] sm:$0xf0] }
 0x44b   :  { %v5383_v4 = vpop.f32.mrf.mxu1  ;;  %v5396_v38 = vpop.f32.mrf.mxu2  ;;  %v11765_v42 = vld [vmem:[%s22350_s1 + $0x88] sm:$0xf]  ;;  %v13924_v30 = vld [vmem:[%s22350_s1 + $0x8c] sm:$0xf]  ;;  %vm5554_vm4 = vweird.f32 %v19485_v59 }
 0x44c   :  { %v5384_v13 = vadd.f32 %v5383_v4, %v5370_v11  ;;  %6465 = vmatpush.bf16.msra.mxu2 %v11730_v55  ;;  %v12018_v4 = vor.u32 %v13987_v58, %v12015_v29  ;;  %v12183_v55 = vld [vmem:[%s22350_s1 + $0x3e8] sm:$0xf0]  ;;  %v11861_v58 = vld [vmem:[%s22350_s1 + $0x148] sm:$0xf] }
 0x44d   :  { %v5372_v32 = vpop.f32.mrf.mxu0  ;;  %v12186_v62 = vor.u32 %v14028_v35, %v12183_v55  ;;  %v13948_v29 = vld [vmem:[%s22350_s1 + $0x14c] sm:$0xf]  ;;  %v12053_v55 = vld [vmem:[%s22350_s1 + $0x2c8] sm:$0xf] }
 0x44e   :  { %v5519_v24 = vadd.f32 %v11157_v53, %v5384_v13  ;;  %v11695_v13 = vld [vmem:[%s22350_s1 + $0x20] sm:$0xf0]  ;;  %6477 = vmatpush.bf16.msra.mxu3 %v12018_v4  ;;  %v11925_v32 = vld [vmem:[%s22350_s1 + $0x1c8] sm:$0xf]  ;;  %6452 = vmatpush.bf16.msra.mxu1 %v11982_v12  ;;  %v11863_v4 = vld [vmem:[%s22350_s1 + $0x168] sm:$0xf0] }
 0x44f   :  { %v11698_v39 = vor.u32 %v13907_v26, %v11695_v13  ;;  %v11926_v6 = vor.u32 %v13968_v14, %v11925_v32  ;;  %v14024_v26 = vld [vmem:[%s22350_s1 + $0x3a4] sm:$0xf0]  ;;  %v11767_v35 = vld [vmem:[%s22350_s1 + $0xa8] sm:$0xf0] }
 0x450   :  { %v11677_v21 = vmul.f32 -1.442695, %v5519_v24  ;;  %v13964_v24 = vld [vmem:[%s22350_s1 + $0x1cc] sm:$0xf]  ;;  %v11797_v12 = vld [vmem:[%s22350_s1 + $0xc8] sm:$0xf] }
 0x451   :  { %v5409_v56 = vpop.f32.mrf.mxu3  ;;  %6466 = vmatpush.bf16.msra.mxu2 %v11698_v39  ;;  %v11930_v48 = vor.u32 %v13964_v24, %v11927_v34  ;;  %v11829_v39 = vld [vmem:[%s22350_s1 + $0x108] sm:$0xf] }
 0x452   :  { %v5410_v54 = vadd.f32 %v5409_v56, %v5396_v38  ;;  %14421 = vpow2.f32 %v11677_v21  ;;  %v11693_v38 = vld [vmem:[%s22350_s1] sm:$0xf]  ;;  %v11983_v56 = vld [vmem:[%s22350_s1 + $0x260] sm:$0xf0]  ;;  %v11830_v34 = vor.u32 %v13944_v41, %v11829_v39  ;;  %v13916_v39 = vld [vmem:[%s22350_s1 + $0x4c] sm:$0xf] }
 0x453   :  { %v5385_v11 = vpop.f32.mrf.mxu1  ;;  %v5398_v52 = vpop.f32.mrf.mxu2  ;;  %v11694_v43 = vor.u32 %v13911_v33, %v11693_v38  ;;  %v11986_v63 = vor.u32 %v13979_v10, %v11983_v56  ;;  %v12149_v38 = vld [vmem:[%s22350_s1 + $0x388] sm:$0xf]  ;;  %v12119_v10 = vld [vmem:[%s22350_s1 + $0x368] sm:$0xf0] }
 0x454   :  { %v5520_v50 = vadd.f32 %v11158_v49, %v5410_v54  ;;  %v11894_v49 = vor.u32 %v13960_v0, %v11893_v57  ;;  %v11895_v54 = vld [vmem:[%s22350_s1 + $0x1a8] sm:$0xf0]  ;;  %v13975_v52 = vld [vmem:[%s22350_s1 + $0x21c] sm:$0xf0]  ;;  %v12150_v13 = vor.u32 %v14024_v26, %v12149_v38  ;;  %v13936_v56 = vld [vmem:[%s22350_s1 + $0xe4] sm:$0xf0] }
 0x455   :  { %v5422_v18 = vpop.f32.mrf.mxu0  ;;  %6440 = vmatpush.bf16.msra.mxu0 %v11694_v43  ;;  %6511 = vmatpush.bf16.msrb.mxu2 %v11930_v48  ;;  %v11160_v11 = vld [vmem:[%s22352_s0 + $0x128] sm:$0xff]  ;;  %v11898_v44 = vor.u32 %v13956_v1, %v11895_v54  ;;  %v11950_v51 = vor.u32 %v13975_v52, %v11949_v5  ;;  %v11866_v43 = vor.u32 %v13948_v29, %v11863_v4 }
 0x456   :  { %v11678_v46 = vmul.f32 -1.442695, %v5520_v50  ;;  %6478 = vmatpush.bf16.msra.mxu3 %v11986_v63  ;;  %v14016_v48 = vld [vmem:[%s22350_s1 + $0x364] sm:$0xf0]  ;;  %v12122_v63 = vor.u32 %v14012_v61, %v12119_v10  ;;  %v13932_v0 = vld [vmem:[%s22350_s1 + $0xcc] sm:$0xf]  ;;  %v11798_v5 = vor.u32 %v13936_v56, %v11797_v12 }
 0x457   :  { %6453 = vmatpush.bf16.msra.mxu1 %v11950_v51  ;;  %v11799_v1 = vld [vmem:[%s22350_s1 + $0xe8] sm:$0xf0]  ;;  %v14008_v52 = vld [vmem:[%s22350_s1 + $0x324] sm:$0xf0]  ;;  %v11161_v12 = vld [vmem:[%s22352_s0 + $0x130] sm:$0xff] }
 0x458   :  { %v14422_v45 = vpop.eup %14421  ;;  %14423 = vpow2.f32 %v11678_v46  ;;  %v12087_v51 = vld [vmem:[%s22350_s1 + $0x328] sm:$0xf0] }
 0x459   :  { %v5411_v53 = vpop.f32.mrf.mxu3  ;;  %14425 = vpow2.f32 %v11676_v17  ;;  %6485 = vmatpush.bf16.msrb.mxu0 %v11926_v6  ;;  %v19493_v21 = vadd.f32 1.0, %v14422_v45  ;;  %6512 = vmatpush.bf16.msrb.mxu2 %v11898_v44  ;;  %v12117_v45 = vld [vmem:[%s22350_s1 + $0x348] sm:$0xf]  ;;  %v14004_v44 = vld [vmem:[%s22350_s1 + $0x30c] sm:$0xf] }
 0x45a   :  { %14427 = vrcp.f32 %v19485_v59  ;;  %6479 = vmatpush.bf16.msra.mxu3 %v11954_v19  ;;  %v11862_v53 = vor.u32 %v13952_v23, %v11861_v58  ;;  %v12090_v20 = vor.u32 %v14004_v44, %v12087_v51  ;;  %v13996_v58 = vld [vmem:[%s22350_s1 + $0x2cc] sm:$0xf] }
 0x45b   :  { %v5448_v36 = vpop.f32.mrf.mxu2  ;;  %v5435_v31 = vpop.f32.mrf.mxu1  ;;  %14429 = vrcp.f32 %v19493_v21  ;;  %6498 = vmatpush.bf16.msrb.mxu1 %v12182_v40  ;;  %v12055_v23 = vld [vmem:[%s22350_s1 + $0x2e8] sm:$0xf0]  ;;  %vm5584_vm2 = vweird.f32 %v19493_v21 }
 0x45c   :  { %v5436_v47 = vadd.f32 %v5435_v31, %v5422_v18  ;;  %v13940_v31 = vld [vmem:[%s22350_s1 + $0x10c] sm:$0xf]  ;;  %v12058_v38 = vor.u32 %v13996_v58, %v12055_v23  ;;  %v13976_v58 = vld [vmem:[%s22350_s1 + $0x224] sm:$0xf0] }
 0x45d   :  { %v5424_v25 = vpop.f32.mrf.mxu0  ;;  %6486 = vmatpush.bf16.msrb.mxu0 %v11894_v49  ;;  %6513 = vmatpush.bf16.msrb.mxu2 %v11866_v43  ;;  %v13920_v43 = vld [vmem:[%s22350_s1 + $0x64] sm:$0xf0] }
 0x45e   :  { %v5521_v15 = vadd.f32 %v11159_v3, %v5436_v47  ;;  %v14424_v50 = vpop.eup %14423  ;;  %6524 = vmatpush.bf16.msrb.mxu3 %v12186_v62  ;;  %v14020_v3 = vld [vmem:[%s22350_s1 + $0x38c] sm:$0xf]  ;;  %v11834_v25 = vor.u32 %v13940_v31, %v11831_v27  ;;  %v14000_v62 = vld [vmem:[%s22350_s1 + $0x2e4] sm:$0xf0] }
 0x45f   :  { %v14426_v28 = vpop.eup %14425  ;;  %v19536_v46 = vadd.f32 1.0, %v14424_v50  ;;  %6499 = vmatpush.bf16.msrb.mxu1 %v12150_v13  ;;  %v13928_v50 = vld [vmem:[%s22350_s1 + $0xa4] sm:$0xf0]  ;;  %v12054_v4 = vor.u32 %v14000_v62, %v12053_v55  ;;  %v13988_v27 = vld [vmem:[%s22350_s1 + $0x28c] sm:$0xf] }
 0x460   :  { %v11679_v7 = vmul.f32 -1.442695, %v5521_v15  ;;  %v19544_v33 = vadd.f32 1.0, %v14426_v28  ;;  %v19558_v32 = vpop.eup %14427  ;;  %v12118_v15 = vor.u32 %v14016_v48, %v12117_v45  ;;  %v11766_v19 = vor.u32 %v13928_v50, %v11765_v42  ;;  %v13912_v48 = vld [vmem:[%s22350_s1 + $0x24] sm:$0xf0] }
 0x461   :  { %v5461_v60 = vpop.f32.mrf.mxu3  ;;  %6487 = vmatpush.bf16.msrb.mxu0 %v11862_v53  ;;  %v19566_v6 = vpop.eup %14429  ;;  %v5550_v57 = vmul.f32 %v19558_v32, %v19485_v59  ;;  %6514 = vmatpush.bf16.msrb.mxu2 %v11834_v25  ;;  %v11701_v25 = vld [vmem:[%s22350_s1 + $0x8] sm:$0xf]  ;;  %vm5555_vm1 = vweird.f32 %v19558_v32  ;;  %vm5599_vm10 = vweird.f32 %v19536_v46 }
 0x462   :  { %v5462_v18 = vadd.f32 %v5461_v60, %v5448_v36  ;;  %14431 = vpow2.f32 %v11679_v7  ;;  %v12151_v36 = vld [vmem:[%s22350_s1 + $0x3a8] sm:$0xf0]  ;;  %v5580_v49 = vmul.f32 %v19566_v6, %v19493_v21  ;;  %v11802_v7 = vor.u32 %v13932_v0, %v11799_v1  ;;  %v13984_v42 = vld [vmem:[%s22350_s1 + $0x264] sm:$0xf0]  ;;  %vm19760_vm7 = vmor %vm5554_vm4, %vm5555_vm1 }
 0x463   :  { %v5450_v9 = vpop.f32.mrf.mxu2  ;;  %v5437_v37 = vpop.f32.mrf.mxu1  ;;  %v12154_v14 = vor.u32 %v14020_v3, %v12151_v36  ;;  %14433 = vrcp.f32 %v19536_v46  ;;  %6500 = vmatpush.bf16.msrb.mxu1 %v12118_v15  ;;  %v5560_v3 = vand.u32 2147483648, %v19485_v59  ;;  %v13908_v0 = vld [vmem:[%s22350_s1 + $0xc] sm:$0xf]  ;;  %vm5585_vm0 = vweird.f32 %v19566_v6 }
 0x464   :  { %v5522_v2 = vadd.f32 %v11160_v11, %v5462_v18  ;;  %v12085_v11 = vld [vmem:[%s22350_s1 + $0x308] sm:$0xf]  ;;  %v5551_v9 = vsub.f32 1.0, %v5550_v57  ;;  %v5581_v37 = vsub.f32 1.0, %v5580_v49  ;;  %v11703_v1 = vld [vmem:[%s22350_s1 + $0x28] sm:$0xf0]  ;;  %vm19725_vm3 = vmor %vm5584_vm2, %vm5585_vm0  ;;  %vm5569_vm6 = vweird.f32 %v19544_v33 }
 0x465   :  { %6525 = vmatpush.bf16.msrb.mxu3 %v12154_v14  ;;  %6488 = vmatpush.bf16.msrb.mxu0 %v11830_v34  ;;  %v12086_v60 = vor.u32 %v14008_v52, %v12085_v11  ;;  %v11735_v14 = vld [vmem:[%s22350_s1 + $0x68] sm:$0xf0]  ;;  %v13992_v34 = vld [vmem:[%s22350_s1 + $0x2a4] sm:$0xf0]  ;;  %v5558_v11 = vand.u32 2147483647, %v19485_v59  ;;  %v11706_v51 = vor.u32 %v13908_v0, %v11703_v1 }
 0x466   :  { %v11680_v17 = vmul.f32 -1.442695, %v5522_v2  ;;  %6515 = vmatpush.bf16.msrb.mxu2 %v11802_v7  ;;  %v11770_v2 = vor.u32 %v13924_v30, %v11767_v35  ;;  %v5552_v13 = vmul.f32 %v19558_v32, %v5551_v9  ;;  %v5582_v41 = vmul.f32 %v19566_v6, %v5581_v37  ;;  %v11991_v30 = vld [vmem:[%s22350_s1 + $0x268] sm:$0xf0] }
 0x467   :  { %6501 = vmatpush.bf16.msrb.mxu1 %v12086_v60  ;;  %v11738_v31 = vor.u32 %v13916_v39, %v11735_v14  ;;  %v5590_v52 = vand.u32 2147483648, %v19493_v21  ;;  %v5588_v37 = vand.u32 2147483647, %v19493_v21  ;;  %vm19730_vm5 = vcmp.eq.f32.partialorder %v5558_v11, 8.507059e+37  ;;  %v11957_v21 = vld [vmem:[%s22350_s1 + $0x208] sm:$0xf] }
 0x468   :  { %v14432_v47 = vpop.eup %14431  ;;  %14435 = vpow2.f32 %v11680_v17  ;;  %v11733_v17 = vld [vmem:[%s22350_s1 + $0x48] sm:$0xf]  ;;  %v19699_v7 = vadd.f32 %v19558_v32, %v5552_v13  ;;  %v5583_v60 = vadd.f32 %v19566_v6, %v5582_v41  ;;  %v5561_v62 = vor.u32 1.1754944e-38, %v5560_v3  ;;  %v11959_v13 = vld [vmem:[%s22350_s1 + $0x228] sm:$0xf0] }
 0x469   :  { %v5463_v24 = vpop.f32.mrf.mxu3  ;;  %14437 = vrcp.f32 %v19544_v33  ;;  %v19601_v54 = vadd.f32 1.0, %v14432_v47  ;;  %6526 = vmatpush.bf16.msrb.mxu3 %v12122_v63  ;;  %v19615_v16 = vpop.eup %14433  ;;  %6489 = vmatpush.bf16.msrb.mxu0 %v11798_v5  ;;  %v11734_v36 = vor.u32 %v13920_v43, %v11733_v17  ;;  %v12023_v47 = vld [vmem:[%s22350_s1 + $0x2a8] sm:$0xf0]  ;;  %v11702_v63 = vor.u32 %v13912_v48, %v11701_v25 }
 0x46a   :  { %v5595_v29 = vmul.f32 %v19615_v16, %v19536_v46  ;;  %6516 = vmatpush.bf16.msrb.mxu2 %v11770_v2  ;;  %v12021_v24 = vld [vmem:[%s22350_s1 + $0x288] sm:$0xf]  ;;  %v12026_v15 = vor.u32 %v13988_v27, %v12023_v47  ;;  %v11958_v39 = vor.u32 %v13976_v58, %v11957_v21  ;;  %vm5600_vm8 = vweird.f32 %v19615_v16  ;;  %v12061_v21 = vld [vmem:[%s22350_s1 + $0x2d0] sm:$0xf] }
 0x46b   :  { %14439 = vrcp.f32 %v19601_v54  ;;  %6502 = vmatpush.bf16.msrb.mxu1 %v12054_v4  ;;  %v12022_v45 = vor.u32 %v13992_v34, %v12021_v24  ;;  %v5587_v4 = vsel %vm19725_vm3, %v19566_v6, %v5583_v60  ;;  %v5557_v41 = vsel %vm19760_vm7, %v19558_v32, %v19699_v7  ;;  %vm19779_vm12 = vmor %vm5599_vm10, %vm5600_vm8  ;;  %v14029_v6 = vld [vmem:[%s22350_s1 + $0x3d4] sm:$0xf] }
 0x46c   :  { %v5596_v10 = vsub.f32 1.0, %v5595_v29  ;;  %v5591_v29 = vor.u32 1.1754944e-38, %v5590_v52  ;;  %vm5589_vm9 = vcmp.eq.f32.partialorder %v5588_v37, 8.507059e+37  ;;  %v5605_v34 = vand.u32 2147483648, %v19536_v46 }
 0x46d   :  { %6527 = vmatpush.bf16.msrb.mxu3 %v12090_v20  ;;  %6490 = vmatpush.bf16.msrb.mxu0 %v11766_v19  ;;  %v11989_v20 = vld [vmem:[%s22350_s1 + $0x248] sm:$0xf]  ;;  %v13980_v19 = vld [vmem:[%s22350_s1 + $0x24c] sm:$0xf]  ;;  %v5603_v32 = vand.u32 2147483647, %v19536_v46  ;;  %vm5614_vm1 = vweird.f32 %v19601_v54 }
 0x46e   :  { %v14436_v18 = vpop.eup %14435  ;;  %6517 = vmatpush.bf16.msrb.mxu2 %v11738_v31  ;;  %v11990_v9 = vor.u32 %v13984_v42, %v11989_v20  ;;  %v5597_v35 = vmul.f32 %v19615_v16, %v5596_v10  ;;  %v5606_v1 = vor.u32 1.1754944e-38, %v5605_v34  ;;  %v13953_v34 = vld [vmem:[%s22350_s1 + $0x16c] sm:$0xf0] }
 0x46f   :  { %v19629_v28 = vpop.eup %14437  ;;  %v19646_v53 = vadd.f32 1.0, %v14436_v18  ;;  %6503 = vmatpush.bf16.msrb.mxu1 %v12022_v45  ;;  %v5592_v45 = vsel %vm5589_vm9, %v5591_v29, %v5587_v4  ;;  %vm5604_vm14 = vcmp.eq.f32.partialorder %v5603_v32, 8.507059e+37  ;;  %v11901_v4 = vld [vmem:[%s22350_s1 + $0x190] sm:$0xf] }
 0x470   :  { %v19656_v26 = vmul.f32 %v19629_v28, %v19544_v33  ;;  %v5598_v31 = vadd.f32 %v19615_v16, %v5597_v35  ;;  %vm5570_vm11 = vweird.f32 %v19629_v28  ;;  %v12157_v32 = vld [vmem:[%s22350_s1 + $0x390] sm:$0xf] }
 0x471   :  { %6528 = vmatpush.bf16.msrb.mxu3 %v12058_v38  ;;  %v19685_v61 = vpop.eup %14439  ;;  %14441 = vrcp.f32 %v19646_v53  ;;  %6491 = vmatpush.bf16.msrb.mxu0 %v11734_v36  ;;  %v11162_v38 = vld [vmem:[%s22352_s0 + $0x138] sm:$0xff]  ;;  %vm19796_vm13 = vmor %vm5569_vm6, %vm5570_vm11  ;;  %v5633_v55 = vand.u32 2147483647, %v19646_v53  ;;  %v5635_v2 = vand.u32 2147483648, %v19646_v53 }
 0x472   :  { %v5566_v49 = vsub.f32 1.0, %v19656_v26  ;;  %v5610_v50 = vmul.f32 %v19685_v61, %v19601_v54  ;;  %6518 = vmatpush.bf16.msrb.mxu2 %v11706_v51  ;;  %v13972_v26 = vld [vmem:[%s22350_s1 + $0x20c] sm:$0xf]  ;;  %v5602_v0 = vsel %vm19779_vm12, %v19615_v16, %v5598_v31  ;;  %vm5615_vm15 = vweird.f32 %v19685_v61 }
 0x473   :  { %6504 = vmatpush.bf16.msrb.mxu1 %v11990_v9  ;;  %v11962_v14 = vor.u32 %v13972_v26, %v11959_v13  ;;  %v5607_v60 = vsel %vm5604_vm14, %v5606_v1, %v5602_v0  ;;  %vm5616_vm2 = vmor %vm5614_vm1, %vm5615_vm15  ;;  %v11903_v26 = vld [vmem:[%s22350_s1 + $0x1b0] sm:$0xf0]  ;;  %vm5634_vm7 = vcmp.eq.f32.partialorder %v5633_v55, 8.507059e+37  ;;  %v5636_v13 = vor.u32 1.1754944e-38, %v5635_v2 }
 0x474   :  { %v5567_v43 = vmul.f32 %v19629_v28, %v5566_v49  ;;  %v5611_v3 = vsub.f32 1.0, %v5610_v50  ;;  %v5642_v42 = vmul.f32 %v5607_v60, %v18844_v22  ;;  %v13965_v22 = vld [vmem:[%s22350_s1 + $0x1d4] sm:$0xf] }
 0x475   :  { %v5474_v40 = vpop.f32.mrf.mxu0  ;;  %6529 = vmatpush.bf16.msrb.mxu3 %v12026_v15  ;;  %6492 = vmatpush.bf16.msrb.mxu0 %v11702_v63  ;;  %v5641_v15 = vmul.f32 %v5592_v45, %v18830_v8  ;;  %v5573_v63 = vand.u32 2147483647, %v19544_v33  ;;  %v11871_v45 = vld [vmem:[%s22350_s1 + $0x170] sm:$0xf0] }
 0x476   :  { %v5568_v25 = vadd.f32 %v19629_v28, %v5567_v43  ;;  %v13957_v43 = vld [vmem:[%s22350_s1 + $0x194] sm:$0xf] }
 0x477   :  { %v19740_v23 = vpop.eup %14441  ;;  %6505 = vmatpush.bf16.msrb.mxu1 %v11958_v39  ;;  %vm5574_vm0 = vcmp.eq.f32.partialorder %v5573_v63, 8.507059e+37  ;;  %v11906_v31 = vor.u32 %v13957_v43, %v11903_v26  ;;  %v13945_v63 = vld [vmem:[%s22350_s1 + $0x12c] sm:$0xf0]  ;;  %v13941_v0 = vld [vmem:[%s22350_s1 + $0x114] sm:$0xf] }
 0x478   :  { %v5625_v27 = vmul.f32 %v19740_v23, %v19646_v53  ;;  %v5572_v8 = vsel %vm19796_vm13, %v19629_v28, %v5568_v25  ;;  %vm5630_vm4 = vweird.f32 %v19740_v23  ;;  %v11839_v1 = vld [vmem:[%s22350_s1 + $0x130] sm:$0xf0]  ;;  %v11741_v43 = vld [vmem:[%s22350_s1 + $0x50] sm:$0xf] }
 0x479   :  { %v11775_v55 = vld [vmem:[%s22350_s1 + $0xb0] sm:$0xf0]  ;;  %v13921_v26 = vld [vmem:[%s22350_s1 + $0x6c] sm:$0xf0] }
 0x47a   :  { %v5626_v49 = vsub.f32 1.0, %v5625_v27  ;;  %v13949_v27 = vld [vmem:[%s22350_s1 + $0x154] sm:$0xf] }
 0x47b   :  { %v5487_v56 = vpop.f32.mrf.mxu1  ;;  %v5500_v57 = vpop.f32.mrf.mxu2 }
 0x47c   :  { %v5488_v5 = vadd.f32 %v5487_v56, %v5474_v40  ;;  %v11994_v40 = vor.u32 %v13980_v19, %v11991_v30  ;;  %v5562_v56 = vsel %vm19730_vm5, %v5561_v62, %v5557_v41  ;;  %v5627_v28 = vmul.f32 %v19740_v23, %v5626_v49  ;;  %v11933_v30 = vld [vmem:[%s22350_s1 + $0x1d0] sm:$0xf] }
 0x47d   :  { %v5476_v44 = vpop.f32.mrf.mxu0  ;;  %vm5629_vm5 = vweird.f32 %v19646_v53 }
 0x47e   :  { %v5523_v18 = vadd.f32 %v11161_v12, %v5488_v5  ;;  %6530 = vmatpush.bf16.msrb.mxu3 %v11994_v40  ;;  %v5612_v12 = vmul.f32 %v19685_v61, %v5611_v3  ;;  %v5620_v44 = vand.u32 2147483648, %v19601_v54  ;;  %v5628_v35 = vadd.f32 %v19740_v23, %v5627_v28  ;;  %vm19834_vm6 = vmor %vm5629_vm5, %vm5630_vm4  ;;  %v14033_v3 = vld [vmem:[%s22350_s1 + $0x3ec] sm:$0xf0]  ;;  %v13933_v28 = vld [vmem:[%s22350_s1 + $0xd4] sm:$0xf] }
 0x480   :  { %14443 = vtanh.f32 %v5523_v18  ;;  %v5613_v16 = vadd.f32 %v19685_v61, %v5612_v12  ;;  %v5621_v9 = vor.u32 1.1754944e-38, %v5620_v44  ;;  %v14021_v12 = vld [vmem:[%s22350_s1 + $0x394] sm:$0xf]  ;;  %v11805_v44 = vld [vmem:[%s22350_s1 + $0xd0] sm:$0xf] }
 0x481   :  { %v5513_v17 = vpop.f32.mrf.mxu3 }
 0x482   :  { %v5514_v36 = vadd.f32 %v5513_v17, %v5500_v57  ;;  %v5575_v57 = vand.u32 2147483648, %v19544_v33  ;;  %6531 = vmatpush.bf16.msrb.mxu3 %v11962_v14  ;;  %v5618_v33 = vand.u32 2147483647, %v19601_v54  ;;  %v5617_v18 = vsel %vm5616_vm2, %v19685_v61, %v5613_v16  ;;  %v13969_v54 = vld [vmem:[%s22350_s1 + $0x1ec] sm:$0xf0] }
 0x483   :  { %v5489_v59 = vpop.f32.mrf.mxu1  ;;  %v5502_v24 = vpop.f32.mrf.mxu2  ;;  %v11935_v61 = vld [vmem:[%s22350_s1 + $0x1f0] sm:$0xf0]  ;;  %v11934_v58 = vor.u32 %v13969_v54, %v11933_v30  ;;  %v5632_v17 = vsel %vm19834_vm6, %v19740_v23, %v5628_v35  ;;  %v12189_v23 = vld [vmem:[%s22350_s1 + $0x3d0] sm:$0xf] }
 0x484   :  { %v5524_v47 = vadd.f32 %v11162_v38, %v5514_v36  ;;  %v5576_v52 = vor.u32 1.1754944e-38, %v5575_v57  ;;  %vm5619_vm3 = vcmp.eq.f32.partialorder %v5618_v33, 8.507059e+37  ;;  %v11938_v29 = vor.u32 %v13965_v22, %v11935_v61  ;;  %v13961_v38 = vld [vmem:[%s22350_s1 + $0x1ac] sm:$0xf0]  ;;  %v12191_v36 = vld [vmem:[%s22350_s1 + $0x3f0] sm:$0xf0] }
 0x485   :  { %v5622_v40 = vsel %vm5619_vm3, %v5621_v9, %v5617_v18  ;;  %v5637_v14 = vsel %vm5634_vm7, %v5636_v13, %v5632_v17  ;;  %v11902_v41 = vor.u32 %v13961_v38, %v11901_v4  ;;  %v11869_v59 = vld [vmem:[%s22350_s1 + $0x150] sm:$0xf]  ;;  %v12194_v25 = vor.u32 %v14029_v6, %v12191_v36  ;;  %v14013_v16 = vld [vmem:[%s22350_s1 + $0x354] sm:$0xf] }
 0x486   :  { %v14444_v48 = vpop.eup %14443  ;;  %14445 = vtanh.f32 %v5524_v47  ;;  %v5577_v20 = vsel %vm5574_vm0, %v5576_v52, %v5572_v8  ;;  %v12190_v47 = vor.u32 %v14033_v3, %v12189_v23  ;;  %v11870_v57 = vor.u32 %v13953_v34, %v11869_v59  ;;  %v12125_v8 = vld [vmem:[%s22350_s1 + $0x350] sm:$0xf]  ;;  %v12127_v52 = vld [vmem:[%s22350_s1 + $0x370] sm:$0xf0] }
 0x487   :  { %v5643_v46 = vmul.f32 %v14444_v48, %v5562_v56  ;;  %v14025_v48 = vld [vmem:[%s22350_s1 + $0x3ac] sm:$0xf0]  ;;  %v12159_v56 = vld [vmem:[%s22350_s1 + $0x3b0] sm:$0xf0]  ;;  %v11842_v33 = vor.u32 %v13941_v0, %v11839_v1 }
 0x488   :  { %v12158_v49 = vor.u32 %v14025_v48, %v12157_v32  ;;  %v12162_v5 = vor.u32 %v14021_v12, %v12159_v56  ;;  %v12093_v18 = vld [vmem:[%s22350_s1 + $0x310] sm:$0xf]  ;;  %v14005_v30 = vld [vmem:[%s22350_s1 + $0x314] sm:$0xf]  ;;  %v13966_v12 = vld [vmem:[%s22350_s1 + $0x1dc] sm:$0xf] }
 0x489   :  { %v19800_v7 = vadd.f32 %v5643_v46, %v5641_v15  ;;  %v5515_v11 = vpop.f32.mrf.mxu3  ;;  %v11874_v15 = vor.u32 %v13949_v27, %v11871_v45  ;;  %v11837_v46 = vld [vmem:[%s22350_s1 + $0x110] sm:$0xf]  ;;  %v12095_v35 = vld [vmem:[%s22350_s1 + $0x330] sm:$0xf0]  ;;  %v11943_v56 = vld [vmem:[%s22350_s1 + $0x1f8] sm:$0xf0] }
 0x48a   :  { %v14017_v11 = vld [vmem:[%s22350_s1 + $0x36c] sm:$0xf0]  ;;  %v11838_v60 = vor.u32 %v13945_v63, %v11837_v46  ;;  %v12063_v4 = vld [vmem:[%s22350_s1 + $0x2f0] sm:$0xf0] }
 0x48b   :  { %14447 = vtanh.f32 %v19800_v7  ;;  %v14009_v9 = vld [vmem:[%s22350_s1 + $0x32c] sm:$0xf0]  ;;  %v13917_v13 = vld [vmem:[%s22350_s1 + $0x54] sm:$0xf] }
 0x48c   :  { %v14446_v51 = vpop.eup %14445  ;;  %v11773_v61 = vld [vmem:[%s22350_s1 + $0x90] sm:$0xf]  ;;  %v12094_v2 = vor.u32 %v14009_v9, %v12093_v18  ;;  %v11743_v23 = vld [vmem:[%s22350_s1 + $0x70] sm:$0xf0]  ;;  %v14030_v18 = vld [vmem:[%s22350_s1 + $0x3dc] sm:$0xf] }
 0x48d   :  { %v5644_v50 = vmul.f32 %v14446_v51, %v5577_v20  ;;  %v13937_v51 = vld [vmem:[%s22350_s1 + $0xec] sm:$0xf0]  ;;  %v11807_v20 = vld [vmem:[%s22350_s1 + $0xf0] sm:$0xf0]  ;;  %v11746_v59 = vor.u32 %v13917_v13, %v11743_v23  ;;  %v12199_v9 = vld [vmem:[%s22350_s1 + $0x3f8] sm:$0xf0] }
 0x48e   :  { %v11806_v54 = vor.u32 %v13937_v51, %v11805_v44  ;;  %v11810_v22 = vor.u32 %v13933_v28, %v11807_v20  ;;  %v12029_v36 = vld [vmem:[%s22350_s1 + $0x290] sm:$0xf]  ;;  %v13909_v27 = vld [vmem:[%s22350_s1 + $0x14] sm:$0xf]  ;;  %v13942_v13 = vld [vmem:[%s22350_s1 + $0x11c] sm:$0xf] }
 0x48f   :  { %v19814_v19 = vadd.f32 %v5644_v50, %v5642_v42  ;;  %v12126_v42 = vor.u32 %v14017_v11, %v12125_v8  ;;  %v12130_v50 = vor.u32 %v14013_v16, %v12127_v52  ;;  %v13913_v34 = vld [vmem:[%s22350_s1 + $0x2c] sm:$0xf0]  ;;  %v11711_v45 = vld [vmem:[%s22350_s1 + $0x30] sm:$0xf0]  ;;  %v11909_v8 = vld [vmem:[%s22350_s1 + $0x198] sm:$0xf] }
 0x490   :  { %v13981_v46 = vld [vmem:[%s22350_s1 + $0x254] sm:$0xf]  ;;  %v11714_v1 = vor.u32 %v13909_v27, %v11711_v45  ;;  %v13962_v11 = vld [vmem:[%s22350_s1 + $0x1b4] sm:$0xf0]  ;;  %v13958_v16 = vld [vmem:[%s22350_s1 + $0x19c] sm:$0xf] }
 0x491   :  { %v14448_v37 = vpop.eup %14447  ;;  %14449 = vtanh.f32 %v19814_v19  ;;  %v11999_v63 = vld [vmem:[%s22350_s1 + $0x270] sm:$0xf0]  ;;  %v11965_v44 = vld [vmem:[%s22350_s1 + $0x210] sm:$0xf]  ;;  %v11847_v23 = vld [vmem:[%s22350_s1 + $0x138] sm:$0xf0] }
 0x492   :  { %v5649_v62 = vmul.f32 %v14448_v37, %v5622_v40  ;;  %v13929_v37 = vld [vmem:[%s22350_s1 + $0xac] sm:$0xf0]  ;;  %v13925_v40 = vld [vmem:[%s22350_s1 + $0x94] sm:$0xf]  ;;  %v13934_v27 = vld [vmem:[%s22350_s1 + $0xdc] sm:$0xf] }
 0x493   :  { %v11774_v38 = vor.u32 %v13929_v37, %v11773_v61  ;;  %v11778_v17 = vor.u32 %v13925_v40, %v11775_v55  ;;  %v13977_v51 = vld [vmem:[%s22350_s1 + $0x22c] sm:$0xf0]  ;;  %v13973_v28 = vld [vmem:[%s22350_s1 + $0x214] sm:$0xf]  ;;  %v13954_v37 = vld [vmem:[%s22350_s1 + $0x174] sm:$0xf0] }
 0x494   :  { %11681 = vst [vmem:[%s22354_s4 + $0x40] sm:$0xff] %v5649_v62  ;;  %v19850_v53 = vpack.c.bf16 %v5649_v62, %v5649_v62  ;;  %v12098_v62 = vor.u32 %v14005_v30, %v12095_v35  ;;  %v11967_v20 = vld [vmem:[%s22350_s1 + $0x230] sm:$0xf0]  ;;  %v11910_v30 = vor.u32 %v13962_v11, %v11909_v8  ;;  %v13950_v40 = vld [vmem:[%s22350_s1 + $0x15c] sm:$0xf] }
 0x495   :  { %v11970_v61 = vor.u32 %v13973_v28, %v11967_v20  ;;  %v11879_v55 = vld [vmem:[%s22350_s1 + $0x178] sm:$0xf0]  ;;  %v12069_v8 = vld [vmem:[%s22350_s1 + $0x2d8] sm:$0xf] }
 0x496   :  { %6441 = vmatmul.bf16.vlgmr.msra.gmra.mxu0 %v19850_v53  ;;  %6467 = vmatmul.bf16.vlgmr.msra.gmra.mxu2 %v19850_v53  ;;  %v11815_v45 = vld [vmem:[%s22350_s1 + $0xf8] sm:$0xf0]  ;;  %v14002_v11 = vld [vmem:[%s22350_s1 + $0x2f4] sm:$0xf0] }
 0x497   :  { %v14450_v39 = vpop.eup %14449  ;;  %6537 = vmatpush.bf16.msra.mxu0 %v11934_v58  ;;  %6563 = vmatpush.bf16.msra.mxu2 %v11938_v29  ;;  %v14001_v58 = vld [vmem:[%s22350_s1 + $0x2ec] sm:$0xf0]  ;;  %v13997_v29 = vld [vmem:[%s22350_s1 + $0x2d4] sm:$0xf]  ;;  %v13918_v28 = vld [vmem:[%s22350_s1 + $0x5c] sm:$0xf] }
 0x498   :  { %v5650_v24 = vmul.f32 %v14450_v39, %v5637_v14  ;;  %v12062_v3 = vor.u32 %v14001_v58, %v12061_v21  ;;  %v12066_v6 = vor.u32 %v13997_v29, %v12063_v4  ;;  %v13993_v39 = vld [vmem:[%s22350_s1 + $0x2ac] sm:$0xf0]  ;;  %v13989_v14 = vld [vmem:[%s22350_s1 + $0x294] sm:$0xf]  ;;  %v12165_v21 = vld [vmem:[%s22350_s1 + $0x398] sm:$0xf] }
 0x499   :  { %v12030_v32 = vor.u32 %v13993_v39, %v12029_v36  ;;  %v14026_v58 = vld [vmem:[%s22350_s1 + $0x3b4] sm:$0xf0]  ;;  %v14022_v29 = vld [vmem:[%s22350_s1 + $0x39c] sm:$0xf] }
 0x49a   :  { %11682 = vst [vmem:[%s22354_s4 + $0x48] sm:$0xff] %v5650_v24  ;;  %v19893_v10 = vpack.c.bf16 %v5650_v24, %v5650_v24  ;;  %v11709_v24 = vld [vmem:[%s22350_s1 + $0x10] sm:$0xf]  ;;  %v12167_v4 = vld [vmem:[%s22350_s1 + $0x3b8] sm:$0xf0] }
 0x49b   :  { %6538 = vmatpush.bf16.msra.mxu0 %v11902_v41  ;;  %6564 = vmatpush.bf16.msra.mxu2 %v11906_v31  ;;  %v12031_v41 = vld [vmem:[%s22350_s1 + $0x2b0] sm:$0xf0]  ;;  %v11742_v31 = vor.u32 %v13921_v26, %v11741_v43  ;;  %v11710_v0 = vor.u32 %v13913_v34, %v11709_v24  ;;  %v11845_v43 = vld [vmem:[%s22350_s1 + $0x118] sm:$0xf]  ;;  %v11751_v20 = vld [vmem:[%s22350_s1 + $0x78] sm:$0xf0] }
 0x49c   :  { %6454 = vmatmul.bf16.vlgmr.msra.gmra.mxu1 %v19893_v10  ;;  %6480 = vmatmul.bf16.vlgmr.msra.gmra.mxu3 %v19893_v10  ;;  %v12034_v48 = vor.u32 %v13989_v14, %v12031_v41  ;;  %v13946_v26 = vld [vmem:[%s22350_s1 + $0x134] sm:$0xf0]  ;;  %v14014_v14 = vld [vmem:[%s22350_s1 + $0x35c] sm:$0xf] }
 0x49d   :  { %6550 = vmatpush.bf16.msra.mxu1 %v12190_v47  ;;  %6576 = vmatpush.bf16.msra.mxu3 %v12194_v25  ;;  %v11941_v47 = vld [vmem:[%s22350_s1 + $0x1d8] sm:$0xf]  ;;  %v12135_v41 = vld [vmem:[%s22350_s1 + $0x378] sm:$0xf0] }
 0x49e   :  { %v13970_v25 = vld [vmem:[%s22350_s1 + $0x1f4] sm:$0xf0] }
 0x49f   :  { %6539 = vmatpush.bf16.msra.mxu0 %v11870_v57  ;;  %6565 = vmatpush.bf16.msra.mxu2 %v11874_v15  ;;  %v11997_v57 = vld [vmem:[%s22350_s1 + $0x250] sm:$0xf]  ;;  %v12133_v36 = vld [vmem:[%s22350_s1 + $0x358] sm:$0xf] }
 0x4a0   :  { %v13985_v15 = vld [vmem:[%s22350_s1 + $0x26c] sm:$0xf0]  ;;  %v14018_v39 = vld [vmem:[%s22350_s1 + $0x374] sm:$0xf0] }
 0x4a1   :  { %6551 = vmatpush.bf16.msra.mxu1 %v12158_v49  ;;  %6577 = vmatpush.bf16.msra.mxu3 %v12162_v5  ;;  %v11942_v49 = vor.u32 %v13970_v25, %v11941_v47  ;;  %v11946_v5 = vor.u32 %v13966_v12, %v11943_v56  ;;  %v11998_v52 = vor.u32 %v13985_v15, %v11997_v57  ;;  %v11813_v24 = vld [vmem:[%s22350_s1 + $0xd8] sm:$0xf]  ;;  %v14006_v12 = vld [vmem:[%s22350_s1 + $0x31c] sm:$0xf] }
 0x4a2   :  { %v13938_v34 = vld [vmem:[%s22350_s1 + $0xf4] sm:$0xf0]  ;;  %v12134_v47 = vor.u32 %v14018_v39, %v12133_v36  ;;  %v12138_v25 = vor.u32 %v14014_v14, %v12135_v41  ;;  %v12103_v56 = vld [vmem:[%s22350_s1 + $0x338] sm:$0xf0]  ;;  %v11818_v15 = vor.u32 %v13934_v27, %v11815_v45 }
 0x4a3   :  { %6540 = vmatpush.bf16.msra.mxu0 %v11838_v60  ;;  %6566 = vmatpush.bf16.msra.mxu2 %v11842_v33  ;;  %v12002_v60 = vor.u32 %v13981_v46, %v11999_v63  ;;  %v11911_v33 = vld [vmem:[%s22350_s1 + $0x1b8] sm:$0xf0]  ;;  %v11814_v57 = vor.u32 %v13938_v34, %v11813_v24  ;;  %v11781_v46 = vld [vmem:[%s22350_s1 + $0x98] sm:$0xf]  ;;  %v12445_v24 = vld [vmem:[%s22350_s1 + $0x1c0] sm:$0xf] }
 0x4a4   :  { %v11914_v35 = vor.u32 %v13958_v16, %v11911_v33  ;;  %v13930_v63 = vld [vmem:[%s22350_s1 + $0xb4] sm:$0xf0]  ;;  %v13998_v16 = vld [vmem:[%s22350_s1 + $0x2dc] sm:$0xf]  ;;  %v14095_v34 = vld [vmem:[%s22350_s1 + $0x1dc] sm:$0xf0] }
 0x4a5   :  { %6552 = vmatpush.bf16.msra.mxu1 %v12126_v42  ;;  %6578 = vmatpush.bf16.msra.mxu3 %v12130_v50  ;;  %v12197_v42 = vld [vmem:[%s22350_s1 + $0x3d8] sm:$0xf]  ;;  %v12446_v27 = vor.u32 %v14095_v34, %v12445_v24 }
 0x4a6   :  { %6493 = vmatmul.bf16.vlgmr.msrb.gmra.mxu0 %v19850_v53  ;;  %6519 = vmatmul.bf16.vlgmr.msrb.gmra.mxu2 %v19850_v53  ;;  %v14034_v50 = vld [vmem:[%s22350_s1 + $0x3f4] sm:$0xf0] }
 0x4a7   :  { %6541 = vmatpush.bf16.msra.mxu0 %v11806_v54  ;;  %6567 = vmatpush.bf16.msra.mxu2 %v11810_v22  ;;  %v11877_v54 = vld [vmem:[%s22350_s1 + $0x158] sm:$0xf]  ;;  %v11966_v22 = vor.u32 %v13977_v51, %v11965_v44 }
 0x4a8   :  { %v11749_v44 = vld [vmem:[%s22350_s1 + $0x58] sm:$0xf] }
 0x4a9   :  { %6553 = vmatpush.bf16.msra.mxu1 %v12094_v2  ;;  %6579 = vmatpush.bf16.msra.mxu3 %v12098_v62  ;;  %v12198_v2 = vor.u32 %v14034_v50, %v12197_v42  ;;  %v12202_v62 = vor.u32 %v14030_v18, %v12199_v9  ;;  %v13922_v51 = vld [vmem:[%s22350_s1 + $0x74] sm:$0xf0]  ;;  %v12070_v42 = vor.u32 %v14002_v11, %v12069_v8  ;;  %v12703_v8 = vld [vmem:[%s22350_s1 + $0x3e0] sm:$0xf0] }
 0x4aa   :  { %v12037_v18 = vld [vmem:[%s22350_s1 + $0x298] sm:$0xf] }
 0x4ab   :  { %6542 = vmatpush.bf16.msra.mxu0 %v11774_v38  ;;  %6568 = vmatpush.bf16.msra.mxu2 %v11778_v17  ;;  %v11878_v38 = vor.u32 %v13954_v37, %v11877_v54  ;;  %v11882_v17 = vor.u32 %v13950_v40, %v11879_v55  ;;  %v13994_v9 = vld [vmem:[%s22350_s1 + $0x2b4] sm:$0xf0]  ;;  %v11750_v54 = vor.u32 %v13922_v51, %v11749_v44  ;;  %v13910_v40 = vld [vmem:[%s22350_s1 + $0x1c] sm:$0xf] }
 0x4ac   :  { %6506 = vmatmul.bf16.vlgmr.msrb.gmra.mxu1 %v19893_v10  ;;  %6532 = vmatmul.bf16.vlgmr.msrb.gmra.mxu3 %v19893_v10  ;;  %v13914_v37 = vld [vmem:[%s22350_s1 + $0x34] sm:$0xf0]  ;;  %v11719_v55 = vld [vmem:[%s22350_s1 + $0x38] sm:$0xf0] }
 0x4ad   :  { %6554 = vmatpush.bf16.msra.mxu1 %v12062_v3  ;;  %6580 = vmatpush.bf16.msra.mxu3 %v12066_v6  ;;  %v12166_v3 = vor.u32 %v14026_v58, %v12165_v21  ;;  %v12170_v6 = vor.u32 %v14022_v29, %v12167_v4  ;;  %v12005_v21 = vld [vmem:[%s22350_s1 + $0x258] sm:$0xf]  ;;  %v13982_v29 = vld [vmem:[%s22350_s1 + $0x25c] sm:$0xf] }
 0x4ae   :  { %v13986_v58 = vld [vmem:[%s22350_s1 + $0x274] sm:$0xf0]  ;;  %v12007_v4 = vld [vmem:[%s22350_s1 + $0x278] sm:$0xf0] }
 0x4af   :  { %6543 = vmatpush.bf16.msra.mxu0 %v11742_v31  ;;  %6569 = vmatpush.bf16.msra.mxu2 %v11746_v59  ;;  %v11846_v31 = vor.u32 %v13946_v26, %v11845_v43  ;;  %v11850_v59 = vor.u32 %v13942_v13, %v11847_v23  ;;  %v12006_v43 = vor.u32 %v13986_v58, %v12005_v21  ;;  %v11973_v13 = vld [vmem:[%s22350_s1 + $0x218] sm:$0xf]  ;;  %v11685_v21 = vld [vmem:[%s22352_s0 + $0x150] sm:$0xff] }
 0x4b0   :  { %v12010_v26 = vor.u32 %v13982_v29, %v12007_v4  ;;  %v13978_v23 = vld [vmem:[%s22350_s1 + $0x234] sm:$0xf0]  ;;  %v12637_v4 = vld [vmem:[%s22350_s1 + $0x340] sm:$0xf] }
 0x4b1   :  { %6555 = vmatpush.bf16.msra.mxu1 %v12030_v32  ;;  %6581 = vmatpush.bf16.msra.mxu3 %v12034_v48  ;;  %v12101_v32 = vld [vmem:[%s22350_s1 + $0x318] sm:$0xf]  ;;  %v11974_v36 = vor.u32 %v13978_v23, %v11973_v13  ;;  %v14139_v13 = vld [vmem:[%s22350_s1 + $0x344] sm:$0xf] }
 0x4b2   :  { %v14010_v48 = vld [vmem:[%s22350_s1 + $0x334] sm:$0xf0]  ;;  %v12639_v23 = vld [vmem:[%s22350_s1 + $0x360] sm:$0xf0] }
 0x4b3   :  { %6544 = vmatpush.bf16.msra.mxu0 %v11710_v0  ;;  %6570 = vmatpush.bf16.msra.mxu2 %v11714_v1  ;;  %v13926_v0 = vld [vmem:[%s22350_s1 + $0x9c] sm:$0xf] }
 0x4b4   :  { %v11783_v1 = vld [vmem:[%s22350_s1 + $0xb8] sm:$0xf0] }
 0x4b5   :  { %6556 = vmatpush.bf16.msra.mxu1 %v11998_v52  ;;  %6582 = vmatpush.bf16.msra.mxu3 %v12002_v60  ;;  %v12071_v52 = vld [vmem:[%s22350_s1 + $0x2f8] sm:$0xf0]  ;;  %v11782_v60 = vor.u32 %v13930_v63, %v11781_v46  ;;  %v11786_v33 = vor.u32 %v13926_v0, %v11783_v1  ;;  %v12701_v63 = vld [vmem:[%s22350_s1 + $0x3c0] sm:$0xf]  ;;  %v14155_v1 = vld [vmem:[%s22350_s1 + $0x3c4] sm:$0xf] }
 0x4b6   :  { %6545 = vmatmul.bf16.vlgmr.msra.gmra.mxu0 %v19850_v53  ;;  %6571 = vmatmul.bf16.vlgmr.msra.gmra.mxu2 %v19850_v53  ;;  %v12074_v50 = vor.u32 %v13998_v16, %v12071_v52  ;;  %v14159_v0 = vld [vmem:[%s22350_s1 + $0x3dc] sm:$0xf0]  ;;  %v12706_v11 = vor.u32 %v14155_v1, %v12703_v8  ;;  %v11686_v24 = vld [vmem:[%s22352_s0 + $0x158] sm:$0xff] }
 0x4b7   :  { %6589 = vmatpush.bf16.msrb.mxu0 %v11942_v49  ;;  %6615 = vmatpush.bf16.msrb.mxu2 %v11946_v5  ;;  %v12102_v49 = vor.u32 %v14010_v48, %v12101_v32  ;;  %v12106_v5 = vor.u32 %v14006_v12, %v12103_v56  ;;  %v14087_v32 = vld [vmem:[%s22350_s1 + $0x19c] sm:$0xf0]  ;;  %v14083_v48 = vld [vmem:[%s22350_s1 + $0x184] sm:$0xf] }
 0x4b8   :  { %v12381_v16 = vld [vmem:[%s22350_s1 + $0x140] sm:$0xf] }
 0x4b9   :  { %6557 = vmatpush.bf16.msra.mxu1 %v11966_v22  ;;  %6583 = vmatpush.bf16.msra.mxu3 %v11970_v61  ;;  %v11754_v22 = vor.u32 %v13918_v28, %v11751_v20  ;;  %v11717_v61 = vld [vmem:[%s22350_s1 + $0x18] sm:$0xf]  ;;  %v14079_v52 = vld [vmem:[%s22350_s1 + $0x15c] sm:$0xf0] }
 0x4ba   :  { %v12382_v44 = vor.u32 %v14079_v52, %v12381_v16  ;;  %v12669_v28 = vld [vmem:[%s22350_s1 + $0x380] sm:$0xf] }
 0x4bb   :  { %6590 = vmatpush.bf16.msrb.mxu0 %v11910_v30  ;;  %6616 = vmatpush.bf16.msrb.mxu2 %v11914_v35  ;;  %v13990_v30 = vld [vmem:[%s22350_s1 + $0x29c] sm:$0xf]  ;;  %v14151_v20 = vld [vmem:[%s22350_s1 + $0x39c] sm:$0xf0] }
 0x4bc   :  { %6558 = vmatmul.bf16.vlgmr.msra.gmra.mxu1 %v19893_v10  ;;  %6584 = vmatmul.bf16.vlgmr.msra.gmra.mxu3 %v19893_v10  ;;  %v12039_v35 = vld [vmem:[%s22350_s1 + $0x2b8] sm:$0xf0]  ;;  %v12573_v16 = vld [vmem:[%s22350_s1 + $0x2c0] sm:$0xf] }
 0x4bd   :  { %6602 = vmatpush.bf16.msrb.mxu1 %v12198_v2  ;;  %6628 = vmatpush.bf16.msrb.mxu3 %v12202_v62  ;;  %v12038_v2 = vor.u32 %v13994_v9, %v12037_v18  ;;  %v12042_v62 = vor.u32 %v13990_v30, %v12039_v35  ;;  %v12670_v30 = vor.u32 %v14151_v20, %v12669_v28  ;;  %v12671_v35 = vld [vmem:[%s22350_s1 + $0x3a0] sm:$0xf0]  ;;  %v14127_v52 = vld [vmem:[%s22350_s1 + $0x2dc] sm:$0xf0] }
 0x4bf   :  { %6591 = vmatpush.bf16.msrb.mxu0 %v11878_v38  ;;  %6617 = vmatpush.bf16.msrb.mxu2 %v11882_v17  ;;  %v11718_v38 = vor.u32 %v13914_v37, %v11717_v61  ;;  %v11722_v17 = vor.u32 %v13910_v40, %v11719_v55  ;;  %v14071_v61 = vld [vmem:[%s22350_s1 + $0x11c] sm:$0xf0]  ;;  %v14067_v37 = vld [vmem:[%s22350_s1 + $0x104] sm:$0xf] }
 0x4c1   :  { %6603 = vmatpush.bf16.msrb.mxu1 %v12166_v3  ;;  %6629 = vmatpush.bf16.msrb.mxu3 %v12170_v6  ;;  %v13974_v3 = vld [vmem:[%s22350_s1 + $0x21c] sm:$0xf] }
 0x4c2   :  { %v11975_v6 = vld [vmem:[%s22350_s1 + $0x238] sm:$0xf0] }
 0x4c3   :  { %6592 = vmatpush.bf16.msrb.mxu0 %v11846_v31  ;;  %6618 = vmatpush.bf16.msrb.mxu2 %v11850_v59  ;;  %v11978_v39 = vor.u32 %v13974_v3, %v11975_v6  ;;  %v12642_v3 = vor.u32 %v14139_v13, %v12639_v23  ;;  %v12317_v6 = vld [vmem:[%s22350_s1 + $0xc0] sm:$0xf] }
 0x4c5   :  { %6604 = vmatpush.bf16.msrb.mxu1 %v12134_v47  ;;  %6630 = vmatpush.bf16.msrb.mxu3 %v12138_v25  ;;  %v12413_v25 = vld [vmem:[%s22350_s1 + $0x180] sm:$0xf] }
 0x4c7   :  { %6593 = vmatpush.bf16.msrb.mxu0 %v11814_v57  ;;  %6619 = vmatpush.bf16.msrb.mxu2 %v11818_v15  ;;  %v12414_v57 = vor.u32 %v14087_v32, %v12413_v25  ;;  %v12415_v15 = vld [vmem:[%s22350_s1 + $0x1a0] sm:$0xf0] }
 0x4c8   :  { %v12418_v46 = vor.u32 %v14083_v48, %v12415_v15  ;;  %v14131_v32 = vld [vmem:[%s22350_s1 + $0x304] sm:$0xf]  ;;  %v12285_v15 = vld [vmem:[%s22350_s1 + $0x80] sm:$0xf] }
 0x4c9   :  { %6605 = vmatpush.bf16.msrb.mxu1 %v12102_v49  ;;  %6631 = vmatpush.bf16.msrb.mxu3 %v12106_v5  ;;  %v12702_v5 = vor.u32 %v14159_v0, %v12701_v63  ;;  %v12607_v48 = vld [vmem:[%s22350_s1 + $0x320] sm:$0xf0] }
 0x4ca   :  { %v14051_v63 = vld [vmem:[%s22350_s1 + $0x84] sm:$0xf] }
 0x4cb   :  { %6594 = vmatpush.bf16.msrb.mxu0 %v11782_v60  ;;  %6620 = vmatpush.bf16.msrb.mxu2 %v11786_v33  ;;  %v14075_v60 = vld [vmem:[%s22350_s1 + $0x144] sm:$0xf] }
 0x4cc   :  { %v12383_v33 = vld [vmem:[%s22350_s1 + $0x160] sm:$0xf0] }
 0x4cd   :  { %6606 = vmatpush.bf16.msrb.mxu1 %v12070_v42  ;;  %6632 = vmatpush.bf16.msrb.mxu3 %v12074_v50  ;;  %v12386_v51 = vor.u32 %v14075_v60, %v12383_v33  ;;  %v14147_v42 = vld [vmem:[%s22350_s1 + $0x384] sm:$0xf]  ;;  %v12574_v33 = vor.u32 %v14127_v52, %v12573_v16  ;;  %v14103_v16 = vld [vmem:[%s22350_s1 + $0x21c] sm:$0xf0] }
 0x4ce   :  { %v11683_v50 = vld [vmem:[%s22352_s0 + $0x140] sm:$0xff] }
 0x4cf   :  { %6595 = vmatpush.bf16.msrb.mxu0 %v11750_v54  ;;  %6621 = vmatpush.bf16.msrb.mxu2 %v11754_v22  ;;  %v12674_v54 = vor.u32 %v14147_v42, %v12671_v35  ;;  %v12349_v22 = vld [vmem:[%s22350_s1 + $0x100] sm:$0xf]  ;;  %v12255_v35 = vld [vmem:[%s22350_s1 + $0x60] sm:$0xf0] }
 0x4d0   :  { %v12253_v42 = vld [vmem:[%s22350_s1 + $0x40] sm:$0xf]  ;;  %v14099_v52 = vld [vmem:[%s22350_s1 + $0x204] sm:$0xf] }
 0x4d1   :  { %6607 = vmatpush.bf16.msrb.mxu1 %v12038_v2  ;;  %6633 = vmatpush.bf16.msrb.mxu3 %v12042_v62  ;;  %v12350_v2 = vor.u32 %v14071_v61, %v12349_v22  ;;  %v12351_v62 = vld [vmem:[%s22350_s1 + $0x120] sm:$0xf0]  ;;  %v12541_v22 = vld [vmem:[%s22350_s1 + $0x280] sm:$0xf] }
 0x4d2   :  { %v12354_v29 = vor.u32 %v14067_v37, %v12351_v62  ;;  %v14119_v61 = vld [vmem:[%s22350_s1 + $0x29c] sm:$0xf0]  ;;  %v14115_v37 = vld [vmem:[%s22350_s1 + $0x284] sm:$0xf] }
 0x4d3   :  { %6596 = vmatpush.bf16.msrb.mxu0 %v11718_v38  ;;  %6622 = vmatpush.bf16.msrb.mxu2 %v11722_v17  ;;  %v14143_v38 = vld [vmem:[%s22350_s1 + $0x35c] sm:$0xf0] }
 0x4d5   :  { %6608 = vmatpush.bf16.msrb.mxu1 %v12006_v43  ;;  %6634 = vmatpush.bf16.msrb.mxu3 %v12010_v26  ;;  %v12638_v26 = vor.u32 %v14143_v38, %v12637_v4  ;;  %v11687_v4 = vld [vmem:[%s22352_s0 + $0x160] sm:$0xff] }
 0x4d6   :  { %6597 = vmatmul.bf16.vlgmr.msrb.gmra.mxu0 %v19850_v53  ;;  %6623 = vmatmul.bf16.vlgmr.msrb.gmra.mxu2 %v19850_v53  ;;  %v14091_v53 = vld [vmem:[%s22350_s1 + $0x1c4] sm:$0xf] }
 0x4d7   :  { %7557 = vmatpush.bf16.msra.mxu0 %v12446_v27  ;;  %v14135_v27 = vld [vmem:[%s22350_s1 + $0x31c] sm:$0xf0] }
 0x4d9   :  { %6609 = vmatpush.bf16.msrb.mxu1 %v11974_v36  ;;  %6635 = vmatpush.bf16.msrb.mxu3 %v11978_v39  ;;  %v14063_v36 = vld [vmem:[%s22350_s1 + $0xdc] sm:$0xf0]  ;;  %v14059_v39 = vld [vmem:[%s22350_s1 + $0xc4] sm:$0xf] }
 0x4db   :  { %7558 = vmatpush.bf16.msra.mxu0 %v12414_v57  ;;  %v12610_v57 = vor.u32 %v14131_v32, %v12607_v48 }
 0x4dc   :  { %6610 = vmatmul.bf16.vlgmr.msrb.gmra.mxu1 %v19893_v10  ;;  %6636 = vmatmul.bf16.vlgmr.msrb.gmra.mxu3 %v19893_v10  ;;  %v12447_v10 = vld [vmem:[%s22350_s1 + $0x1e0] sm:$0xf0] }
 0x4dd   :  { %v12450_v45 = vor.u32 %v14091_v53, %v12447_v10  ;;  %7570 = vmatpush.bf16.msra.mxu1 %v12702_v5  ;;  %7596 = vmatpush.bf16.msra.mxu3 %v12706_v11  ;;  %v12605_v53 = vld [vmem:[%s22350_s1 + $0x300] sm:$0xf]  ;;  %v12287_v5 = vld [vmem:[%s22350_s1 + $0xa0] sm:$0xf0] }
 0x4de   :  { %v12606_v25 = vor.u32 %v14135_v27, %v12605_v53  ;;  %v12290_v11 = vor.u32 %v14051_v63, %v12287_v5  ;;  %v12509_v53 = vld [vmem:[%s22350_s1 + $0x240] sm:$0xf]  ;;  %v11688_v5 = vld [vmem:[%s22352_s0 + $0x168] sm:$0xff] }
 0x4df   :  { %7583 = vmatpush.bf16.msra.mxu2 %v12450_v45  ;;  %7559 = vmatpush.bf16.msra.mxu0 %v12382_v44  ;;  %v14123_v44 = vld [vmem:[%s22350_s1 + $0x2c4] sm:$0xf] }
 0x4e1   :  { %7571 = vmatpush.bf16.msra.mxu1 %v12670_v30  ;;  %7597 = vmatpush.bf16.msra.mxu3 %v12674_v54  ;;  %v14043_v30 = vld [vmem:[%s22350_s1 + $0x44] sm:$0xf] }
 0x4e2   :  { %v12258_v54 = vor.u32 %v14043_v30, %v12255_v35 }
 0x4e3   :  { %7584 = vmatpush.bf16.msra.mxu2 %v12418_v46  ;;  %7560 = vmatpush.bf16.msra.mxu0 %v12350_v2  ;;  %v14055_v46 = vld [vmem:[%s22350_s1 + $0x9c] sm:$0xf0]  ;;  %v12543_v2 = vld [vmem:[%s22350_s1 + $0x2a0] sm:$0xf0] }
 0x4e5   :  { %7572 = vmatpush.bf16.msra.mxu1 %v12638_v26  ;;  %7598 = vmatpush.bf16.msra.mxu3 %v12642_v3  ;;  %v12223_v26 = vld [vmem:[%s22350_s1 + $0x20] sm:$0xf0] }
 0x4e7   :  { %7585 = vmatpush.bf16.msra.mxu2 %v12386_v51  ;;  %v12575_v51 = vld [vmem:[%s22350_s1 + $0x2e0] sm:$0xf0] }
 0x4e8   :  { %v12578_v20 = vor.u32 %v14123_v44, %v12575_v51  ;;  %v12479_v51 = vld [vmem:[%s22350_s1 + $0x220] sm:$0xf0] }
 0x4e9   :  { %7573 = vmatpush.bf16.msra.mxu1 %v12606_v25  ;;  %7599 = vmatpush.bf16.msra.mxu3 %v12610_v57  ;;  %v12511_v25 = vld [vmem:[%s22350_s1 + $0x260] sm:$0xf0]  ;;  %v12421_v57 = vld [vmem:[%s22350_s1 + $0x188] sm:$0xf] }
 0x4eb   :  { %7586 = vmatpush.bf16.msra.mxu2 %v12354_v29  ;;  %v14039_v29 = vld [vmem:[%s22350_s1 + $0x1c] sm:$0xf0] }
 0x4ed   :  { %7574 = vmatpush.bf16.msra.mxu1 %v12574_v33  ;;  %7600 = vmatpush.bf16.msra.mxu3 %v12578_v20 }
 0x513   :  { %v6442_v14 = vpop.f32.mrf.mxu0 }
 0x519   :  { %v6455_v41 = vpop.f32.mrf.mxu1  ;;  %v20239_v31 = vpop.f32.mrf.mxu2 }
 0x51a   :  { %v6456_v18 = vadd.f32 %v6455_v41, %v6442_v14  ;;  %v12318_v41 = vor.u32 %v14063_v36, %v12317_v6  ;;  %v12453_v6 = vld [vmem:[%s22350_s1 + $0x1c8] sm:$0xf] }
 0x51b   :  { %v6444_v59 = vpop.f32.mrf.mxu0  ;;  %v14096_v36 = vld [vmem:[%s22350_s1 + $0x1e4] sm:$0xf0] }
 0x51c   :  { %v6641_v17 = vadd.f32 %v11683_v50, %v6456_v18  ;;  %v12319_v59 = vld [vmem:[%s22350_s1 + $0xe0] sm:$0xf0]  ;;  %7561 = vmatpush.bf16.msra.mxu0 %v12318_v41  ;;  %v14047_v50 = vld [vmem:[%s22350_s1 + $0x5c] sm:$0xf0] }
 0x51d   :  { %v12322_v34 = vor.u32 %v14059_v39, %v12319_v59  ;;  %v14092_v39 = vld [vmem:[%s22350_s1 + $0x1cc] sm:$0xf] }
 0x51e   :  { %v12203_v10 = vmul.f32 -1.442695, %v6641_v17 }
 0x51f   :  { %v20253_v47 = vpop.f32.mrf.mxu3  ;;  %7587 = vmatpush.bf16.msra.mxu2 %v12322_v34  ;;  %v12455_v34 = vld [vmem:[%s22350_s1 + $0x1e8] sm:$0xf0] }
 0x520   :  { %14451 = vpow2.f32 %v12203_v10  ;;  %v12458_v27 = vor.u32 %v14092_v39, %v12455_v34  ;;  %v14111_v10 = vld [vmem:[%s22350_s1 + $0x25c] sm:$0xf0]  ;;  %v14072_v39 = vld [vmem:[%s22350_s1 + $0x124] sm:$0xf0] }
 0x521   :  { %v6457_v12 = vpop.f32.mrf.mxu1  ;;  %v6470_v56 = vpop.f32.mrf.mxu2  ;;  %v12645_v34 = vld [vmem:[%s22350_s1 + $0x348] sm:$0xf] }
 0x522   :  { %v6482_v12 = vadd.f32 %v20253_v47, %v20239_v31  ;;  %v11684_v31 = vld [vmem:[%s22352_s0 + $0x148] sm:$0xff] }
 0x523   :  { %v6494_v49 = vpop.f32.mrf.mxu0  ;;  %7588 = vmatpush.bf16.msra.mxu2 %v12290_v11 }
 0x524   :  { %v6642_v28 = vadd.f32 %v11684_v31, %v6482_v12  ;;  %v12510_v12 = vor.u32 %v14111_v10, %v12509_v53  ;;  %v14084_v31 = vld [vmem:[%s22350_s1 + $0x18c] sm:$0xf]  ;;  %v14144_v53 = vld [vmem:[%s22350_s1 + $0x364] sm:$0xf0] }
 0x525   :  { %v14140_v10 = vld [vmem:[%s22350_s1 + $0x34c] sm:$0xf] }
 0x526   :  { %v12204_v62 = vmul.f32 -1.442695, %v6642_v28  ;;  %v14452_v13 = vpop.eup %14451  ;;  %v12709_v28 = vld [vmem:[%s22350_s1 + $0x3c8] sm:$0xf] }
 0x527   :  { %v6483_v9 = vpop.f32.mrf.mxu3  ;;  %7589 = vmatpush.bf16.msra.mxu2 %v12258_v54  ;;  %v20452_v32 = vadd.f32 1.0, %v14452_v13  ;;  %v12711_v54 = vld [vmem:[%s22350_s1 + $0x3e8] sm:$0xf0] }
 0x528   :  { %v12254_v9 = vor.u32 %v14047_v50, %v12253_v42  ;;  %v12482_v50 = vor.u32 %v14099_v52, %v12479_v51  ;;  %v12679_v13 = vld [vmem:[%s22350_s1 + $0x3a8] sm:$0xf0] }
 0x529   :  { %v6507_v40 = vpop.f32.mrf.mxu1  ;;  %v6520_v55 = vpop.f32.mrf.mxu2  ;;  %v14132_v52 = vld [vmem:[%s22350_s1 + $0x30c] sm:$0xf]  ;;  %vm6678_vm8 = vweird.f32 %v20452_v32 }
 0x52a   :  { %v6508_v58 = vadd.f32 %v6507_v40, %v6494_v49  ;;  %v12286_v49 = vor.u32 %v14055_v46, %v12285_v15  ;;  %v14088_v15 = vld [vmem:[%s22350_s1 + $0x1a4] sm:$0xf0] }
 0x52b   :  { %v6496_v43 = vpop.f32.mrf.mxu0  ;;  %v12422_v63 = vor.u32 %v14088_v15, %v12421_v57 }
 0x52c   :  { %v6643_v14 = vadd.f32 %v11685_v21, %v6508_v58  ;;  %7562 = vmatpush.bf16.msra.mxu0 %v12286_v49  ;;  %v12546_v21 = vor.u32 %v14115_v37, %v12543_v2  ;;  %v12221_v58 = vld [vmem:[%s22350_s1] sm:$0xf]  ;;  %v14035_v43 = vld [vmem:[%s22350_s1 + $0x4] sm:$0xf]  ;;  %v12391_v2 = vld [vmem:[%s22350_s1 + $0x168] sm:$0xf0] }
 0x52d   :  { %v12222_v17 = vor.u32 %v14039_v29, %v12221_v58  ;;  %v12226_v3 = vor.u32 %v14035_v43, %v12223_v26  ;;  %v12477_v49 = vld [vmem:[%s22350_s1 + $0x200] sm:$0xf]  ;;  %v12677_v29 = vld [vmem:[%s22350_s1 + $0x388] sm:$0xf] }
 0x52e   :  { %v12205_v47 = vmul.f32 -1.442695, %v6643_v14  ;;  %7601 = vmatpush.bf16.msra.mxu3 %v12546_v21  ;;  %v12478_v44 = vor.u32 %v14103_v16, %v12477_v49 }
 0x52f   :  { %v6533_v45 = vpop.f32.mrf.mxu3  ;;  %7590 = vmatpush.bf16.msra.mxu2 %v12226_v3 }
 0x530   :  { %v6534_v56 = vadd.f32 %v6533_v45, %v6520_v55  ;;  %14453 = vpow2.f32 %v12205_v47  ;;  %v12542_v55 = vor.u32 %v14119_v61, %v12541_v22  ;;  %7563 = vmatpush.bf16.msra.mxu0 %v12254_v9  ;;  %v14107_v45 = vld [vmem:[%s22350_s1 + $0x244] sm:$0xf]  ;;  %v12423_v47 = vld [vmem:[%s22350_s1 + $0x1a8] sm:$0xf0]  ;;  %v12389_v22 = vld [vmem:[%s22350_s1 + $0x148] sm:$0xf] }
 0x531   :  { %v6509_v0 = vpop.f32.mrf.mxu1  ;;  %v6522_v1 = vpop.f32.mrf.mxu2  ;;  %v12426_v11 = vor.u32 %v14084_v31, %v12423_v47  ;;  %v14156_v9 = vld [vmem:[%s22350_s1 + $0x3cc] sm:$0xf] }
 0x532   :  { %v6644_v8 = vadd.f32 %v11686_v24, %v6534_v56  ;;  %7575 = vmatpush.bf16.msra.mxu1 %v12542_v55  ;;  %v12454_v24 = vor.u32 %v14096_v36, %v12453_v6  ;;  %v12514_v56 = vor.u32 %v14107_v45, %v12511_v25  ;;  %v12714_v37 = vor.u32 %v14156_v9, %v12711_v54  ;;  %v14076_v55 = vld [vmem:[%s22350_s1 + $0x14c] sm:$0xf] }
 0x533   :  { %v6546_v60 = vpop.f32.mrf.mxu0  ;;  %7635 = vmatpush.bf16.msrb.mxu2 %v12458_v27  ;;  %v12394_v58 = vor.u32 %v14076_v55, %v12391_v2  ;;  %v12647_v45 = vld [vmem:[%s22350_s1 + $0x368] sm:$0xf0] }
 0x534   :  { %v12206_v18 = vmul.f32 -1.442695, %v6644_v8  ;;  %7564 = vmatpush.bf16.msra.mxu0 %v12222_v17  ;;  %7602 = vmatpush.bf16.msra.mxu3 %v12514_v56  ;;  %v14064_v56 = vld [vmem:[%s22350_s1 + $0xe4] sm:$0xf0]  ;;  %v12650_v31 = vor.u32 %v14140_v10, %v12647_v45 }
 0x535   :  { %v12229_v10 = vld [vmem:[%s22350_s1 + $0x8] sm:$0xf] }
 0x536   :  { %14455 = vpow2.f32 %v12206_v18  ;;  %v14454_v14 = vpop.eup %14453  ;;  %7576 = vmatpush.bf16.msra.mxu1 %v12510_v12  ;;  %v14160_v18 = vld [vmem:[%s22350_s1 + $0x3e4] sm:$0xf0] }
 0x537   :  { %v6535_v40 = vpop.f32.mrf.mxu3  ;;  %14457 = vpow2.f32 %v12204_v62  ;;  %v20460_v46 = vadd.f32 1.0, %v14454_v14  ;;  %7636 = vmatpush.bf16.msrb.mxu2 %v12426_v11  ;;  %v12710_v35 = vor.u32 %v14160_v18, %v12709_v28  ;;  %v14068_v14 = vld [vmem:[%s22350_s1 + $0x10c] sm:$0xf]  ;;  %v12325_v12 = vld [vmem:[%s22350_s1 + $0xc8] sm:$0xf] }
 0x538   :  { %7609 = vmatpush.bf16.msrb.mxu0 %v12454_v24  ;;  %14459 = vrcp.f32 %v20452_v32  ;;  %7603 = vmatpush.bf16.msra.mxu3 %v12482_v50  ;;  %v14080_v40 = vld [vmem:[%s22350_s1 + $0x164] sm:$0xf0]  ;;  %v12359_v24 = vld [vmem:[%s22350_s1 + $0x128] sm:$0xf0]  ;;  %v12326_v47 = vor.u32 %v14064_v56, %v12325_v12 }
 0x539   :  { %v6572_v38 = vpop.f32.mrf.mxu2  ;;  %v6559_v23 = vpop.f32.mrf.mxu1  ;;  %14461 = vrcp.f32 %v20460_v46  ;;  %v12390_v21 = vor.u32 %v14080_v40, %v12389_v22  ;;  %v12362_v25 = vor.u32 %v14068_v14, %v12359_v24  ;;  %v12293_v28 = vld [vmem:[%s22350_s1 + $0x88] sm:$0xf]  ;;  %v14052_v50 = vld [vmem:[%s22350_s1 + $0x8c] sm:$0xf]  ;;  %vm6708_vm11 = vweird.f32 %v20460_v46 }
 0x53a   :  { %v6560_v41 = vadd.f32 %v6559_v23, %v6546_v60  ;;  %7577 = vmatpush.bf16.msra.mxu1 %v12478_v44  ;;  %v12357_v23 = vld [vmem:[%s22350_s1 + $0x108] sm:$0xf]  ;;  %v14124_v40 = vld [vmem:[%s22350_s1 + $0x2cc] sm:$0xf] }
 0x53b   :  { %v6548_v59 = vpop.f32.mrf.mxu0  ;;  %7637 = vmatpush.bf16.msrb.mxu2 %v12394_v58  ;;  %v12261_v58 = vld [vmem:[%s22350_s1 + $0x48] sm:$0xf]  ;;  %v12263_v14 = vld [vmem:[%s22350_s1 + $0x68] sm:$0xf0] }
 0x53c   :  { %v6645_v48 = vadd.f32 %v11687_v4, %v6560_v41  ;;  %v14456_v0 = vpop.eup %14455  ;;  %7610 = vmatpush.bf16.msrb.mxu0 %v12422_v63  ;;  %7648 = vmatpush.bf16.msrb.mxu3 %v12714_v37  ;;  %v14152_v4 = vld [vmem:[%s22350_s1 + $0x3a4] sm:$0xf0]  ;;  %v12358_v59 = vor.u32 %v14072_v39, %v12357_v23 }
 0x53d   :  { %v20488_v20 = vadd.f32 1.0, %v14456_v0  ;;  %v14458_v61 = vpop.eup %14457  ;;  %v12678_v26 = vor.u32 %v14152_v4, %v12677_v29  ;;  %v14060_v0 = vld [vmem:[%s22350_s1 + $0xcc] sm:$0xf]  ;;  %v14128_v37 = vld [vmem:[%s22350_s1 + $0x2e4] sm:$0xf0] }
 0x53e   :  { %v12207_v1 = vmul.f32 -1.442695, %v6645_v48  ;;  %7622 = vmatpush.bf16.msrb.mxu1 %v12710_v35  ;;  %v20521_v17 = vpop.eup %14459  ;;  %v20523_v43 = vadd.f32 1.0, %v14458_v61  ;;  %v12646_v48 = vor.u32 %v14144_v53, %v12645_v34  ;;  %v12295_v35 = vld [vmem:[%s22350_s1 + $0xa8] sm:$0xf0] }
 0x53f   :  { %v6585_v8 = vpop.f32.mrf.mxu3  ;;  %v20531_v3 = vpop.eup %14461  ;;  %v6674_v27 = vmul.f32 %v20521_v17, %v20452_v32  ;;  %7638 = vmatpush.bf16.msrb.mxu2 %v12362_v25  ;;  %v12581_v61 = vld [vmem:[%s22350_s1 + $0x2c8] sm:$0xf]  ;;  %v12298_v2 = vor.u32 %v14052_v50, %v12295_v35  ;;  %v14116_v53 = vld [vmem:[%s22350_s1 + $0x28c] sm:$0xf]  ;;  %vm6679_vm9 = vweird.f32 %v20521_v17  ;;  %vm6723_vm2 = vweird.f32 %v20488_v20  ;;  %v12461_v50 = vld [vmem:[%s22350_s1 + $0x1d0] sm:$0xf] }
 0x540   :  { %v6586_v60 = vadd.f32 %v6585_v8, %v6572_v38  ;;  %14463 = vpow2.f32 %v12207_v1  ;;  %v14148_v38 = vld [vmem:[%s22350_s1 + $0x38c] sm:$0xf]  ;;  %7611 = vmatpush.bf16.msrb.mxu0 %v12390_v21  ;;  %v6704_v15 = vmul.f32 %v20531_v3, %v20460_v46  ;;  %v14136_v8 = vld [vmem:[%s22350_s1 + $0x324] sm:$0xf0]  ;;  %vm6709_vm10 = vweird.f32 %v20531_v3  ;;  %vm20697_vm12 = vmor %vm6678_vm8, %vm6679_vm9 }
 0x541   :  { %v6574_v33 = vpop.f32.mrf.mxu2  ;;  %v6561_v42 = vpop.f32.mrf.mxu1  ;;  %14465 = vrcp.f32 %v20488_v20  ;;  %v12682_v36 = vor.u32 %v14148_v38, %v12679_v13  ;;  %v12327_v1 = vld [vmem:[%s22350_s1 + $0xe8] sm:$0xf0]  ;;  %v6675_v11 = vsub.f32 1.0, %v6674_v27  ;;  %v14040_v56 = vld [vmem:[%s22350_s1 + $0x24] sm:$0xf0]  ;;  %vm20707_vm13 = vmor %vm6708_vm11, %vm6709_vm10  ;;  %vm6693_vm15 = vweird.f32 %v20523_v43 }
 0x542   :  { %v6646_v30 = vadd.f32 %v11688_v5, %v6586_v60  ;;  %7623 = vmatpush.bf16.msrb.mxu1 %v12678_v26  ;;  %v12330_v49 = vor.u32 %v14060_v0, %v12327_v1  ;;  %v12613_v5 = vld [vmem:[%s22350_s1 + $0x308] sm:$0xf]  ;;  %v12615_v60 = vld [vmem:[%s22350_s1 + $0x328] sm:$0xf0]  ;;  %v6705_v18 = vsub.f32 1.0, %v6704_v15  ;;  %v6684_v1 = vand.u32 2147483648, %v20452_v32 }
 0x543   :  { %7649 = vmatpush.bf16.msrb.mxu3 %v12682_v36  ;;  %v12614_v16 = vor.u32 %v14136_v8, %v12613_v5  ;;  %v12618_v51 = vor.u32 %v14132_v52, %v12615_v60  ;;  %v14056_v42 = vld [vmem:[%s22350_s1 + $0xa4] sm:$0xf0]  ;;  %v12583_v21 = vld [vmem:[%s22350_s1 + $0x2e8] sm:$0xf0]  ;;  %v6676_v4 = vmul.f32 %v20521_v17, %v6675_v11  ;;  %v11689_v36 = vld [vmem:[%s22352_s0 + $0x170] sm:$0xff]  ;;  %v12230_v11 = vor.u32 %v14040_v56, %v12229_v10 }
 0x544   :  { %v12208_v62 = vmul.f32 -1.442695, %v6646_v30  ;;  %7612 = vmatpush.bf16.msrb.mxu0 %v12358_v59  ;;  %v6682_v30 = vand.u32 2147483647, %v20452_v32  ;;  %7639 = vmatpush.bf16.msrb.mxu2 %v12330_v49  ;;  %v12294_v22 = vor.u32 %v14056_v42, %v12293_v28  ;;  %v12586_v38 = vor.u32 %v14124_v40, %v12583_v21  ;;  %v14048_v26 = vld [vmem:[%s22350_s1 + $0x64] sm:$0xf0] }
 0x545   :  { %v14044_v13 = vld [vmem:[%s22350_s1 + $0x4c] sm:$0xf]  ;;  %v12262_v39 = vor.u32 %v14048_v26, %v12261_v58  ;;  %v14120_v59 = vld [vmem:[%s22350_s1 + $0x2a4] sm:$0xf0]  ;;  %v20672_v0 = vadd.f32 %v20521_v17, %v6676_v4  ;;  %v6714_v52 = vand.u32 2147483648, %v20460_v46 }
 0x546   :  { %v14464_v41 = vpop.eup %14463  ;;  %14467 = vpow2.f32 %v12208_v62  ;;  %7624 = vmatpush.bf16.msrb.mxu1 %v12646_v48  ;;  %v12582_v62 = vor.u32 %v14128_v37, %v12581_v61  ;;  %v12266_v24 = vor.u32 %v14044_v13, %v12263_v14  ;;  %v12551_v27 = vld [vmem:[%s22350_s1 + $0x2a8] sm:$0xf0]  ;;  %vm20713_vm14 = vcmp.eq.f32.partialorder %v6682_v30, 8.507059e+37 }
 0x547   :  { %v6587_v6 = vpop.f32.mrf.mxu3  ;;  %14469 = vrcp.f32 %v20523_v43  ;;  %v20563_v57 = vpop.eup %14465  ;;  %v20567_v63 = vadd.f32 1.0, %v14464_v41  ;;  %7650 = vmatpush.bf16.msrb.mxu3 %v12650_v31  ;;  %v12549_v41 = vld [vmem:[%s22350_s1 + $0x288] sm:$0xf]  ;;  %v12554_v12 = vor.u32 %v14116_v53, %v12551_v27  ;;  %v14036_v15 = vld [vmem:[%s22350_s1 + $0xc] sm:$0xf]  ;;  %v6685_v37 = vor.u32 1.1754944e-38, %v6684_v1 }
 0x548   :  { %v20589_v44 = vmul.f32 %v20563_v57, %v20488_v20  ;;  %7613 = vmatpush.bf16.msrb.mxu0 %v12326_v47  ;;  %v6706_v6 = vmul.f32 %v20531_v3, %v6705_v18  ;;  %7640 = vmatpush.bf16.msrb.mxu2 %v12298_v2  ;;  %v12550_v34 = vor.u32 %v14120_v59, %v12549_v41  ;;  %v12231_v31 = vld [vmem:[%s22350_s1 + $0x28] sm:$0xf0]  ;;  %v6712_v18 = vand.u32 2147483647, %v20460_v46  ;;  %v11690_v46 = vld [vmem:[%s22352_s0 + $0x178] sm:$0xff] }
 0x549   :  { %14471 = vrcp.f32 %v20567_v63  ;;  %v14108_v28 = vld [vmem:[%s22350_s1 + $0x24c] sm:$0xf]  ;;  %v12485_v2 = vld [vmem:[%s22350_s1 + $0x208] sm:$0xf]  ;;  %v6681_v32 = vsel %vm20697_vm12, %v20521_v17, %v20672_v0  ;;  %vm6724_vm0 = vweird.f32 %v20563_v57  ;;  %v6729_v14 = vand.u32 2147483648, %v20488_v20 }
 0x54a   :  { %7625 = vmatpush.bf16.msrb.mxu1 %v12614_v16  ;;  %v6720_v29 = vsub.f32 1.0, %v20589_v44  ;;  %v6707_v5 = vadd.f32 %v20531_v3, %v6706_v6  ;;  %v12517_v16 = vld [vmem:[%s22350_s1 + $0x248] sm:$0xf]  ;;  %v12234_v44 = vor.u32 %v14036_v15, %v12231_v31  ;;  %v12519_v35 = vld [vmem:[%s22350_s1 + $0x268] sm:$0xf0]  ;;  %vm6713_vm1 = vcmp.eq.f32.partialorder %v6712_v18, 8.507059e+37  ;;  %vm20754_vm4 = vmor %vm6723_vm2, %vm6724_vm0 }
 0x54b   :  { %7651 = vmatpush.bf16.msrb.mxu3 %v12618_v51  ;;  %v14112_v51 = vld [vmem:[%s22350_s1 + $0x264] sm:$0xf0]  ;;  %v12522_v40 = vor.u32 %v14108_v28, %v12519_v35  ;;  %v14100_v4 = vld [vmem:[%s22350_s1 + $0x20c] sm:$0xf]  ;;  %v6727_v53 = vand.u32 2147483647, %v20488_v20  ;;  %vm6738_vm9 = vweird.f32 %v20567_v63 }
 0x54c   :  { %v14468_v33 = vpop.eup %14467  ;;  %7614 = vmatpush.bf16.msrb.mxu0 %v12294_v22  ;;  %7641 = vmatpush.bf16.msrb.mxu2 %v12266_v24  ;;  %v6721_v42 = vmul.f32 %v20563_v57, %v6720_v29  ;;  %v6711_v30 = vsel %vm20707_vm13, %v20531_v3, %v6707_v5  ;;  %v14104_v29 = vld [vmem:[%s22350_s1 + $0x224] sm:$0xf0]  ;;  %v12487_v17 = vld [vmem:[%s22350_s1 + $0x228] sm:$0xf0]  ;;  %v6697_v20 = vand.u32 2147483647, %v20523_v43 }
 0x54d   :  { %v20605_v54 = vpop.eup %14469  ;;  %v20616_v55 = vadd.f32 1.0, %v14468_v33  ;;  %v12486_v13 = vor.u32 %v14104_v29, %v12485_v2  ;;  %vm6728_vm6 = vcmp.eq.f32.partialorder %v6727_v53, 8.507059e+37  ;;  %v12431_v29 = vld [vmem:[%s22350_s1 + $0x1b0] sm:$0xf0]  ;;  %v12685_v53 = vld [vmem:[%s22350_s1 + $0x390] sm:$0xf] }
 0x54e   :  { %v20634_v23 = vmul.f32 %v20605_v54, %v20523_v43  ;;  %7626 = vmatpush.bf16.msrb.mxu1 %v12582_v62  ;;  %vm6694_vm3 = vweird.f32 %v20605_v54  ;;  %vm6698_vm8 = vcmp.eq.f32.partialorder %v6697_v20, 8.507059e+37  ;;  %v14073_v20 = vld [vmem:[%s22350_s1 + $0x12c] sm:$0xf0] }
 0x54f   :  { %v20658_v45 = vpop.eup %14471  ;;  %14473 = vrcp.f32 %v20616_v55  ;;  %7652 = vmatpush.bf16.msrb.mxu3 %v12586_v38  ;;  %v6715_v38 = vor.u32 1.1754944e-38, %v6714_v52  ;;  %vm20771_vm5 = vmor %vm6693_vm15, %vm6694_vm3  ;;  %v6757_v22 = vand.u32 2147483647, %v20616_v55  ;;  %v6759_v61 = vand.u32 2147483648, %v20616_v55 }
 0x550   :  { %7615 = vmatpush.bf16.msrb.mxu0 %v12262_v39  ;;  %v6690_v49 = vsub.f32 1.0, %v20634_v23  ;;  %v6734_v60 = vmul.f32 %v20658_v45, %v20567_v63  ;;  %7642 = vmatpush.bf16.msrb.mxu2 %v12234_v44  ;;  %v6722_v23 = vadd.f32 %v20563_v57, %v6721_v42  ;;  %v12490_v39 = vor.u32 %v14100_v4, %v12487_v17  ;;  %v14161_v17 = vld [vmem:[%s22350_s1 + $0x3ec] sm:$0xf0] }
 0x551   :  { %v6716_v59 = vsel %vm6713_vm1, %v6715_v38, %v6711_v30  ;;  %vm6739_vm7 = vweird.f32 %v20658_v45  ;;  %vm6753_vm13 = vweird.f32 %v20616_v55  ;;  %v14089_v30 = vld [vmem:[%s22350_s1 + $0x1ac] sm:$0xf0]  ;;  %vm6758_vm15 = vcmp.eq.f32.partialorder %v6757_v22, 8.507059e+37  ;;  %v14157_v38 = vld [vmem:[%s22350_s1 + $0x3d4] sm:$0xf] }
 0x552   :  { %7627 = vmatpush.bf16.msrb.mxu1 %v12550_v34  ;;  %v6691_v58 = vmul.f32 %v20605_v54, %v6690_v49  ;;  %v6735_v26 = vsub.f32 1.0, %v6734_v60  ;;  %v6765_v56 = vmul.f32 %v6716_v59, %v19800_v7  ;;  %v6726_v31 = vsel %vm20754_vm4, %v20563_v57, %v6722_v23  ;;  %vm6740_vm10 = vmor %vm6738_vm9, %vm6739_vm7  ;;  %v12399_v59 = vld [vmem:[%s22350_s1 + $0x170] sm:$0xf0] }
 0x553   :  { %v6598_v9 = vpop.f32.mrf.mxu0  ;;  %7653 = vmatpush.bf16.msrb.mxu3 %v12554_v12  ;;  %v6699_v12 = vand.u32 2147483648, %v20523_v43  ;;  %v6742_v43 = vand.u32 2147483647, %v20567_v63  ;;  %v6760_v4 = vor.u32 1.1754944e-38, %v6759_v61  ;;  %v12303_v22 = vld [vmem:[%s22350_s1 + $0xb0] sm:$0xf0] }
 0x554   :  { %7616 = vmatpush.bf16.msrb.mxu0 %v12230_v11  ;;  %v6692_v34 = vadd.f32 %v20605_v54, %v6691_v58  ;;  %v14085_v58 = vld [vmem:[%s22350_s1 + $0x194] sm:$0xf] }
 0x555   :  { %v20723_v62 = vpop.eup %14473  ;;  %vm6743_vm11 = vcmp.eq.f32.partialorder %v6742_v43, 8.507059e+37 }
 0x556   :  { %v6749_v41 = vmul.f32 %v20723_v62, %v20616_v55  ;;  %v6696_v7 = vsel %vm20771_vm5, %v20605_v54, %v6692_v34  ;;  %vm6754_vm12 = vweird.f32 %v20723_v62 }
 0x557   :  { %7654 = vmatpush.bf16.msrb.mxu3 %v12522_v40 }
 0x558   :  { %v6750_v0 = vsub.f32 1.0, %v6749_v41  ;;  %v14077_v41 = vld [vmem:[%s22350_s1 + $0x154] sm:$0xf] }
 0x559   :  { %v6611_v25 = vpop.f32.mrf.mxu1  ;;  %v6624_v48 = vpop.f32.mrf.mxu2 }
 0x55a   :  { %v6612_v47 = vadd.f32 %v6611_v25, %v6598_v9  ;;  %v12518_v9 = vor.u32 %v14112_v51, %v12517_v16  ;;  %v6736_v25 = vmul.f32 %v20658_v45, %v6735_v26  ;;  %v6744_v16 = vand.u32 2147483648, %v20567_v63  ;;  %v14097_v63 = vld [vmem:[%s22350_s1 + $0x1ec] sm:$0xf0]  ;;  %v12719_v26 = vld [vmem:[%s22350_s1 + $0x3f0] sm:$0xf0] }
 0x55b   :  { %v6600_v8 = vpop.f32.mrf.mxu0  ;;  %7655 = vmatpush.bf16.msrb.mxu3 %v12490_v39  ;;  %v6751_v54 = vmul.f32 %v20723_v62, %v6750_v0  ;;  %v12462_v40 = vor.u32 %v14097_v63, %v12461_v50  ;;  %v12722_v34 = vor.u32 %v14157_v38, %v12719_v26  ;;  %v14133_v50 = vld [vmem:[%s22350_s1 + $0x314] sm:$0xf]  ;;  %v12557_v26 = vld [vmem:[%s22350_s1 + $0x290] sm:$0xf] }
 0x55c   :  { %v6647_v33 = vadd.f32 %v11689_v36, %v6612_v47  ;;  %7628 = vmatpush.bf16.msrb.mxu1 %v12518_v9  ;;  %v6730_v47 = vor.u32 1.1754944e-38, %v6729_v14  ;;  %v6737_v57 = vadd.f32 %v20658_v45, %v6736_v25  ;;  %v6700_v8 = vor.u32 1.1754944e-38, %v6699_v12  ;;  %v14081_v14 = vld [vmem:[%s22350_s1 + $0x16c] sm:$0xf0]  ;;  %v14149_v25 = vld [vmem:[%s22350_s1 + $0x394] sm:$0xf] }
 0x55d   :  { %v6745_v28 = vor.u32 1.1754944e-38, %v6744_v16  ;;  %v6752_v18 = vadd.f32 %v20723_v62, %v6751_v54  ;;  %v12333_v16 = vld [vmem:[%s22350_s1 + $0xd0] sm:$0xf]  ;;  %v14061_v54 = vld [vmem:[%s22350_s1 + $0xd4] sm:$0xf] }
 0x55e   :  { %14475 = vtanh.f32 %v6647_v33  ;;  %v6731_v11 = vsel %vm6728_vm6, %v6730_v47, %v6726_v31  ;;  %v6701_v60 = vsel %vm6698_vm8, %v6700_v8, %v6696_v7  ;;  %v6741_v51 = vsel %vm6740_vm10, %v20658_v45, %v6737_v57  ;;  %v12463_v45 = vld [vmem:[%s22350_s1 + $0x1f0] sm:$0xf0]  ;;  %v12653_v7 = vld [vmem:[%s22350_s1 + $0x350] sm:$0xf] }
 0x55f   :  { %v6637_v21 = vpop.f32.mrf.mxu3  ;;  %v6766_v33 = vmul.f32 %v6731_v11, %v19814_v19  ;;  %v14093_v19 = vld [vmem:[%s22350_s1 + $0x1d4] sm:$0xf]  ;;  %v6746_v35 = vsel %vm6743_vm11, %v6745_v28, %v6741_v51  ;;  %v12621_v51 = vld [vmem:[%s22350_s1 + $0x310] sm:$0xf] }
 0x560   :  { %v6638_v3 = vadd.f32 %v6637_v21, %v6624_v48  ;;  %v6686_v48 = vsel %vm20713_vm14, %v6685_v37, %v6681_v32  ;;  %7629 = vmatpush.bf16.msrb.mxu1 %v12486_v13  ;;  %vm20809_vm14 = vmor %vm6753_vm13, %vm6754_vm12  ;;  %v12466_v2 = vor.u32 %v14093_v19, %v12463_v45  ;;  %v12429_v32 = vld [vmem:[%s22350_s1 + $0x190] sm:$0xf]  ;;  %v14069_v31 = vld [vmem:[%s22350_s1 + $0x114] sm:$0xf] }
 0x561   :  { %v6613_v6 = vpop.f32.mrf.mxu1  ;;  %v6626_v36 = vpop.f32.mrf.mxu2  ;;  %v6756_v21 = vsel %vm20809_vm14, %v20723_v62, %v6752_v18  ;;  %v12717_v62 = vld [vmem:[%s22350_s1 + $0x3d0] sm:$0xf]  ;;  %v12430_v23 = vor.u32 %v14089_v30, %v12429_v32  ;;  %v12367_v47 = vld [vmem:[%s22350_s1 + $0x130] sm:$0xf0] }
 0x562   :  { %v6648_v24 = vadd.f32 %v11690_v46, %v6638_v3  ;;  %v6761_v13 = vsel %vm6758_vm15, %v6760_v4, %v6756_v21  ;;  %v12434_v6 = vor.u32 %v14085_v58, %v12431_v29  ;;  %v12397_v36 = vld [vmem:[%s22350_s1 + $0x150] sm:$0xf]  ;;  %v14141_v57 = vld [vmem:[%s22350_s1 + $0x354] sm:$0xf]  ;;  %v12370_v43 = vor.u32 %v14069_v31, %v12367_v47 }
 0x563   :  { %v12398_v12 = vor.u32 %v14081_v14, %v12397_v36  ;;  %v12655_v8 = vld [vmem:[%s22350_s1 + $0x370] sm:$0xf0]  ;;  %v14137_v28 = vld [vmem:[%s22350_s1 + $0x32c] sm:$0xf0] }
 0x564   :  { %v14476_v27 = vpop.eup %14475  ;;  %14477 = vtanh.f32 %v6648_v24  ;;  %v12718_v24 = vor.u32 %v14161_v17, %v12717_v62  ;;  %v12623_v18 = vld [vmem:[%s22350_s1 + $0x330] sm:$0xf0]  ;;  %v12301_v45 = vld [vmem:[%s22350_s1 + $0x90] sm:$0xf]  ;;  %v12622_v61 = vor.u32 %v14137_v28, %v12621_v51  ;;  %v14158_v51 = vld [vmem:[%s22350_s1 + $0x3dc] sm:$0xf] }
 0x565   :  { %v6767_v15 = vmul.f32 %v14476_v27, %v6686_v48  ;;  %v14153_v27 = vld [vmem:[%s22350_s1 + $0x3ac] sm:$0xf0]  ;;  %v12687_v48 = vld [vmem:[%s22350_s1 + $0x3b0] sm:$0xf0]  ;;  %v12727_v28 = vld [vmem:[%s22350_s1 + $0x3f8] sm:$0xf0] }
 0x566   :  { %v12686_v0 = vor.u32 %v14153_v27, %v12685_v53  ;;  %v12690_v1 = vor.u32 %v14149_v25, %v12687_v48  ;;  %v12589_v46 = vld [vmem:[%s22350_s1 + $0x2d0] sm:$0xf]  ;;  %v12591_v32 = vld [vmem:[%s22350_s1 + $0x2f0] sm:$0xf0]  ;;  %v14094_v25 = vld [vmem:[%s22350_s1 + $0x1dc] sm:$0xf] }
 0x567   :  { %v20775_v49 = vadd.f32 %v6767_v15, %v6765_v56  ;;  %v6639_v5 = vpop.f32.mrf.mxu3  ;;  %v12402_v56 = vor.u32 %v14077_v41, %v12399_v59  ;;  %v12365_v15 = vld [vmem:[%s22350_s1 + $0x110] sm:$0xf]  ;;  %v14045_v4 = vld [vmem:[%s22350_s1 + $0x54] sm:$0xf]  ;;  %v12471_v48 = vld [vmem:[%s22350_s1 + $0x1f8] sm:$0xf0] }
 0x568   :  { %v14145_v5 = vld [vmem:[%s22350_s1 + $0x36c] sm:$0xf0]  ;;  %v12366_v11 = vor.u32 %v14073_v20, %v12365_v15  ;;  %v12271_v62 = vld [vmem:[%s22350_s1 + $0x70] sm:$0xf0] }
 0x569   :  { %14479 = vtanh.f32 %v20775_v49  ;;  %v12269_v58 = vld [vmem:[%s22350_s1 + $0x50] sm:$0xf]  ;;  %v12274_v36 = vor.u32 %v14045_v4, %v12271_v62  ;;  %v14037_v41 = vld [vmem:[%s22350_s1 + $0x14] sm:$0xf]  ;;  %v14070_v4 = vld [vmem:[%s22350_s1 + $0x11c] sm:$0xf] }
 0x56a   :  { %v14478_v52 = vpop.eup %14477  ;;  %v14049_v29 = vld [vmem:[%s22350_s1 + $0x6c] sm:$0xf0]  ;;  %v12239_v59 = vld [vmem:[%s22350_s1 + $0x30] sm:$0xf0]  ;;  %v12375_v62 = vld [vmem:[%s22350_s1 + $0x138] sm:$0xf0] }
 0x56b   :  { %v6768_v44 = vmul.f32 %v14478_v52, %v6701_v60  ;;  %v14065_v52 = vld [vmem:[%s22350_s1 + $0xec] sm:$0xf0]  ;;  %v12335_v60 = vld [vmem:[%s22350_s1 + $0xf0] sm:$0xf0]  ;;  %v12242_v47 = vor.u32 %v14037_v41, %v12239_v59  ;;  %v14062_v41 = vld [vmem:[%s22350_s1 + $0xdc] sm:$0xf] }
 0x56c   :  { %v12334_v63 = vor.u32 %v14065_v52, %v12333_v16  ;;  %v12338_v19 = vor.u32 %v14061_v54, %v12335_v60  ;;  %v14041_v14 = vld [vmem:[%s22350_s1 + $0x2c] sm:$0xf0]  ;;  %v14109_v15 = vld [vmem:[%s22350_s1 + $0x254] sm:$0xf]  ;;  %v12343_v59 = vld [vmem:[%s22350_s1 + $0xf8] sm:$0xf0] }
 0x56d   :  { %v20789_v42 = vadd.f32 %v6768_v44, %v6766_v33  ;;  %v12654_v33 = vor.u32 %v14145_v5, %v12653_v7  ;;  %v12658_v44 = vor.u32 %v14141_v57, %v12655_v8  ;;  %v12527_v20 = vld [vmem:[%s22350_s1 + $0x270] sm:$0xf0]  ;;  %v12437_v7 = vld [vmem:[%s22350_s1 + $0x198] sm:$0xf]  ;;  %v14086_v57 = vld [vmem:[%s22350_s1 + $0x19c] sm:$0xf] }
 0x56e   :  { %v14090_v5 = vld [vmem:[%s22350_s1 + $0x1b4] sm:$0xf0]  ;;  %v12493_v16 = vld [vmem:[%s22350_s1 + $0x210] sm:$0xf]  ;;  %v14101_v54 = vld [vmem:[%s22350_s1 + $0x214] sm:$0xf] }
 0x56f   :  { %v14480_v9 = vpop.eup %14479  ;;  %14481 = vtanh.f32 %v20789_v42  ;;  %v14105_v52 = vld [vmem:[%s22350_s1 + $0x22c] sm:$0xf0]  ;;  %v12495_v60 = vld [vmem:[%s22350_s1 + $0x230] sm:$0xf0] }
 0x570   :  { %v6773_v37 = vmul.f32 %v14480_v9, %v6746_v35  ;;  %v14057_v9 = vld [vmem:[%s22350_s1 + $0xac] sm:$0xf0]  ;;  %v14053_v35 = vld [vmem:[%s22350_s1 + $0x94] sm:$0xf] }
 0x571   :  { %v12302_v30 = vor.u32 %v14057_v9, %v12301_v45  ;;  %v12306_v21 = vor.u32 %v14053_v35, %v12303_v22  ;;  %v12498_v45 = vor.u32 %v14101_v54, %v12495_v60  ;;  %v14082_v9 = vld [vmem:[%s22350_s1 + $0x174] sm:$0xf0]  ;;  %v14078_v35 = vld [vmem:[%s22350_s1 + $0x15c] sm:$0xf] }
 0x572   :  { %12209 = vst [vmem:[%s22354_s4 + $0x50] sm:$0xff] %v6773_v37  ;;  %v20825_v55 = vpack.c.bf16 %v6773_v37, %v6773_v37  ;;  %v12626_v37 = vor.u32 %v14133_v50, %v12623_v18  ;;  %v12438_v50 = vor.u32 %v14090_v5, %v12437_v7  ;;  %v12407_v22 = vld [vmem:[%s22350_s1 + $0x178] sm:$0xf0]  ;;  %v12597_v7 = vld [vmem:[%s22350_s1 + $0x2d8] sm:$0xf] }
 0x573   :  { %v14130_v5 = vld [vmem:[%s22350_s1 + $0x2f4] sm:$0xf0]  ;;  %v14046_v54 = vld [vmem:[%s22350_s1 + $0x5c] sm:$0xf] }
 0x574   :  { %7565 = vmatmul.bf16.vlgmr.msra.gmra.mxu0 %v20825_v55  ;;  %7591 = vmatmul.bf16.vlgmr.msra.gmra.mxu2 %v20825_v55  ;;  %v12279_v60 = vld [vmem:[%s22350_s1 + $0x78] sm:$0xf0] }
 0x575   :  { %v14482_v3 = vpop.eup %14481  ;;  %7661 = vmatpush.bf16.msra.mxu0 %v12462_v40  ;;  %7687 = vmatpush.bf16.msra.mxu2 %v12466_v2  ;;  %v14129_v40 = vld [vmem:[%s22350_s1 + $0x2ec] sm:$0xf0]  ;;  %v14125_v2 = vld [vmem:[%s22350_s1 + $0x2d4] sm:$0xf] }
 0x576   :  { %v6774_v39 = vmul.f32 %v14482_v3, %v6761_v13  ;;  %v12590_v17 = vor.u32 %v14129_v40, %v12589_v46  ;;  %v12594_v38 = vor.u32 %v14125_v2, %v12591_v32  ;;  %v14121_v3 = vld [vmem:[%s22350_s1 + $0x2ac] sm:$0xf0]  ;;  %v14117_v13 = vld [vmem:[%s22350_s1 + $0x294] sm:$0xf]  ;;  %v12693_v46 = vld [vmem:[%s22350_s1 + $0x398] sm:$0xf] }
 0x577   :  { %v12558_v53 = vor.u32 %v14121_v3, %v12557_v26  ;;  %v14154_v40 = vld [vmem:[%s22350_s1 + $0x3b4] sm:$0xf0]  ;;  %v14150_v2 = vld [vmem:[%s22350_s1 + $0x39c] sm:$0xf] }
 0x578   :  { %12210 = vst [vmem:[%s22354_s4 + $0x58] sm:$0xff] %v6774_v39  ;;  %v20868_v10 = vpack.c.bf16 %v6774_v39, %v6774_v39  ;;  %v12237_v39 = vld [vmem:[%s22350_s1 + $0x10] sm:$0xf]  ;;  %v12695_v32 = vld [vmem:[%s22350_s1 + $0x3b8] sm:$0xf0] }
 0x579   :  { %7662 = vmatpush.bf16.msra.mxu0 %v12430_v23  ;;  %7688 = vmatpush.bf16.msra.mxu2 %v12434_v6  ;;  %v12559_v23 = vld [vmem:[%s22350_s1 + $0x2b0] sm:$0xf0]  ;;  %v12270_v6 = vor.u32 %v14049_v29, %v12269_v58  ;;  %v12238_v31 = vor.u32 %v14041_v14, %v12237_v39  ;;  %v12373_v58 = vld [vmem:[%s22350_s1 + $0x118] sm:$0xf] }
 0x57a   :  { %7578 = vmatmul.bf16.vlgmr.msra.gmra.mxu1 %v20868_v10  ;;  %7604 = vmatmul.bf16.vlgmr.msra.gmra.mxu3 %v20868_v10  ;;  %v12562_v27 = vor.u32 %v14117_v13, %v12559_v23  ;;  %v14074_v29 = vld [vmem:[%s22350_s1 + $0x134] sm:$0xf0]  ;;  %v14142_v13 = vld [vmem:[%s22350_s1 + $0x35c] sm:$0xf] }
 0x57b   :  { %7674 = vmatpush.bf16.msra.mxu1 %v12718_v24  ;;  %7700 = vmatpush.bf16.msra.mxu3 %v12722_v34  ;;  %v12469_v24 = vld [vmem:[%s22350_s1 + $0x1d8] sm:$0xf]  ;;  %v12663_v23 = vld [vmem:[%s22350_s1 + $0x378] sm:$0xf0] }
 0x57c   :  { %v14098_v34 = vld [vmem:[%s22350_s1 + $0x1f4] sm:$0xf0] }
 0x57d   :  { %7663 = vmatpush.bf16.msra.mxu0 %v12398_v12  ;;  %7689 = vmatpush.bf16.msra.mxu2 %v12402_v56  ;;  %v12525_v12 = vld [vmem:[%s22350_s1 + $0x250] sm:$0xf]  ;;  %v12661_v26 = vld [vmem:[%s22350_s1 + $0x358] sm:$0xf] }
 0x57e   :  { %v14113_v56 = vld [vmem:[%s22350_s1 + $0x26c] sm:$0xf0]  ;;  %v14146_v3 = vld [vmem:[%s22350_s1 + $0x374] sm:$0xf0] }
 0x57f   :  { %7675 = vmatpush.bf16.msra.mxu1 %v12686_v0  ;;  %7701 = vmatpush.bf16.msra.mxu3 %v12690_v1  ;;  %v12470_v0 = vor.u32 %v14098_v34, %v12469_v24  ;;  %v12474_v1 = vor.u32 %v14094_v25, %v12471_v48  ;;  %v12526_v8 = vor.u32 %v14113_v56, %v12525_v12  ;;  %v12341_v39 = vld [vmem:[%s22350_s1 + $0xd8] sm:$0xf]  ;;  %v14134_v25 = vld [vmem:[%s22350_s1 + $0x31c] sm:$0xf] }
 0x580   :  { %v14066_v14 = vld [vmem:[%s22350_s1 + $0xf4] sm:$0xf0]  ;;  %v12662_v24 = vor.u32 %v14146_v3, %v12661_v26  ;;  %v12666_v34 = vor.u32 %v14142_v13, %v12663_v23  ;;  %v12631_v48 = vld [vmem:[%s22350_s1 + $0x338] sm:$0xf0]  ;;  %v12346_v56 = vor.u32 %v14062_v41, %v12343_v59 }
 0x581   :  { %7664 = vmatpush.bf16.msra.mxu0 %v12366_v11  ;;  %7690 = vmatpush.bf16.msra.mxu2 %v12370_v43  ;;  %v12530_v11 = vor.u32 %v14109_v15, %v12527_v20  ;;  %v12439_v43 = vld [vmem:[%s22350_s1 + $0x1b8] sm:$0xf0]  ;;  %v12342_v12 = vor.u32 %v14066_v14, %v12341_v39  ;;  %v12309_v15 = vld [vmem:[%s22350_s1 + $0x98] sm:$0xf]  ;;  %v12973_v39 = vld [vmem:[%s22350_s1 + $0x1c0] sm:$0xf] }
 0x582   :  { %v12442_v18 = vor.u32 %v14086_v57, %v12439_v43  ;;  %v14058_v20 = vld [vmem:[%s22350_s1 + $0xb4] sm:$0xf0]  ;;  %v14126_v57 = vld [vmem:[%s22350_s1 + $0x2dc] sm:$0xf]  ;;  %v14223_v14 = vld [vmem:[%s22350_s1 + $0x1dc] sm:$0xf0] }
 0x583   :  { %7676 = vmatpush.bf16.msra.mxu1 %v12654_v33  ;;  %7702 = vmatpush.bf16.msra.mxu3 %v12658_v44  ;;  %v12725_v33 = vld [vmem:[%s22350_s1 + $0x3d8] sm:$0xf]  ;;  %v12974_v41 = vor.u32 %v14223_v14, %v12973_v39  ;;  %v13133_v14 = vld [vmem:[%s22350_s1 + $0x300] sm:$0xf] }
 0x584   :  { %7617 = vmatmul.bf16.vlgmr.msrb.gmra.mxu0 %v20825_v55  ;;  %7643 = vmatmul.bf16.vlgmr.msrb.gmra.mxu2 %v20825_v55  ;;  %v14162_v44 = vld [vmem:[%s22350_s1 + $0x3f4] sm:$0xf0] }
 0x585   :  { %7665 = vmatpush.bf16.msra.mxu0 %v12334_v63  ;;  %7691 = vmatpush.bf16.msra.mxu2 %v12338_v19  ;;  %v12405_v63 = vld [vmem:[%s22350_s1 + $0x158] sm:$0xf]  ;;  %v12494_v19 = vor.u32 %v14105_v52, %v12493_v16 }
 0x586   :  { %v12277_v16 = vld [vmem:[%s22350_s1 + $0x58] sm:$0xf] }
 0x587   :  { %7677 = vmatpush.bf16.msra.mxu1 %v12622_v61  ;;  %7703 = vmatpush.bf16.msra.mxu3 %v12626_v37  ;;  %v12726_v61 = vor.u32 %v14162_v44, %v12725_v33  ;;  %v12730_v37 = vor.u32 %v14158_v51, %v12727_v28  ;;  %v14050_v52 = vld [vmem:[%s22350_s1 + $0x74] sm:$0xf0]  ;;  %v12598_v33 = vor.u32 %v14130_v5, %v12597_v7 }
 0x588   :  { %v12565_v51 = vld [vmem:[%s22350_s1 + $0x298] sm:$0xf] }
 0x589   :  { %7666 = vmatpush.bf16.msra.mxu0 %v12302_v30  ;;  %7692 = vmatpush.bf16.msra.mxu2 %v12306_v21  ;;  %v12406_v30 = vor.u32 %v14082_v9, %v12405_v63  ;;  %v12410_v21 = vor.u32 %v14078_v35, %v12407_v22  ;;  %v14122_v28 = vld [vmem:[%s22350_s1 + $0x2b4] sm:$0xf0]  ;;  %v12278_v63 = vor.u32 %v14050_v52, %v12277_v16  ;;  %v14038_v35 = vld [vmem:[%s22350_s1 + $0x1c] sm:$0xf]  ;;  %v12911_v16 = vld [vmem:[%s22350_s1 + $0x160] sm:$0xf0] }
 0x58a   :  { %7630 = vmatmul.bf16.vlgmr.msrb.gmra.mxu1 %v20868_v10  ;;  %7656 = vmatmul.bf16.vlgmr.msrb.gmra.mxu3 %v20868_v10  ;;  %v14042_v9 = vld [vmem:[%s22350_s1 + $0x34] sm:$0xf0]  ;;  %v12247_v22 = vld [vmem:[%s22350_s1 + $0x38] sm:$0xf0] }
 0x58b   :  { %7678 = vmatpush.bf16.msra.mxu1 %v12590_v17  ;;  %7704 = vmatpush.bf16.msra.mxu3 %v12594_v38  ;;  %v12694_v17 = vor.u32 %v14154_v40, %v12693_v46  ;;  %v12698_v38 = vor.u32 %v14150_v2, %v12695_v32  ;;  %v12533_v46 = vld [vmem:[%s22350_s1 + $0x258] sm:$0xf]  ;;  %v14110_v2 = vld [vmem:[%s22350_s1 + $0x25c] sm:$0xf] }
 0x58c   :  { %v14114_v40 = vld [vmem:[%s22350_s1 + $0x274] sm:$0xf0]  ;;  %v12535_v32 = vld [vmem:[%s22350_s1 + $0x278] sm:$0xf0] }
 0x58d   :  { %7667 = vmatpush.bf16.msra.mxu0 %v12270_v6  ;;  %7693 = vmatpush.bf16.msra.mxu2 %v12274_v36  ;;  %v12374_v6 = vor.u32 %v14074_v29, %v12373_v58  ;;  %v12378_v36 = vor.u32 %v14070_v4, %v12375_v62  ;;  %v12534_v58 = vor.u32 %v14114_v40, %v12533_v46  ;;  %v12501_v4 = vld [vmem:[%s22350_s1 + $0x218] sm:$0xf] }
 0x58e   :  { %v12538_v29 = vor.u32 %v14110_v2, %v12535_v32  ;;  %v14106_v62 = vld [vmem:[%s22350_s1 + $0x234] sm:$0xf0]  ;;  %v13165_v2 = vld [vmem:[%s22350_s1 + $0x340] sm:$0xf] }
 0x58f   :  { %7679 = vmatpush.bf16.msra.mxu1 %v12558_v53  ;;  %7705 = vmatpush.bf16.msra.mxu3 %v12562_v27  ;;  %v12629_v53 = vld [vmem:[%s22350_s1 + $0x318] sm:$0xf]  ;;  %v12502_v26 = vor.u32 %v14106_v62, %v12501_v4  ;;  %v14271_v32 = vld [vmem:[%s22350_s1 + $0x35c] sm:$0xf0]  ;;  %v13167_v4 = vld [vmem:[%s22350_s1 + $0x360] sm:$0xf0] }
 0x590   :  { %v14138_v27 = vld [vmem:[%s22350_s1 + $0x334] sm:$0xf0] }
 0x591   :  { %7668 = vmatpush.bf16.msra.mxu0 %v12238_v31  ;;  %7694 = vmatpush.bf16.msra.mxu2 %v12242_v47  ;;  %v14054_v31 = vld [vmem:[%s22350_s1 + $0x9c] sm:$0xf] }
 0x592   :  { %v12311_v47 = vld [vmem:[%s22350_s1 + $0xb8] sm:$0xf0] }
 0x593   :  { %7680 = vmatpush.bf16.msra.mxu1 %v12526_v8  ;;  %7706 = vmatpush.bf16.msra.mxu3 %v12530_v11  ;;  %v12599_v8 = vld [vmem:[%s22350_s1 + $0x2f8] sm:$0xf0]  ;;  %v12310_v11 = vor.u32 %v14058_v20, %v12309_v15  ;;  %v12314_v43 = vor.u32 %v14054_v31, %v12311_v47  ;;  %v13229_v20 = vld [vmem:[%s22350_s1 + $0x3c0] sm:$0xf]  ;;  %v14283_v47 = vld [vmem:[%s22350_s1 + $0x3c4] sm:$0xf] }
 0x594   :  { %7669 = vmatmul.bf16.vlgmr.msra.gmra.mxu0 %v20825_v55  ;;  %7695 = vmatmul.bf16.vlgmr.msra.gmra.mxu2 %v20825_v55  ;;  %v12602_v44 = vor.u32 %v14126_v57, %v12599_v8  ;;  %v14287_v31 = vld [vmem:[%s22350_s1 + $0x3dc] sm:$0xf0] }
 0x595   :  { %7713 = vmatpush.bf16.msrb.mxu0 %v12470_v0  ;;  %7739 = vmatpush.bf16.msrb.mxu2 %v12474_v1  ;;  %v12630_v0 = vor.u32 %v14138_v27, %v12629_v53  ;;  %v12634_v1 = vor.u32 %v14134_v25, %v12631_v48  ;;  %v14215_v53 = vld [vmem:[%s22350_s1 + $0x19c] sm:$0xf0]  ;;  %v14211_v27 = vld [vmem:[%s22350_s1 + $0x184] sm:$0xf] }
 0x596   :  { %v12943_v48 = vld [vmem:[%s22350_s1 + $0x1a0] sm:$0xf0]  ;;  %v12909_v57 = vld [vmem:[%s22350_s1 + $0x140] sm:$0xf] }
 0x597   :  { %7681 = vmatpush.bf16.msra.mxu1 %v12494_v19  ;;  %7707 = vmatpush.bf16.msra.mxu3 %v12498_v45  ;;  %v12282_v19 = vor.u32 %v14046_v54, %v12279_v60  ;;  %v12245_v45 = vld [vmem:[%s22350_s1 + $0x18] sm:$0xf]  ;;  %v12946_v15 = vor.u32 %v14211_v27, %v12943_v48  ;;  %v14207_v8 = vld [vmem:[%s22350_s1 + $0x15c] sm:$0xf0] }
 0x598   :  { %v13197_v54 = vld [vmem:[%s22350_s1 + $0x380] sm:$0xf] }
 0x599   :  { %7714 = vmatpush.bf16.msrb.mxu0 %v12438_v50  ;;  %7740 = vmatpush.bf16.msrb.mxu2 %v12442_v18  ;;  %v14118_v50 = vld [vmem:[%s22350_s1 + $0x29c] sm:$0xf]  ;;  %v14279_v60 = vld [vmem:[%s22350_s1 + $0x39c] sm:$0xf0] }
 0x59a   :  { %7682 = vmatmul.bf16.vlgmr.msra.gmra.mxu1 %v20868_v10  ;;  %7708 = vmatmul.bf16.vlgmr.msra.gmra.mxu3 %v20868_v10  ;;  %v12567_v18 = vld [vmem:[%s22350_s1 + $0x2b8] sm:$0xf0]  ;;  %v14183_v48 = vld [vmem:[%s22350_s1 + $0x9c] sm:$0xf0] }
 0x59b   :  { %7726 = vmatpush.bf16.msrb.mxu1 %v12726_v61  ;;  %7752 = vmatpush.bf16.msrb.mxu3 %v12730_v37  ;;  %v12566_v61 = vor.u32 %v14122_v28, %v12565_v51  ;;  %v12570_v37 = vor.u32 %v14118_v50, %v12567_v18  ;;  %v13198_v51 = vor.u32 %v14279_v60, %v13197_v54  ;;  %v13199_v28 = vld [vmem:[%s22350_s1 + $0x3a0] sm:$0xf0]  ;;  %v12781_v60 = vld [vmem:[%s22350_s1 + $0x40] sm:$0xf] }
 0x59c   :  { %v12211_v50 = vld [vmem:[%s22352_s0 + $0x180] sm:$0xff] }
 0x59d   :  { %7715 = vmatpush.bf16.msrb.mxu0 %v12406_v30  ;;  %7741 = vmatpush.bf16.msrb.mxu2 %v12410_v21  ;;  %v12246_v30 = vor.u32 %v14042_v9, %v12245_v45  ;;  %v12250_v21 = vor.u32 %v14038_v35, %v12247_v22  ;;  %v14199_v45 = vld [vmem:[%s22350_s1 + $0x11c] sm:$0xf0]  ;;  %v14195_v35 = vld [vmem:[%s22350_s1 + $0x104] sm:$0xf] }
 0x59e   :  { %v12879_v22 = vld [vmem:[%s22350_s1 + $0x120] sm:$0xf0] }
 0x59f   :  { %7727 = vmatpush.bf16.msrb.mxu1 %v12694_v17  ;;  %7753 = vmatpush.bf16.msrb.mxu3 %v12698_v38  ;;  %v14102_v17 = vld [vmem:[%s22350_s1 + $0x21c] sm:$0xf]  ;;  %v12882_v40 = vor.u32 %v14195_v35, %v12879_v22  ;;  %v13071_v35 = vld [vmem:[%s22350_s1 + $0x2a0] sm:$0xf0] }
 0x5a0   :  { %v12503_v38 = vld [vmem:[%s22350_s1 + $0x238] sm:$0xf0] }
 0x5a1   :  { %7716 = vmatpush.bf16.msrb.mxu0 %v12374_v6  ;;  %7742 = vmatpush.bf16.msrb.mxu2 %v12378_v36  ;;  %v12506_v3 = vor.u32 %v14102_v17, %v12503_v38  ;;  %v12845_v38 = vld [vmem:[%s22350_s1 + $0xc0] sm:$0xf] }
 0x5a3   :  { %7728 = vmatpush.bf16.msrb.mxu1 %v12662_v24  ;;  %7754 = vmatpush.bf16.msrb.mxu3 %v12666_v34  ;;  %v12941_v34 = vld [vmem:[%s22350_s1 + $0x180] sm:$0xf] }
 0x5a4   :  { %v12942_v25 = vor.u32 %v14215_v53, %v12941_v34  ;;  %v13135_v34 = vld [vmem:[%s22350_s1 + $0x320] sm:$0xf0] }
 0x5a5   :  { %7717 = vmatpush.bf16.msrb.mxu0 %v12342_v12  ;;  %7743 = vmatpush.bf16.msrb.mxu2 %v12346_v56 }
 0x5a7   :  { %7729 = vmatpush.bf16.msrb.mxu1 %v12630_v0  ;;  %7755 = vmatpush.bf16.msrb.mxu3 %v12634_v1  ;;  %v13230_v0 = vor.u32 %v14287_v31, %v13229_v20  ;;  %v13231_v1 = vld [vmem:[%s22350_s1 + $0x3e0] sm:$0xf0]  ;;  %v12214_v31 = vld [vmem:[%s22352_s0 + $0x198] sm:$0xff] }
 0x5a8   :  { %v13234_v5 = vor.u32 %v14283_v47, %v13231_v1  ;;  %v12815_v1 = vld [vmem:[%s22350_s1 + $0xa0] sm:$0xf0] }
 0x5a9   :  { %7718 = vmatpush.bf16.msrb.mxu0 %v12310_v11  ;;  %7744 = vmatpush.bf16.msrb.mxu2 %v12314_v43  ;;  %v12910_v11 = vor.u32 %v14207_v8, %v12909_v57  ;;  %v14203_v43 = vld [vmem:[%s22350_s1 + $0x144] sm:$0xf] }
 0x5aa   :  { %v12914_v52 = vor.u32 %v14203_v43, %v12911_v16  ;;  %v14251_v8 = vld [vmem:[%s22350_s1 + $0x2c4] sm:$0xf] }
 0x5ab   :  { %7730 = vmatpush.bf16.msrb.mxu1 %v12598_v33  ;;  %7756 = vmatpush.bf16.msrb.mxu3 %v12602_v44  ;;  %v14275_v33 = vld [vmem:[%s22350_s1 + $0x384] sm:$0xf] }
 0x5ac   :  { %v13103_v43 = vld [vmem:[%s22350_s1 + $0x2e0] sm:$0xf0] }
 0x5ad   :  { %7719 = vmatpush.bf16.msrb.mxu0 %v12278_v63  ;;  %7745 = vmatpush.bf16.msrb.mxu2 %v12282_v19  ;;  %v13202_v63 = vor.u32 %v14275_v33, %v13199_v28  ;;  %v12877_v19 = vld [vmem:[%s22350_s1 + $0x100] sm:$0xf]  ;;  %v13106_v54 = vor.u32 %v14251_v8, %v13103_v43  ;;  %v14227_v8 = vld [vmem:[%s22350_s1 + $0x204] sm:$0xf]  ;;  %v13237_v43 = vld [vmem:[%s22350_s1 + $0x3c8] sm:$0xf] }
 0x5ae   :  { %v12878_v9 = vor.u32 %v14199_v45, %v12877_v19  ;;  %v14175_v33 = vld [vmem:[%s22350_s1 + $0x5c] sm:$0xf0]  ;;  %v14243_v45 = vld [vmem:[%s22350_s1 + $0x284] sm:$0xf] }
 0x5af   :  { %7731 = vmatpush.bf16.msrb.mxu1 %v12566_v61  ;;  %7757 = vmatpush.bf16.msrb.mxu3 %v12570_v37  ;;  %v12213_v61 = vld [vmem:[%s22352_s0 + $0x190] sm:$0xff]  ;;  %v12782_v28 = vor.u32 %v14175_v33, %v12781_v60  ;;  %v14247_v19 = vld [vmem:[%s22350_s1 + $0x29c] sm:$0xf0]  ;;  %v14288_v33 = vld [vmem:[%s22350_s1 + $0x3e4] sm:$0xf0] }
 0x5b1   :  { %7720 = vmatpush.bf16.msrb.mxu0 %v12246_v30  ;;  %7746 = vmatpush.bf16.msrb.mxu2 %v12250_v21 }
 0x5b3   :  { %7732 = vmatpush.bf16.msrb.mxu1 %v12534_v58  ;;  %7758 = vmatpush.bf16.msrb.mxu3 %v12538_v29  ;;  %v13166_v58 = vor.u32 %v14271_v32, %v13165_v2  ;;  %v14267_v29 = vld [vmem:[%s22350_s1 + $0x344] sm:$0xf] }
 0x5b4   :  { %7721 = vmatmul.bf16.vlgmr.msrb.gmra.mxu0 %v20825_v55  ;;  %7747 = vmatmul.bf16.vlgmr.msrb.gmra.mxu2 %v20825_v55  ;;  %v14219_v55 = vld [vmem:[%s22350_s1 + $0x1c4] sm:$0xf]  ;;  %v13170_v17 = vor.u32 %v14267_v29, %v13167_v4 }
 0x5b5   :  { %8681 = vmatpush.bf16.msra.mxu0 %v12974_v41 }
 0x5b7   :  { %7733 = vmatpush.bf16.msrb.mxu1 %v12502_v26  ;;  %7759 = vmatpush.bf16.msrb.mxu3 %v12506_v3  ;;  %v14191_v26 = vld [vmem:[%s22350_s1 + $0xdc] sm:$0xf0]  ;;  %v14187_v3 = vld [vmem:[%s22350_s1 + $0xc4] sm:$0xf] }
 0x5b9   :  { %8682 = vmatpush.bf16.msra.mxu0 %v12942_v25  ;;  %v12813_v25 = vld [vmem:[%s22350_s1 + $0x80] sm:$0xf] }
 0x5ba   :  { %7734 = vmatmul.bf16.vlgmr.msrb.gmra.mxu1 %v20868_v10  ;;  %7760 = vmatmul.bf16.vlgmr.msrb.gmra.mxu3 %v20868_v10  ;;  %v12975_v10 = vld [vmem:[%s22350_s1 + $0x1e0] sm:$0xf0] }
 0x5bb   :  { %v12978_v59 = vor.u32 %v14219_v55, %v12975_v10  ;;  %8694 = vmatpush.bf16.msra.mxu1 %v13230_v0  ;;  %8720 = vmatpush.bf16.msra.mxu3 %v13234_v5  ;;  %v14263_v55 = vld [vmem:[%s22350_s1 + $0x31c] sm:$0xf0]  ;;  %v12814_v0 = vor.u32 %v14183_v48, %v12813_v25 }
 0x5bc   :  { %v13134_v10 = vor.u32 %v14263_v55, %v13133_v14 }
 0x5bd   :  { %8707 = vmatpush.bf16.msra.mxu2 %v12978_v59  ;;  %8683 = vmatpush.bf16.msra.mxu0 %v12910_v11  ;;  %v14259_v59 = vld [vmem:[%s22350_s1 + $0x304] sm:$0xf] }
 0x5be   :  { %v13138_v27 = vor.u32 %v14259_v59, %v13135_v34  ;;  %v14235_v59 = vld [vmem:[%s22350_s1 + $0x244] sm:$0xf] }
 0x5bf   :  { %8695 = vmatpush.bf16.msra.mxu1 %v13198_v51  ;;  %8721 = vmatpush.bf16.msra.mxu3 %v13202_v63  ;;  %v13069_v63 = vld [vmem:[%s22350_s1 + $0x280] sm:$0xf] }
 0x5c1   :  { %8708 = vmatpush.bf16.msra.mxu2 %v12946_v15  ;;  %8684 = vmatpush.bf16.msra.mxu0 %v12878_v9  ;;  %v13070_v9 = vor.u32 %v14247_v19, %v13069_v63 }
 0x5c3   :  { %8696 = vmatpush.bf16.msra.mxu1 %v13166_v58  ;;  %8722 = vmatpush.bf16.msra.mxu3 %v13170_v17  ;;  %v12215_v58 = vld [vmem:[%s22352_s0 + $0x1a0] sm:$0xff]  ;;  %v14224_v17 = vld [vmem:[%s22350_s1 + $0x1e4] sm:$0xf0] }
 0x5c5   :  { %8709 = vmatpush.bf16.msra.mxu2 %v12914_v52 }
 0x5c7   :  { %8697 = vmatpush.bf16.msra.mxu1 %v13134_v10  ;;  %8723 = vmatpush.bf16.msra.mxu3 %v13138_v27  ;;  %v14239_v10 = vld [vmem:[%s22350_s1 + $0x25c] sm:$0xf0]  ;;  %v12949_v27 = vld [vmem:[%s22350_s1 + $0x188] sm:$0xf] }
 0x5c9   :  { %8710 = vmatpush.bf16.msra.mxu2 %v12882_v40  ;;  %v14167_v40 = vld [vmem:[%s22350_s1 + $0x1c] sm:$0xf0] }
 0x5cb   :  { %8724 = vmatpush.bf16.msra.mxu3 %v13106_v54 }
 0x5f1   :  { %v7566_v13 = vpop.f32.mrf.mxu0 }
 0x5f7   :  { %v7579_v23 = vpop.f32.mrf.mxu1  ;;  %v21214_v6 = vpop.f32.mrf.mxu2 }
 0x5f8   :  { %v7580_v44 = vadd.f32 %v7579_v23, %v7566_v13  ;;  %v12846_v23 = vor.u32 %v14191_v26, %v12845_v38 }
 0x5f9   :  { %v7568_v36 = vpop.f32.mrf.mxu0 }
 0x5fa   :  { %v7765_v30 = vadd.f32 %v12211_v50, %v7580_v44  ;;  %v12847_v36 = vld [vmem:[%s22350_s1 + $0xe0] sm:$0xf0]  ;;  %8685 = vmatpush.bf16.msra.mxu0 %v12846_v23  ;;  %v12983_v23 = vld [vmem:[%s22350_s1 + $0x1e8] sm:$0xf0] }
 0x5fb   :  { %v12850_v39 = vor.u32 %v14187_v3, %v12847_v36  ;;  %v14171_v44 = vld [vmem:[%s22350_s1 + $0x44] sm:$0xf]  ;;  %v13037_v36 = vld [vmem:[%s22350_s1 + $0x240] sm:$0xf] }
 0x5fc   :  { %v12731_v41 = vmul.f32 -1.442695, %v7765_v30  ;;  %v12783_v50 = vld [vmem:[%s22350_s1 + $0x60] sm:$0xf0]  ;;  %v13038_v34 = vor.u32 %v14239_v10, %v13037_v36  ;;  %v12887_v36 = vld [vmem:[%s22350_s1 + $0x128] sm:$0xf0] }
 0x5fd   :  { %v21228_v24 = vpop.f32.mrf.mxu3  ;;  %8711 = vmatpush.bf16.msra.mxu2 %v12850_v39  ;;  %v14163_v30 = vld [vmem:[%s22350_s1 + $0x4] sm:$0xf]  ;;  %v14268_v10 = vld [vmem:[%s22350_s1 + $0x34c] sm:$0xf] }
 0x5fe   :  { %v7606_v15 = vadd.f32 %v21228_v24, %v21214_v6  ;;  %v13101_v6 = vld [vmem:[%s22350_s1 + $0x2c0] sm:$0xf]  ;;  %8686 = vmatpush.bf16.msra.mxu0 %v12814_v0  ;;  %14483 = vpow2.f32 %v12731_v41 }
 0x5ff   :  { %v7581_v12 = vpop.f32.mrf.mxu1  ;;  %v7594_v56 = vpop.f32.mrf.mxu2  ;;  %v14255_v24 = vld [vmem:[%s22350_s1 + $0x2dc] sm:$0xf0] }
 0x600   :  { %v14179_v12 = vld [vmem:[%s22350_s1 + $0x84] sm:$0xf]  ;;  %v12212_v56 = vld [vmem:[%s22352_s0 + $0x188] sm:$0xff]  ;;  %v13102_v11 = vor.u32 %v14255_v24, %v13101_v6  ;;  %v13005_v0 = vld [vmem:[%s22350_s1 + $0x200] sm:$0xf] }
 0x601   :  { %v7618_v7 = vpop.f32.mrf.mxu0  ;;  %v12818_v57 = vor.u32 %v14179_v12, %v12815_v1  ;;  %v7766_v51 = vadd.f32 %v12212_v56, %v7606_v15  ;;  %v14216_v56 = vld [vmem:[%s22350_s1 + $0x1a4] sm:$0xf0]  ;;  %v14212_v15 = vld [vmem:[%s22350_s1 + $0x18c] sm:$0xf] }
 0x602   :  { %8698 = vmatpush.bf16.msra.mxu1 %v13102_v11  ;;  %8687 = vmatpush.bf16.msra.mxu0 %v12782_v28  ;;  %v13007_v11 = vld [vmem:[%s22350_s1 + $0x220] sm:$0xf0] }
 0x603   :  { %8712 = vmatpush.bf16.msra.mxu2 %v12818_v57  ;;  %v12732_v2 = vmul.f32 -1.442695, %v7766_v51  ;;  %v13010_v60 = vor.u32 %v14227_v8, %v13007_v11 }
 0x604   :  { %v14484_v38 = vpop.eup %14483 }
 0x605   :  { %v7607_v18 = vpop.f32.mrf.mxu3  ;;  %v21430_v25 = vadd.f32 1.0, %v14484_v38  ;;  %v14200_v38 = vld [vmem:[%s22350_s1 + $0x124] sm:$0xf0] }
 0x606   :  { %v12786_v18 = vor.u32 %v14171_v44, %v12783_v50  ;;  %8699 = vmatpush.bf16.msra.mxu1 %v13070_v9  ;;  %v14284_v44 = vld [vmem:[%s22350_s1 + $0x3cc] sm:$0xf]  ;;  %v13238_v50 = vor.u32 %v14288_v33, %v13237_v43  ;;  %v14208_v9 = vld [vmem:[%s22350_s1 + $0x164] sm:$0xf0] }
 0x607   :  { %v7631_v37 = vpop.f32.mrf.mxu1  ;;  %v7644_v46 = vpop.f32.mrf.mxu2  ;;  %v12821_v43 = vld [vmem:[%s22350_s1 + $0x88] sm:$0xf]  ;;  %v14180_v33 = vld [vmem:[%s22350_s1 + $0x8c] sm:$0xf]  ;;  %vm7802_vm4 = vweird.f32 %v21430_v25 }
 0x608   :  { %v7632_v21 = vadd.f32 %v7631_v37, %v7618_v7  ;;  %8713 = vmatpush.bf16.msra.mxu2 %v12786_v18  ;;  %v13074_v37 = vor.u32 %v14243_v45, %v13071_v35  ;;  %v13239_v18 = vld [vmem:[%s22350_s1 + $0x3e8] sm:$0xf0]  ;;  %v12917_v45 = vld [vmem:[%s22350_s1 + $0x148] sm:$0xf] }
 0x609   :  { %v7620_v62 = vpop.f32.mrf.mxu0  ;;  %v13242_v19 = vor.u32 %v14284_v44, %v13239_v18  ;;  %v14204_v35 = vld [vmem:[%s22350_s1 + $0x14c] sm:$0xf]  ;;  %v13109_v18 = vld [vmem:[%s22350_s1 + $0x2c8] sm:$0xf] }
 0x60a   :  { %v7767_v13 = vadd.f32 %v12213_v61, %v7632_v21  ;;  %v12751_v21 = vld [vmem:[%s22350_s1 + $0x20] sm:$0xf0]  ;;  %8725 = vmatpush.bf16.msra.mxu3 %v13074_v37  ;;  %v12981_v62 = vld [vmem:[%s22350_s1 + $0x1c8] sm:$0xf]  ;;  %8700 = vmatpush.bf16.msra.mxu1 %v13038_v34  ;;  %v12919_v37 = vld [vmem:[%s22350_s1 + $0x168] sm:$0xf0] }
 0x60b   :  { %v12754_v4 = vor.u32 %v14163_v30, %v12751_v21  ;;  %v12982_v3 = vor.u32 %v14224_v17, %v12981_v62  ;;  %v14280_v30 = vld [vmem:[%s22350_s1 + $0x3a4] sm:$0xf0]  ;;  %v12823_v44 = vld [vmem:[%s22350_s1 + $0xa8] sm:$0xf0] }
 0x60c   :  { %v12733_v20 = vmul.f32 -1.442695, %v7767_v13  ;;  %v14220_v13 = vld [vmem:[%s22350_s1 + $0x1cc] sm:$0xf]  ;;  %v12853_v34 = vld [vmem:[%s22350_s1 + $0xc8] sm:$0xf] }
 0x60d   :  { %v7657_v53 = vpop.f32.mrf.mxu3  ;;  %8714 = vmatpush.bf16.msra.mxu2 %v12754_v4  ;;  %v12986_v41 = vor.u32 %v14220_v13, %v12983_v23  ;;  %v12885_v4 = vld [vmem:[%s22350_s1 + $0x108] sm:$0xf] }
 0x60e   :  { %v7658_v47 = vadd.f32 %v7657_v53, %v7644_v46  ;;  %14485 = vpow2.f32 %v12733_v20  ;;  %v12749_v46 = vld [vmem:[%s22350_s1] sm:$0xf]  ;;  %v13039_v53 = vld [vmem:[%s22350_s1 + $0x260] sm:$0xf0]  ;;  %v12886_v23 = vor.u32 %v14200_v38, %v12885_v4  ;;  %v14172_v4 = vld [vmem:[%s22350_s1 + $0x4c] sm:$0xf] }
 0x60f   :  { %v7633_v7 = vpop.f32.mrf.mxu1  ;;  %v7646_v5 = vpop.f32.mrf.mxu2  ;;  %v12750_v32 = vor.u32 %v14167_v40, %v12749_v46  ;;  %v13042_v12 = vor.u32 %v14235_v59, %v13039_v53  ;;  %v13205_v46 = vld [vmem:[%s22350_s1 + $0x388] sm:$0xf]  ;;  %v13175_v59 = vld [vmem:[%s22350_s1 + $0x368] sm:$0xf0] }
 0x610   :  { %v7768_v16 = vadd.f32 %v12214_v31, %v7658_v47  ;;  %v12950_v31 = vor.u32 %v14216_v56, %v12949_v27  ;;  %v12951_v47 = vld [vmem:[%s22350_s1 + $0x1a8] sm:$0xf0]  ;;  %v14231_v5 = vld [vmem:[%s22350_s1 + $0x21c] sm:$0xf0]  ;;  %v13206_v21 = vor.u32 %v14280_v30, %v13205_v46  ;;  %v14192_v53 = vld [vmem:[%s22350_s1 + $0xe4] sm:$0xf0] }
 0x611   :  { %v7670_v52 = vpop.f32.mrf.mxu0  ;;  %8688 = vmatpush.bf16.msra.mxu0 %v12750_v32  ;;  %8759 = vmatpush.bf16.msrb.mxu2 %v12986_v41  ;;  %v12216_v7 = vld [vmem:[%s22352_s0 + $0x1a8] sm:$0xff]  ;;  %v12954_v6 = vor.u32 %v14212_v15, %v12951_v47  ;;  %v13006_v24 = vor.u32 %v14231_v5, %v13005_v0  ;;  %v12922_v32 = vor.u32 %v14204_v35, %v12919_v37 }
 0x612   :  { %v12734_v22 = vmul.f32 -1.442695, %v7768_v16  ;;  %8726 = vmatpush.bf16.msra.mxu3 %v13042_v12  ;;  %v14272_v41 = vld [vmem:[%s22350_s1 + $0x364] sm:$0xf0]  ;;  %v13178_v12 = vor.u32 %v14268_v10, %v13175_v59  ;;  %v14188_v56 = vld [vmem:[%s22350_s1 + $0xcc] sm:$0xf]  ;;  %v12854_v0 = vor.u32 %v14192_v53, %v12853_v34 }
 0x613   :  { %8701 = vmatpush.bf16.msra.mxu1 %v13006_v24  ;;  %v12855_v15 = vld [vmem:[%s22350_s1 + $0xe8] sm:$0xf0]  ;;  %v14264_v5 = vld [vmem:[%s22350_s1 + $0x324] sm:$0xf0]  ;;  %v12217_v34 = vld [vmem:[%s22352_s0 + $0x1b0] sm:$0xff] }
 0x614   :  { %v14486_v39 = vpop.eup %14485  ;;  %14487 = vpow2.f32 %v12734_v22  ;;  %v13143_v24 = vld [vmem:[%s22350_s1 + $0x328] sm:$0xf0] }
 0x615   :  { %v7659_v61 = vpop.f32.mrf.mxu3  ;;  %14489 = vpow2.f32 %v12732_v2  ;;  %8733 = vmatpush.bf16.msrb.mxu0 %v12982_v3  ;;  %v21438_v20 = vadd.f32 1.0, %v14486_v39  ;;  %8760 = vmatpush.bf16.msrb.mxu2 %v12954_v6  ;;  %v13173_v39 = vld [vmem:[%s22350_s1 + $0x348] sm:$0xf]  ;;  %v14260_v6 = vld [vmem:[%s22350_s1 + $0x30c] sm:$0xf] }
 0x616   :  { %14491 = vrcp.f32 %v21430_v25  ;;  %8727 = vmatpush.bf16.msra.mxu3 %v13010_v60  ;;  %v12918_v61 = vor.u32 %v14208_v9, %v12917_v45  ;;  %v13146_v11 = vor.u32 %v14260_v6, %v13143_v24  ;;  %v14252_v45 = vld [vmem:[%s22350_s1 + $0x2cc] sm:$0xf] }
 0x617   :  { %v7696_v29 = vpop.f32.mrf.mxu2  ;;  %v7683_v26 = vpop.f32.mrf.mxu1  ;;  %14493 = vrcp.f32 %v21438_v20  ;;  %8746 = vmatpush.bf16.msrb.mxu1 %v13238_v50  ;;  %v13111_v9 = vld [vmem:[%s22350_s1 + $0x2e8] sm:$0xf0]  ;;  %vm7832_vm2 = vweird.f32 %v21438_v20 }
 0x618   :  { %v7684_v14 = vadd.f32 %v7683_v26, %v7670_v52  ;;  %v14196_v26 = vld [vmem:[%s22350_s1 + $0x10c] sm:$0xf]  ;;  %v13114_v46 = vor.u32 %v14252_v45, %v13111_v9  ;;  %v14232_v45 = vld [vmem:[%s22350_s1 + $0x224] sm:$0xf0] }
 0x619   :  { %v7672_v55 = vpop.f32.mrf.mxu0  ;;  %8734 = vmatpush.bf16.msrb.mxu0 %v12950_v31  ;;  %8761 = vmatpush.bf16.msrb.mxu2 %v12922_v32  ;;  %v14176_v32 = vld [vmem:[%s22350_s1 + $0x64] sm:$0xf0] }
 0x61a   :  { %v7769_v48 = vadd.f32 %v12215_v58, %v7684_v14  ;;  %v14488_v16 = vpop.eup %14487  ;;  %8772 = vmatpush.bf16.msrb.mxu3 %v13242_v19  ;;  %v14276_v58 = vld [vmem:[%s22350_s1 + $0x38c] sm:$0xf]  ;;  %v12890_v55 = vor.u32 %v14196_v26, %v12887_v36  ;;  %v14256_v19 = vld [vmem:[%s22350_s1 + $0x2e4] sm:$0xf0] }
 0x61b   :  { %v14490_v51 = vpop.eup %14489  ;;  %v21481_v22 = vadd.f32 1.0, %v14488_v16  ;;  %8747 = vmatpush.bf16.msrb.mxu1 %v13206_v21  ;;  %v14184_v16 = vld [vmem:[%s22350_s1 + $0xa4] sm:$0xf0]  ;;  %v13110_v37 = vor.u32 %v14256_v19, %v13109_v18  ;;  %v14244_v36 = vld [vmem:[%s22350_s1 + $0x28c] sm:$0xf] }
 0x61c   :  { %v12735_v1 = vmul.f32 -1.442695, %v7769_v48  ;;  %v21489_v40 = vadd.f32 1.0, %v14490_v51  ;;  %v21503_v62 = vpop.eup %14491  ;;  %v13174_v48 = vor.u32 %v14272_v41, %v13173_v39  ;;  %v12822_v60 = vor.u32 %v14184_v16, %v12821_v43  ;;  %v14168_v41 = vld [vmem:[%s22350_s1 + $0x24] sm:$0xf0] }
 0x61d   :  { %v7709_v57 = vpop.f32.mrf.mxu3  ;;  %8735 = vmatpush.bf16.msrb.mxu0 %v12918_v61  ;;  %v21511_v3 = vpop.eup %14493  ;;  %v7798_v27 = vmul.f32 %v21503_v62, %v21430_v25  ;;  %8762 = vmatpush.bf16.msrb.mxu2 %v12890_v55  ;;  %v12757_v55 = vld [vmem:[%s22350_s1 + $0x8] sm:$0xf]  ;;  %vm7803_vm1 = vweird.f32 %v21503_v62  ;;  %vm7847_vm10 = vweird.f32 %v21481_v22 }
 0x61e   :  { %v7710_v52 = vadd.f32 %v7709_v57, %v7696_v29  ;;  %14495 = vpow2.f32 %v12735_v1  ;;  %v13207_v29 = vld [vmem:[%s22350_s1 + $0x3a8] sm:$0xf0]  ;;  %v7828_v31 = vmul.f32 %v21511_v3, %v21438_v20  ;;  %v12858_v1 = vor.u32 %v14188_v56, %v12855_v15  ;;  %v14240_v43 = vld [vmem:[%s22350_s1 + $0x264] sm:$0xf0]  ;;  %vm21705_vm7 = vmor %vm7802_vm4, %vm7803_vm1 }
 0x61f   :  { %v7698_v54 = vpop.f32.mrf.mxu2  ;;  %v7685_v28 = vpop.f32.mrf.mxu1  ;;  %v13210_v17 = vor.u32 %v14276_v58, %v13207_v29  ;;  %14497 = vrcp.f32 %v21481_v22  ;;  %8748 = vmatpush.bf16.msrb.mxu1 %v13174_v48  ;;  %v7808_v58 = vand.u32 2147483648, %v21430_v25  ;;  %v14164_v56 = vld [vmem:[%s22350_s1 + $0xc] sm:$0xf]  ;;  %vm7833_vm0 = vweird.f32 %v21511_v3 }
 0x620   :  { %v7770_v63 = vadd.f32 %v12216_v7, %v7710_v52  ;;  %v13141_v7 = vld [vmem:[%s22350_s1 + $0x308] sm:$0xf]  ;;  %v7799_v54 = vsub.f32 1.0, %v7798_v27  ;;  %v7829_v28 = vsub.f32 1.0, %v7828_v31  ;;  %v12759_v15 = vld [vmem:[%s22350_s1 + $0x28] sm:$0xf0]  ;;  %vm21670_vm3 = vmor %vm7832_vm2, %vm7833_vm0  ;;  %vm7817_vm6 = vweird.f32 %v21489_v40 }
 0x621   :  { %8773 = vmatpush.bf16.msrb.mxu3 %v13210_v17  ;;  %8736 = vmatpush.bf16.msrb.mxu0 %v12886_v23  ;;  %v13142_v57 = vor.u32 %v14264_v5, %v13141_v7  ;;  %v12791_v17 = vld [vmem:[%s22350_s1 + $0x68] sm:$0xf0]  ;;  %v14248_v23 = vld [vmem:[%s22350_s1 + $0x2a4] sm:$0xf0]  ;;  %v7806_v7 = vand.u32 2147483647, %v21430_v25  ;;  %v12762_v24 = vor.u32 %v14164_v56, %v12759_v15 }
 0x622   :  { %v12736_v2 = vmul.f32 -1.442695, %v7770_v63  ;;  %8763 = vmatpush.bf16.msrb.mxu2 %v12858_v1  ;;  %v12826_v63 = vor.u32 %v14180_v33, %v12823_v44  ;;  %v7800_v21 = vmul.f32 %v21503_v62, %v7799_v54  ;;  %v7830_v38 = vmul.f32 %v21511_v3, %v7829_v28  ;;  %v13047_v33 = vld [vmem:[%s22350_s1 + $0x268] sm:$0xf0] }
 0x623   :  { %8749 = vmatpush.bf16.msrb.mxu1 %v13142_v57  ;;  %v12794_v26 = vor.u32 %v14172_v4, %v12791_v17  ;;  %v7838_v5 = vand.u32 2147483648, %v21438_v20  ;;  %v7836_v28 = vand.u32 2147483647, %v21438_v20  ;;  %vm21675_vm5 = vcmp.eq.f32.partialorder %v7806_v7, 8.507059e+37  ;;  %v13013_v20 = vld [vmem:[%s22350_s1 + $0x208] sm:$0xf] }
 0x624   :  { %v14496_v14 = vpop.eup %14495  ;;  %14499 = vpow2.f32 %v12736_v2  ;;  %v12789_v2 = vld [vmem:[%s22350_s1 + $0x48] sm:$0xf]  ;;  %v21644_v1 = vadd.f32 %v21503_v62, %v7800_v21  ;;  %v7831_v57 = vadd.f32 %v21511_v3, %v7830_v38  ;;  %v7809_v19 = vor.u32 1.1754944e-38, %v7808_v58  ;;  %v13015_v21 = vld [vmem:[%s22350_s1 + $0x228] sm:$0xf0] }
 0x625   :  { %v7711_v13 = vpop.f32.mrf.mxu3  ;;  %14501 = vrcp.f32 %v21489_v40  ;;  %v21546_v47 = vadd.f32 1.0, %v14496_v14  ;;  %8774 = vmatpush.bf16.msrb.mxu3 %v13178_v12  ;;  %v21560_v8 = vpop.eup %14497  ;;  %8737 = vmatpush.bf16.msrb.mxu0 %v12854_v0  ;;  %v12790_v29 = vor.u32 %v14176_v32, %v12789_v2  ;;  %v13079_v14 = vld [vmem:[%s22350_s1 + $0x2a8] sm:$0xf0]  ;;  %v12758_v12 = vor.u32 %v14168_v41, %v12757_v55 }
 0x626   :  { %v7843_v35 = vmul.f32 %v21560_v8, %v21481_v22  ;;  %8764 = vmatpush.bf16.msrb.mxu2 %v12826_v63  ;;  %v13077_v13 = vld [vmem:[%s22350_s1 + $0x288] sm:$0xf]  ;;  %v13082_v48 = vor.u32 %v14244_v36, %v13079_v14  ;;  %v13014_v4 = vor.u32 %v14232_v45, %v13013_v20  ;;  %vm7848_vm8 = vweird.f32 %v21560_v8  ;;  %v13117_v20 = vld [vmem:[%s22350_s1 + $0x2d0] sm:$0xf] }
 0x627   :  { %14503 = vrcp.f32 %v21546_v47  ;;  %8750 = vmatpush.bf16.msrb.mxu1 %v13110_v37  ;;  %v13078_v39 = vor.u32 %v14248_v23, %v13077_v13  ;;  %v7835_v37 = vsel %vm21670_vm3, %v21511_v3, %v7831_v57  ;;  %v7805_v38 = vsel %vm21705_vm7, %v21503_v62, %v21644_v1  ;;  %vm21724_vm12 = vmor %vm7847_vm10, %vm7848_vm8  ;;  %v14285_v3 = vld [vmem:[%s22350_s1 + $0x3d4] sm:$0xf] }
 0x628   :  { %v7844_v59 = vsub.f32 1.0, %v7843_v35  ;;  %v7839_v35 = vor.u32 1.1754944e-38, %v7838_v5  ;;  %vm7837_vm9 = vcmp.eq.f32.partialorder %v7836_v28, 8.507059e+37  ;;  %v7853_v23 = vand.u32 2147483648, %v21481_v22 }
 0x629   :  { %8775 = vmatpush.bf16.msrb.mxu3 %v13146_v11  ;;  %8738 = vmatpush.bf16.msrb.mxu0 %v12822_v60  ;;  %v13045_v11 = vld [vmem:[%s22350_s1 + $0x248] sm:$0xf]  ;;  %v14236_v60 = vld [vmem:[%s22350_s1 + $0x24c] sm:$0xf]  ;;  %v7851_v62 = vand.u32 2147483647, %v21481_v22  ;;  %vm7862_vm1 = vweird.f32 %v21546_v47 }
 0x62a   :  { %v14500_v52 = vpop.eup %14499  ;;  %8765 = vmatpush.bf16.msrb.mxu2 %v12794_v26  ;;  %v13046_v54 = vor.u32 %v14240_v43, %v13045_v11  ;;  %v7845_v44 = vmul.f32 %v21560_v8, %v7844_v59  ;;  %v7854_v15 = vor.u32 1.1754944e-38, %v7853_v23  ;;  %v14209_v23 = vld [vmem:[%s22350_s1 + $0x16c] sm:$0xf0] }
 0x62b   :  { %v21574_v51 = vpop.eup %14501  ;;  %v21591_v61 = vadd.f32 1.0, %v14500_v52  ;;  %8751 = vmatpush.bf16.msrb.mxu1 %v13078_v39  ;;  %v7840_v39 = vsel %vm7837_vm9, %v7839_v35, %v7835_v37  ;;  %vm7852_vm14 = vcmp.eq.f32.partialorder %v7851_v62, 8.507059e+37  ;;  %v12957_v37 = vld [vmem:[%s22350_s1 + $0x190] sm:$0xf] }
 0x62c   :  { %v21601_v30 = vmul.f32 %v21574_v51, %v21489_v40  ;;  %v7846_v26 = vadd.f32 %v21560_v8, %v7845_v44  ;;  %vm7818_vm11 = vweird.f32 %v21574_v51  ;;  %v13213_v62 = vld [vmem:[%s22350_s1 + $0x390] sm:$0xf] }
 0x62d   :  { %8776 = vmatpush.bf16.msrb.mxu3 %v13114_v46  ;;  %v21630_v10 = vpop.eup %14503  ;;  %14505 = vrcp.f32 %v21591_v61  ;;  %8739 = vmatpush.bf16.msrb.mxu0 %v12790_v29  ;;  %v12218_v46 = vld [vmem:[%s22352_s0 + $0x1b8] sm:$0xff]  ;;  %vm21741_vm13 = vmor %vm7817_vm6, %vm7818_vm11  ;;  %v7881_v18 = vand.u32 2147483647, %v21591_v61  ;;  %v7883_v63 = vand.u32 2147483648, %v21591_v61 }
 0x62e   :  { %v7814_v31 = vsub.f32 1.0, %v21601_v30  ;;  %v7858_v16 = vmul.f32 %v21630_v10, %v21546_v47  ;;  %8766 = vmatpush.bf16.msrb.mxu2 %v12762_v24  ;;  %v14228_v30 = vld [vmem:[%s22350_s1 + $0x20c] sm:$0xf]  ;;  %v7850_v56 = vsel %vm21724_vm12, %v21560_v8, %v7846_v26  ;;  %vm7863_vm15 = vweird.f32 %v21630_v10 }
 0x62f   :  { %8752 = vmatpush.bf16.msrb.mxu1 %v13046_v54  ;;  %v13018_v17 = vor.u32 %v14228_v30, %v13015_v21  ;;  %v7855_v57 = vsel %vm7852_vm14, %v7854_v15, %v7850_v56  ;;  %vm7864_vm2 = vmor %vm7862_vm1, %vm7863_vm15  ;;  %v12959_v30 = vld [vmem:[%s22350_s1 + $0x1b0] sm:$0xf0]  ;;  %vm7882_vm7 = vcmp.eq.f32.partialorder %v7881_v18, 8.507059e+37  ;;  %v7884_v21 = vor.u32 1.1754944e-38, %v7883_v63 }
 0x630   :  { %v7815_v32 = vmul.f32 %v21574_v51, %v7814_v31  ;;  %v7859_v58 = vsub.f32 1.0, %v7858_v16  ;;  %v7890_v43 = vmul.f32 %v7855_v57, %v20789_v42  ;;  %v14221_v42 = vld [vmem:[%s22350_s1 + $0x1d4] sm:$0xf] }
 0x631   :  { %v7722_v50 = vpop.f32.mrf.mxu0  ;;  %8777 = vmatpush.bf16.msrb.mxu3 %v13082_v48  ;;  %8740 = vmatpush.bf16.msrb.mxu0 %v12758_v12  ;;  %v7889_v48 = vmul.f32 %v7840_v39, %v20775_v49  ;;  %v7821_v12 = vand.u32 2147483647, %v21489_v40  ;;  %v12927_v39 = vld [vmem:[%s22350_s1 + $0x170] sm:$0xf0] }
 0x632   :  { %v7816_v55 = vadd.f32 %v21574_v51, %v7815_v32  ;;  %v14213_v32 = vld [vmem:[%s22350_s1 + $0x194] sm:$0xf] }
 0x633   :  { %v21685_v9 = vpop.eup %14505  ;;  %8753 = vmatpush.bf16.msrb.mxu1 %v13014_v4  ;;  %vm7822_vm0 = vcmp.eq.f32.partialorder %v7821_v12, 8.507059e+37  ;;  %v12962_v26 = vor.u32 %v14213_v32, %v12959_v30  ;;  %v14201_v12 = vld [vmem:[%s22350_s1 + $0x12c] sm:$0xf0]  ;;  %v14197_v56 = vld [vmem:[%s22350_s1 + $0x114] sm:$0xf] }
 0x634   :  { %v7873_v36 = vmul.f32 %v21685_v9, %v21591_v61  ;;  %v7820_v49 = vsel %vm21741_vm13, %v21574_v51, %v7816_v55  ;;  %vm7878_vm4 = vweird.f32 %v21685_v9  ;;  %v12895_v15 = vld [vmem:[%s22350_s1 + $0x130] sm:$0xf0]  ;;  %v12797_v32 = vld [vmem:[%s22350_s1 + $0x50] sm:$0xf] }
 0x635   :  { %v12831_v18 = vld [vmem:[%s22350_s1 + $0xb0] sm:$0xf0]  ;;  %v14177_v30 = vld [vmem:[%s22350_s1 + $0x6c] sm:$0xf0] }
 0x636   :  { %v7874_v31 = vsub.f32 1.0, %v7873_v36  ;;  %v14205_v36 = vld [vmem:[%s22350_s1 + $0x154] sm:$0xf] }
 0x637   :  { %v7735_v53 = vpop.f32.mrf.mxu1  ;;  %v7748_v27 = vpop.f32.mrf.mxu2 }
 0x638   :  { %v7736_v0 = vadd.f32 %v7735_v53, %v7722_v50  ;;  %v13050_v50 = vor.u32 %v14236_v60, %v13047_v33  ;;  %v7810_v53 = vsel %vm21675_vm5, %v7809_v19, %v7805_v38  ;;  %v7875_v51 = vmul.f32 %v21685_v9, %v7874_v31  ;;  %v12989_v33 = vld [vmem:[%s22350_s1 + $0x1d0] sm:$0xf] }
 0x639   :  { %v7724_v6 = vpop.f32.mrf.mxu0  ;;  %vm7877_vm5 = vweird.f32 %v21591_v61 }
 0x63a   :  { %v7771_v52 = vadd.f32 %v12217_v34, %v7736_v0  ;;  %8778 = vmatpush.bf16.msrb.mxu3 %v13050_v50  ;;  %v7860_v34 = vmul.f32 %v21630_v10, %v7859_v58  ;;  %v7868_v6 = vand.u32 2147483648, %v21546_v47  ;;  %v7876_v44 = vadd.f32 %v21685_v9, %v7875_v51  ;;  %vm21779_vm6 = vmor %vm7877_vm5, %vm7878_vm4  ;;  %v14289_v58 = vld [vmem:[%s22350_s1 + $0x3ec] sm:$0xf0]  ;;  %v14189_v51 = vld [vmem:[%s22350_s1 + $0xd4] sm:$0xf] }
 0x63c   :  { %14507 = vtanh.f32 %v7771_v52  ;;  %v7861_v8 = vadd.f32 %v21630_v10, %v7860_v34  ;;  %v7869_v54 = vor.u32 1.1754944e-38, %v7868_v6  ;;  %v14277_v34 = vld [vmem:[%s22350_s1 + $0x394] sm:$0xf]  ;;  %v12861_v6 = vld [vmem:[%s22350_s1 + $0xd0] sm:$0xf] }
 0x63d   :  { %v7761_v2 = vpop.f32.mrf.mxu3 }
 0x63e   :  { %v7762_v29 = vadd.f32 %v7761_v2, %v7748_v27  ;;  %v7823_v27 = vand.u32 2147483648, %v21489_v40  ;;  %8779 = vmatpush.bf16.msrb.mxu3 %v13018_v17  ;;  %v7866_v40 = vand.u32 2147483647, %v21546_v47  ;;  %v7865_v52 = vsel %vm7864_vm2, %v21630_v10, %v7861_v8  ;;  %v14225_v47 = vld [vmem:[%s22350_s1 + $0x1ec] sm:$0xf0] }
 0x63f   :  { %v7737_v25 = vpop.f32.mrf.mxu1  ;;  %v7750_v13 = vpop.f32.mrf.mxu2  ;;  %v12991_v10 = vld [vmem:[%s22350_s1 + $0x1f0] sm:$0xf0]  ;;  %v12990_v45 = vor.u32 %v14225_v47, %v12989_v33  ;;  %v7880_v2 = vsel %vm21779_vm6, %v21685_v9, %v7876_v44  ;;  %v13245_v9 = vld [vmem:[%s22350_s1 + $0x3d0] sm:$0xf] }
 0x640   :  { %v7772_v14 = vadd.f32 %v12218_v46, %v7762_v29  ;;  %v7824_v5 = vor.u32 1.1754944e-38, %v7823_v27  ;;  %vm7867_vm3 = vcmp.eq.f32.partialorder %v7866_v40, 8.507059e+37  ;;  %v12994_v35 = vor.u32 %v14221_v42, %v12991_v10  ;;  %v14217_v46 = vld [vmem:[%s22350_s1 + $0x1ac] sm:$0xf0]  ;;  %v13247_v29 = vld [vmem:[%s22350_s1 + $0x3f0] sm:$0xf0] }
 0x641   :  { %v7870_v50 = vsel %vm7867_vm3, %v7869_v54, %v7865_v52  ;;  %v7885_v17 = vsel %vm7882_vm7, %v7884_v21, %v7880_v2  ;;  %v12958_v38 = vor.u32 %v14217_v46, %v12957_v37  ;;  %v12925_v25 = vld [vmem:[%s22350_s1 + $0x150] sm:$0xf]  ;;  %v13250_v55 = vor.u32 %v14285_v3, %v13247_v29  ;;  %v14269_v8 = vld [vmem:[%s22350_s1 + $0x354] sm:$0xf] }
 0x642   :  { %v14508_v41 = vpop.eup %14507  ;;  %14509 = vtanh.f32 %v7772_v14  ;;  %v7825_v11 = vsel %vm7822_vm0, %v7824_v5, %v7820_v49  ;;  %v13246_v14 = vor.u32 %v14289_v58, %v13245_v9  ;;  %v12926_v27 = vor.u32 %v14209_v23, %v12925_v25  ;;  %v13181_v49 = vld [vmem:[%s22350_s1 + $0x350] sm:$0xf]  ;;  %v13183_v5 = vld [vmem:[%s22350_s1 + $0x370] sm:$0xf0] }
 0x643   :  { %v7891_v22 = vmul.f32 %v14508_v41, %v7810_v53  ;;  %v14281_v41 = vld [vmem:[%s22350_s1 + $0x3ac] sm:$0xf0]  ;;  %v13215_v53 = vld [vmem:[%s22350_s1 + $0x3b0] sm:$0xf0]  ;;  %v12898_v40 = vor.u32 %v14197_v56, %v12895_v15 }
 0x644   :  { %v13214_v31 = vor.u32 %v14281_v41, %v13213_v62  ;;  %v13218_v0 = vor.u32 %v14277_v34, %v13215_v53  ;;  %v13149_v52 = vld [vmem:[%s22350_s1 + $0x310] sm:$0xf]  ;;  %v14261_v33 = vld [vmem:[%s22350_s1 + $0x314] sm:$0xf]  ;;  %v14222_v34 = vld [vmem:[%s22350_s1 + $0x1dc] sm:$0xf] }
 0x645   :  { %v21745_v1 = vadd.f32 %v7891_v22, %v7889_v48  ;;  %v7763_v7 = vpop.f32.mrf.mxu3  ;;  %v12930_v48 = vor.u32 %v14205_v36, %v12927_v39  ;;  %v12893_v22 = vld [vmem:[%s22350_s1 + $0x110] sm:$0xf]  ;;  %v13151_v44 = vld [vmem:[%s22350_s1 + $0x330] sm:$0xf0]  ;;  %v12999_v53 = vld [vmem:[%s22350_s1 + $0x1f8] sm:$0xf0] }
 0x646   :  { %v14273_v7 = vld [vmem:[%s22350_s1 + $0x36c] sm:$0xf0]  ;;  %v12894_v57 = vor.u32 %v14201_v12, %v12893_v22  ;;  %v13119_v37 = vld [vmem:[%s22350_s1 + $0x2f0] sm:$0xf0] }
 0x647   :  { %14511 = vtanh.f32 %v21745_v1  ;;  %v14265_v54 = vld [vmem:[%s22350_s1 + $0x32c] sm:$0xf0]  ;;  %v14173_v21 = vld [vmem:[%s22350_s1 + $0x54] sm:$0xf] }
 0x648   :  { %v14510_v24 = vpop.eup %14509  ;;  %v12829_v10 = vld [vmem:[%s22350_s1 + $0x90] sm:$0xf]  ;;  %v13150_v63 = vor.u32 %v14265_v54, %v13149_v52  ;;  %v12799_v9 = vld [vmem:[%s22350_s1 + $0x70] sm:$0xf0]  ;;  %v14286_v52 = vld [vmem:[%s22350_s1 + $0x3dc] sm:$0xf] }
 0x649   :  { %v7892_v16 = vmul.f32 %v14510_v24, %v7825_v11  ;;  %v14193_v24 = vld [vmem:[%s22350_s1 + $0xec] sm:$0xf0]  ;;  %v12863_v11 = vld [vmem:[%s22350_s1 + $0xf0] sm:$0xf0]  ;;  %v12802_v25 = vor.u32 %v14173_v21, %v12799_v9  ;;  %v13255_v54 = vld [vmem:[%s22350_s1 + $0x3f8] sm:$0xf0] }
 0x64a   :  { %v12862_v47 = vor.u32 %v14193_v24, %v12861_v6  ;;  %v12866_v42 = vor.u32 %v14189_v51, %v12863_v11  ;;  %v13085_v29 = vld [vmem:[%s22350_s1 + $0x290] sm:$0xf]  ;;  %v14165_v36 = vld [vmem:[%s22350_s1 + $0x14] sm:$0xf]  ;;  %v14198_v21 = vld [vmem:[%s22350_s1 + $0x11c] sm:$0xf] }
 0x64b   :  { %v21759_v60 = vadd.f32 %v7892_v16, %v7890_v43  ;;  %v13182_v43 = vor.u32 %v14273_v7, %v13181_v49  ;;  %v13186_v16 = vor.u32 %v14269_v8, %v13183_v5  ;;  %v14169_v23 = vld [vmem:[%s22350_s1 + $0x2c] sm:$0xf0]  ;;  %v12767_v39 = vld [vmem:[%s22350_s1 + $0x30] sm:$0xf0]  ;;  %v12965_v49 = vld [vmem:[%s22350_s1 + $0x198] sm:$0xf] }
 0x64c   :  { %v14237_v22 = vld [vmem:[%s22350_s1 + $0x254] sm:$0xf]  ;;  %v12770_v15 = vor.u32 %v14165_v36, %v12767_v39  ;;  %v14218_v7 = vld [vmem:[%s22350_s1 + $0x1b4] sm:$0xf0]  ;;  %v14214_v8 = vld [vmem:[%s22350_s1 + $0x19c] sm:$0xf] }
 0x64d   :  { %v14512_v28 = vpop.eup %14511  ;;  %14513 = vtanh.f32 %v21759_v60  ;;  %v13055_v12 = vld [vmem:[%s22350_s1 + $0x270] sm:$0xf0]  ;;  %v13021_v6 = vld [vmem:[%s22350_s1 + $0x210] sm:$0xf]  ;;  %v12903_v9 = vld [vmem:[%s22350_s1 + $0x138] sm:$0xf0] }
 0x64e   :  { %v7897_v19 = vmul.f32 %v14512_v28, %v7870_v50  ;;  %v14185_v28 = vld [vmem:[%s22350_s1 + $0xac] sm:$0xf0]  ;;  %v14181_v50 = vld [vmem:[%s22350_s1 + $0x94] sm:$0xf]  ;;  %v14190_v36 = vld [vmem:[%s22350_s1 + $0xdc] sm:$0xf] }
 0x64f   :  { %v12830_v46 = vor.u32 %v14185_v28, %v12829_v10  ;;  %v12834_v2 = vor.u32 %v14181_v50, %v12831_v18  ;;  %v14233_v24 = vld [vmem:[%s22350_s1 + $0x22c] sm:$0xf0]  ;;  %v14229_v51 = vld [vmem:[%s22350_s1 + $0x214] sm:$0xf]  ;;  %v14210_v28 = vld [vmem:[%s22350_s1 + $0x174] sm:$0xf0] }
 0x650   :  { %12737 = vst [vmem:[%s22354_s4 + $0x60] sm:$0xff] %v7897_v19  ;;  %v21795_v61 = vpack.c.bf16 %v7897_v19, %v7897_v19  ;;  %v13154_v19 = vor.u32 %v14261_v33, %v13151_v44  ;;  %v13023_v11 = vld [vmem:[%s22350_s1 + $0x230] sm:$0xf0]  ;;  %v12966_v33 = vor.u32 %v14218_v7, %v12965_v49  ;;  %v14206_v50 = vld [vmem:[%s22350_s1 + $0x15c] sm:$0xf] }
 0x651   :  { %v13026_v10 = vor.u32 %v14229_v51, %v13023_v11  ;;  %v12935_v18 = vld [vmem:[%s22350_s1 + $0x178] sm:$0xf0]  ;;  %v13125_v49 = vld [vmem:[%s22350_s1 + $0x2d8] sm:$0xf] }
 0x652   :  { %8689 = vmatmul.bf16.vlgmr.msra.gmra.mxu0 %v21795_v61  ;;  %8715 = vmatmul.bf16.vlgmr.msra.gmra.mxu2 %v21795_v61  ;;  %v12871_v39 = vld [vmem:[%s22350_s1 + $0xf8] sm:$0xf0]  ;;  %v14258_v7 = vld [vmem:[%s22350_s1 + $0x2f4] sm:$0xf0] }
 0x653   :  { %v14514_v4 = vpop.eup %14513  ;;  %8785 = vmatpush.bf16.msra.mxu0 %v12990_v45  ;;  %8811 = vmatpush.bf16.msra.mxu2 %v12994_v35  ;;  %v14257_v45 = vld [vmem:[%s22350_s1 + $0x2ec] sm:$0xf0]  ;;  %v14253_v35 = vld [vmem:[%s22350_s1 + $0x2d4] sm:$0xf]  ;;  %v14174_v51 = vld [vmem:[%s22350_s1 + $0x5c] sm:$0xf] }
 0x654   :  { %v7898_v13 = vmul.f32 %v14514_v4, %v7885_v17  ;;  %v13118_v58 = vor.u32 %v14257_v45, %v13117_v20  ;;  %v13122_v3 = vor.u32 %v14253_v35, %v13119_v37  ;;  %v14249_v4 = vld [vmem:[%s22350_s1 + $0x2ac] sm:$0xf0]  ;;  %v14245_v17 = vld [vmem:[%s22350_s1 + $0x294] sm:$0xf]  ;;  %v13221_v20 = vld [vmem:[%s22350_s1 + $0x398] sm:$0xf] }
 0x655   :  { %v13086_v62 = vor.u32 %v14249_v4, %v13085_v29  ;;  %v14282_v45 = vld [vmem:[%s22350_s1 + $0x3b4] sm:$0xf0]  ;;  %v14278_v35 = vld [vmem:[%s22350_s1 + $0x39c] sm:$0xf] }
 0x656   :  { %12738 = vst [vmem:[%s22354_s4 + $0x68] sm:$0xff] %v7898_v13  ;;  %v21838_v59 = vpack.c.bf16 %v7898_v13, %v7898_v13  ;;  %v12765_v13 = vld [vmem:[%s22350_s1 + $0x10] sm:$0xf]  ;;  %v13223_v37 = vld [vmem:[%s22350_s1 + $0x3b8] sm:$0xf0] }
 0x657   :  { %8786 = vmatpush.bf16.msra.mxu0 %v12958_v38  ;;  %8812 = vmatpush.bf16.msra.mxu2 %v12962_v26  ;;  %v13087_v38 = vld [vmem:[%s22350_s1 + $0x2b0] sm:$0xf0]  ;;  %v12798_v26 = vor.u32 %v14177_v30, %v12797_v32  ;;  %v12766_v56 = vor.u32 %v14169_v23, %v12765_v13  ;;  %v12901_v32 = vld [vmem:[%s22350_s1 + $0x118] sm:$0xf]  ;;  %v12807_v11 = vld [vmem:[%s22350_s1 + $0x78] sm:$0xf0] }
 0x658   :  { %8702 = vmatmul.bf16.vlgmr.msra.gmra.mxu1 %v21838_v59  ;;  %8728 = vmatmul.bf16.vlgmr.msra.gmra.mxu3 %v21838_v59  ;;  %v13090_v41 = vor.u32 %v14245_v17, %v13087_v38  ;;  %v14202_v30 = vld [vmem:[%s22350_s1 + $0x134] sm:$0xf0]  ;;  %v14270_v17 = vld [vmem:[%s22350_s1 + $0x35c] sm:$0xf] }
 0x659   :  { %8798 = vmatpush.bf16.msra.mxu1 %v13246_v14  ;;  %8824 = vmatpush.bf16.msra.mxu3 %v13250_v55  ;;  %v12997_v14 = vld [vmem:[%s22350_s1 + $0x1d8] sm:$0xf]  ;;  %v13191_v38 = vld [vmem:[%s22350_s1 + $0x378] sm:$0xf0] }
 0x65a   :  { %v14226_v55 = vld [vmem:[%s22350_s1 + $0x1f4] sm:$0xf0] }
 0x65b   :  { %8787 = vmatpush.bf16.msra.mxu0 %v12926_v27  ;;  %8813 = vmatpush.bf16.msra.mxu2 %v12930_v48  ;;  %v13053_v27 = vld [vmem:[%s22350_s1 + $0x250] sm:$0xf]  ;;  %v13189_v29 = vld [vmem:[%s22350_s1 + $0x358] sm:$0xf] }
 0x65c   :  { %v14241_v48 = vld [vmem:[%s22350_s1 + $0x26c] sm:$0xf0]  ;;  %v14274_v4 = vld [vmem:[%s22350_s1 + $0x374] sm:$0xf0] }
 0x65d   :  { %8799 = vmatpush.bf16.msra.mxu1 %v13214_v31  ;;  %8825 = vmatpush.bf16.msra.mxu3 %v13218_v0  ;;  %v12998_v31 = vor.u32 %v14226_v55, %v12997_v14  ;;  %v13002_v0 = vor.u32 %v14222_v34, %v12999_v53  ;;  %v13054_v5 = vor.u32 %v14241_v48, %v13053_v27  ;;  %v12869_v13 = vld [vmem:[%s22350_s1 + $0xd8] sm:$0xf]  ;;  %v14262_v34 = vld [vmem:[%s22350_s1 + $0x31c] sm:$0xf] }
 0x65e   :  { %v14194_v23 = vld [vmem:[%s22350_s1 + $0xf4] sm:$0xf0]  ;;  %v13190_v14 = vor.u32 %v14274_v4, %v13189_v29  ;;  %v13194_v55 = vor.u32 %v14270_v17, %v13191_v38  ;;  %v13159_v53 = vld [vmem:[%s22350_s1 + $0x338] sm:$0xf0]  ;;  %v12874_v48 = vor.u32 %v14190_v36, %v12871_v39 }
 0x65f   :  { %8788 = vmatpush.bf16.msra.mxu0 %v12894_v57  ;;  %8814 = vmatpush.bf16.msra.mxu2 %v12898_v40  ;;  %v13058_v57 = vor.u32 %v14237_v22, %v13055_v12  ;;  %v12967_v40 = vld [vmem:[%s22350_s1 + $0x1b8] sm:$0xf0]  ;;  %v12870_v27 = vor.u32 %v14194_v23, %v12869_v13  ;;  %v12837_v22 = vld [vmem:[%s22350_s1 + $0x98] sm:$0xf] }
 0x660   :  { %v12970_v44 = vor.u32 %v14214_v8, %v12967_v40  ;;  %v14186_v12 = vld [vmem:[%s22350_s1 + $0xb4] sm:$0xf0]  ;;  %v14254_v8 = vld [vmem:[%s22350_s1 + $0x2dc] sm:$0xf] }
 0x661   :  { %8800 = vmatpush.bf16.msra.mxu1 %v13182_v43  ;;  %8826 = vmatpush.bf16.msra.mxu3 %v13186_v16  ;;  %v13253_v43 = vld [vmem:[%s22350_s1 + $0x3d8] sm:$0xf] }
 0x662   :  { %8741 = vmatmul.bf16.vlgmr.msrb.gmra.mxu0 %v21795_v61  ;;  %8767 = vmatmul.bf16.vlgmr.msrb.gmra.mxu2 %v21795_v61  ;;  %v14290_v16 = vld [vmem:[%s22350_s1 + $0x3f4] sm:$0xf0] }
 0x663   :  { %8789 = vmatpush.bf16.msra.mxu0 %v12862_v47  ;;  %8815 = vmatpush.bf16.msra.mxu2 %v12866_v42  ;;  %v12933_v47 = vld [vmem:[%s22350_s1 + $0x158] sm:$0xf]  ;;  %v13022_v42 = vor.u32 %v14233_v24, %v13021_v6 }
 0x664   :  { %v12805_v6 = vld [vmem:[%s22350_s1 + $0x58] sm:$0xf] }
 0x665   :  { %8801 = vmatpush.bf16.msra.mxu1 %v13150_v63  ;;  %8827 = vmatpush.bf16.msra.mxu3 %v13154_v19  ;;  %v13254_v63 = vor.u32 %v14290_v16, %v13253_v43  ;;  %v13258_v19 = vor.u32 %v14286_v52, %v13255_v54  ;;  %v14178_v24 = vld [vmem:[%s22350_s1 + $0x74] sm:$0xf0]  ;;  %v13126_v43 = vor.u32 %v14258_v7, %v13125_v49  ;;  %v12740_v7 = vld [vmem:[%s22352_s0 + $0x1c8] sm:$0xff] }
 0x666   :  { %v13093_v52 = vld [vmem:[%s22350_s1 + $0x298] sm:$0xf] }
 0x667   :  { %8790 = vmatpush.bf16.msra.mxu0 %v12830_v46  ;;  %8816 = vmatpush.bf16.msra.mxu2 %v12834_v2  ;;  %v12934_v46 = vor.u32 %v14210_v28, %v12933_v47  ;;  %v12938_v2 = vor.u32 %v14206_v50, %v12935_v18  ;;  %v14250_v54 = vld [vmem:[%s22350_s1 + $0x2b4] sm:$0xf0]  ;;  %v12806_v47 = vor.u32 %v14178_v24, %v12805_v6  ;;  %v14166_v50 = vld [vmem:[%s22350_s1 + $0x1c] sm:$0xf] }
 0x668   :  { %8754 = vmatmul.bf16.vlgmr.msrb.gmra.mxu1 %v21838_v59  ;;  %8780 = vmatmul.bf16.vlgmr.msrb.gmra.mxu3 %v21838_v59  ;;  %v14170_v28 = vld [vmem:[%s22350_s1 + $0x34] sm:$0xf0]  ;;  %v12775_v18 = vld [vmem:[%s22350_s1 + $0x38] sm:$0xf0] }
 0x669   :  { %8802 = vmatpush.bf16.msra.mxu1 %v13118_v58  ;;  %8828 = vmatpush.bf16.msra.mxu3 %v13122_v3  ;;  %v13222_v58 = vor.u32 %v14282_v45, %v13221_v20  ;;  %v13226_v3 = vor.u32 %v14278_v35, %v13223_v37  ;;  %v13061_v20 = vld [vmem:[%s22350_s1 + $0x258] sm:$0xf]  ;;  %v14238_v35 = vld [vmem:[%s22350_s1 + $0x25c] sm:$0xf] }
 0x66a   :  { %v14242_v45 = vld [vmem:[%s22350_s1 + $0x274] sm:$0xf0]  ;;  %v13063_v37 = vld [vmem:[%s22350_s1 + $0x278] sm:$0xf0] }
 0x66b   :  { %8791 = vmatpush.bf16.msra.mxu0 %v12798_v26  ;;  %8817 = vmatpush.bf16.msra.mxu2 %v12802_v25  ;;  %v12902_v26 = vor.u32 %v14202_v30, %v12901_v32  ;;  %v12906_v25 = vor.u32 %v14198_v21, %v12903_v9  ;;  %v13062_v32 = vor.u32 %v14242_v45, %v13061_v20  ;;  %v13029_v21 = vld [vmem:[%s22350_s1 + $0x218] sm:$0xf] }
 0x66c   :  { %v13066_v30 = vor.u32 %v14238_v35, %v13063_v37  ;;  %v14234_v9 = vld [vmem:[%s22350_s1 + $0x234] sm:$0xf0] }
 0x66d   :  { %8803 = vmatpush.bf16.msra.mxu1 %v13086_v62  ;;  %8829 = vmatpush.bf16.msra.mxu3 %v13090_v41  ;;  %v13157_v62 = vld [vmem:[%s22350_s1 + $0x318] sm:$0xf]  ;;  %v13030_v29 = vor.u32 %v14234_v9, %v13029_v21 }
 0x66e   :  { %v14266_v41 = vld [vmem:[%s22350_s1 + $0x334] sm:$0xf0] }
 0x66f   :  { %8792 = vmatpush.bf16.msra.mxu0 %v12766_v56  ;;  %8818 = vmatpush.bf16.msra.mxu2 %v12770_v15  ;;  %v14182_v56 = vld [vmem:[%s22350_s1 + $0x9c] sm:$0xf] }
 0x670   :  { %v12839_v15 = vld [vmem:[%s22350_s1 + $0xb8] sm:$0xf0] }
 0x671   :  { %8804 = vmatpush.bf16.msra.mxu1 %v13054_v5  ;;  %8830 = vmatpush.bf16.msra.mxu3 %v13058_v57  ;;  %v13127_v5 = vld [vmem:[%s22350_s1 + $0x2f8] sm:$0xf0]  ;;  %v12838_v57 = vor.u32 %v14186_v12, %v12837_v22  ;;  %v12842_v40 = vor.u32 %v14182_v56, %v12839_v15 }
 0x672   :  { %8793 = vmatmul.bf16.vlgmr.msra.gmra.mxu0 %v21795_v61  ;;  %8819 = vmatmul.bf16.vlgmr.msra.gmra.mxu2 %v21795_v61  ;;  %v13130_v16 = vor.u32 %v14254_v8, %v13127_v5  ;;  %v12742_v12 = vld [vmem:[%s22352_s0 + $0x1d8] sm:$0xff] }
 0x673   :  { %8837 = vmatpush.bf16.msrb.mxu0 %v12998_v31  ;;  %8863 = vmatpush.bf16.msrb.mxu2 %v13002_v0  ;;  %v13158_v31 = vor.u32 %v14266_v41, %v13157_v62  ;;  %v13162_v0 = vor.u32 %v14262_v34, %v13159_v53 }
 0x675   :  { %8805 = vmatpush.bf16.msra.mxu1 %v13022_v42  ;;  %8831 = vmatpush.bf16.msra.mxu3 %v13026_v10  ;;  %v12810_v42 = vor.u32 %v14174_v51, %v12807_v11  ;;  %v12773_v10 = vld [vmem:[%s22350_s1 + $0x18] sm:$0xf] }
 0x677   :  { %8838 = vmatpush.bf16.msrb.mxu0 %v12966_v33  ;;  %8864 = vmatpush.bf16.msrb.mxu2 %v12970_v44  ;;  %v14246_v33 = vld [vmem:[%s22350_s1 + $0x29c] sm:$0xf] }
 0x678   :  { %8806 = vmatmul.bf16.vlgmr.msra.gmra.mxu1 %v21838_v59  ;;  %8832 = vmatmul.bf16.vlgmr.msra.gmra.mxu3 %v21838_v59  ;;  %v13095_v44 = vld [vmem:[%s22350_s1 + $0x2b8] sm:$0xf0] }
 0x679   :  { %8850 = vmatpush.bf16.msrb.mxu1 %v13254_v63  ;;  %8876 = vmatpush.bf16.msrb.mxu3 %v13258_v19  ;;  %v13094_v63 = vor.u32 %v14250_v54, %v13093_v52  ;;  %v13098_v19 = vor.u32 %v14246_v33, %v13095_v44 }
 0x67b   :  { %8839 = vmatpush.bf16.msrb.mxu0 %v12934_v46  ;;  %8865 = vmatpush.bf16.msrb.mxu2 %v12938_v2  ;;  %v12774_v46 = vor.u32 %v14170_v28, %v12773_v10  ;;  %v12778_v2 = vor.u32 %v14166_v50, %v12775_v18  ;;  %v12744_v28 = vld [vmem:[%s22352_s0 + $0x1e8] sm:$0xff] }
 0x67d   :  { %8851 = vmatpush.bf16.msrb.mxu1 %v13222_v58  ;;  %8877 = vmatpush.bf16.msrb.mxu3 %v13226_v3  ;;  %v14230_v58 = vld [vmem:[%s22350_s1 + $0x21c] sm:$0xf] }
 0x67e   :  { %v13031_v3 = vld [vmem:[%s22350_s1 + $0x238] sm:$0xf0] }
 0x67f   :  { %8840 = vmatpush.bf16.msrb.mxu0 %v12902_v26  ;;  %8866 = vmatpush.bf16.msrb.mxu2 %v12906_v25  ;;  %v13034_v4 = vor.u32 %v14230_v58, %v13031_v3 }
 0x681   :  { %8852 = vmatpush.bf16.msrb.mxu1 %v13190_v14  ;;  %8878 = vmatpush.bf16.msrb.mxu3 %v13194_v55 }
 0x683   :  { %8841 = vmatpush.bf16.msrb.mxu0 %v12870_v27  ;;  %8867 = vmatpush.bf16.msrb.mxu2 %v12874_v48 }
 0x685   :  { %8853 = vmatpush.bf16.msrb.mxu1 %v13158_v31  ;;  %8879 = vmatpush.bf16.msrb.mxu3 %v13162_v0 }
 0x687   :  { %8842 = vmatpush.bf16.msrb.mxu0 %v12838_v57  ;;  %8868 = vmatpush.bf16.msrb.mxu2 %v12842_v40 }
 0x689   :  { %8854 = vmatpush.bf16.msrb.mxu1 %v13126_v43  ;;  %8880 = vmatpush.bf16.msrb.mxu3 %v13130_v16  ;;  %v12743_v43 = vld [vmem:[%s22352_s0 + $0x1e0] sm:$0xff] }
 0x68b   :  { %8843 = vmatpush.bf16.msrb.mxu0 %v12806_v47  ;;  %8869 = vmatpush.bf16.msrb.mxu2 %v12810_v42 }
 0x68d   :  { %8855 = vmatpush.bf16.msrb.mxu1 %v13094_v63  ;;  %8881 = vmatpush.bf16.msrb.mxu3 %v13098_v19 }
 0x68f   :  { %8844 = vmatpush.bf16.msrb.mxu0 %v12774_v46  ;;  %8870 = vmatpush.bf16.msrb.mxu2 %v12778_v2 }
 0x691   :  { %8856 = vmatpush.bf16.msrb.mxu1 %v13062_v32  ;;  %8882 = vmatpush.bf16.msrb.mxu3 %v13066_v30 }
 0x692   :  { %8845 = vmatmul.bf16.vlgmr.msrb.gmra.mxu0 %v21795_v61  ;;  %8871 = vmatmul.bf16.vlgmr.msrb.gmra.mxu2 %v21795_v61  ;;  %v12741_v61 = vld [vmem:[%s22352_s0 + $0x1d0] sm:$0xff] }
 0x695   :  { %8857 = vmatpush.bf16.msrb.mxu1 %v13030_v29  ;;  %8883 = vmatpush.bf16.msrb.mxu3 %v13034_v4 }
 0x698   :  { %8858 = vmatmul.bf16.vlgmr.msrb.gmra.mxu1 %v21838_v59  ;;  %8884 = vmatmul.bf16.vlgmr.msrb.gmra.mxu3 %v21838_v59  ;;  %v12739_v59 = vld [vmem:[%s22352_s0 + $0x1c0] sm:$0xff] }
 0x6cf   :  { %v8690_v17 = vpop.f32.mrf.mxu0 }
 0x6d5   :  { %v8703_v38 = vpop.f32.mrf.mxu1  ;;  %v8716_v26 = vpop.f32.mrf.mxu2 }
 0x6d6   :  { %v8704_v53 = vadd.f32 %v8703_v38, %v8690_v17 }
 0x6d7   :  { %v8692_v25 = vpop.f32.mrf.mxu0 }
 0x6d8   :  { %v8889_v22 = vadd.f32 %v12739_v59, %v8704_v53 }
 0x6da   :  { %v13259_v57 = vmul.f32 -1.442695, %v8889_v22 }
 0x6db   :  { %v8729_v13 = vpop.f32.mrf.mxu3 }
 0x6dc   :  { %v8730_v49 = vadd.f32 %v8729_v13, %v8716_v26 }
 0x6dd   :  { %v8705_v23 = vpop.f32.mrf.mxu1  ;;  %v8718_v36 = vpop.f32.mrf.mxu2 }
 0x6de   :  { %v8890_v40 = vadd.f32 %v12740_v7, %v8730_v49 }
 0x6df   :  { %v8742_v39 = vpop.f32.mrf.mxu0 }
 0x6e0   :  { %v13260_v11 = vmul.f32 -1.442695, %v8890_v40 }
 0x6e3   :  { %v8731_v14 = vpop.f32.mrf.mxu3 }
 0x6e5   :  { %v8755_v55 = vpop.f32.mrf.mxu1  ;;  %v8768_v62 = vpop.f32.mrf.mxu2 }
 0x6e6   :  { %v8756_v41 = vadd.f32 %v8755_v55, %v8742_v39 }
 0x6e7   :  { %v8744_v34 = vpop.f32.mrf.mxu0 }
 0x6e8   :  { %v8891_v27 = vadd.f32 %v12741_v61, %v8756_v41  ;;  %v12745_v41 = vld [vmem:[%s22352_s0 + $0x1f0] sm:$0xff] }
 0x6ea   :  { %v13261_v15 = vmul.f32 -1.442695, %v8891_v27 }
 0x6eb   :  { %v8781_v48 = vpop.f32.mrf.mxu3 }
 0x6ec   :  { %v8782_v56 = vadd.f32 %v8781_v48, %v8768_v62  ;;  %14515 = vpow2.f32 %v13261_v15 }
 0x6ed   :  { %v8757_v31 = vpop.f32.mrf.mxu1  ;;  %v8770_v0 = vpop.f32.mrf.mxu2  ;;  %14517 = vpow2.f32 %v13259_v57 }
 0x6ee   :  { %v8892_v8 = vadd.f32 %v12742_v12, %v8782_v56 }
 0x6ef   :  { %v8794_v5 = vpop.f32.mrf.mxu0 }
 0x6f0   :  { %v13262_v6 = vmul.f32 -1.442695, %v8892_v8 }
 0x6f2   :  { %v14516_v52 = vpop.eup %14515  ;;  %14519 = vpow2.f32 %v13262_v6 }
 0x6f3   :  { %v8783_v24 = vpop.f32.mrf.mxu3  ;;  %v14518_v47 = vpop.eup %14517  ;;  %14521 = vpow2.f32 %v13260_v11  ;;  %v22199_v42 = vadd.f32 1.0, %v14516_v52  ;;  %v12746_v11 = vld [vmem:[%s22352_s0 + $0x1f8] sm:$0xff] }
 0x6f4   :  { %v22204_v63 = vadd.f32 1.0, %v14518_v47 }
 0x6f5   :  { %v8820_v51 = vpop.f32.mrf.mxu2  ;;  %v8807_v16 = vpop.f32.mrf.mxu1  ;;  %14523 = vrcp.f32 %v22199_v42  ;;  %v8962_v31 = vand.u32 2147483648, %v22199_v42  ;;  %vm8956_vm10 = vweird.f32 %v22199_v42 }
 0x6f6   :  { %v8808_v54 = vadd.f32 %v8807_v16, %v8794_v5  ;;  %v8930_v48 = vand.u32 2147483647, %v22204_v63  ;;  %v8932_v12 = vand.u32 2147483648, %v22204_v63  ;;  %v8960_v5 = vand.u32 2147483647, %v22199_v42 }
 0x6f7   :  { %v8796_v33 = vpop.f32.mrf.mxu0  ;;  %vm8926_vm12 = vweird.f32 %v22204_v63  ;;  %v8963_v52 = vor.u32 1.1754944e-38, %v8962_v31 }
 0x6f8   :  { %v8893_v44 = vadd.f32 %v12743_v43, %v8808_v54  ;;  %v14520_v18 = vpop.eup %14519  ;;  %vm22262_vm13 = vcmp.eq.f32.partialorder %v8930_v48, 8.507059e+37  ;;  %v8933_v24 = vor.u32 1.1754944e-38, %v8932_v12  ;;  %vm8961_vm1 = vcmp.eq.f32.partialorder %v8960_v5, 8.507059e+37 }
 0x6f9   :  { %v14522_v37 = vpop.eup %14521  ;;  %v22207_v46 = vadd.f32 1.0, %v14520_v18 }
 0x6fa   :  { %v13263_v10 = vmul.f32 -1.442695, %v8893_v44  ;;  %v22210_v32 = vadd.f32 1.0, %v14522_v37 }
 0x6fb   :  { %v8833_v50 = vpop.f32.mrf.mxu3  ;;  %v22212_v30 = vpop.eup %14523  ;;  %vm8971_vm2 = vweird.f32 %v22207_v46 }
 0x6fc   :  { %v8834_v19 = vadd.f32 %v8833_v50, %v8820_v51  ;;  %14525 = vpow2.f32 %v13263_v10  ;;  %v8952_v3 = vmul.f32 %v22212_v30, %v22199_v42  ;;  %vm8957_vm8 = vweird.f32 %v22212_v30 }
 0x6fd   :  { %v8822_v20 = vpop.f32.mrf.mxu2  ;;  %v8809_v45 = vpop.f32.mrf.mxu1  ;;  %14527 = vrcp.f32 %v22204_v63  ;;  %vm22255_vm11 = vmor %vm8956_vm10, %vm8957_vm8  ;;  %vm8941_vm15 = vweird.f32 %v22210_v32  ;;  %v8977_v50 = vand.u32 2147483648, %v22207_v46 }
 0x6fe   :  { %v8894_v35 = vadd.f32 %v12744_v28, %v8834_v19  ;;  %14529 = vrcp.f32 %v22207_v46  ;;  %v8953_v26 = vsub.f32 1.0, %v8952_v3  ;;  %v8975_v45 = vand.u32 2147483647, %v22207_v46 }
 0x700   :  { %v13264_v2 = vmul.f32 -1.442695, %v8894_v35  ;;  %v8954_v55 = vmul.f32 %v22212_v30, %v8953_v26  ;;  %vm8976_vm6 = vcmp.eq.f32.partialorder %v8975_v45, 8.507059e+37 }
 0x702   :  { %v14526_v9 = vpop.eup %14525  ;;  %14531 = vpow2.f32 %v13264_v2  ;;  %v8955_v56 = vadd.f32 %v22212_v30, %v8954_v55 }
 0x703   :  { %v8835_v21 = vpop.f32.mrf.mxu3  ;;  %v22215_v58 = vpop.eup %14527  ;;  %14533 = vrcp.f32 %v22210_v32  ;;  %v22220_v29 = vadd.f32 1.0, %v14526_v9 }
 0x704   :  { %v22222_v4 = vpop.eup %14529  ;;  %v8922_v17 = vmul.f32 %v22215_v58, %v22204_v63  ;;  %vm8927_vm9 = vweird.f32 %v22215_v58  ;;  %v8959_v51 = vsel %vm22255_vm11, %v22212_v30, %v8955_v56  ;;  %v8947_v21 = vand.u32 2147483648, %v22210_v32 }
 0x705   :  { %14535 = vrcp.f32 %v22220_v29  ;;  %v8967_v36 = vmul.f32 %v22222_v4, %v22207_v46  ;;  %vm22275_vm14 = vmor %vm8926_vm12, %vm8927_vm9  ;;  %vm8972_vm0 = vweird.f32 %v22222_v4  ;;  %v8964_v63 = vsel %vm8961_vm1, %v8963_v52, %v8959_v51 }
 0x706   :  { %v8923_v23 = vsub.f32 1.0, %v8922_v17  ;;  %vm22294_vm4 = vmor %vm8971_vm2, %vm8972_vm0  ;;  %v9013_v9 = vmul.f32 %v8964_v63, %v21745_v1  ;;  %v8945_v46 = vand.u32 2147483647, %v22210_v32  ;;  %v8978_v17 = vor.u32 1.1754944e-38, %v8977_v50 }
 0x707   :  { %v8968_v61 = vsub.f32 1.0, %v8967_v36  ;;  %v8992_v55 = vand.u32 2147483648, %v22220_v29  ;;  %vm8986_vm9 = vweird.f32 %v22220_v29 }
 0x708   :  { %v14532_v38 = vpop.eup %14531  ;;  %v8924_v53 = vmul.f32 %v22215_v58, %v8923_v23  ;;  %vm8946_vm8 = vcmp.eq.f32.partialorder %v8945_v46, 8.507059e+37 }
 0x709   :  { %v22227_v13 = vpop.eup %14533  ;;  %v22231_v39 = vadd.f32 1.0, %v14532_v38  ;;  %v8969_v7 = vmul.f32 %v22222_v4, %v8968_v61 }
 0x70a   :  { %v8937_v14 = vmul.f32 %v22227_v13, %v22210_v32  ;;  %v8925_v8 = vadd.f32 %v22215_v58, %v8924_v53  ;;  %vm8942_vm3 = vweird.f32 %v22227_v13 }
 0x70b   :  { %v22236_v62 = vpop.eup %14535  ;;  %14537 = vrcp.f32 %v22231_v39  ;;  %v8970_v42 = vadd.f32 %v22222_v4, %v8969_v7  ;;  %vm22311_vm5 = vmor %vm8941_vm15, %vm8942_vm3 }
 0x70c   :  { %v8938_v22 = vsub.f32 1.0, %v8937_v14  ;;  %v8982_v0 = vmul.f32 %v22236_v62, %v22220_v29  ;;  %v8929_v47 = vsel %vm22275_vm14, %v22215_v58, %v8925_v8  ;;  %vm8987_vm7 = vweird.f32 %v22236_v62 }
 0x70d   :  { %v8934_v30 = vsel %vm22262_vm13, %v8933_v24, %v8929_v47  ;;  %v8974_v3 = vsel %vm22294_vm4, %v22222_v4, %v8970_v42  ;;  %v8948_v4 = vor.u32 1.1754944e-38, %v8947_v21  ;;  %vm8988_vm10 = vmor %vm8986_vm9, %vm8987_vm7  ;;  %vm9001_vm13 = vweird.f32 %v22231_v39 }
 0x70e   :  { %v8939_v16 = vmul.f32 %v22227_v13, %v8938_v22  ;;  %v8983_v54 = vsub.f32 1.0, %v8982_v0  ;;  %v8979_v14 = vsel %vm8976_vm6, %v8978_v17, %v8974_v3 }
 0x70f   :  { %v8846_v25 = vpop.f32.mrf.mxu0 }
 0x710   :  { %v8940_v20 = vadd.f32 %v22227_v13, %v8939_v16  ;;  %v8984_v2 = vmul.f32 %v22236_v62, %v8983_v54 }
 0x711   :  { %v22260_v40 = vpop.eup %14537 }
 0x712   :  { %v8997_v18 = vmul.f32 %v22260_v40, %v22231_v39  ;;  %v8944_v1 = vsel %vm22311_vm5, %v22227_v13, %v8940_v20  ;;  %v8985_v36 = vadd.f32 %v22236_v62, %v8984_v2  ;;  %v8990_v13 = vand.u32 2147483647, %v22220_v29 }
 0x713   :  { %vm9002_vm12 = vweird.f32 %v22260_v40  ;;  %v9007_v29 = vand.u32 2147483648, %v22231_v39 }
 0x714   :  { %v8998_v38 = vsub.f32 1.0, %v8997_v18  ;;  %vm8991_vm11 = vcmp.eq.f32.partialorder %v8990_v13, 8.507059e+37  ;;  %vm9003_vm14 = vmor %vm9001_vm13, %vm9002_vm12 }
 0x715   :  { %v8859_v34 = vpop.f32.mrf.mxu1  ;;  %v8872_v59 = vpop.f32.mrf.mxu2  ;;  %v9008_v31 = vor.u32 1.1754944e-38, %v9007_v29 }
 0x716   :  { %v8860_v27 = vadd.f32 %v8859_v34, %v8846_v25  ;;  %v8999_v61 = vmul.f32 %v22260_v40, %v8998_v38  ;;  %v9014_v34 = vmul.f32 %v8979_v14, %v21759_v60  ;;  %v9005_v60 = vand.u32 2147483647, %v22231_v39 }
 0x717   :  { %v8848_v15 = vpop.f32.mrf.mxu0 }
 0x718   :  { %v8895_v49 = vadd.f32 %v12745_v41, %v8860_v27  ;;  %v8949_v41 = vsel %vm8946_vm8, %v8948_v4, %v8944_v1  ;;  %v8993_v27 = vor.u32 1.1754944e-38, %v8992_v55  ;;  %v9000_v22 = vadd.f32 %v22260_v40, %v8999_v61 }
 0x719   :  { %vm9006_vm15 = vcmp.eq.f32.partialorder %v9005_v60, 8.507059e+37 }
 0x71a   :  { %14539 = vtanh.f32 %v8895_v49  ;;  %v9004_v15 = vsel %vm9003_vm14, %v22260_v40, %v9000_v22 }
 0x71b   :  { %v8885_v43 = vpop.f32.mrf.mxu3  ;;  %v9009_v49 = vsel %vm9006_vm15, %v9008_v31, %v9004_v15 }
 0x71c   :  { %v8886_v44 = vadd.f32 %v8885_v43, %v8872_v59  ;;  %v8989_v59 = vsel %vm8988_vm10, %v22236_v62, %v8985_v36 }
 0x71d   :  { %v8861_v10 = vpop.f32.mrf.mxu1  ;;  %v8874_v28 = vpop.f32.mrf.mxu2  ;;  %v8994_v56 = vsel %vm8991_vm11, %v8993_v27, %v8989_v59 }
 0x71e   :  { %v8896_v19 = vadd.f32 %v12746_v11, %v8886_v44 }
 0x720   :  { %v14540_v35 = vpop.eup %14539  ;;  %14541 = vtanh.f32 %v8896_v19 }
 0x721   :  { %v9015_v58 = vmul.f32 %v14540_v35, %v8934_v30 }
 0x723   :  { %v9017_v25 = vadd.f32 %v9015_v58, %v9013_v9  ;;  %v8887_v23 = vpop.f32.mrf.mxu3 }
 0x725   :  { %14543 = vtanh.f32 %v9017_v25  ;;  %9039 = vst [vmem:[%s22355_s6] sm:$0xff] %v9017_v25 }
 0x726   :  { %v14542_v32 = vpop.eup %14541 }
 0x727   :  { %v9016_v53 = vmul.f32 %v14542_v32, %v8949_v41 }
 0x729   :  { %v9018_v48 = vadd.f32 %v9016_v53, %v9014_v34 }
 0x72b   :  { %v14544_v12 = vpop.eup %14543  ;;  %14545 = vtanh.f32 %v9018_v48  ;;  %9040 = vst [vmem:[%s22355_s6 + $0x8] sm:$0xff] %v9018_v48 }
 0x72c   :  { %v9021_v62 = vmul.f32 %v14544_v12, %v8994_v56 }
 0x72e   :  { %13265 = vst [vmem:[%s22354_s4 + $0x70] sm:$0xff] %v9021_v62 }
 0x72f   :  { %9035 = vst [vmem:[%s22356_s5] sm:$0xff] %v9021_v62 }
 0x731   :  { %v14546_v0 = vpop.eup %14545 }
 0x732   :  { %v9022_v7 = vmul.f32 %v14546_v0, %v9009_v49 }
 0x734   :  { %13266 = vst [vmem:[%s22354_s4 + $0x78] sm:$0xff] %v9022_v7 }
 0x735   :  { %9036 = vst [vmem:[%s22356_s5 + $0x8] sm:$0xff] %v9022_v7 }

</bundles_post_ra>
